<compile_context>
chip_gen: v7x
topology: tpu7x:2x2x1
jax: 0.10.0
libtpu: 0.0.40
codegen_flags: <defaults>
</compile_context>

<pallas_src>
import functools

import jax
import jax.numpy as jnp
from jax.experimental import pallas as pl
from jax.experimental.pallas import tpu as pltpu

_VMEM_LIMIT = 48 * 1024 * 1024


def _round_up(x, m):
    return (x + m - 1) // m * m


def _apply_act(acc, activation):
    if activation == "relu":
        return jnp.maximum(acc, 0.0)
    if activation == "tanh":
        return jnp.tanh(acc)
    return acc


# ------------------------- plain matmul + activation -------------------------
# Used for layer 1 (1x1 latent -> 4x4 feature map): a single K step, no
# accumulator scratch, no K padding; direct fused-activation store.

def _matmul_act_kernel(a_ref, b_ref, o_ref, *, activation):
    acc = jnp.dot(a_ref[...], b_ref[...], preferred_element_type=jnp.float32)
    o_ref[...] = _apply_act(acc, activation).astype(o_ref.dtype)


def matmul_act(a, b, activation, out_dtype):
    """act(a @ b): bf16 operands, f32 accumulation, fused activation."""
    m, k = a.shape
    k2, n = b.shape
    assert k == k2
    a_bf = a.astype(jnp.bfloat16)
    b_bf = b.astype(jnp.bfloat16)

    if m <= 512:                       # single M tile, full-extent block (legal)
        tm, mt, m_pad, a_p = m, 1, m, a_bf
    else:                              # tile M only; K/N stay full-extent
        tm = 512
        m_pad = _round_up(m, tm)
        mt = m_pad // tm
        a_p = jnp.pad(a_bf, ((0, m_pad - m), (0, 0)))

    out = pl.pallas_call(
        functools.partial(_matmul_act_kernel, activation=activation),
        out_shape=jax.ShapeDtypeStruct((m_pad, n), out_dtype),
        grid_spec=pltpu.PrefetchScalarGridSpec(
            num_scalar_prefetch=0,
            grid=(mt,),
            in_specs=[
                pl.BlockSpec((tm, k), lambda i: (i, 0)),
                pl.BlockSpec((k, n), lambda i: (0, 0)),   # resident across grid
            ],
            out_specs=pl.BlockSpec((tm, n), lambda i: (i, 0)),
        ),
        compiler_params=pltpu.CompilerParams(
            dimension_semantics=("parallel",),
            vmem_limit_bytes=_VMEM_LIMIT),
        cost_estimate=pl.CostEstimate(
            flops=2 * m_pad * k * n, transcendentals=0,
            bytes_accessed=int(a_p.size * 2 + b_bf.size * 2
                               + m_pad * n * jnp.dtype(out_dtype).itemsize)),
    )(a_p, b_bf)
    return out[:m] if m_pad != m else out


# ------------------ stride-2 ConvTranspose2d as in-kernel conv ----------------

def _subpixel_weight(w):
    """(C_in, C_out, 4, 4) ConvTranspose2d weight -> (9*C_in, 4*C_out) matrix.

    Rows: the 9 taps of the equivalent 3x3 "same" conv (tap u*3+v, channels
    innermost).  Columns: output-pixel parity (ry, rx) then C_out
    (depth-to-space layout).  Built once per layer at trace time.
    """
    c_in, c_out = w.shape[0], w.shape[1]
    b9 = jnp.zeros((3, 3, c_in, 2, 2, c_out), w.dtype)
    for u in range(3):
        for v in range(3):
            for ry in range(2):
                for rx in range(2):
                    if 0 <= u - ry <= 1 and 0 <= v - rx <= 1:
                        ky = 3 - 2 * u + ry
                        kx = 3 - 2 * v + rx
                        b9 = b9.at[u, v, :, ry, rx, :].set(w[:, :, ky, kx])
    return b9.reshape(9 * c_in, 4 * c_out)


def _deconv_kernel(x_ref, w_ref, o_ref, *, h, w, activation):
    """One batch image per grid step.

    x_ref: ((h+3)*(w+2), c_in)  halo-padded image, spatially flattened (bf16)
    w_ref: (9, c_in, 4*c_out)   per-tap weight matrices (bf16)
    o_ref: (h*(w+2), 4*c_out)   flattened output; 2 garbage cols per row
                                (sliced off in the wrapper)
    """
    row = w + 2                      # flattened row stride of the padded image
    l = h * row                      # rows per tap matmul / output rows
    n_cols = o_ref.shape[-1]
    acc = jnp.zeros((l, n_cols), jnp.float32)
    for u in range(3):
        for v in range(3):
            off = u * row + v        # static -> contiguous 2D slice, no reshape
            acc = acc + jnp.dot(x_ref[off:off + l, :], w_ref[u * 3 + v],
                                preferred_element_type=jnp.float32)
    o_ref[...] = _apply_act(acc, activation).astype(o_ref.dtype)


def deconv4x4_s2_p1(x, w, activation, out_dtype):
    """ConvTranspose2d(k=4, stride=2, pad=1, bias=False) + activation, NHWC."""
    n, h, wd, c_in = x.shape
    c_out = w.shape[1]
    n_cols = 4 * c_out
    row = wd + 2
    l = h * row

    # Halo pad (+1 top/left/right, +2 bottom so every tap's flat slice stays in
    # bounds) and flatten the spatial dims: one cheap HBM pass, read once by
    # the kernel (replaces the old 9x im2col materialization).
    xp = jnp.pad(x.astype(jnp.bfloat16), ((0, 0), (1, 2), (1, 1), (0, 0)))
    xf = xp.reshape(n, (h + 3) * row, c_in)

    w9 = _subpixel_weight(w).reshape(9, c_in, n_cols).astype(jnp.bfloat16)

    out = pl.pallas_call(
        functools.partial(_deconv_kernel, h=h, w=wd, activation=activation),
        out_shape=jax.ShapeDtypeStruct((n, l, n_cols), out_dtype),
        grid_spec=pltpu.PrefetchScalarGridSpec(
            num_scalar_prefetch=0,
            grid=(n,),
            in_specs=[
                pl.BlockSpec((None, (h + 3) * row, c_in), lambda i: (i, 0, 0)),
                pl.BlockSpec((9, c_in, n_cols), lambda i: (0, 0, 0)),  # resident
            ],
            out_specs=pl.BlockSpec((None, l, n_cols), lambda i: (i, 0, 0)),
        ),
        compiler_params=pltpu.CompilerParams(
            dimension_semantics=("parallel",),
            vmem_limit_bytes=_VMEM_LIMIT),
        cost_estimate=pl.CostEstimate(
            flops=2 * n * l * 9 * c_in * n_cols,
            transcendentals=(n * l * n_cols) if activation == "tanh" else 0,
            bytes_accessed=int(xf.size * 2 + w9.size * 2
                               + n * l * n_cols * jnp.dtype(out_dtype).itemsize)),
    )(xf, w9)

    # Drop the 2 halo columns per row, then depth-to-space (parity -> 2x2 pixels).
    # TODO(synk): fold this depth-to-space into the next layer's in-kernel
    # im2col (read parity column groups directly) to remove one HBM pass.
    out = out.reshape(n, h, row, 2, 2, c_out)[:, :, :wd]
    out = out.transpose(0, 1, 3, 2, 4, 5)
    return out.reshape(n, 2 * h, 2 * wd, c_out)


def deconv4x4_s1_latent(x_nchw, w, activation, out_dtype):
    """First layer: ConvTranspose2d(k=4, stride=1, pad=0) on the 1x1 latent."""
    assert x_nchw.shape[2:] == (1, 1), "DCGAN first layer expects a 1x1 latent"
    n, c_in = x_nchw.shape[0], x_nchw.shape[1]
    c_out = w.shape[1]
    a = x_nchw.reshape(n, c_in)
    b = w.transpose(0, 2, 3, 1).reshape(c_in, 16 * c_out)
    return matmul_act(a, b, activation, out_dtype).reshape(n, 4, 4, c_out)


# --------------------------------- the module ---------------------------------

class DCGANGNobnPallas:
    """Forward pass of DCGAN_G_nobn (the ngpu/data_parallel branch is a no-op)."""

    def __init__(self, nz, ngf, nc, key):
        ks = jax.random.split(key, 5)

        def mk_w(k, cin, cout):      # DCGAN-style deterministic init: N(0, 0.02)
            return 0.02 * jax.random.normal(k, (cin, cout, 4, 4), jnp.float32)

        # (weight, stride, padding, activation) -- mirrors the nn.Sequential
        self.layers = [
            (mk_w(ks[0], nz,      ngf * 8), 1, 0, "relu"),
            (mk_w(ks[1], ngf * 8, ngf * 4), 2, 1, "relu"),
            (mk_w(ks[2], ngf * 4, ngf * 2), 2, 1, "relu"),
            (mk_w(ks[3], ngf * 2, ngf),     2, 1, "relu"),
            (mk_w(ks[4], ngf,     nc),      2, 1, "tanh"),
        ]

    def __call__(self, x):
        # layer 1: plain matmul on the latent; hidden activations flow NHWC bf16
        w0, _, _, act0 = self.layers[0]
        h = deconv4x4_s1_latent(x, w0, act0, jnp.bfloat16)
        for wt, _, _, act in self.layers[1:-1]:
            h = deconv4x4_s2_p1(h, wt, act, jnp.bfloat16)
        wl, _, _, actl = self.layers[-1]
        h = deconv4x4_s2_p1(h, wl, actl, jnp.float32)
        return h.transpose(0, 3, 1, 2)    # NHWC -> NCHW once, at the boundary


# pure-JAX f32 reference (lax conv with lhs_dilation == ConvTranspose2d semantics)
def reference(x, layers):
    for wt, s, p, act in layers:
        _, _, kh, kw = wt.shape
        w_conv = jnp.flip(wt, axis=(2, 3)).transpose(1, 0, 2, 3)  # (C_out, C_in, kH, kW)
        x = jax.lax.conv_general_dilated(
            x, w_conv, window_strides=(1, 1),
            padding=[(kh - 1 - p, kh - 1 - p), (kw - 1 - p, kw - 1 - p)],
            lhs_dilation=(s, s),
            dimension_numbers=("NCHW", "OIHW", "NCHW"),
            precision=jax.lax.Precision.HIGHEST)
        x = jnp.maximum(x, 0.0) if act == "relu" else jnp.tanh(x)
    return x


if __name__ == "__main__":
    nz, ngf, nc, batch = 8, 8, 3, 2
    key = jax.random.PRNGKey(0)
    kx, kw = jax.random.split(key)

    x = jax.random.normal(kx, (batch, nz, 1, 1), jnp.float32)   # latent, NCHW
    model = DCGANGNobnPallas(nz, ngf, nc, kw)

    fwd = jax.jit(lambda z: model(z))
    out = jax.block_until_ready(fwd(x))
    assert out.shape == (batch, nc, 64, 64), out.shape

    ref = jax.block_until_ready(reference(x, model.layers))
    max_err = float(jnp.max(jnp.abs(out - ref)))
    assert jnp.allclose(out, ref, atol=2e-2, rtol=2e-2), max_err

    print("KERNEL_OK")
</pallas_src>

<mosaic_0001>
module attributes {stable_mosaic.version = 11 : i64} {
  func.func @_matmul_act_kernel(%arg0: i32, %arg1: memref<2x8xbf16, #tpu.memory_space<vmem>>, %arg2: memref<8x1024xbf16, #tpu.memory_space<vmem>>, %arg3: memref<2x1024xbf16, #tpu.memory_space<vmem>>) attributes {dimension_semantics = [#tpu.dimension_semantics<parallel>], iteration_bounds = array<i64: 1>, scalar_prefetch = 0 : i64, scratch_operands = 0 : i64, tpu.core_type = #tpu.core_type<tc>, window_params = [{transform_indices = @transform_0, window_bounds = array<i64: 2, 8>}, {pipeline_mode = #tpu.pipeline_mode<synchronous>, transform_indices = @transform_1, window_bounds = array<i64: 8, 1024>}, {transform_indices = @transform_2, window_bounds = array<i64: 2, 1024>}]} {
    %c0 = arith.constant 0 : index
    %c0_0 = arith.constant 0 : index
    %0 = vector.load %arg1[%c0, %c0_0] : memref<2x8xbf16, #tpu.memory_space<vmem>>, vector<2x8xbf16>
    %c0_1 = arith.constant 0 : index
    %c0_2 = arith.constant 0 : index
    %1 = vector.load %arg2[%c0_1, %c0_2] : memref<8x1024xbf16, #tpu.memory_space<vmem>>, vector<8x1024xbf16>
    %cst = arith.constant dense<0.000000e+00> : vector<2x1024xf32>
    %2 = tpu.matmul %0, %1, %cst {dimension_numbers = #tpu.dot_dimension_numbers<[1], [0], [0], [1], [0, 0, 1, 1], [], []>} : vector<2x8xbf16>, vector<8x1024xbf16>, vector<2x1024xf32> -> vector<2x1024xf32>
    %cst_3 = arith.constant 0.000000e+00 : f32
    %3 = vector.broadcast %cst_3 : f32 to vector<2x1024xf32>
    %4 = arith.maximumf %2, %3 : vector<2x1024xf32>
    %5 = arith.truncf %4 : vector<2x1024xf32> to vector<2x1024xbf16>
    %c0_4 = arith.constant 0 : index
    %c0_5 = arith.constant 0 : index
    %6 = vector.load %arg3[%c0_4, %c0_5] : memref<2x1024xbf16, #tpu.memory_space<vmem>>, vector<2x1024xbf16>
    tpu.vector_store %arg3[%c0_4, %c0_5], %5 {strides = array<i32>} : memref<2x1024xbf16, #tpu.memory_space<vmem>>, vector<2x1024xbf16>,
    return
  }
  func.func @transform_0(%arg0: i32) -> (i32, i32) {
    %c0_i32 = arith.constant 0 : i32
    %c0_i32_0 = arith.constant 0 : i32
    return %arg0, %c0_i32 : i32, i32
  }
  func.func @transform_1(%arg0: i32) -> (i32, i32) {
    %c0_i32 = arith.constant 0 : i32
    %c0_i32_0 = arith.constant 0 : i32
    %c0_i32_1 = arith.constant 0 : i32
    return %c0_i32, %c0_i32_0 : i32, i32
  }
  func.func @transform_2(%arg0: i32) -> (i32, i32) {
    %c0_i32 = arith.constant 0 : i32
    %c0_i32_0 = arith.constant 0 : i32
    return %arg0, %c0_i32 : i32, i32
  }
}

module attributes {stable_mosaic.version = 11 : i64} {
  func.func @_deconv_kernel(%arg0: i32, %arg1: memref<1x42x64xbf16, #tpu.memory_space<vmem>>, %arg2: memref<9x64x128xbf16, #tpu.memory_space<vmem>>, %arg3: memref<1x24x128xbf16, #tpu.memory_space<vmem>>) attributes {dimension_semantics = [#tpu.dimension_semantics<parallel>], iteration_bounds = array<i64: 2>, scalar_prefetch = 0 : i64, scratch_operands = 0 : i64, tpu.core_type = #tpu.core_type<tc>, window_params = [{transform_indices = @transform_0, window_bounds = array<i64: 1, 42, 64>}, {pipeline_mode = #tpu.pipeline_mode<synchronous>, transform_indices = @transform_1, window_bounds = array<i64: 9, 64, 128>}, {transform_indices = @transform_2, window_bounds = array<i64: 1, 24, 128>}]} {
    %cst = arith.constant 0.000000e+00 : f32
    %0 = vector.broadcast %cst : f32 to vector<24x128xf32>
    %c0 = arith.constant 0 : index
    %c0_0 = arith.constant 0 : index
    %c0_1 = arith.constant 0 : index
    %1 = vector.load %arg1[%c0, %c0_0, %c0_1] : memref<1x42x64xbf16, #tpu.memory_space<vmem>>, vector<1x24x64xbf16>
    %2 = vector.shape_cast %1 : vector<1x24x64xbf16> to vector<24x64xbf16>
    %c0_2 = arith.constant 0 : index
    %c0_3 = arith.constant 0 : index
    %c0_4 = arith.constant 0 : index
    %3 = vector.load %arg2[%c0_2, %c0_3, %c0_4] : memref<9x64x128xbf16, #tpu.memory_space<vmem>>, vector<1x64x128xbf16>
    %4 = vector.shape_cast %3 : vector<1x64x128xbf16> to vector<64x128xbf16>
    %cst_5 = arith.constant dense<0.000000e+00> : vector<24x128xf32>
    %5 = tpu.matmul %2, %4, %cst_5 {dimension_numbers = #tpu.dot_dimension_numbers<[1], [0], [0], [1], [0, 0, 1, 1], [], []>} : vector<24x64xbf16>, vector<64x128xbf16>, vector<24x128xf32> -> vector<24x128xf32>
    %6 = arith.addf %0, %5 : vector<24x128xf32>
    %c0_6 = arith.constant 0 : index
    %c1 = arith.constant 1 : index
    %c0_7 = arith.constant 0 : index
    %7 = vector.load %arg1[%c0_6, %c1, %c0_7] : memref<1x42x64xbf16, #tpu.memory_space<vmem>>, vector<1x24x64xbf16>
    %8 = vector.shape_cast %7 : vector<1x24x64xbf16> to vector<24x64xbf16>
    %c1_8 = arith.constant 1 : index
    %c0_9 = arith.constant 0 : index
    %c0_10 = arith.constant 0 : index
    %9 = vector.load %arg2[%c1_8, %c0_9, %c0_10] : memref<9x64x128xbf16, #tpu.memory_space<vmem>>, vector<1x64x128xbf16>
    %10 = vector.shape_cast %9 : vector<1x64x128xbf16> to vector<64x128xbf16>
    %cst_11 = arith.constant dense<0.000000e+00> : vector<24x128xf32>
    %11 = tpu.matmul %8, %10, %cst_11 {dimension_numbers = #tpu.dot_dimension_numbers<[1], [0], [0], [1], [0, 0, 1, 1], [], []>} : vector<24x64xbf16>, vector<64x128xbf16>, vector<24x128xf32> -> vector<24x128xf32>
    %12 = arith.addf %6, %11 : vector<24x128xf32>
    %c0_12 = arith.constant 0 : index
    %c2 = arith.constant 2 : index
    %c0_13 = arith.constant 0 : index
    %13 = vector.load %arg1[%c0_12, %c2, %c0_13] : memref<1x42x64xbf16, #tpu.memory_space<vmem>>, vector<1x24x64xbf16>
    %14 = vector.shape_cast %13 : vector<1x24x64xbf16> to vector<24x64xbf16>
    %c2_14 = arith.constant 2 : index
    %c0_15 = arith.constant 0 : index
    %c0_16 = arith.constant 0 : index
    %15 = vector.load %arg2[%c2_14, %c0_15, %c0_16] : memref<9x64x128xbf16, #tpu.memory_space<vmem>>, vector<1x64x128xbf16>
    %16 = vector.shape_cast %15 : vector<1x64x128xbf16> to vector<64x128xbf16>
    %cst_17 = arith.constant dense<0.000000e+00> : vector<24x128xf32>
    %17 = tpu.matmul %14, %16, %cst_17 {dimension_numbers = #tpu.dot_dimension_numbers<[1], [0], [0], [1], [0, 0, 1, 1], [], []>} : vector<24x64xbf16>, vector<64x128xbf16>, vector<24x128xf32> -> vector<24x128xf32>
    %18 = arith.addf %12, %17 : vector<24x128xf32>
    %c0_18 = arith.constant 0 : index
    %c6 = arith.constant 6 : index
    %c0_19 = arith.constant 0 : index
    %19 = vector.load %arg1[%c0_18, %c6, %c0_19] : memref<1x42x64xbf16, #tpu.memory_space<vmem>>, vector<1x24x64xbf16>
    %20 = vector.shape_cast %19 : vector<1x24x64xbf16> to vector<24x64xbf16>
    %c3 = arith.constant 3 : index
    %c0_20 = arith.constant 0 : index
    %c0_21 = arith.constant 0 : index
    %21 = vector.load %arg2[%c3, %c0_20, %c0_21] : memref<9x64x128xbf16, #tpu.memory_space<vmem>>, vector<1x64x128xbf16>
    %22 = vector.shape_cast %21 : vector<1x64x128xbf16> to vector<64x128xbf16>
    %cst_22 = arith.constant dense<0.000000e+00> : vector<24x128xf32>
    %23 = tpu.matmul %20, %22, %cst_22 {dimension_numbers = #tpu.dot_dimension_numbers<[1], [0], [0], [1], [0, 0, 1, 1], [], []>} : vector<24x64xbf16>, vector<64x128xbf16>, vector<24x128xf32> -> vector<24x128xf32>
    %24 = arith.addf %18, %23 : vector<24x128xf32>
    %c0_23 = arith.constant 0 : index
    %c7 = arith.constant 7 : index
    %c0_24 = arith.constant 0 : index
    %25 = vector.load %arg1[%c0_23, %c7, %c0_24] : memref<1x42x64xbf16, #tpu.memory_space<vmem>>, vector<1x24x64xbf16>
    %26 = vector.shape_cast %25 : vector<1x24x64xbf16> to vector<24x64xbf16>
    %c4 = arith.constant 4 : index
    %c0_25 = arith.constant 0 : index
    %c0_26 = arith.constant 0 : index
    %27 = vector.load %arg2[%c4, %c0_25, %c0_26] : memref<9x64x128xbf16, #tpu.memory_space<vmem>>, vector<1x64x128xbf16>
    %28 = vector.shape_cast %27 : vector<1x64x128xbf16> to vector<64x128xbf16>
    %cst_27 = arith.constant dense<0.000000e+00> : vector<24x128xf32>
    %29 = tpu.matmul %26, %28, %cst_27 {dimension_numbers = #tpu.dot_dimension_numbers<[1], [0], [0], [1], [0, 0, 1, 1], [], []>} : vector<24x64xbf16>, vector<64x128xbf16>, vector<24x128xf32> -> vector<24x128xf32>
    %30 = arith.addf %24, %29 : vector<24x128xf32>
    %c0_28 = arith.constant 0 : index
    %c8 = arith.constant 8 : index
    %c0_29 = arith.constant 0 : index
    %31 = vector.load %arg1[%c0_28, %c8, %c0_29] : memref<1x42x64xbf16, #tpu.memory_space<vmem>>, vector<1x24x64xbf16>
    %32 = vector.shape_cast %31 : vector<1x24x64xbf16> to vector<24x64xbf16>
    %c5 = arith.constant 5 : index
    %c0_30 = arith.constant 0 : index
    %c0_31 = arith.constant 0 : index
    %33 = vector.load %arg2[%c5, %c0_30, %c0_31] : memref<9x64x128xbf16, #tpu.memory_space<vmem>>, vector<1x64x128xbf16>
    %34 = vector.shape_cast %33 : vector<1x64x128xbf16> to vector<64x128xbf16>
    %cst_32 = arith.constant dense<0.000000e+00> : vector<24x128xf32>
    %35 = tpu.matmul %32, %34, %cst_32 {dimension_numbers = #tpu.dot_dimension_numbers<[1], [0], [0], [1], [0, 0, 1, 1], [], []>} : vector<24x64xbf16>, vector<64x128xbf16>, vector<24x128xf32> -> vector<24x128xf32>
    %36 = arith.addf %30, %35 : vector<24x128xf32>
    %c0_33 = arith.constant 0 : index
    %c12 = arith.constant 12 : index
    %c0_34 = arith.constant 0 : index
    %37 = vector.load %arg1[%c0_33, %c12, %c0_34] : memref<1x42x64xbf16, #tpu.memory_space<vmem>>, vector<1x24x64xbf16>
    %38 = vector.shape_cast %37 : vector<1x24x64xbf16> to vector<24x64xbf16>
    %c6_35 = arith.constant 6 : index
    %c0_36 = arith.constant 0 : index
    %c0_37 = arith.constant 0 : index
    %39 = vector.load %arg2[%c6_35, %c0_36, %c0_37] : memref<9x64x128xbf16, #tpu.memory_space<vmem>>, vector<1x64x128xbf16>
    %40 = vector.shape_cast %39 : vector<1x64x128xbf16> to vector<64x128xbf16>
    %cst_38 = arith.constant dense<0.000000e+00> : vector<24x128xf32>
    %41 = tpu.matmul %38, %40, %cst_38 {dimension_numbers = #tpu.dot_dimension_numbers<[1], [0], [0], [1], [0, 0, 1, 1], [], []>} : vector<24x64xbf16>, vector<64x128xbf16>, vector<24x128xf32> -> vector<24x128xf32>
    %42 = arith.addf %36, %41 : vector<24x128xf32>
    %c0_39 = arith.constant 0 : index
    %c13 = arith.constant 13 : index
    %c0_40 = arith.constant 0 : index
    %43 = vector.load %arg1[%c0_39, %c13, %c0_40] : memref<1x42x64xbf16, #tpu.memory_space<vmem>>, vector<1x24x64xbf16>
    %44 = vector.shape_cast %43 : vector<1x24x64xbf16> to vector<24x64xbf16>
    %c7_41 = arith.constant 7 : index
    %c0_42 = arith.constant 0 : index
    %c0_43 = arith.constant 0 : index
    %45 = vector.load %arg2[%c7_41, %c0_42, %c0_43] : memref<9x64x128xbf16, #tpu.memory_space<vmem>>, vector<1x64x128xbf16>
    %46 = vector.shape_cast %45 : vector<1x64x128xbf16> to vector<64x128xbf16>
    %cst_44 = arith.constant dense<0.000000e+00> : vector<24x128xf32>
    %47 = tpu.matmul %44, %46, %cst_44 {dimension_numbers = #tpu.dot_dimension_numbers<[1], [0], [0], [1], [0, 0, 1, 1], [], []>} : vector<24x64xbf16>, vector<64x128xbf16>, vector<24x128xf32> -> vector<24x128xf32>
    %48 = arith.addf %42, %47 : vector<24x128xf32>
    %c0_45 = arith.constant 0 : index
    %c14 = arith.constant 14 : index
    %c0_46 = arith.constant 0 : index
    %49 = vector.load %arg1[%c0_45, %c14, %c0_46] : memref<1x42x64xbf16, #tpu.memory_space<vmem>>, vector<1x24x64xbf16>
    %50 = vector.shape_cast %49 : vector<1x24x64xbf16> to vector<24x64xbf16>
    %c8_47 = arith.constant 8 : index
    %c0_48 = arith.constant 0 : index
    %c0_49 = arith.constant 0 : index
    %51 = vector.load %arg2[%c8_47, %c0_48, %c0_49] : memref<9x64x128xbf16, #tpu.memory_space<vmem>>, vector<1x64x128xbf16>
    %52 = vector.shape_cast %51 : vector<1x64x128xbf16> to vector<64x128xbf16>
    %cst_50 = arith.constant dense<0.000000e+00> : vector<24x128xf32>
    %53 = tpu.matmul %50, %52, %cst_50 {dimension_numbers = #tpu.dot_dimension_numbers<[1], [0], [0], [1], [0, 0, 1, 1], [], []>} : vector<24x64xbf16>, vector<64x128xbf16>, vector<24x128xf32> -> vector<24x128xf32>
    %54 = arith.addf %48, %53 : vector<24x128xf32>
    %cst_51 = arith.constant 0.000000e+00 : f32
    %55 = vector.broadcast %cst_51 : f32 to vector<24x128xf32>
    %56 = arith.maximumf %54, %55 : vector<24x128xf32>
    %57 = arith.truncf %56 : vector<24x128xf32> to vector<24x128xbf16>
    %c0_52 = arith.constant 0 : index
    %c0_53 = arith.constant 0 : index
    %c0_54 = arith.constant 0 : index
    %58 = vector.load %arg3[%c0_52, %c0_53, %c0_54] : memref<1x24x128xbf16, #tpu.memory_space<vmem>>, vector<1x24x128xbf16>
    %59 = vector.shape_cast %58 : vector<1x24x128xbf16> to vector<24x128xbf16>
    %60 = vector.shape_cast %57 : vector<24x128xbf16> to vector<1x24x128xbf16>
    tpu.vector_store %arg3[%c0_52, %c0_53, %c0_54], %60 {strides = array<i32>} : memref<1x24x128xbf16, #tpu.memory_space<vmem>>, vector<1x24x128xbf16>,
    return
  }
  func.func @transform_0(%arg0: i32) -> (i32, i32, i32) {
    %c0_i32 = arith.constant 0 : i32
    %c0_i32_0 = arith.constant 0 : i32
    %c0_i32_1 = arith.constant 0 : i32
    return %arg0, %c0_i32, %c0_i32_0 : i32, i32, i32
  }
  func.func @transform_1(%arg0: i32) -> (i32, i32, i32) {
    %c0_i32 = arith.constant 0 : i32
    %c0_i32_0 = arith.constant 0 : i32
    %c0_i32_1 = arith.constant 0 : i32
    %c0_i32_2 = arith.constant 0 : i32
    return %c0_i32, %c0_i32_0, %c0_i32_1 : i32, i32, i32
  }
  func.func @transform_2(%arg0: i32) -> (i32, i32, i32) {
    %c0_i32 = arith.constant 0 : i32
    %c0_i32_0 = arith.constant 0 : i32
    %c0_i32_1 = arith.constant 0 : i32
    return %arg0, %c0_i32, %c0_i32_0 : i32, i32, i32
  }
}

module attributes {stable_mosaic.version = 11 : i64} {
  func.func @_deconv_kernel(%arg0: i32, %arg1: memref<1x110x32xbf16, #tpu.memory_space<vmem>>, %arg2: memref<9x32x64xbf16, #tpu.memory_space<vmem>>, %arg3: memref<1x80x64xbf16, #tpu.memory_space<vmem>>) attributes {dimension_semantics = [#tpu.dimension_semantics<parallel>], iteration_bounds = array<i64: 2>, scalar_prefetch = 0 : i64, scratch_operands = 0 : i64, tpu.core_type = #tpu.core_type<tc>, window_params = [{transform_indices = @transform_0, window_bounds = array<i64: 1, 110, 32>}, {pipeline_mode = #tpu.pipeline_mode<synchronous>, transform_indices = @transform_1, window_bounds = array<i64: 9, 32, 64>}, {transform_indices = @transform_2, window_bounds = array<i64: 1, 80, 64>}]} {
    %cst = arith.constant 0.000000e+00 : f32
    %0 = vector.broadcast %cst : f32 to vector<80x64xf32>
    %c0 = arith.constant 0 : index
    %c0_0 = arith.constant 0 : index
    %c0_1 = arith.constant 0 : index
    %1 = vector.load %arg1[%c0, %c0_0, %c0_1] : memref<1x110x32xbf16, #tpu.memory_space<vmem>>, vector<1x80x32xbf16>
    %2 = vector.shape_cast %1 : vector<1x80x32xbf16> to vector<80x32xbf16>
    %c0_2 = arith.constant 0 : index
    %c0_3 = arith.constant 0 : index
    %c0_4 = arith.constant 0 : index
    %3 = vector.load %arg2[%c0_2, %c0_3, %c0_4] : memref<9x32x64xbf16, #tpu.memory_space<vmem>>, vector<1x32x64xbf16>
    %4 = vector.shape_cast %3 : vector<1x32x64xbf16> to vector<32x64xbf16>
    %cst_5 = arith.constant dense<0.000000e+00> : vector<80x64xf32>
    %5 = tpu.matmul %2, %4, %cst_5 {dimension_numbers = #tpu.dot_dimension_numbers<[1], [0], [0], [1], [0, 0, 1, 1], [], []>} : vector<80x32xbf16>, vector<32x64xbf16>, vector<80x64xf32> -> vector<80x64xf32>
    %6 = arith.addf %0, %5 : vector<80x64xf32>
    %c0_6 = arith.constant 0 : index
    %c1 = arith.constant 1 : index
    %c0_7 = arith.constant 0 : index
    %7 = vector.load %arg1[%c0_6, %c1, %c0_7] : memref<1x110x32xbf16, #tpu.memory_space<vmem>>, vector<1x80x32xbf16>
    %8 = vector.shape_cast %7 : vector<1x80x32xbf16> to vector<80x32xbf16>
    %c1_8 = arith.constant 1 : index
    %c0_9 = arith.constant 0 : index
    %c0_10 = arith.constant 0 : index
    %9 = vector.load %arg2[%c1_8, %c0_9, %c0_10] : memref<9x32x64xbf16, #tpu.memory_space<vmem>>, vector<1x32x64xbf16>
    %10 = vector.shape_cast %9 : vector<1x32x64xbf16> to vector<32x64xbf16>
    %cst_11 = arith.constant dense<0.000000e+00> : vector<80x64xf32>
    %11 = tpu.matmul %8, %10, %cst_11 {dimension_numbers = #tpu.dot_dimension_numbers<[1], [0], [0], [1], [0, 0, 1, 1], [], []>} : vector<80x32xbf16>, vector<32x64xbf16>, vector<80x64xf32> -> vector<80x64xf32>
    %12 = arith.addf %6, %11 : vector<80x64xf32>
    %c0_12 = arith.constant 0 : index
    %c2 = arith.constant 2 : index
    %c0_13 = arith.constant 0 : index
    %13 = vector.load %arg1[%c0_12, %c2, %c0_13] : memref<1x110x32xbf16, #tpu.memory_space<vmem>>, vector<1x80x32xbf16>
    %14 = vector.shape_cast %13 : vector<1x80x32xbf16> to vector<80x32xbf16>
    %c2_14 = arith.constant 2 : index
    %c0_15 = arith.constant 0 : index
    %c0_16 = arith.constant 0 : index
    %15 = vector.load %arg2[%c2_14, %c0_15, %c0_16] : memref<9x32x64xbf16, #tpu.memory_space<vmem>>, vector<1x32x64xbf16>
    %16 = vector.shape_cast %15 : vector<1x32x64xbf16> to vector<32x64xbf16>
    %cst_17 = arith.constant dense<0.000000e+00> : vector<80x64xf32>
    %17 = tpu.matmul %14, %16, %cst_17 {dimension_numbers = #tpu.dot_dimension_numbers<[1], [0], [0], [1], [0, 0, 1, 1], [], []>} : vector<80x32xbf16>, vector<32x64xbf16>, vector<80x64xf32> -> vector<80x64xf32>
    %18 = arith.addf %12, %17 : vector<80x64xf32>
    %c0_18 = arith.constant 0 : index
    %c10 = arith.constant 10 : index
    %c0_19 = arith.constant 0 : index
    %19 = vector.load %arg1[%c0_18, %c10, %c0_19] : memref<1x110x32xbf16, #tpu.memory_space<vmem>>, vector<1x80x32xbf16>
    %20 = vector.shape_cast %19 : vector<1x80x32xbf16> to vector<80x32xbf16>
    %c3 = arith.constant 3 : index
    %c0_20 = arith.constant 0 : index
    %c0_21 = arith.constant 0 : index
    %21 = vector.load %arg2[%c3, %c0_20, %c0_21] : memref<9x32x64xbf16, #tpu.memory_space<vmem>>, vector<1x32x64xbf16>
    %22 = vector.shape_cast %21 : vector<1x32x64xbf16> to vector<32x64xbf16>
    %cst_22 = arith.constant dense<0.000000e+00> : vector<80x64xf32>
    %23 = tpu.matmul %20, %22, %cst_22 {dimension_numbers = #tpu.dot_dimension_numbers<[1], [0], [0], [1], [0, 0, 1, 1], [], []>} : vector<80x32xbf16>, vector<32x64xbf16>, vector<80x64xf32> -> vector<80x64xf32>
    %24 = arith.addf %18, %23 : vector<80x64xf32>
    %c0_23 = arith.constant 0 : index
    %c11 = arith.constant 11 : index
    %c0_24 = arith.constant 0 : index
    %25 = vector.load %arg1[%c0_23, %c11, %c0_24] : memref<1x110x32xbf16, #tpu.memory_space<vmem>>, vector<1x80x32xbf16>
    %26 = vector.shape_cast %25 : vector<1x80x32xbf16> to vector<80x32xbf16>
    %c4 = arith.constant 4 : index
    %c0_25 = arith.constant 0 : index
    %c0_26 = arith.constant 0 : index
    %27 = vector.load %arg2[%c4, %c0_25, %c0_26] : memref<9x32x64xbf16, #tpu.memory_space<vmem>>, vector<1x32x64xbf16>
    %28 = vector.shape_cast %27 : vector<1x32x64xbf16> to vector<32x64xbf16>
    %cst_27 = arith.constant dense<0.000000e+00> : vector<80x64xf32>
    %29 = tpu.matmul %26, %28, %cst_27 {dimension_numbers = #tpu.dot_dimension_numbers<[1], [0], [0], [1], [0, 0, 1, 1], [], []>} : vector<80x32xbf16>, vector<32x64xbf16>, vector<80x64xf32> -> vector<80x64xf32>
    %30 = arith.addf %24, %29 : vector<80x64xf32>
    %c0_28 = arith.constant 0 : index
    %c12 = arith.constant 12 : index
    %c0_29 = arith.constant 0 : index
    %31 = vector.load %arg1[%c0_28, %c12, %c0_29] : memref<1x110x32xbf16, #tpu.memory_space<vmem>>, vector<1x80x32xbf16>
    %32 = vector.shape_cast %31 : vector<1x80x32xbf16> to vector<80x32xbf16>
    %c5 = arith.constant 5 : index
    %c0_30 = arith.constant 0 : index
    %c0_31 = arith.constant 0 : index
    %33 = vector.load %arg2[%c5, %c0_30, %c0_31] : memref<9x32x64xbf16, #tpu.memory_space<vmem>>, vector<1x32x64xbf16>
    %34 = vector.shape_cast %33 : vector<1x32x64xbf16> to vector<32x64xbf16>
    %cst_32 = arith.constant dense<0.000000e+00> : vector<80x64xf32>
    %35 = tpu.matmul %32, %34, %cst_32 {dimension_numbers = #tpu.dot_dimension_numbers<[1], [0], [0], [1], [0, 0, 1, 1], [], []>} : vector<80x32xbf16>, vector<32x64xbf16>, vector<80x64xf32> -> vector<80x64xf32>
    %36 = arith.addf %30, %35 : vector<80x64xf32>
    %c0_33 = arith.constant 0 : index
    %c20 = arith.constant 20 : index
    %c0_34 = arith.constant 0 : index
    %37 = vector.load %arg1[%c0_33, %c20, %c0_34] : memref<1x110x32xbf16, #tpu.memory_space<vmem>>, vector<1x80x32xbf16>
    %38 = vector.shape_cast %37 : vector<1x80x32xbf16> to vector<80x32xbf16>
    %c6 = arith.constant 6 : index
    %c0_35 = arith.constant 0 : index
    %c0_36 = arith.constant 0 : index
    %39 = vector.load %arg2[%c6, %c0_35, %c0_36] : memref<9x32x64xbf16, #tpu.memory_space<vmem>>, vector<1x32x64xbf16>
    %40 = vector.shape_cast %39 : vector<1x32x64xbf16> to vector<32x64xbf16>
    %cst_37 = arith.constant dense<0.000000e+00> : vector<80x64xf32>
    %41 = tpu.matmul %38, %40, %cst_37 {dimension_numbers = #tpu.dot_dimension_numbers<[1], [0], [0], [1], [0, 0, 1, 1], [], []>} : vector<80x32xbf16>, vector<32x64xbf16>, vector<80x64xf32> -> vector<80x64xf32>
    %42 = arith.addf %36, %41 : vector<80x64xf32>
    %c0_38 = arith.constant 0 : index
    %c21 = arith.constant 21 : index
    %c0_39 = arith.constant 0 : index
    %43 = vector.load %arg1[%c0_38, %c21, %c0_39] : memref<1x110x32xbf16, #tpu.memory_space<vmem>>, vector<1x80x32xbf16>
    %44 = vector.shape_cast %43 : vector<1x80x32xbf16> to vector<80x32xbf16>
    %c7 = arith.constant 7 : index
    %c0_40 = arith.constant 0 : index
    %c0_41 = arith.constant 0 : index
    %45 = vector.load %arg2[%c7, %c0_40, %c0_41] : memref<9x32x64xbf16, #tpu.memory_space<vmem>>, vector<1x32x64xbf16>
    %46 = vector.shape_cast %45 : vector<1x32x64xbf16> to vector<32x64xbf16>
    %cst_42 = arith.constant dense<0.000000e+00> : vector<80x64xf32>
    %47 = tpu.matmul %44, %46, %cst_42 {dimension_numbers = #tpu.dot_dimension_numbers<[1], [0], [0], [1], [0, 0, 1, 1], [], []>} : vector<80x32xbf16>, vector<32x64xbf16>, vector<80x64xf32> -> vector<80x64xf32>
    %48 = arith.addf %42, %47 : vector<80x64xf32>
    %c0_43 = arith.constant 0 : index
    %c22 = arith.constant 22 : index
    %c0_44 = arith.constant 0 : index
    %49 = vector.load %arg1[%c0_43, %c22, %c0_44] : memref<1x110x32xbf16, #tpu.memory_space<vmem>>, vector<1x80x32xbf16>
    %50 = vector.shape_cast %49 : vector<1x80x32xbf16> to vector<80x32xbf16>
    %c8 = arith.constant 8 : index
    %c0_45 = arith.constant 0 : index
    %c0_46 = arith.constant 0 : index
    %51 = vector.load %arg2[%c8, %c0_45, %c0_46] : memref<9x32x64xbf16, #tpu.memory_space<vmem>>, vector<1x32x64xbf16>
    %52 = vector.shape_cast %51 : vector<1x32x64xbf16> to vector<32x64xbf16>
    %cst_47 = arith.constant dense<0.000000e+00> : vector<80x64xf32>
    %53 = tpu.matmul %50, %52, %cst_47 {dimension_numbers = #tpu.dot_dimension_numbers<[1], [0], [0], [1], [0, 0, 1, 1], [], []>} : vector<80x32xbf16>, vector<32x64xbf16>, vector<80x64xf32> -> vector<80x64xf32>
    %54 = arith.addf %48, %53 : vector<80x64xf32>
    %cst_48 = arith.constant 0.000000e+00 : f32
    %55 = vector.broadcast %cst_48 : f32 to vector<80x64xf32>
    %56 = arith.maximumf %54, %55 : vector<80x64xf32>
    %57 = arith.truncf %56 : vector<80x64xf32> to vector<80x64xbf16>
    %c0_49 = arith.constant 0 : index
    %c0_50 = arith.constant 0 : index
    %c0_51 = arith.constant 0 : index
    %58 = vector.load %arg3[%c0_49, %c0_50, %c0_51] : memref<1x80x64xbf16, #tpu.memory_space<vmem>>, vector<1x80x64xbf16>
    %59 = vector.shape_cast %58 : vector<1x80x64xbf16> to vector<80x64xbf16>
    %60 = vector.shape_cast %57 : vector<80x64xbf16> to vector<1x80x64xbf16>
    tpu.vector_store %arg3[%c0_49, %c0_50, %c0_51], %60 {strides = array<i32>} : memref<1x80x64xbf16, #tpu.memory_space<vmem>>, vector<1x80x64xbf16>,
    return
  }
  func.func @transform_0(%arg0: i32) -> (i32, i32, i32) {
    %c0_i32 = arith.constant 0 : i32
    %c0_i32_0 = arith.constant 0 : i32
    %c0_i32_1 = arith.constant 0 : i32
    return %arg0, %c0_i32, %c0_i32_0 : i32, i32, i32
  }
  func.func @transform_1(%arg0: i32) -> (i32, i32, i32) {
    %c0_i32 = arith.constant 0 : i32
    %c0_i32_0 = arith.constant 0 : i32
    %c0_i32_1 = arith.constant 0 : i32
    %c0_i32_2 = arith.constant 0 : i32
    return %c0_i32, %c0_i32_0, %c0_i32_1 : i32, i32, i32
  }
  func.func @transform_2(%arg0: i32) -> (i32, i32, i32) {
    %c0_i32 = arith.constant 0 : i32
    %c0_i32_0 = arith.constant 0 : i32
    %c0_i32_1 = arith.constant 0 : i32
    return %arg0, %c0_i32, %c0_i32_0 : i32, i32, i32
  }
}

module attributes {stable_mosaic.version = 11 : i64} {
  func.func @_deconv_kernel(%arg0: i32, %arg1: memref<1x342x16xbf16, #tpu.memory_space<vmem>>, %arg2: memref<9x16x32xbf16, #tpu.memory_space<vmem>>, %arg3: memref<1x288x32xbf16, #tpu.memory_space<vmem>>) attributes {dimension_semantics = [#tpu.dimension_semantics<parallel>], iteration_bounds = array<i64: 2>, scalar_prefetch = 0 : i64, scratch_operands = 0 : i64, tpu.core_type = #tpu.core_type<tc>, window_params = [{transform_indices = @transform_0, window_bounds = array<i64: 1, 342, 16>}, {pipeline_mode = #tpu.pipeline_mode<synchronous>, transform_indices = @transform_1, window_bounds = array<i64: 9, 16, 32>}, {transform_indices = @transform_2, window_bounds = array<i64: 1, 288, 32>}]} {
    %cst = arith.constant 0.000000e+00 : f32
    %0 = vector.broadcast %cst : f32 to vector<288x32xf32>
    %c0 = arith.constant 0 : index
    %c0_0 = arith.constant 0 : index
    %c0_1 = arith.constant 0 : index
    %1 = vector.load %arg1[%c0, %c0_0, %c0_1] : memref<1x342x16xbf16, #tpu.memory_space<vmem>>, vector<1x288x16xbf16>
    %2 = vector.shape_cast %1 : vector<1x288x16xbf16> to vector<288x16xbf16>
    %c0_2 = arith.constant 0 : index
    %c0_3 = arith.constant 0 : index
    %c0_4 = arith.constant 0 : index
    %3 = vector.load %arg2[%c0_2, %c0_3, %c0_4] : memref<9x16x32xbf16, #tpu.memory_space<vmem>>, vector<1x16x32xbf16>
    %4 = vector.shape_cast %3 : vector<1x16x32xbf16> to vector<16x32xbf16>
    %cst_5 = arith.constant dense<0.000000e+00> : vector<288x32xf32>
    %5 = tpu.matmul %2, %4, %cst_5 {dimension_numbers = #tpu.dot_dimension_numbers<[1], [0], [0], [1], [0, 0, 1, 1], [], []>} : vector<288x16xbf16>, vector<16x32xbf16>, vector<288x32xf32> -> vector<288x32xf32>
    %6 = arith.addf %0, %5 : vector<288x32xf32>
    %c0_6 = arith.constant 0 : index
    %c1 = arith.constant 1 : index
    %c0_7 = arith.constant 0 : index
    %7 = vector.load %arg1[%c0_6, %c1, %c0_7] : memref<1x342x16xbf16, #tpu.memory_space<vmem>>, vector<1x288x16xbf16>
    %8 = vector.shape_cast %7 : vector<1x288x16xbf16> to vector<288x16xbf16>
    %c1_8 = arith.constant 1 : index
    %c0_9 = arith.constant 0 : index
    %c0_10 = arith.constant 0 : index
    %9 = vector.load %arg2[%c1_8, %c0_9, %c0_10] : memref<9x16x32xbf16, #tpu.memory_space<vmem>>, vector<1x16x32xbf16>
    %10 = vector.shape_cast %9 : vector<1x16x32xbf16> to vector<16x32xbf16>
    %cst_11 = arith.constant dense<0.000000e+00> : vector<288x32xf32>
    %11 = tpu.matmul %8, %10, %cst_11 {dimension_numbers = #tpu.dot_dimension_numbers<[1], [0], [0], [1], [0, 0, 1, 1], [], []>} : vector<288x16xbf16>, vector<16x32xbf16>, vector<288x32xf32> -> vector<288x32xf32>
    %12 = arith.addf %6, %11 : vector<288x32xf32>
    %c0_12 = arith.constant 0 : index
    %c2 = arith.constant 2 : index
    %c0_13 = arith.constant 0 : index
    %13 = vector.load %arg1[%c0_12, %c2, %c0_13] : memref<1x342x16xbf16, #tpu.memory_space<vmem>>, vector<1x288x16xbf16>
    %14 = vector.shape_cast %13 : vector<1x288x16xbf16> to vector<288x16xbf16>
    %c2_14 = arith.constant 2 : index
    %c0_15 = arith.constant 0 : index
    %c0_16 = arith.constant 0 : index
    %15 = vector.load %arg2[%c2_14, %c0_15, %c0_16] : memref<9x16x32xbf16, #tpu.memory_space<vmem>>, vector<1x16x32xbf16>
    %16 = vector.shape_cast %15 : vector<1x16x32xbf16> to vector<16x32xbf16>
    %cst_17 = arith.constant dense<0.000000e+00> : vector<288x32xf32>
    %17 = tpu.matmul %14, %16, %cst_17 {dimension_numbers = #tpu.dot_dimension_numbers<[1], [0], [0], [1], [0, 0, 1, 1], [], []>} : vector<288x16xbf16>, vector<16x32xbf16>, vector<288x32xf32> -> vector<288x32xf32>
    %18 = arith.addf %12, %17 : vector<288x32xf32>
    %c0_18 = arith.constant 0 : index
    %c18 = arith.constant 18 : index
    %c0_19 = arith.constant 0 : index
    %19 = vector.load %arg1[%c0_18, %c18, %c0_19] : memref<1x342x16xbf16, #tpu.memory_space<vmem>>, vector<1x288x16xbf16>
    %20 = vector.shape_cast %19 : vector<1x288x16xbf16> to vector<288x16xbf16>
    %c3 = arith.constant 3 : index
    %c0_20 = arith.constant 0 : index
    %c0_21 = arith.constant 0 : index
    %21 = vector.load %arg2[%c3, %c0_20, %c0_21] : memref<9x16x32xbf16, #tpu.memory_space<vmem>>, vector<1x16x32xbf16>
    %22 = vector.shape_cast %21 : vector<1x16x32xbf16> to vector<16x32xbf16>
    %cst_22 = arith.constant dense<0.000000e+00> : vector<288x32xf32>
    %23 = tpu.matmul %20, %22, %cst_22 {dimension_numbers = #tpu.dot_dimension_numbers<[1], [0], [0], [1], [0, 0, 1, 1], [], []>} : vector<288x16xbf16>, vector<16x32xbf16>, vector<288x32xf32> -> vector<288x32xf32>
    %24 = arith.addf %18, %23 : vector<288x32xf32>
    %c0_23 = arith.constant 0 : index
    %c19 = arith.constant 19 : index
    %c0_24 = arith.constant 0 : index
    %25 = vector.load %arg1[%c0_23, %c19, %c0_24] : memref<1x342x16xbf16, #tpu.memory_space<vmem>>, vector<1x288x16xbf16>
    %26 = vector.shape_cast %25 : vector<1x288x16xbf16> to vector<288x16xbf16>
    %c4 = arith.constant 4 : index
    %c0_25 = arith.constant 0 : index
    %c0_26 = arith.constant 0 : index
    %27 = vector.load %arg2[%c4, %c0_25, %c0_26] : memref<9x16x32xbf16, #tpu.memory_space<vmem>>, vector<1x16x32xbf16>
    %28 = vector.shape_cast %27 : vector<1x16x32xbf16> to vector<16x32xbf16>
    %cst_27 = arith.constant dense<0.000000e+00> : vector<288x32xf32>
    %29 = tpu.matmul %26, %28, %cst_27 {dimension_numbers = #tpu.dot_dimension_numbers<[1], [0], [0], [1], [0, 0, 1, 1], [], []>} : vector<288x16xbf16>, vector<16x32xbf16>, vector<288x32xf32> -> vector<288x32xf32>
    %30 = arith.addf %24, %29 : vector<288x32xf32>
    %c0_28 = arith.constant 0 : index
    %c20 = arith.constant 20 : index
    %c0_29 = arith.constant 0 : index
    %31 = vector.load %arg1[%c0_28, %c20, %c0_29] : memref<1x342x16xbf16, #tpu.memory_space<vmem>>, vector<1x288x16xbf16>
    %32 = vector.shape_cast %31 : vector<1x288x16xbf16> to vector<288x16xbf16>
    %c5 = arith.constant 5 : index
    %c0_30 = arith.constant 0 : index
    %c0_31 = arith.constant 0 : index
    %33 = vector.load %arg2[%c5, %c0_30, %c0_31] : memref<9x16x32xbf16, #tpu.memory_space<vmem>>, vector<1x16x32xbf16>
    %34 = vector.shape_cast %33 : vector<1x16x32xbf16> to vector<16x32xbf16>
    %cst_32 = arith.constant dense<0.000000e+00> : vector<288x32xf32>
    %35 = tpu.matmul %32, %34, %cst_32 {dimension_numbers = #tpu.dot_dimension_numbers<[1], [0], [0], [1], [0, 0, 1, 1], [], []>} : vector<288x16xbf16>, vector<16x32xbf16>, vector<288x32xf32> -> vector<288x32xf32>
    %36 = arith.addf %30, %35 : vector<288x32xf32>
    %c0_33 = arith.constant 0 : index
    %c36 = arith.constant 36 : index
    %c0_34 = arith.constant 0 : index
    %37 = vector.load %arg1[%c0_33, %c36, %c0_34] : memref<1x342x16xbf16, #tpu.memory_space<vmem>>, vector<1x288x16xbf16>
    %38 = vector.shape_cast %37 : vector<1x288x16xbf16> to vector<288x16xbf16>
    %c6 = arith.constant 6 : index
    %c0_35 = arith.constant 0 : index
    %c0_36 = arith.constant 0 : index
    %39 = vector.load %arg2[%c6, %c0_35, %c0_36] : memref<9x16x32xbf16, #tpu.memory_space<vmem>>, vector<1x16x32xbf16>
    %40 = vector.shape_cast %39 : vector<1x16x32xbf16> to vector<16x32xbf16>
    %cst_37 = arith.constant dense<0.000000e+00> : vector<288x32xf32>
    %41 = tpu.matmul %38, %40, %cst_37 {dimension_numbers = #tpu.dot_dimension_numbers<[1], [0], [0], [1], [0, 0, 1, 1], [], []>} : vector<288x16xbf16>, vector<16x32xbf16>, vector<288x32xf32> -> vector<288x32xf32>
    %42 = arith.addf %36, %41 : vector<288x32xf32>
    %c0_38 = arith.constant 0 : index
    %c37 = arith.constant 37 : index
    %c0_39 = arith.constant 0 : index
    %43 = vector.load %arg1[%c0_38, %c37, %c0_39] : memref<1x342x16xbf16, #tpu.memory_space<vmem>>, vector<1x288x16xbf16>
    %44 = vector.shape_cast %43 : vector<1x288x16xbf16> to vector<288x16xbf16>
    %c7 = arith.constant 7 : index
    %c0_40 = arith.constant 0 : index
    %c0_41 = arith.constant 0 : index
    %45 = vector.load %arg2[%c7, %c0_40, %c0_41] : memref<9x16x32xbf16, #tpu.memory_space<vmem>>, vector<1x16x32xbf16>
    %46 = vector.shape_cast %45 : vector<1x16x32xbf16> to vector<16x32xbf16>
    %cst_42 = arith.constant dense<0.000000e+00> : vector<288x32xf32>
    %47 = tpu.matmul %44, %46, %cst_42 {dimension_numbers = #tpu.dot_dimension_numbers<[1], [0], [0], [1], [0, 0, 1, 1], [], []>} : vector<288x16xbf16>, vector<16x32xbf16>, vector<288x32xf32> -> vector<288x32xf32>
    %48 = arith.addf %42, %47 : vector<288x32xf32>
    %c0_43 = arith.constant 0 : index
    %c38 = arith.constant 38 : index
    %c0_44 = arith.constant 0 : index
    %49 = vector.load %arg1[%c0_43, %c38, %c0_44] : memref<1x342x16xbf16, #tpu.memory_space<vmem>>, vector<1x288x16xbf16>
    %50 = vector.shape_cast %49 : vector<1x288x16xbf16> to vector<288x16xbf16>
    %c8 = arith.constant 8 : index
    %c0_45 = arith.constant 0 : index
    %c0_46 = arith.constant 0 : index
    %51 = vector.load %arg2[%c8, %c0_45, %c0_46] : memref<9x16x32xbf16, #tpu.memory_space<vmem>>, vector<1x16x32xbf16>
    %52 = vector.shape_cast %51 : vector<1x16x32xbf16> to vector<16x32xbf16>
    %cst_47 = arith.constant dense<0.000000e+00> : vector<288x32xf32>
    %53 = tpu.matmul %50, %52, %cst_47 {dimension_numbers = #tpu.dot_dimension_numbers<[1], [0], [0], [1], [0, 0, 1, 1], [], []>} : vector<288x16xbf16>, vector<16x32xbf16>, vector<288x32xf32> -> vector<288x32xf32>
    %54 = arith.addf %48, %53 : vector<288x32xf32>
    %cst_48 = arith.constant 0.000000e+00 : f32
    %55 = vector.broadcast %cst_48 : f32 to vector<288x32xf32>
    %56 = arith.maximumf %54, %55 : vector<288x32xf32>
    %57 = arith.truncf %56 : vector<288x32xf32> to vector<288x32xbf16>
    %c0_49 = arith.constant 0 : index
    %c0_50 = arith.constant 0 : index
    %c0_51 = arith.constant 0 : index
    %58 = vector.load %arg3[%c0_49, %c0_50, %c0_51] : memref<1x288x32xbf16, #tpu.memory_space<vmem>>, vector<1x288x32xbf16>
    %59 = vector.shape_cast %58 : vector<1x288x32xbf16> to vector<288x32xbf16>
    %60 = vector.shape_cast %57 : vector<288x32xbf16> to vector<1x288x32xbf16>
    tpu.vector_store %arg3[%c0_49, %c0_50, %c0_51], %60 {strides = array<i32>} : memref<1x288x32xbf16, #tpu.memory_space<vmem>>, vector<1x288x32xbf16>,
    return
  }
  func.func @transform_0(%arg0: i32) -> (i32, i32, i32) {
    %c0_i32 = arith.constant 0 : i32
    %c0_i32_0 = arith.constant 0 : i32
    %c0_i32_1 = arith.constant 0 : i32
    return %arg0, %c0_i32, %c0_i32_0 : i32, i32, i32
  }
  func.func @transform_1(%arg0: i32) -> (i32, i32, i32) {
    %c0_i32 = arith.constant 0 : i32
    %c0_i32_0 = arith.constant 0 : i32
    %c0_i32_1 = arith.constant 0 : i32
    %c0_i32_2 = arith.constant 0 : i32
    return %c0_i32, %c0_i32_0, %c0_i32_1 : i32, i32, i32
  }
  func.func @transform_2(%arg0: i32) -> (i32, i32, i32) {
    %c0_i32 = arith.constant 0 : i32
    %c0_i32_0 = arith.constant 0 : i32
    %c0_i32_1 = arith.constant 0 : i32
    return %arg0, %c0_i32, %c0_i32_0 : i32, i32, i32
  }
}

module attributes {stable_mosaic.version = 11 : i64} {
  func.func @_deconv_kernel(%arg0: i32, %arg1: memref<1x1190x8xbf16, #tpu.memory_space<vmem>>, %arg2: memref<9x8x12xbf16, #tpu.memory_space<vmem>>, %arg3: memref<1x1088x12xf32, #tpu.memory_space<vmem>>) attributes {dimension_semantics = [#tpu.dimension_semantics<parallel>], iteration_bounds = array<i64: 2>, scalar_prefetch = 0 : i64, scratch_operands = 0 : i64, tpu.core_type = #tpu.core_type<tc>, window_params = [{transform_indices = @transform_0, window_bounds = array<i64: 1, 1190, 8>}, {pipeline_mode = #tpu.pipeline_mode<synchronous>, transform_indices = @transform_1, window_bounds = array<i64: 9, 8, 12>}, {transform_indices = @transform_2, window_bounds = array<i64: 1, 1088, 12>}]} {
    %cst = arith.constant 0.000000e+00 : f32
    %0 = vector.broadcast %cst : f32 to vector<1088x12xf32>
    %c0 = arith.constant 0 : index
    %c0_0 = arith.constant 0 : index
    %c0_1 = arith.constant 0 : index
    %1 = vector.load %arg1[%c0, %c0_0, %c0_1] : memref<1x1190x8xbf16, #tpu.memory_space<vmem>>, vector<1x1088x8xbf16>
    %2 = vector.shape_cast %1 : vector<1x1088x8xbf16> to vector<1088x8xbf16>
    %c0_2 = arith.constant 0 : index
    %c0_3 = arith.constant 0 : index
    %c0_4 = arith.constant 0 : index
    %3 = vector.load %arg2[%c0_2, %c0_3, %c0_4] : memref<9x8x12xbf16, #tpu.memory_space<vmem>>, vector<1x8x12xbf16>
    %4 = vector.shape_cast %3 : vector<1x8x12xbf16> to vector<8x12xbf16>
    %cst_5 = arith.constant dense<0.000000e+00> : vector<1088x12xf32>
    %5 = tpu.matmul %2, %4, %cst_5 {dimension_numbers = #tpu.dot_dimension_numbers<[1], [0], [0], [1], [0, 0, 1, 1], [], []>} : vector<1088x8xbf16>, vector<8x12xbf16>, vector<1088x12xf32> -> vector<1088x12xf32>
    %6 = arith.addf %0, %5 : vector<1088x12xf32>
    %c0_6 = arith.constant 0 : index
    %c1 = arith.constant 1 : index
    %c0_7 = arith.constant 0 : index
    %7 = vector.load %arg1[%c0_6, %c1, %c0_7] : memref<1x1190x8xbf16, #tpu.memory_space<vmem>>, vector<1x1088x8xbf16>
    %8 = vector.shape_cast %7 : vector<1x1088x8xbf16> to vector<1088x8xbf16>
    %c1_8 = arith.constant 1 : index
    %c0_9 = arith.constant 0 : index
    %c0_10 = arith.constant 0 : index
    %9 = vector.load %arg2[%c1_8, %c0_9, %c0_10] : memref<9x8x12xbf16, #tpu.memory_space<vmem>>, vector<1x8x12xbf16>
    %10 = vector.shape_cast %9 : vector<1x8x12xbf16> to vector<8x12xbf16>
    %cst_11 = arith.constant dense<0.000000e+00> : vector<1088x12xf32>
    %11 = tpu.matmul %8, %10, %cst_11 {dimension_numbers = #tpu.dot_dimension_numbers<[1], [0], [0], [1], [0, 0, 1, 1], [], []>} : vector<1088x8xbf16>, vector<8x12xbf16>, vector<1088x12xf32> -> vector<1088x12xf32>
    %12 = arith.addf %6, %11 : vector<1088x12xf32>
    %c0_12 = arith.constant 0 : index
    %c2 = arith.constant 2 : index
    %c0_13 = arith.constant 0 : index
    %13 = vector.load %arg1[%c0_12, %c2, %c0_13] : memref<1x1190x8xbf16, #tpu.memory_space<vmem>>, vector<1x1088x8xbf16>
    %14 = vector.shape_cast %13 : vector<1x1088x8xbf16> to vector<1088x8xbf16>
    %c2_14 = arith.constant 2 : index
    %c0_15 = arith.constant 0 : index
    %c0_16 = arith.constant 0 : index
    %15 = vector.load %arg2[%c2_14, %c0_15, %c0_16] : memref<9x8x12xbf16, #tpu.memory_space<vmem>>, vector<1x8x12xbf16>
    %16 = vector.shape_cast %15 : vector<1x8x12xbf16> to vector<8x12xbf16>
    %cst_17 = arith.constant dense<0.000000e+00> : vector<1088x12xf32>
    %17 = tpu.matmul %14, %16, %cst_17 {dimension_numbers = #tpu.dot_dimension_numbers<[1], [0], [0], [1], [0, 0, 1, 1], [], []>} : vector<1088x8xbf16>, vector<8x12xbf16>, vector<1088x12xf32> -> vector<1088x12xf32>
    %18 = arith.addf %12, %17 : vector<1088x12xf32>
    %c0_18 = arith.constant 0 : index
    %c34 = arith.constant 34 : index
    %c0_19 = arith.constant 0 : index
    %19 = vector.load %arg1[%c0_18, %c34, %c0_19] : memref<1x1190x8xbf16, #tpu.memory_space<vmem>>, vector<1x1088x8xbf16>
    %20 = vector.shape_cast %19 : vector<1x1088x8xbf16> to vector<1088x8xbf16>
    %c3 = arith.constant 3 : index
    %c0_20 = arith.constant 0 : index
    %c0_21 = arith.constant 0 : index
    %21 = vector.load %arg2[%c3, %c0_20, %c0_21] : memref<9x8x12xbf16, #tpu.memory_space<vmem>>, vector<1x8x12xbf16>
    %22 = vector.shape_cast %21 : vector<1x8x12xbf16> to vector<8x12xbf16>
    %cst_22 = arith.constant dense<0.000000e+00> : vector<1088x12xf32>
    %23 = tpu.matmul %20, %22, %cst_22 {dimension_numbers = #tpu.dot_dimension_numbers<[1], [0], [0], [1], [0, 0, 1, 1], [], []>} : vector<1088x8xbf16>, vector<8x12xbf16>, vector<1088x12xf32> -> vector<1088x12xf32>
    %24 = arith.addf %18, %23 : vector<1088x12xf32>
    %c0_23 = arith.constant 0 : index
    %c35 = arith.constant 35 : index
    %c0_24 = arith.constant 0 : index
    %25 = vector.load %arg1[%c0_23, %c35, %c0_24] : memref<1x1190x8xbf16, #tpu.memory_space<vmem>>, vector<1x1088x8xbf16>
    %26 = vector.shape_cast %25 : vector<1x1088x8xbf16> to vector<1088x8xbf16>
    %c4 = arith.constant 4 : index
    %c0_25 = arith.constant 0 : index
    %c0_26 = arith.constant 0 : index
    %27 = vector.load %arg2[%c4, %c0_25, %c0_26] : memref<9x8x12xbf16, #tpu.memory_space<vmem>>, vector<1x8x12xbf16>
    %28 = vector.shape_cast %27 : vector<1x8x12xbf16> to vector<8x12xbf16>
    %cst_27 = arith.constant dense<0.000000e+00> : vector<1088x12xf32>
    %29 = tpu.matmul %26, %28, %cst_27 {dimension_numbers = #tpu.dot_dimension_numbers<[1], [0], [0], [1], [0, 0, 1, 1], [], []>} : vector<1088x8xbf16>, vector<8x12xbf16>, vector<1088x12xf32> -> vector<1088x12xf32>
    %30 = arith.addf %24, %29 : vector<1088x12xf32>
    %c0_28 = arith.constant 0 : index
    %c36 = arith.constant 36 : index
    %c0_29 = arith.constant 0 : index
    %31 = vector.load %arg1[%c0_28, %c36, %c0_29] : memref<1x1190x8xbf16, #tpu.memory_space<vmem>>, vector<1x1088x8xbf16>
    %32 = vector.shape_cast %31 : vector<1x1088x8xbf16> to vector<1088x8xbf16>
    %c5 = arith.constant 5 : index
    %c0_30 = arith.constant 0 : index
    %c0_31 = arith.constant 0 : index
    %33 = vector.load %arg2[%c5, %c0_30, %c0_31] : memref<9x8x12xbf16, #tpu.memory_space<vmem>>, vector<1x8x12xbf16>
    %34 = vector.shape_cast %33 : vector<1x8x12xbf16> to vector<8x12xbf16>
    %cst_32 = arith.constant dense<0.000000e+00> : vector<1088x12xf32>
    %35 = tpu.matmul %32, %34, %cst_32 {dimension_numbers = #tpu.dot_dimension_numbers<[1], [0], [0], [1], [0, 0, 1, 1], [], []>} : vector<1088x8xbf16>, vector<8x12xbf16>, vector<1088x12xf32> -> vector<1088x12xf32>
    %36 = arith.addf %30, %35 : vector<1088x12xf32>
    %c0_33 = arith.constant 0 : index
    %c68 = arith.constant 68 : index
    %c0_34 = arith.constant 0 : index
    %37 = vector.load %arg1[%c0_33, %c68, %c0_34] : memref<1x1190x8xbf16, #tpu.memory_space<vmem>>, vector<1x1088x8xbf16>
    %38 = vector.shape_cast %37 : vector<1x1088x8xbf16> to vector<1088x8xbf16>
    %c6 = arith.constant 6 : index
    %c0_35 = arith.constant 0 : index
    %c0_36 = arith.constant 0 : index
    %39 = vector.load %arg2[%c6, %c0_35, %c0_36] : memref<9x8x12xbf16, #tpu.memory_space<vmem>>, vector<1x8x12xbf16>
    %40 = vector.shape_cast %39 : vector<1x8x12xbf16> to vector<8x12xbf16>
    %cst_37 = arith.constant dense<0.000000e+00> : vector<1088x12xf32>
    %41 = tpu.matmul %38, %40, %cst_37 {dimension_numbers = #tpu.dot_dimension_numbers<[1], [0], [0], [1], [0, 0, 1, 1], [], []>} : vector<1088x8xbf16>, vector<8x12xbf16>, vector<1088x12xf32> -> vector<1088x12xf32>
    %42 = arith.addf %36, %41 : vector<1088x12xf32>
    %c0_38 = arith.constant 0 : index
    %c69 = arith.constant 69 : index
    %c0_39 = arith.constant 0 : index
    %43 = vector.load %arg1[%c0_38, %c69, %c0_39] : memref<1x1190x8xbf16, #tpu.memory_space<vmem>>, vector<1x1088x8xbf16>
    %44 = vector.shape_cast %43 : vector<1x1088x8xbf16> to vector<1088x8xbf16>
    %c7 = arith.constant 7 : index
    %c0_40 = arith.constant 0 : index
    %c0_41 = arith.constant 0 : index
    %45 = vector.load %arg2[%c7, %c0_40, %c0_41] : memref<9x8x12xbf16, #tpu.memory_space<vmem>>, vector<1x8x12xbf16>
    %46 = vector.shape_cast %45 : vector<1x8x12xbf16> to vector<8x12xbf16>
    %cst_42 = arith.constant dense<0.000000e+00> : vector<1088x12xf32>
    %47 = tpu.matmul %44, %46, %cst_42 {dimension_numbers = #tpu.dot_dimension_numbers<[1], [0], [0], [1], [0, 0, 1, 1], [], []>} : vector<1088x8xbf16>, vector<8x12xbf16>, vector<1088x12xf32> -> vector<1088x12xf32>
    %48 = arith.addf %42, %47 : vector<1088x12xf32>
    %c0_43 = arith.constant 0 : index
    %c70 = arith.constant 70 : index
    %c0_44 = arith.constant 0 : index
    %49 = vector.load %arg1[%c0_43, %c70, %c0_44] : memref<1x1190x8xbf16, #tpu.memory_space<vmem>>, vector<1x1088x8xbf16>
    %50 = vector.shape_cast %49 : vector<1x1088x8xbf16> to vector<1088x8xbf16>
    %c8 = arith.constant 8 : index
    %c0_45 = arith.constant 0 : index
    %c0_46 = arith.constant 0 : index
    %51 = vector.load %arg2[%c8, %c0_45, %c0_46] : memref<9x8x12xbf16, #tpu.memory_space<vmem>>, vector<1x8x12xbf16>
    %52 = vector.shape_cast %51 : vector<1x8x12xbf16> to vector<8x12xbf16>
    %cst_47 = arith.constant dense<0.000000e+00> : vector<1088x12xf32>
    %53 = tpu.matmul %50, %52, %cst_47 {dimension_numbers = #tpu.dot_dimension_numbers<[1], [0], [0], [1], [0, 0, 1, 1], [], []>} : vector<1088x8xbf16>, vector<8x12xbf16>, vector<1088x12xf32> -> vector<1088x12xf32>
    %54 = arith.addf %48, %53 : vector<1088x12xf32>
    %55 = math.tanh %54 : vector<1088x12xf32>
    %c0_48 = arith.constant 0 : index
    %c0_49 = arith.constant 0 : index
    %c0_50 = arith.constant 0 : index
    %56 = vector.load %arg3[%c0_48, %c0_49, %c0_50] : memref<1x1088x12xf32, #tpu.memory_space<vmem>>, vector<1x1088x12xf32>
    %57 = vector.shape_cast %56 : vector<1x1088x12xf32> to vector<1088x12xf32>
    %58 = vector.shape_cast %55 : vector<1088x12xf32> to vector<1x1088x12xf32>
    tpu.vector_store %arg3[%c0_48, %c0_49, %c0_50], %58 {strides = array<i32>} : memref<1x1088x12xf32, #tpu.memory_space<vmem>>, vector<1x1088x12xf32>,
    return
  }
  func.func @transform_0(%arg0: i32) -> (i32, i32, i32) {
    %c0_i32 = arith.constant 0 : i32
    %c0_i32_0 = arith.constant 0 : i32
    %c0_i32_1 = arith.constant 0 : i32
    return %arg0, %c0_i32, %c0_i32_0 : i32, i32, i32
  }
  func.func @transform_1(%arg0: i32) -> (i32, i32, i32) {
    %c0_i32 = arith.constant 0 : i32
    %c0_i32_0 = arith.constant 0 : i32
    %c0_i32_1 = arith.constant 0 : i32
    %c0_i32_2 = arith.constant 0 : i32
    return %c0_i32, %c0_i32_0, %c0_i32_1 : i32, i32, i32
  }
  func.func @transform_2(%arg0: i32) -> (i32, i32, i32) {
    %c0_i32 = arith.constant 0 : i32
    %c0_i32_0 = arith.constant 0 : i32
    %c0_i32_1 = arith.constant 0 : i32
    return %arg0, %c0_i32, %c0_i32_0 : i32, i32, i32
  }
}

</mosaic_0001>

<bundles_post_ra>
// kernel: _lambda_.5
= control target key start
LH: loop header
LB: loop body
LE: loop exit
PB: predicated region body
PF: predicated region fallthrough
CT: control target
= control target key end

     0   :  { %7 = vsyncpa [#allocation3], 0  ;;  %s377_s9 = smov [#allocation2]   ;;  %s421_s0 = inlined_call_operand.vmem [shape: bf16[2,8], index: 0, kind: input, shape index: {}]   ;;  %s422_s1 = inlined_call_operand.hbm [shape: bf16[8,1024], index: 1, kind: input, shape index: {}]   ;;  %s423_s2 = inlined_call_operand.vmem [shape: bf16[2,1024], index: 2, kind: output, shape index: {}]  }
   0x1   :  { %s16_s10 = sshll.u32 %s377_s9, 4  ;;  %s353_s13 = scalar_lea.hbm %s422_s1, 512  ;;  %s17_s10 = int_to_ptr.vmem [resolvable:$true] %s16_s10 }
   0x2   :  { %p354_p0 = scmp.ne.s32.totalorder %s422_s1, %s353_s13  ;;  %p357_p1 = scmp.lt.u32.totalorder %s353_s13, %s422_s1 }
   0x4   :  { %p359_p2 = pnand %p357_p1, %p354_p0 }
   0x6   :  { %362 = shalt.err (!%p359_p2)
}
   0x7   :  { %s363_s18 = scalar_lea.vmem %s17_s10, 512  ;;  %p368_p4 = scmp.lt.s32.totalorder %s17_s10, %s17_s10 }
   0x8   :  { %p364_p3 = scmp.ne.s32.totalorder %s17_s10, %s363_s18  ;;  %p369_p5 = scmp.lt.s32.totalorder %s363_s18, %s363_s18 }
   0xa   :  { %p370_p6 = por %p369_p5, %p368_p4 }
   0xc   :  { %p371_p7 = pnand %p370_p6, %p364_p3 }
   0xe   :  { %374 = shalt.err (!%p371_p7)
}
   0xf   :  { %19 = dma.hbm_to_vmem [thread:$0]  %s422_s1, 512, %s17_s10, [#allocation3]  }
  0x10   :  { %375 = dma.done.wait [#allocation3], 512  }
  0x11   :  { %376 = vsyncadd [#allocation3], 4294966784  ;;  %v378_v0 = vmov 0   ;;  %v25_v1 = vld [vmem:[#allocation2] sm:$0xff]  ;;  %vm53_vm0 = vcmask 1043456   ;;  %v26_v2 = vld [vmem:[#allocation2 + $0x8] sm:$0xff]  ;;  %v273_v20 = vlaneseq }
  0x12   :  { %110 = vmatprep.mubr.bf16.mxu0 %v378_v0  ;;  %151 = vmatprep.mubr.bf16.mxu1 %v378_v0  ;;  %v323_v3 = vcombine.high %v25_v1, %v25_v1  ;;  %v325_v4 = vcombine.high %v26_v2, %v26_v2  ;;  %v322_v5 = vcombine.low %v25_v1, %v25_v1  ;;  %v27_v7 = vld [vmem:[#allocation2 + $0x10] sm:$0xff]  ;;  %v28_v8 = vld [vmem:[#allocation2 + $0x18] sm:$0xff]  ;;  %v24_v15 = vld [vmem:[%s421_s0] sm:$0x1]  ;;  %vm49_vm1 = vcmask 64512  }
  0x13   :  { %v324_v6 = vcombine.low %v26_v2, %v26_v2  ;;  %v327_v9 = vcombine.high %v27_v7, %v27_v7  ;;  %v329_v10 = vcombine.high %v28_v8, %v28_v8  ;;  %v326_v11 = vcombine.low %v27_v7, %v27_v7 }
  0x14   :  { %v328_v12 = vcombine.low %v28_v8, %v28_v8  ;;  %330 = vmatprep.subr.msk.bf16.mxu0 %vm53_vm0, %v323_v3  ;;  %332 = vmatprep.subr.msk.bf16.mxu1 %vm53_vm0, %v325_v4  ;;  %v55_v13 = vsel %vm53_vm0, %v322_v5, 0  ;;  %v379_v18 = vmov 1966171168   ;;  %v274_v22 = vshrl.u32 %v273_v20, 7 }
  0x15   :  { %v61_v14 = vsel %vm53_vm0, %v324_v6, 0  ;;  %79 = vmatpush1.bf16.msra.mxu0 %v55_v13  ;;  %v67_v16 = vsel %vm53_vm0, %v326_v11, 0  ;;  %v271_v19 = vunpack.c.l.s4 %v379_v18 }
  0x16   :  { %120 = vmatpush1.bf16.msra.mxu1 %v61_v14  ;;  %334 = vmatprep.subr.msk.bf16.mxu0 %vm53_vm0, %v327_v9  ;;  %v73_v17 = vsel %vm53_vm0, %v328_v12, 0 }
  0x17   :  { %336 = vmatprep.subr.msk.bf16.mxu1 %vm53_vm0, %v329_v10  ;;  %v272_v21 = vunpack.c.0.s8 %v271_v19 }
  0x18   :  { %331 = vmatmul.mubr.msk.bf16.vlgmr.msra.gmra.mrb[0].mxu0 %vm49_vm1, %v24_v15 }
  0x19   :  { %333 = vmatmul.mubr.msk.bf16.vlgmr.msra.gmra.mrb[0].mxu1 %vm49_vm1, %v24_v15  ;;  %161 = vmatpush1.bf16.msra.mxu0 %v67_v16  ;;  %v275_v30 = vsub.s32 %v272_v21, %v274_v22 }
  0x1a   :  { %202 = vmatpush1.bf16.msra.mxu1 %v73_v17  ;;  %192 = vmatprep.mubr.bf16.mxu0 %v378_v0 }
  0x1b   :  { %233 = vmatprep.mubr.bf16.mxu1 %v378_v0 }
  0x20   :  { %335 = vmatmul.mubr.msk.bf16.vlgmr.msra.gmra.mrb[4].mxu0 %vm49_vm1, %v24_v15 }
  0x21   :  { %337 = vmatmul.mubr.msk.bf16.vlgmr.msra.gmra.mrb[4].mxu1 %vm49_vm1, %v24_v15 }
  0xeb   :  { %v112_v23 = vpop.f32.mrb[0].mxu0 }
  0xec   :  { %v153_v24 = vpop.f32.mrb[0].mxu1  ;;  %v242_v25 = vmax.f32 %v112_v23, 0.0  ;;  %v114_v27 = vpop.f32.mrb[1].mxu0 }
  0xed   :  { %v244_v26 = vmax.f32 %v153_v24, 0.0  ;;  %v155_v28 = vpop.f32.mrb[1].mxu1  ;;  %v243_v29 = vmax.f32 %v114_v27, 0.0  ;;  %v116_v32 = vpop.f32.mrb[2].mxu0 }
  0xee   :  { %v245_v31 = vmax.f32 %v155_v28, 0.0  ;;  %v157_v33 = vpop.f32.mrb[2].mxu1  ;;  %v117_v34 = vpop.f32.mrb[3].mxu0 }
  0xef   :  { %v158_v35 = vpop.f32.mrb[3].mxu1  ;;  %v338_v36 = vpack.c.bf16 %v243_v29, %v242_v25 }
  0xf0   :  { %v339_v37 = vpack.c.bf16 %v245_v31, %v244_v26 }
  0xf1   :  { %v276_v38 = vrot.slane %v338_v36, %v275_v30 }
  0xf2   :  { %v283_v39 = vrot.slane %v339_v37, %v275_v30 }
  0xf3   :  { %v194_v41 = vpop.f32.mrb[4].mxu0 }
  0xf4   :  { %v298_v40 = vcombine.low %v276_v38, %v283_v39  ;;  %v235_v42 = vpop.f32.mrb[4].mxu1  ;;  %v246_v43 = vmax.f32 %v194_v41, 0.0  ;;  %v196_v45 = vpop.f32.mrb[5].mxu0 }
  0xf5   :  { %v248_v44 = vmax.f32 %v235_v42, 0.0  ;;  %v237_v46 = vpop.f32.mrb[5].mxu1  ;;  %v247_v47 = vmax.f32 %v196_v45, 0.0  ;;  %v198_v49 = vpop.f32.mrb[6].mxu0 }
  0xf6   :  { %v249_v48 = vmax.f32 %v237_v46, 0.0  ;;  %v239_v50 = vpop.f32.mrb[6].mxu1  ;;  %v199_v51 = vpop.f32.mrb[7].mxu0  ;;  %v306_v58 = vrot.slane %v298_v40, %v275_v30 }
  0xf7   :  { %v240_v52 = vpop.f32.mrb[7].mxu1  ;;  %v340_v53 = vpack.c.bf16 %v247_v47, %v246_v43 }
  0xf8   :  { %v341_v54 = vpack.c.bf16 %v249_v48, %v248_v44 }
  0xf9   :  { %v290_v55 = vrot.slane %v340_v53, %v275_v30 }
  0xfa   :  { %v297_v56 = vrot.slane %v341_v54, %v275_v30 }
  0xfc   :  { %v299_v57 = vcombine.low %v290_v55, %v297_v56 }
  0xfe   :  { %v313_v59 = vrot.slane %v299_v57, %v275_v30 }
 0x100   :  { %v314_v60 = vcombine.low %v306_v58, %v313_v59 }
 0x102   :  { %316 = vst [vmem:[%s423_s2] sm:$0xff] %v314_v60 }
 0x103   :  { %321 = vsyncpa [#allocation3], 1 }

// kernel: _lambda_.6
= control target key start
LH: loop header
LB: loop body
LE: loop exit
PB: predicated region body
PF: predicated region fallthrough
CT: control target
= control target key end

     0   :  { %7 = vsyncpa [#allocation3], 0  ;;  %s1583_s9 = smov 0   ;;  %s1725_s0 = inlined_call_operand.vmem [shape: bf16[2,42,64], index: 0, kind: input, shape index: {}]   ;;  %s1726_s1 = inlined_call_operand.hbm [shape: bf16[9,64,128], index: 1, kind: input, shape index: {}]   ;;  %s1727_s2 = inlined_call_operand.vmem [shape: bf16[2,24,128], index: 2, kind: output, shape index: {}]  }
   0x1 LB: > { %s1589_s10 = sadd.s32 4294967295, %s1563_s9   ;;  %p1173_p0 = scmp.ge.s32.totalorder %s1563_s9, 1  ;;  %s1563_s9 = sphi %s1583_s9, %s13_s9  }
   0x2   : > { %p91_p1 = scmp.lt.s32.totalorder %s1563_s9, 3  ;;  %s1565_s11 = smov [#allocation2]  }
   0x3   : > { %s103_s12 = sshll.u32 %s1565_s11, 4  ;;  %p1728_p3 = scmp.eq.s32.totalorder %s1589_s10, 0  ;;  %s104_s12 = int_to_ptr.vmem [resolvable:$true] %s103_s12 }
   0x4   : > { %p1593_p2 = pnand %p1173_p0, %p91_p1  ;;  %s1525_s17 = scalar_lea.hbm %s1726_s1, 4608 }
   0x5   : > { %p1526_p6 = scmp.ne.s32.totalorder %s1726_s1, %s1525_s17  ;;  %p1532_p10 = scmp.lt.u32.totalorder %s1525_s17, %s1726_s1 }
   0x6   : > { %s1730_s13 = scalar_select %p1593_p2, 1, 0 }
   0x7   : > { %p1459_p4 = pneg %p1593_p2 }
   0x9   : > { %p1602_p5 = pnand %p1728_p3, %p1459_p4 }
   0xb   : > { %p1527_p7 = pneg %p1602_p5 }
   0xd   : > { %p1528_p8 = pnand %p1527_p7, %p1526_p6 }
   0xf   : > { %p1529_p9 = pneg %p1528_p8 }
  0x11   : > { %p1534_p11 = pnand %p1532_p10, %p1529_p9 }
  0x13   : > { %1537 = shalt.err (!%p1534_p11)
}
  0x14   : > { %s1538_s22 = scalar_lea.vmem %s104_s12, 4608  ;;  %p1546_p1 = scmp.lt.s32.totalorder %s104_s12, %s104_s12 }
  0x15   : > { %p1539_p12 = scmp.ne.s32.totalorder %s104_s12, %s1538_s22  ;;  %p1547_p4 = scmp.lt.s32.totalorder %s1538_s22, %s1538_s22 }
  0x17   : > { %p1541_p13 = pnand %p1539_p12, %p1527_p7  ;;  %p1548_p3 = por %p1547_p4, %p1546_p1 }
  0x19   : > { %p1542_p0 = pneg %p1541_p13 }
  0x1b   : > { %p1549_p2 = pnand %p1548_p3, %p1542_p0 }
  0x1d   : > { %1552 = shalt.err (!%p1549_p2)
}
  0x1e   : > { %s1566_s23 = smov 64   ;;  %s1567_s24 = smov 4  }
  0x1f   : > { %1462 = dma.hbm_to_vmem [thread:$0]  (!%p1602_p5), %s1726_s1, 4608, %s104_s12, [#allocation3], %s1566_s23, %s1566_s23, %s1567_s24  }
  0x20   : > { %p1732_p6 = scmp.ne.s32.totalorder %s1730_s13, 0 }
  0x21   : > { %p1733_p8 = scmp.eq.s32.totalorder (!%p1732_p6), %s1589_s10, 0 }
  0x22   : > { %127 = sbr.rel (%p1732_p6) target bundleno = 348 (0x15c), region = 28 }
  0x29   : > { %1558 = dma.done.wait (%p1733_p8), [#allocation3], 4608   ;;  %p1734_p7 = pmov %p1733_p8 }
  0x2a   : > { %p149_p2 = scmp.lt.s32.totalorder %s1589_s10, 1  ;;  %v1476_v0 = vld [vmem:[#allocation2 + $0x20] sm:$0xff]   ;;  %v1478_v2 = vld [vmem:[#allocation2 + $0x28] sm:$0xff]   ;;  %v1480_v4 = vld [vmem:[#allocation2 + $0x30] sm:$0xff]   ;;  %vm191_vm0 = vsmask.f32 7424 }
  0x2b   : > { %1560 = vsyncadd (%p1734_p7), [#allocation3], 4294962688  ;;  %v1477_v1 = vld [vmem:[#allocation2 + $0x80] sm:$0xff]   ;;  %1314 = vmatprep.subr.bf16.mxu1 %v1476_v0  ;;  %v1479_v3 = vld [vmem:[#allocation2 + $0x88] sm:$0xff]   ;;  %vm231_vm1 = vcmask 523264   ;;  %vm377_vm3 = vcmask 1046528  }
  0x2c   : > { %s1736_s10 = smov (!%p149_p2, %s1589_s10), 1  ;;  %1362 = vmatprep.subr.bf16.mxu0 %v1477_v1  ;;  %1315 = vmatpush3.bf16.msra.mxu1 %v1476_v0  ;;  %v1481_v5 = vld [vmem:[#allocation2 + $0x90] sm:$0xff]   ;;  %v1482_v6 = vld [vmem:[#allocation2 + $0x38] sm:$0xff]   ;;  %vm577_vm2 = vsmask.f32 4352  ;;  %v1486_v22 = vld [vmem:[#allocation2] sm:$0xff]  }
  0x2d   : > { %s1453_s27 = smul.u32 24, %s1736_s10  ;;  %1363 = vmatpush3.bf16.msra.mxu0 %v1477_v1  ;;  %1316 = vmatprep.subr.bf16.mxu1 %v1478_v2  ;;  %v1483_v7 = vld [vmem:[#allocation2 + $0x98] sm:$0xff]   ;;  %v1490_v23 = vld [vmem:[#allocation2 + $0xa0] sm:$0xff]   ;;  %v1491_v38 = vld [vmem:[#allocation2 + $0x8] sm:$0xff]   ;;  %vm791_vm4 = vcmask 1045504   ;;  %vm479_vm5 = vcmask 1044480  }
  0x2e   : > { %1364 = vmatprep.subr.bf16.mxu0 %v1479_v3  ;;  %v1492_v42 = vld [vmem:[#allocation2 + $0xa8] sm:$0xff]   ;;  %v1493_v43 = vld [vmem:[#allocation2 + $0x10] sm:$0xff]   ;;  %v1495_v45 = vld [vmem:[#allocation2 + $0x18] sm:$0xff]   ;;  %vm889_vm6 = vsmask.f32 5376  ;;  %s1454_s3 = smul.u32 12, %s1736_s10 }
  0x2f   : > { %s1636_s30 = scalar_lea.vmem %s1725_s0, %s1453_s27  ;;  %v1494_v44 = vld [vmem:[#allocation2 + $0xb0] sm:$0xff]   ;;  %v1496_v46 = vld [vmem:[#allocation2 + $0xb8] sm:$0xff]   ;;  %v1497_v48 = vld [vmem:[#allocation2 + $0x40] sm:$0xff]  }
  0x30   : > { %1317 = vmatpush3.bf16.msra.mxu1 %v1478_v2  ;;  %v160_v8 = vld [vmem:[%s1636_s30] sm:$0xf]  ;;  %v1640_v9 = vld [vmem:[%s1636_s30 + $0x4] sm:$0xf]  ;;  %v1643_v10 = vld [vmem:[%s1636_s30 + $0x8] sm:$0xf]  ;;  %s158_s6 = scalar_lea.vmem %s1727_s2, %s1454_s3 }
  0x31   : > { %1365 = vmatpush3.bf16.msra.mxu0 %v1479_v3  ;;  %1318 = vmatprep.subr.bf16.mxu1 %v1480_v4  ;;  %v171_v11 = vld [vmem:[%s1636_s30 + $0xc] sm:$0x1]  ;;  %v1180_v12 = vcombine.low %v160_v8, %v1640_v9  ;;  %v462_v14 = vld [vmem:[%s1636_s30] sm:$0x8]  ;;  %v1217_v40 = vcombine.low %v1640_v9, %v1643_v10  ;;  %v768_v50 = vld [vmem:[%s1636_s30 + $0x4] sm:$0xc]  ;;  %v1188_v57 = vcombine.low %v1643_v10, %v1643_v10 }
  0x32   : > { %1366 = vmatprep.subr.bf16.mxu0 %v1481_v5  ;;  %v1648_v13 = vcombine.low %v1643_v10, %v171_v11  ;;  %v1652_v15 = vld [vmem:[%s1636_s30 + $0xc] sm:$0xf]  ;;  %v1655_v18 = vcombine.low %v462_v14, %v1640_v9  ;;  %v364_v47 = vld [vmem:[%s1636_s30] sm:$0xe]  ;;  %v1677_v51 = vld [vmem:[%s1636_s30 + $0x8] sm:$0xf] }
  0x33   : > { %v193_v16 = vshrl.u32 %v1180_v12, 16  ;;  %v195_v17 = vshll.u32 %v1180_v12, 16  ;;  %v1210_v19 = vcombine.low %v1643_v10, %v1652_v15  ;;  %v1195_v49 = vcombine.low %v364_v47, %v1640_v9  ;;  %v770_v52 = vld [vmem:[%s1636_s30 + $0xc] sm:$0xf]  ;;  %v771_v55 = vld [vmem:[%s1636_s30 + $0x10] sm:$0x3] }
  0x34   : > { %1319 = vmatpush3.bf16.msra.mxu1 %v1480_v4  ;;  %v200_v20 = vshll.u32 %v1648_v13, 16  ;;  %v204_v21 = vshrl.u32 %v1648_v13, 16  ;;  %v579_v25 = vshrl.u32 %v1655_v18, 16  ;;  %v582_v26 = vshll.u32 %v1655_v18, 16  ;;  %v876_v59 = vld [vmem:[%s1636_s30 + $0x10] sm:$0x7] }
  0x35   : > { %1367 = vmatpush3.bf16.msra.mxu0 %v1481_v5  ;;  %1320 = vmatprep.subr.bf16.mxu1 %v1482_v6  ;;  %v197_v24 = vrot.slane %v195_v17, 1  ;;  %v587_v27 = vshrl.u32 %v1210_v19, 16  ;;  %v590_v29 = vshll.u32 %v1210_v19, 16  ;;  %v378_v53 = vrot.slane %v1195_v49, 1  ;;  %v1499_v60 = vld [vmem:[#allocation2 + $0xc0] sm:$0xff]   ;;  %v1501_v62 = vld [vmem:[#allocation2 + $0x48] sm:$0xff]  }
  0x36   : > { %1368 = vmatprep.subr.bf16.mxu0 %v1483_v7  ;;  %v202_v28 = vrot.slane %v200_v20, 1  ;;  %v581_v31 = vrot.slane %v579_v25, 3  ;;  %v584_v32 = vrot.slane %v582_v26, 4  ;;  %v379_v54 = vrot.slane %v1648_v13, 1  ;;  %v1502_v2 = vld [vmem:[#allocation2 + $0xc8] sm:$0xff]   ;;  %v1503_v5 = vld [vmem:[#allocation2 + $0x50] sm:$0xff]  }
  0x37   : > { %v198_v30 = vor.u32 %v197_v24, %v193_v16  ;;  %v589_v33 = vrot.slane %v587_v27, 3  ;;  %v592_v35 = vrot.slane %v590_v29, 4  ;;  %v1225_v56 = vcombine.low %v768_v50, %v1677_v51  ;;  %v1505_v14 = vld [vmem:[#allocation2 + $0x58] sm:$0xff]   ;;  %v1512_v25 = vld [vmem:[#allocation2 + $0xe0] sm:$0xff]   ;;  %v1513_v27 = vld [vmem:[#allocation2 + $0x68] sm:$0xff]  }
  0x38   : > { %1321 = vmatpush3.bf16.msra.mxu1 %v1482_v6  ;;  %v206_v34 = vor.u32 %v204_v21, %v202_v28  ;;  %v585_v37 = vor.u32 %v584_v32, %v581_v31  ;;  %v1226_v58 = vcombine.low %v770_v52, %v771_v55  ;;  %v1218_v0 = vcombine.low %v1652_v15, %v1652_v15  ;;  %v1504_v6 = vld [vmem:[#allocation2 + $0xd0] sm:$0xff]   ;;  %v1506_v16 = vld [vmem:[#allocation2 + $0xd8] sm:$0xff]   ;;  %v988_v32 = vld [vmem:[%s1636_s30 + $0x4] sm:$0x8] }
  0x39   : > { %1369 = vmatpush3.bf16.msra.mxu0 %v1483_v7  ;;  %1326 = vmatprep.subr.bf16.mxu1 %v1486_v22  ;;  %v203_v36 = vsel %vm191_vm0, %v198_v30, %v202_v28  ;;  %v593_v39 = vor.u32 %v592_v35, %v589_v33  ;;  %v792_v61 = vrot.slane %v1225_v56, 2  ;;  %v380_v1 = vsel %vm377_vm3, %v378_v53, %v379_v54  ;;  %v463_v7 = vld [vmem:[%s1636_s30 + $0xc] sm:$0x7]  ;;  %v1515_v30 = vld [vmem:[#allocation2 + $0x70] sm:$0xff]   ;;  %v1517_v13 = vld [vmem:[#allocation2 + $0x78] sm:$0xff]  }
  0x3a   : > { %1374 = vmatprep.subr.bf16.mxu0 %v1490_v23  ;;  %1322 = vmatprep.mubr.msk.bf16.mxu1 %vm231_vm1, %v203_v36  ;;  %v793_v63 = vrot.slane %v1226_v58, 2  ;;  %v1693_v4 = vcombine.low %v770_v52, %v876_v59  ;;  %v891_v8 = vshrl.u32 %v1225_v56, 16  ;;  %v894_v9 = vshll.u32 %v1225_v56, 16  ;;  %v1516_v31 = vld [vmem:[#allocation2 + $0xf0] sm:$0xff]   ;;  %v1518_v33 = vld [vmem:[#allocation2 + $0xf8] sm:$0xff]   ;;  %v1520_v35 = vld [vmem:[#allocation2 + $0x100] sm:$0xff]  }
  0x3b   : > { %1323 = vmatmul.mubr.msk.bf16.vlgmr.msra.gmra.mrb[0].mxu1 %vm231_vm1, %v206_v34  ;;  %v594_v41 = vsel %vm577_vm2, %v585_v37, %v593_v39  ;;  %v1203_v15 = vcombine.low %v1643_v10, %v463_v7  ;;  %v1240_v34 = vcombine.low %v988_v32, %v1677_v51 }
  0x3c   : > { %1327 = vmatpush3.bf16.msra.mxu1 %v1486_v22  ;;  %1334 = vmatprep.mubr.msk.bf16.mxu1 %vm231_vm1, %v1180_v12  ;;  %v794_v3 = vsel %vm791_vm4, %v792_v61, %v793_v63  ;;  %v899_v11 = vshrl.u32 %v1693_v4, 16  ;;  %v902_v12 = vshll.u32 %v1693_v4, 16  ;;  %v893_v17 = vrot.slane %v891_v8, 2  ;;  %v1508_v22 = vld [vmem:[#allocation2 + $0x60] sm:$0xff]  }
  0x3d   : > { %1370 = vmatprep.mubr.msk.bf16.mxu0 %vm231_vm1, %v594_v41  ;;  %1328 = vmatprep.subr.bf16.mxu1 %v1491_v38  ;;  %v896_v19 = vrot.slane %v894_v9, 3  ;;  %v481_v24 = vrot.slane %v1203_v15, 3  ;;  %v1001_v36 = vrot.slane %v1240_v34, 3  ;;  %v1002_v37 = vrot.slane %v1693_v4, 3  ;;  %v1523_v41 = vld [vmem:[#allocation2 + $0x118] sm:$0xff]  }
  0x3e   : > { %1371 = vmatmul.mubr.msk.bf16.vlgmr.msra.gmra.mrb[0].mxu0 %vm231_vm1, %v593_v39  ;;  %v901_v20 = vrot.slane %v899_v11, 2  ;;  %v904_v21 = vrot.slane %v902_v12, 3 }
  0x3f   : > { %1375 = vmatpush3.bf16.msra.mxu0 %v1490_v23  ;;  %1382 = vmatprep.mubr.msk.bf16.mxu0 %vm231_vm1, %v1217_v40  ;;  %v480_v23 = vrot.slane %v1655_v18, 3  ;;  %v897_v26 = vor.u32 %v896_v19, %v893_v17  ;;  %v1514_v18 = vld [vmem:[#allocation2 + $0xe8] sm:$0xff]   ;;  %v1003_v39 = vsel %vm479_vm5, %v1001_v36, %v1002_v37  ;;  %v1522_v40 = vld [vmem:[#allocation2 + $0x110] sm:$0xff]  }
  0x40   : > { %1376 = vmatprep.subr.bf16.mxu0 %v1492_v42  ;;  %1329 = vmatpush3.bf16.msra.mxu1 %v1491_v38  ;;  %v905_v10 = vor.u32 %v904_v21, %v901_v20  ;;  %v1521_v38 = vld [vmem:[#allocation2 + $0x108] sm:$0xff]  }
  0x41   : > { %1330 = vmatprep.subr.bf16.mxu1 %v1493_v43  ;;  %v482_v28 = vsel %vm479_vm5, %v480_v23, %v481_v24 }
  0x42   : > { %v906_v29 = vsel %vm889_vm6, %v897_v26, %v905_v10 }
  0x43   : > { %1377 = vmatpush3.bf16.msra.mxu0 %v1492_v42 }
  0x44   : > { %1378 = vmatprep.subr.bf16.mxu0 %v1494_v44  ;;  %1331 = vmatpush3.bf16.msra.mxu1 %v1493_v43 }
  0x45   : > { %1332 = vmatprep.subr.bf16.mxu1 %v1495_v45 }
  0x47   : > { %1379 = vmatpush3.bf16.msra.mxu0 %v1494_v44 }
  0x48   : > { %1380 = vmatprep.subr.bf16.mxu0 %v1496_v46  ;;  %1333 = vmatpush3.bf16.msra.mxu1 %v1495_v45 }
  0x49   : > { %1338 = vmatprep.subr.bf16.mxu1 %v1497_v48 }
  0x4b   : > { %1381 = vmatpush3.bf16.msra.mxu0 %v1496_v46  ;;  %1335 = vmatmul.mubr.msk.bf16.vlgmr.msra.gmra.mrb[0].mxu1 %vm231_vm1, %v1188_v57 }
  0x4c   : > { %1386 = vmatprep.subr.bf16.mxu0 %v1499_v60  ;;  %1339 = vmatpush3.bf16.msra.mxu1 %v1497_v48 }
  0x4d   : > { %1340 = vmatprep.subr.bf16.mxu1 %v1501_v62  ;;  %1346 = vmatprep.mubr.msk.bf16.mxu1 %vm231_vm1, %v380_v1 }
  0x4e   : > { %1383 = vmatmul.mubr.msk.bf16.vlgmr.msra.gmra.mrb[0].mxu0 %vm231_vm1, %v1218_v0 }
  0x4f   : > { %1387 = vmatpush3.bf16.msra.mxu0 %v1499_v60  ;;  %1394 = vmatprep.mubr.msk.bf16.mxu0 %vm231_vm1, %v794_v3 }
  0x50   : > { %1388 = vmatprep.subr.bf16.mxu0 %v1502_v2  ;;  %1341 = vmatpush3.bf16.msra.mxu1 %v1501_v62 }
  0x51   : > { %1342 = vmatprep.subr.bf16.mxu1 %v1503_v5 }
  0x53   : > { %1389 = vmatpush3.bf16.msra.mxu0 %v1502_v2 }
  0x54   : > { %1390 = vmatprep.subr.bf16.mxu0 %v1504_v6  ;;  %1343 = vmatpush3.bf16.msra.mxu1 %v1503_v5 }
  0x55   : > { %1344 = vmatprep.subr.bf16.mxu1 %v1505_v14 }
  0x57   : > { %1391 = vmatpush3.bf16.msra.mxu0 %v1504_v6 }
  0x58   : > { %1392 = vmatprep.subr.bf16.mxu0 %v1506_v16  ;;  %1345 = vmatpush3.bf16.msra.mxu1 %v1505_v14 }
  0x59   : > { %1350 = vmatprep.subr.bf16.mxu1 %v1508_v22 }
  0x5b   : > { %1393 = vmatpush3.bf16.msra.mxu0 %v1506_v16  ;;  %1347 = vmatmul.mubr.msk.bf16.vlgmr.msra.gmra.mrb[0].mxu1 %vm231_vm1, %v379_v54 }
  0x5c   : > { %1398 = vmatprep.subr.bf16.mxu0 %v1512_v25  ;;  %1351 = vmatpush3.bf16.msra.mxu1 %v1508_v22 }
  0x5d   : > { %1352 = vmatprep.subr.bf16.mxu1 %v1513_v27  ;;  %1358 = vmatprep.mubr.msk.bf16.mxu1 %vm231_vm1, %v482_v28 }
  0x5e   : > { %1395 = vmatmul.mubr.msk.bf16.vlgmr.msra.gmra.mrb[0].mxu0 %vm231_vm1, %v793_v63 }
  0x5f   : > { %1399 = vmatpush3.bf16.msra.mxu0 %v1512_v25  ;;  %1406 = vmatprep.mubr.msk.bf16.mxu0 %vm231_vm1, %v906_v29 }
  0x60   : > { %1400 = vmatprep.subr.bf16.mxu0 %v1514_v18  ;;  %1353 = vmatpush3.bf16.msra.mxu1 %v1513_v27 }
  0x61   : > { %1354 = vmatprep.subr.bf16.mxu1 %v1515_v30 }
  0x63   : > { %1401 = vmatpush3.bf16.msra.mxu0 %v1514_v18 }
  0x64   : > { %1402 = vmatprep.subr.bf16.mxu0 %v1516_v31  ;;  %1355 = vmatpush3.bf16.msra.mxu1 %v1515_v30 }
  0x65   : > { %1356 = vmatprep.subr.bf16.mxu1 %v1517_v13 }
  0x67   : > { %1403 = vmatpush3.bf16.msra.mxu0 %v1516_v31 }
  0x68   : > { %1404 = vmatprep.subr.bf16.mxu0 %v1518_v33  ;;  %1357 = vmatpush3.bf16.msra.mxu1 %v1517_v13 }
  0x6b   : > { %1405 = vmatpush3.bf16.msra.mxu0 %v1518_v33  ;;  %1359 = vmatmul.mubr.msk.bf16.vlgmr.msra.gmra.mrb[0].mxu1 %vm231_vm1, %v481_v24 }
  0x6c   : > { %1410 = vmatprep.subr.bf16.mxu0 %v1520_v35 }
  0x6e   : > { %1407 = vmatmul.mubr.msk.bf16.vlgmr.msra.gmra.mrb[0].mxu0 %vm231_vm1, %v905_v10 }
  0x6f   : > { %1411 = vmatpush3.bf16.msra.mxu0 %v1520_v35  ;;  %1418 = vmatprep.mubr.msk.bf16.mxu0 %vm231_vm1, %v1003_v39 }
  0x70   : > { %1412 = vmatprep.subr.bf16.mxu0 %v1521_v38 }
  0x73   : > { %1413 = vmatpush3.bf16.msra.mxu0 %v1521_v38 }
  0x74   : > { %1414 = vmatprep.subr.bf16.mxu0 %v1522_v40 }
  0x77   : > { %1415 = vmatpush3.bf16.msra.mxu0 %v1522_v40 }
  0x78   : > { %1416 = vmatprep.subr.bf16.mxu0 %v1523_v41 }
  0x7b   : > { %1417 = vmatpush3.bf16.msra.mxu0 %v1523_v41 }
  0x7e   : > { %1419 = vmatmul.mubr.msk.bf16.vlgmr.msra.gmra.mrb[0].mxu0 %vm231_vm1, %v1002_v37 }
 0x13e   : > { %v1360_v42 = vpop.f32.mrb[0].mxu1 }
 0x13f   : > { %v547_v43 = vpop.f32.mrb[1].mxu1 }
 0x140   : > { %v1361_v44 = vpop.f32.mrb[2].mxu1 }
 0x141   : > { %v550_v45 = vpop.f32.mrb[3].mxu1 }
 0x151   : > { %v1420_v46 = vpop.f32.mrb[0].mxu0 }
 0x152   : > { %v1422_v47 = vadd.f32 %v1420_v46, %v1360_v42  ;;  %v1068_v48 = vpop.f32.mrb[1].mxu0 }
 0x153   : > { %v1423_v49 = vadd.f32 %v1068_v48, %v547_v43  ;;  %v1421_v50 = vpop.f32.mrb[2].mxu0 }
 0x154   : > { %v1087_v51 = vmax.f32 %v1422_v47, 0.0  ;;  %v1071_v52 = vpop.f32.mrb[3].mxu0 }
 0x155   : > { %v1424_v53 = vadd.f32 %v1071_v52, %v550_v45  ;;  %v1085_v55 = vmax.f32 %v1423_v49, 0.0 }
 0x156   : > { %v1254_v54 = vpack.c.bf16 %v1087_v51, %v1087_v51 }
 0x157   : > { %v1086_v56 = vmax.f32 %v1424_v53, 0.0 }
 0x158   : > { %1103 = vst [vmem:[%s158_s6 + $0x8] sm:$0xf] %v1254_v54 }
 0x159   : > { %v1258_v57 = vpack.c.bf16 %v1086_v56, %v1085_v55 }
 0x15b   : > { %1259 = vst [vmem:[%s158_s6] sm:$0xff] %v1258_v57  }
 0x15c PF: > { %s13_s9 = sadd.s32 1, %s1563_s9  }
 0x15d   : > { %p10_p3 = scmp.ge.s32.totalorder %s13_s9, 4  }
 0x15f   :  { %12 = sbr.rel (!%p10_p3) target bundleno = 1 (0x1), region = 71 }
 0x166   :  { %1125 = vsyncpa [#allocation3], 1 }
 0x167   :  { %1127 = vsyncpa [#allocation3 + $0x1], 1 }

// kernel: _lambda_.7
= control target key start
LH: loop header
LB: loop body
LE: loop exit
PB: predicated region body
PF: predicated region fallthrough
CT: control target
= control target key end

     0   :  { %7 = vsyncpa [#allocation3], 0  ;;  %s2322_s9 = smov 0   ;;  %s2797_s0 = inlined_call_operand.vmem [shape: bf16[2,110,32], index: 0, kind: input, shape index: {}]   ;;  %s2798_s1 = inlined_call_operand.hbm [shape: bf16[9,32,64], index: 1, kind: input, shape index: {}]   ;;  %s2799_s2 = inlined_call_operand.vmem [shape: bf16[2,80,64], index: 2, kind: output, shape index: {}]  }
   0x1 LB: > { %s2328_s10 = sadd.s32 4294967295, %s2300_s9   ;;  %p1648_p0 = scmp.ge.s32.totalorder %s2300_s9, 1  ;;  %s2300_s9 = sphi %s2322_s9, %s13_s9  }
   0x2   : > { %p91_p1 = scmp.lt.s32.totalorder %s2300_s9, 3  ;;  %s2302_s11 = smov [#allocation2]  }
   0x3   : > { %s103_s12 = sshll.u32 %s2302_s11, 4  ;;  %p2800_p3 = scmp.eq.s32.totalorder %s2328_s10, 0  ;;  %s104_s12 = int_to_ptr.vmem [resolvable:$true] %s103_s12 }
   0x4   : > { %p2332_p2 = pnand %p1648_p0, %p91_p1  ;;  %s2262_s17 = scalar_lea.hbm %s2798_s1, 2304 }
   0x5   : > { %p2263_p6 = scmp.ne.s32.totalorder %s2798_s1, %s2262_s17  ;;  %p2269_p10 = scmp.lt.u32.totalorder %s2262_s17, %s2798_s1 }
   0x6   : > { %s2802_s13 = scalar_select %p2332_p2, 1, 0 }
   0x7   : > { %p2202_p4 = pneg %p2332_p2 }
   0x9   : > { %p2341_p5 = pnand %p2800_p3, %p2202_p4 }
   0xb   : > { %p2264_p7 = pneg %p2341_p5 }
   0xd   : > { %p2265_p8 = pnand %p2264_p7, %p2263_p6 }
   0xf   : > { %p2266_p9 = pneg %p2265_p8 }
  0x11   : > { %p2271_p11 = pnand %p2269_p10, %p2266_p9 }
  0x13   : > { %2274 = shalt.err (!%p2271_p11)
}
  0x14   : > { %s2275_s22 = scalar_lea.vmem %s104_s12, 2304  ;;  %p2283_p1 = scmp.lt.s32.totalorder %s104_s12, %s104_s12 }
  0x15   : > { %p2276_p12 = scmp.ne.s32.totalorder %s104_s12, %s2275_s22  ;;  %p2284_p4 = scmp.lt.s32.totalorder %s2275_s22, %s2275_s22 }
  0x17   : > { %p2278_p13 = pnand %p2276_p12, %p2264_p7  ;;  %p2285_p3 = por %p2284_p4, %p2283_p1 }
  0x19   : > { %p2279_p0 = pneg %p2278_p13 }
  0x1b   : > { %p2286_p2 = pnand %p2285_p3, %p2279_p0 }
  0x1d   : > { %2289 = shalt.err (!%p2286_p2)
}
  0x1e   : > { %s2303_s23 = smov 64   ;;  %s2304_s24 = smov 4  }
  0x1f   : > { %2205 = dma.hbm_to_vmem [thread:$0]  (!%p2341_p5), %s2798_s1, 2304, %s104_s12, [#allocation3], %s2303_s23, %s2303_s23, %s2304_s24  }
  0x20   : > { %p2804_p6 = scmp.ne.s32.totalorder %s2802_s13, 0 }
  0x21   : > { %p2805_p8 = scmp.eq.s32.totalorder (!%p2804_p6), %s2328_s10, 0 }
  0x22   : > { %127 = sbr.rel (%p2804_p6) target bundleno = 457 (0x1c9), region = 28 }
  0x29   : > { %2295 = dma.done.wait (%p2805_p8), [#allocation3], 2304   ;;  %p2806_p7 = pmov %p2805_p8 }
  0x2a   : > { %p149_p2 = scmp.lt.s32.totalorder %s2328_s10, 1  ;;  %v2305_v0 = vmov 0.0   ;;  %vm2306_vm0 = vmmov 0   ;;  %v2221_v1 = vld [vmem:[#allocation2 + $0x10] sm:$0xff]   ;;  %v2378_v2 = vld [vmem:[#allocation2 + $0x40] sm:$0xff]   ;;  %v2223_v3 = vld [vmem:[#allocation2 + $0x18] sm:$0xff]  }
  0x2b   : > { %2297 = vsyncadd (%p2806_p7), [#allocation3], 4294964992  ;;  %1826 = vmatprep.subr.bf16.mxu1 %v2305_v0  ;;  %1922 = vmatprep.subr.bf16.mxu0 %v2305_v0  ;;  %vm208_vm1 = vsmask.f32 7424  ;;  %v2387_v4 = vld [vmem:[#allocation2 + $0x48] sm:$0xff]   ;;  %vm265_vm3 = vcmask 261120  }
  0x2c   : > { %1830 = vmatprep.mubr.msk.bf16.mxu1 %vm2306_vm0, %v2305_v0  ;;  %1926 = vmatprep.mubr.msk.bf16.mxu0 %vm2306_vm0, %v2305_v0  ;;  %s2808_s10 = smov (!%p149_p2, %s2328_s10), 1  ;;  %vm754_vm2 = vsmask.f32 6400  ;;  %v2232_v35 = vld [vmem:[#allocation2] sm:$0xff]   ;;  %v2229_v37 = vld [vmem:[#allocation2 + $0x50] sm:$0xff]   ;;  %v2233_v46 = vld [vmem:[#allocation2 + $0x58] sm:$0xff]  }
  0x2d   : > { %s2196_s27 = smul.u32 56, %s2808_s10  ;;  %1827 = vmatpush3.bf16.msra.mxu1 %v2221_v1  ;;  %1923 = vmatpush3.bf16.msra.mxu0 %v2378_v2  ;;  %v2239_v52 = vld [vmem:[#allocation2 + $0x8] sm:$0xff]   ;;  %vm458_vm4 = vcmask 1046528   ;;  %vm927_vm5 = vcmask 1045504   ;;  %vm1396_vm6 = vcmask 1044480   ;;  %vm1568_vm8 = vcmask 519168  }
  0x2e   : > { %1828 = vmatprep.subr.bf16.mxu1 %v2305_v0  ;;  %1924 = vmatprep.subr.bf16.mxu0 %v2305_v0  ;;  %vm1223_vm7 = vsmask.f32 5376  ;;  %s2197_s3 = smul.u32 40, %s2808_s10 }
  0x2f   : > { %s2383_s30 = scalar_lea.vmem %s2797_s0, %s2196_s27 }
  0x30   : > { %v160_v5 = vld [vmem:[%s2383_s30] sm:$0xf]  ;;  %v2392_v6 = vld [vmem:[%s2383_s30 + $0x4] sm:$0xf]  ;;  %v2398_v8 = vld [vmem:[%s2383_s30 + $0x8] sm:$0xff]   ;;  %s2772_s6 = scalar_lea.vmem %s2799_s2, %s2197_s3 }
  0x31   : > { %v2395_v7 = vcombine.low %v160_v5, %v2392_v6  ;;  %v580_v9 = vld [vmem:[%s2383_s30 + $0x4] sm:$0xe]  ;;  %1829 = vmatpush3.bf16.msra.mxu1 %v2223_v3  ;;  %v2402_v10 = vld [vmem:[%s2383_s30 + $0x8] sm:$0xf]  ;;  %1925 = vmatpush3.bf16.msra.mxu0 %v2387_v4  ;;  %v217_v13 = vshll.u32 %v2398_v8, 16  ;;  %v2412_v15 = vld [vmem:[%s2383_s30 + $0xc] sm:$0xff]  }
  0x32   : > { %v2409_v14 = vcombine.low %v580_v9, %v2402_v10  ;;  %1850 = vmatprep.subr.bf16.mxu1 %v2305_v0  ;;  %1946 = vmatprep.subr.bf16.mxu0 %v2305_v0  ;;  %v221_v16 = vshrl.u32 %v2398_v8, 16  ;;  %v764_v21 = vshrl.u32 %v2412_v15, 16  ;;  %v767_v22 = vshll.u32 %v2412_v15, 16  ;;  %v2422_v23 = vld [vmem:[%s2383_s30 + $0x10] sm:$0xff]   ;;  %v2433_v39 = vld [vmem:[%s2383_s30 + $0x18] sm:$0xff]   ;;  %v2454_v57 = vld [vmem:[%s2383_s30 + $0x20] sm:$0xff]  }
  0x33   : > { %v210_v11 = vshrl.u32 %v2395_v7, 16  ;;  %v212_v12 = vshll.u32 %v2395_v7, 16  ;;  %v219_v18 = vrot.slane %v217_v13, 1  ;;  %v2425_v24 = vld [vmem:[%s2383_s30 + $0x14] sm:$0xff]   ;;  %v225_v30 = vshll.u32 %v2422_v23, 16  ;;  %v2439_v44 = vld [vmem:[%s2383_s30 + $0x1c] sm:$0xff]  }
  0x34   : > { %v756_v19 = vshrl.u32 %v2409_v14, 16  ;;  %v759_v20 = vshll.u32 %v2409_v14, 16  ;;  %v766_v28 = vrot.slane %v764_v21, 1  ;;  %v769_v29 = vrot.slane %v767_v22, 2  ;;  %v918_v60 = vld [vmem:[%s2383_s30 + $0x4] sm:$0xc] }
  0x35   : > { %v214_v17 = vrot.slane %v212_v12, 1  ;;  %v773_v31 = vshrl.u32 %v2425_v24, 16  ;;  %v776_v34 = vshll.u32 %v2425_v24, 16  ;;  %v223_v40 = vor.u32 %v221_v16, %v219_v18  ;;  %v2470_v1 = vld [vmem:[%s2383_s30 + $0x28] ss:$0 sps:$4 sm:$0x11]  }
  0x36   : > { %v758_v26 = vrot.slane %v756_v19, 1  ;;  %v761_v27 = vrot.slane %v759_v20, 2  ;;  %v770_v36 = vor.u32 %v769_v29, %v766_v28  ;;  %v227_v41 = vrot.slane %v225_v30, 1  ;;  %v449_v16 = vld [vmem:[%s2383_s30] sm:$0xe] }
  0x37   : > { %v215_v25 = vor.u32 %v214_v17, %v210_v11  ;;  %v775_v38 = vrot.slane %v773_v31, 1  ;;  %v778_v42 = vrot.slane %v776_v34, 2  ;;  %v233_v47 = vshll.u32 %v2433_v39, 16  ;;  %v2238_v34 = vld [vmem:[#allocation2 + $0x60] sm:$0xff]  }
  0x38   : > { %v762_v33 = vor.u32 %v761_v27, %v758_v26  ;;  %v782_v48 = vshrl.u32 %v2439_v44, 16  ;;  %v785_v49 = vshll.u32 %v2439_v44, 16  ;;  %v228_v50 = vsel %vm208_vm1, %v223_v40, %v227_v41  ;;  %v2501_v27 = vld [vmem:[%s2383_s30 + $0x28] sm:$0xff]  }
  0x39   : > { %v220_v32 = vsel %vm208_vm1, %v215_v25, %v219_v18  ;;  %v779_v45 = vor.u32 %v778_v42, %v775_v38  ;;  %v229_v51 = vshrl.u32 %v2422_v23, 16  ;;  %v235_v54 = vrot.slane %v233_v47, 1  ;;  %v2484_v18 = vld [vmem:[%s2383_s30 + $0x20] sm:$0xff]  }
  0x3a   : > { %1831 = vmatmul.mubr.msk.bf16.vlgmr.msra.gmra.mrb[0].mxu1 %vm265_vm3, %v220_v32  ;;  %v771_v43 = vsel %vm754_vm2, %v762_v33, %v770_v36  ;;  %v784_v55 = vrot.slane %v782_v48, 1  ;;  %v787_v56 = vrot.slane %v785_v49, 2  ;;  %v237_v62 = vshrl.u32 %v2433_v39, 16  ;;  %v2255_v32 = vld [vmem:[%s2383_s30 + $0x30] ss:$0 sps:$4 sm:$0x33]  }
  0x3b   : > { %1834 = vmatprep.mubr.msk.bf16.mxu1 %vm2306_vm0, %v2305_v0  ;;  %1851 = vmatpush3.bf16.msra.mxu1 %v2232_v35  ;;  %v780_v53 = vsel %vm754_vm2, %v770_v36, %v779_v45  ;;  %v231_v58 = vor.u32 %v229_v51, %v227_v41  ;;  %v241_v63 = vshll.u32 %v2454_v57, 16  ;;  %v1704_v3 = vcombine.low %v918_v60, %v2402_v10  ;;  %v2536_v48 = vld [vmem:[%s2383_s30 + $0x24] sm:$0xff]   ;;  %v2261_v51 = vld [vmem:[%s2383_s30 + $0x2c] ss:$0 sps:$4 sm:$0x11]  }
  0x3c   : > { %1852 = vmatprep.subr.bf16.mxu1 %v2305_v0  ;;  %1927 = vmatmul.mubr.msk.bf16.vlgmr.msra.gmra.mrb[0].mxu0 %vm265_vm3, %v771_v43  ;;  %v2463_v59 = vor.u32 %v787_v56, %v784_v55  ;;  %v460_v9 = vrot.slane %v2398_v8, 1  ;;  %v462_v11 = vrot.slane %v2422_v23, 1  ;;  %v239_v12 = vor.u32 %v237_v62, %v235_v54 }
  0x3d   : > { %1947 = vmatpush3.bf16.msra.mxu0 %v2229_v37  ;;  %1930 = vmatprep.mubr.msk.bf16.mxu0 %vm2306_vm0, %v2305_v0  ;;  %v236_v61 = vsel %vm208_vm1, %v231_v58, %v235_v54  ;;  %v243_v13 = vrot.slane %v241_v63, 1  ;;  %v464_v17 = vrot.slane %v2433_v39, 1  ;;  %v1675_v10 = vcombine.low %v449_v16, %v2392_v6  ;;  %v2557_v58 = vld [vmem:[%s2383_s30 + $0x18] sm:$0xff]  }
  0x3e   : > { %1948 = vmatprep.subr.bf16.mxu0 %v2305_v0  ;;  %v789_v5 = vsel %vm754_vm2, %v779_v45, %v2463_v59  ;;  %v2487_v19 = vsel %vm458_vm4, %v460_v9, %v462_v11  ;;  %v928_v20 = vrot.slane %v1704_v3, 2  ;;  %v929_v21 = vrot.slane %v2412_v15, 2  ;;  %v2241_v45 = vld [vmem:[#allocation2 + $0x68] sm:$0xff]  }
  0x3f   : > { %1853 = vmatpush3.bf16.msra.mxu1 %v2239_v52  ;;  %v2494_v22 = vsel %vm458_vm4, %v462_v11, %v464_v17  ;;  %v245_v6 = vshrl.u32 %v2454_v57, 16  ;;  %v249_v25 = vshll.u32 %v2470_v1, 16  ;;  %v459_v26 = vrot.slane %v1675_v10, 1 }
  0x40   : > { %1874 = vmatprep.subr.bf16.mxu1 %v2305_v0  ;;  %v244_v28 = vsel %vm208_vm1, %v239_v12, %v243_v13  ;;  %v1098_v30 = vrot.slane %v2484_v18, 2  ;;  %v1100_v31 = vrot.slane %v2501_v27, 2  ;;  %v930_v33 = vsel %vm927_vm5, %v928_v20, %v929_v21  ;;  %v2243_v12 = vld [vmem:[#allocation2 + $0x20] sm:$0xff]  }
  0x41   : > { %1949 = vmatpush3.bf16.msra.mxu0 %v2233_v46  ;;  %v2505_v29 = vsel %vm458_vm4, %v459_v26, %v460_v9  ;;  %v1102_v36 = vrot.slane %v2255_v32, 2  ;;  %v247_v37 = vor.u32 %v245_v6, %v243_v13  ;;  %v251_v38 = vrot.slane %v249_v25, 1 }
  0x42   : > { %1835 = vmatmul.mubr.msk.bf16.gmra.mrb[4].mxu1 %vm265_vm3, %v228_v50  ;;  %1970 = vmatprep.subr.bf16.mxu0 %v2305_v0  ;;  %v2515_v35 = vsel %vm927_vm5, %v1098_v30, %v1100_v31  ;;  %v624_v41 = vrot.slane %v2409_v14, 1  ;;  %v625_v42 = vrot.slane %v2412_v15, 1  ;;  %v931_v43 = vrot.slane %v2425_v24, 2  ;;  %v1387_v15 = vld [vmem:[%s2383_s30 + $0x8] sm:$0x8] }
  0x43   : > { %1838 = vmatprep.mubr.msk.bf16.mxu1 %vm2306_vm0, %v2305_v0  ;;  %v2520_v40 = vsel %vm927_vm5, %v1100_v31, %v1102_v36  ;;  %v252_v46 = vsel %vm208_vm1, %v247_v37, %v251_v38  ;;  %v627_v14 = vrot.slane %v2425_v24, 1  ;;  %v629_v50 = vrot.slane %v2439_v44, 1  ;;  %v2549_v24 = vld [vmem:[%s2383_s30 + $0x10] sm:$0xff]  }
  0x44   : > { %1931 = vmatmul.mubr.msk.bf16.gmra.mrb[4].mxu0 %vm265_vm3, %v780_v53  ;;  %v2531_v47 = vsel %vm458_vm4, %v624_v41, %v625_v42  ;;  %v932_v52 = vsel %vm927_vm5, %v929_v21, %v931_v43  ;;  %v1050_v53 = vld [vmem:[%s2383_s30 + $0xc] sm:$0xf]  ;;  %v631_v55 = vrot.slane %v2536_v48, 1  ;;  %v1398_v62 = vrot.slane %v2549_v24, 3 }
  0x45   : > { %1934 = vmatprep.mubr.msk.bf16.mxu0 %vm2306_vm0, %v2305_v0  ;;  %v2539_v49 = vsel %vm458_vm4, %v625_v42, %v627_v14  ;;  %v2553_v54 = vsel %vm458_vm4, %v627_v14, %v629_v50  ;;  %v1733_v56 = vcombine.low %v1387_v15, %v1050_v53  ;;  %v633_v63 = vrot.slane %v2261_v51, 1  ;;  %v2592_v38 = vld [vmem:[%s2383_s30 + $0x30] ss:$0 sps:$4 sm:$0x77]  }
  0x46   : > { %v2561_v60 = vsel %vm458_vm4, %v629_v50, %v631_v55  ;;  %v933_v3 = vrot.slane %v2439_v44, 2  ;;  %v1400_v9 = vrot.slane %v2557_v58, 3  ;;  %v791_v11 = vshrl.u32 %v2536_v48, 16 }
  0x47   : > { %v2574_v16 = vsel %vm458_vm4, %v631_v55, %v633_v63  ;;  %v794_v10 = vshll.u32 %v2536_v48, 16  ;;  %v1402_v20 = vrot.slane %v2484_v18, 3 }
  0x48   : > { %v2579_v21 = vsel %vm1396_vm6, %v1398_v62, %v1400_v9  ;;  %v793_v44 = vrot.slane %v791_v11, 1  ;;  %v934_v31 = vsel %vm927_vm5, %v931_v43, %v933_v3  ;;  %v935_v43 = vrot.slane %v2536_v48, 2  ;;  %v1049_v48 = vld [vmem:[%s2383_s30 + $0x8] sm:$0xc] }
  0x49   : > { %v796_v25 = vrot.slane %v794_v10, 2  ;;  %v2582_v26 = vsel %vm1396_vm6, %v1400_v9, %v1402_v20  ;;  %v1712_v51 = vcombine.low %v1049_v48, %v1050_v53  ;;  %v1096_v53 = vrot.slane %v2557_v58, 2 }
  0x4a   : > { %1839 = vmatmul.mubr.msk.bf16.gmra.mrb[8].mxu1 %vm265_vm3, %v236_v61  ;;  %v1397_v61 = vrot.slane %v1733_v56, 3  ;;  %v2252_v56 = vld [vmem:[#allocation2 + $0x78] sm:$0xff]   ;;  %v1236_v9 = vshll.u32 %v2549_v24, 16 }
  0x4b   : > { %1842 = vmatprep.mubr.msk.bf16.mxu1 %vm2306_vm0, %v2305_v0  ;;  %v797_v36 = vor.u32 %v796_v25, %v793_v44  ;;  %v1099_v63 = vsel %vm927_vm5, %v1096_v53, %v1098_v30  ;;  %v1228_v30 = vshll.u32 %v1712_v51, 16  ;;  %v1242_v44 = vshrl.u32 %v2557_v58, 16  ;;  %v2256_v25 = vld [vmem:[#allocation2 + $0x80] sm:$0xff]  }
  0x4c   : > { %1935 = vmatmul.mubr.msk.bf16.gmra.mrb[8].mxu0 %vm265_vm3, %v789_v5  ;;  %v2244_v5 = vld [vmem:[%s2383_s30 + $0x2c] ss:$0 sps:$4 sm:$0x33]   ;;  %v2571_v13 = vsel %vm1396_vm6, %v1397_v61, %v1398_v62  ;;  %v2254_v62 = vld [vmem:[#allocation2 + $0x30] sm:$0xff]   ;;  %v1238_v10 = vrot.slane %v1236_v9, 3 }
  0x4d   : > { %1950 = vmatprep.mubr.msk.bf16.mxu0 %vm2306_vm0, %v2305_v0  ;;  %v800_v6 = vshrl.u32 %v2244_v5, 16  ;;  %v937_v15 = vrot.slane %v2244_v5, 2 }
  0x4f   : > { %v802_v32 = vrot.slane %v800_v6, 1  ;;  %v938_v50 = vsel %vm927_vm5, %v935_v43, %v937_v15  ;;  %v1269_v15 = vshrl.u32 %v2592_v38, 16 }
  0x52   : > { %1843 = vmatmul.mubr.msk.bf16.gmra.mrb[12].mxu1 %vm265_vm3, %v244_v28  ;;  %v803_v28 = vshll.u32 %v2244_v5, 16  ;;  %v1233_v5 = vshrl.u32 %v2549_v24, 16 }
  0x53   : > { %1846 = vmatprep.mubr.msk.bf16.mxu1 %vm2306_vm0, %v2305_v0 }
  0x54   : > { %1951 = vmatmul.mubr.msk.bf16.vlgmr.msra.gmra.mrb[0].mxu0 %vm265_vm3, %v930_v33  ;;  %v1404_v33 = vrot.slane %v2501_v27, 3  ;;  %v805_v37 = vrot.slane %v803_v28, 2 }
  0x55   : > { %1971 = vmatpush3.bf16.msra.mxu0 %v2238_v34  ;;  %1954 = vmatprep.mubr.msk.bf16.mxu0 %vm2306_vm0, %v2305_v0  ;;  %v2248_v34 = vld [vmem:[#allocation2 + $0x28] sm:$0xff]  }
  0x56   : > { %1972 = vmatprep.subr.bf16.mxu0 %v2305_v0  ;;  %v2595_v41 = vsel %vm1396_vm6, %v1402_v20, %v1404_v33  ;;  %v806_v42 = vor.u32 %v805_v37, %v802_v32  ;;  %v2258_v32 = vld [vmem:[#allocation2 + $0x88] sm:$0xff]   ;;  %v1260_v37 = vshrl.u32 %v2501_v27, 16 }
  0x59   : > { %1973 = vmatpush3.bf16.msra.mxu0 %v2241_v45  ;;  %v1406_v45 = vrot.slane %v2592_v38, 3 }
  0x5a   : > { %1847 = vmatmul.mubr.msk.bf16.gmra.mrb[16].mxu1 %vm265_vm3, %v252_v46  ;;  %1994 = vmatprep.subr.bf16.mxu0 %v2305_v0  ;;  %v2607_v46 = vsel %vm754_vm2, %v797_v36, %v806_v42  ;;  %v1263_v42 = vshll.u32 %v2501_v27, 16 }
  0x5b   : > { %1854 = vmatprep.mubr.msk.bf16.mxu1 %vm2306_vm0, %v2305_v0  ;;  %v2611_v14 = vsel %vm1396_vm6, %v1404_v33, %v1406_v45  ;;  %v1262_v45 = vrot.slane %v1260_v37, 2 }
  0x5c   : > { %1955 = vmatmul.mubr.msk.bf16.gmra.mrb[4].mxu0 %vm265_vm3, %v932_v52  ;;  %v1094_v52 = vrot.slane %v2549_v24, 2 }
  0x5d   : > { %1958 = vmatprep.mubr.msk.bf16.mxu0 %vm2306_vm0, %v2305_v0 }
  0x5e   : > { %v1097_v61 = vsel %vm927_vm5, %v1094_v52, %v1096_v53 }
  0x62   : > { %1855 = vmatmul.mubr.msk.bf16.vlgmr.msra.gmra.mrb[0].mxu1 %vm265_vm3, %v2395_v7  ;;  %v2600_v7 = vsel %vm754_vm2, %v2463_v59, %v797_v36  ;;  %v936_v59 = vsel %vm927_vm5, %v933_v3, %v935_v43  ;;  %v2257_v3 = vld [vmem:[#allocation2 + $0x38] sm:$0xff]  }
  0x63   : > { %1858 = vmatprep.mubr.msk.bf16.mxu1 %vm2306_vm0, %v2305_v0  ;;  %1875 = vmatpush3.bf16.msra.mxu1 %v2243_v12  ;;  %v1235_v12 = vrot.slane %v1233_v5, 2 }
  0x64   : > { %1876 = vmatprep.subr.bf16.mxu1 %v2305_v0  ;;  %1959 = vmatmul.mubr.msk.bf16.gmra.mrb[8].mxu0 %vm265_vm3, %v934_v31  ;;  %v468_v31 = vrot.slane %v2470_v1, 1 }
  0x65   : > { %1962 = vmatprep.mubr.msk.bf16.mxu0 %vm2306_vm0, %v2305_v0  ;;  %v1239_v24 = vor.u32 %v1238_v10, %v1235_v12 }
  0x67   : > { %1877 = vmatpush3.bf16.msra.mxu1 %v2248_v34 }
  0x68   : > { %1898 = vmatprep.subr.bf16.mxu1 %v2305_v0 }
  0x6a   : > { %1859 = vmatmul.mubr.msk.bf16.gmra.mrb[4].mxu1 %vm265_vm3, %v2398_v8  ;;  %v1093_v8 = vrot.slane %v1712_v51, 2 }
  0x6b   : > { %1862 = vmatprep.mubr.msk.bf16.mxu1 %vm2306_vm0, %v2305_v0 }
  0x6c   : > { %1963 = vmatmul.mubr.msk.bf16.gmra.mrb[12].mxu0 %vm265_vm3, %v936_v59  ;;  %v1095_v55 = vsel %vm927_vm5, %v1093_v8, %v1094_v52  ;;  %v1265_v59 = vrot.slane %v1263_v42, 3 }
  0x6d   : > { %1966 = vmatprep.mubr.msk.bf16.mxu0 %vm2306_vm0, %v2305_v0 }
  0x6e   : > { %v1266_v27 = vor.u32 %v1265_v59, %v1262_v45 }
  0x72   : > { %1863 = vmatmul.mubr.msk.bf16.gmra.mrb[8].mxu1 %vm265_vm3, %v2422_v23  ;;  %v2247_v23 = vld [vmem:[#allocation2 + $0x70] sm:$0xff]  }
  0x73   : > { %1866 = vmatprep.mubr.msk.bf16.mxu1 %vm2306_vm0, %v2305_v0 }
  0x74   : > { %1967 = vmatmul.mubr.msk.bf16.gmra.mrb[16].mxu0 %vm265_vm3, %v938_v50 }
  0x75   : > { %1974 = vmatprep.mubr.msk.bf16.mxu0 %vm2306_vm0, %v2305_v0 }
  0x7a   : > { %1867 = vmatmul.mubr.msk.bf16.gmra.mrb[12].mxu1 %vm265_vm3, %v2433_v39 }
  0x7b   : > { %1870 = vmatprep.mubr.msk.bf16.mxu1 %vm2306_vm0, %v2305_v0 }
  0x7c   : > { %1975 = vmatmul.mubr.msk.bf16.vlgmr.msra.gmra.mrb[0].mxu0 %vm265_vm3, %v1095_v55 }
  0x7d   : > { %1995 = vmatpush3.bf16.msra.mxu0 %v2247_v23  ;;  %1978 = vmatprep.mubr.msk.bf16.mxu0 %vm2306_vm0, %v2305_v0 }
  0x7e   : > { %1996 = vmatprep.subr.bf16.mxu0 %v2305_v0 }
  0x81   : > { %1997 = vmatpush3.bf16.msra.mxu0 %v2252_v56 }
  0x82   : > { %1871 = vmatmul.mubr.msk.bf16.gmra.mrb[16].mxu1 %vm265_vm3, %v2454_v57  ;;  %2018 = vmatprep.subr.bf16.mxu0 %v2305_v0 }
  0x83   : > { %1878 = vmatprep.mubr.msk.bf16.mxu1 %vm2306_vm0, %v2305_v0 }
  0x84   : > { %1979 = vmatmul.mubr.msk.bf16.gmra.mrb[4].mxu0 %vm265_vm3, %v1097_v61 }
  0x85   : > { %1982 = vmatprep.mubr.msk.bf16.mxu0 %vm2306_vm0, %v2305_v0 }
  0x8a   : > { %1879 = vmatmul.mubr.msk.bf16.vlgmr.msra.gmra.mrb[0].mxu1 %vm265_vm3, %v2505_v29  ;;  %v1225_v29 = vshrl.u32 %v1712_v51, 16 }
  0x8b   : > { %1882 = vmatprep.mubr.msk.bf16.mxu1 %vm2306_vm0, %v2305_v0  ;;  %1899 = vmatpush3.bf16.msra.mxu1 %v2254_v62 }
  0x8c   : > { %1900 = vmatprep.subr.bf16.mxu1 %v2305_v0  ;;  %1983 = vmatmul.mubr.msk.bf16.gmra.mrb[8].mxu0 %vm265_vm3, %v1099_v63  ;;  %v1227_v11 = vrot.slane %v1225_v29, 2 }
  0x8d   : > { %1986 = vmatprep.mubr.msk.bf16.mxu0 %vm2306_vm0, %v2305_v0 }
  0x8f   : > { %1901 = vmatpush3.bf16.msra.mxu1 %v2257_v3 }
  0x90   : > { %2042 = vmatprep.subr.bf16.mxu1 %v2305_v0 }
  0x92   : > { %1883 = vmatmul.mubr.msk.bf16.gmra.mrb[4].mxu1 %vm265_vm3, %v2487_v19  ;;  %v1230_v19 = vrot.slane %v1228_v30, 3 }
  0x93   : > { %1886 = vmatprep.mubr.msk.bf16.mxu1 %vm2306_vm0, %v2305_v0 }
  0x94   : > { %1987 = vmatmul.mubr.msk.bf16.gmra.mrb[12].mxu0 %vm265_vm3, %v2515_v35  ;;  %v466_v35 = vrot.slane %v2454_v57, 1  ;;  %v1231_v20 = vor.u32 %v1230_v19, %v1227_v11 }
  0x95   : > { %1990 = vmatprep.mubr.msk.bf16.mxu0 %vm2306_vm0, %v2305_v0 }
  0x96   : > { %v467_v6 = vsel %vm458_vm4, %v464_v17, %v466_v35  ;;  %v1240_v57 = vsel %vm1223_vm7, %v1231_v20, %v1239_v24  ;;  %v1251_v17 = vshrl.u32 %v2484_v18, 16  ;;  %v469_v33 = vsel %vm458_vm4, %v466_v35, %v468_v31 }
  0x98   : > { %v1253_v34 = vrot.slane %v1251_v17, 2 }
  0x9a   : > { %1887 = vmatmul.mubr.msk.bf16.gmra.mrb[8].mxu1 %vm265_vm3, %v2494_v22  ;;  %v1245_v22 = vshll.u32 %v2557_v58, 16  ;;  %v1254_v58 = vshll.u32 %v2484_v18, 16 }
  0x9b   : > { %1890 = vmatprep.mubr.msk.bf16.mxu1 %vm2306_vm0, %v2305_v0 }
  0x9c   : > { %1991 = vmatmul.mubr.msk.bf16.gmra.mrb[16].mxu0 %vm265_vm3, %v2520_v40  ;;  %v1244_v40 = vrot.slane %v1242_v44, 2  ;;  %v1247_v28 = vrot.slane %v1245_v22, 3  ;;  %v1256_v36 = vrot.slane %v1254_v58, 3 }
  0x9d   : > { %1998 = vmatprep.mubr.msk.bf16.mxu0 %vm2306_vm0, %v2305_v0 }
  0x9e   : > { %v1248_v39 = vor.u32 %v1247_v28, %v1244_v40  ;;  %v1257_v18 = vor.u32 %v1256_v36, %v1253_v34 }
  0xa0   : > { %v1249_v1 = vsel %vm1223_vm7, %v1239_v24, %v1248_v39  ;;  %v1258_v43 = vsel %vm1223_vm7, %v1248_v39, %v1257_v18  ;;  %v1267_v48 = vsel %vm1223_vm7, %v1257_v18, %v1266_v27 }
  0xa2   : > { %1891 = vmatmul.mubr.msk.bf16.gmra.mrb[12].mxu1 %vm265_vm3, %v467_v6 }
  0xa3   : > { %1894 = vmatprep.mubr.msk.bf16.mxu1 %vm2306_vm0, %v2305_v0 }
  0xa4   : > { %1999 = vmatmul.mubr.msk.bf16.vlgmr.msra.gmra.mrb[0].mxu0 %vm265_vm3, %v1240_v57 }
  0xa5   : > { %2019 = vmatpush3.bf16.msra.mxu0 %v2256_v25  ;;  %2002 = vmatprep.mubr.msk.bf16.mxu0 %vm2306_vm0, %v2305_v0 }
  0xa6   : > { %2020 = vmatprep.subr.bf16.mxu0 %v2305_v0 }
  0xa9   : > { %2021 = vmatpush3.bf16.msra.mxu0 %v2258_v32 }
  0xaa   : > { %1895 = vmatmul.mubr.msk.bf16.gmra.mrb[16].mxu1 %vm265_vm3, %v469_v33 }
  0xab   : > { %1902 = vmatprep.mubr.msk.bf16.mxu1 %vm2306_vm0, %v2305_v0 }
  0xac   : > { %2003 = vmatmul.mubr.msk.bf16.gmra.mrb[4].mxu0 %vm265_vm3, %v1249_v1 }
  0xad   : > { %2006 = vmatprep.mubr.msk.bf16.mxu0 %vm2306_vm0, %v2305_v0 }
  0xb2   : > { %1903 = vmatmul.mubr.msk.bf16.vlgmr.msra.gmra.mrb[0].mxu1 %vm265_vm3, %v2531_v47  ;;  %v1272_v47 = vshll.u32 %v2592_v38, 16 }
  0xb3   : > { %1906 = vmatprep.mubr.msk.bf16.mxu1 %vm2306_vm0, %v2305_v0  ;;  %2044 = vmatpush3.bf16.msra.mxu1 %v2378_v2  ;;  %v1271_v2 = vrot.slane %v1269_v15, 2 }
  0xb4   : > { %2043 = vmatprep.subr.bf16.mxu1 %v2305_v0  ;;  %2007 = vmatmul.mubr.msk.bf16.gmra.mrb[8].mxu0 %vm265_vm3, %v1258_v43  ;;  %v1274_v50 = vrot.slane %v1272_v47, 3 }
  0xb5   : > { %2010 = vmatprep.mubr.msk.bf16.mxu0 %vm2306_vm0, %v2305_v0 }
  0xb6   : > { %v1275_v51 = vor.u32 %v1274_v50, %v1271_v2 }
  0xb7   : > { %2045 = vmatpush3.bf16.msra.mxu1 %v2387_v4 }
  0xb8   : > { %v1276_v4 = vsel %vm1223_vm7, %v1266_v27, %v1275_v51 }
  0xba   : > { %1907 = vmatmul.mubr.msk.bf16.gmra.mrb[4].mxu1 %vm265_vm3, %v2539_v49 }
  0xbb   : > { %1910 = vmatprep.mubr.msk.bf16.mxu1 %vm2306_vm0, %v2305_v0 }
  0xbc   : > { %2011 = vmatmul.mubr.msk.bf16.gmra.mrb[12].mxu0 %vm265_vm3, %v1267_v48 }
  0xbd   : > { %2014 = vmatprep.mubr.msk.bf16.mxu0 %vm2306_vm0, %v2305_v0 }
  0xc2   : > { %1911 = vmatmul.mubr.msk.bf16.gmra.mrb[8].mxu1 %vm265_vm3, %v2553_v54 }
  0xc3   : > { %1914 = vmatprep.mubr.msk.bf16.mxu1 %vm2306_vm0, %v2305_v0 }
  0xc4   : > { %2015 = vmatmul.mubr.msk.bf16.gmra.mrb[16].mxu0 %vm265_vm3, %v1276_v4 }
  0xc5   : > { %2022 = vmatprep.mubr.msk.bf16.mxu0 %vm2306_vm0, %v2305_v0 }
  0xca   : > { %1915 = vmatmul.mubr.msk.bf16.gmra.mrb[12].mxu1 %vm265_vm3, %v2561_v60 }
  0xcb   : > { %1918 = vmatprep.mubr.msk.bf16.mxu1 %vm2306_vm0, %v2305_v0 }
  0xcc   : > { %2023 = vmatmul.mubr.msk.bf16.vlgmr.msra.gmra.mrb[0].mxu0 %vm265_vm3, %v2571_v13 }
  0xcd   : > { %2026 = vmatprep.mubr.msk.bf16.mxu0 %vm2306_vm0, %v2305_v0 }
  0xd2   : > { %1919 = vmatmul.mubr.msk.bf16.gmra.mrb[16].mxu1 %vm265_vm3, %v2574_v16 }
  0xd3   : > { %1938 = vmatprep.mubr.msk.bf16.mxu1 %vm2306_vm0, %v2305_v0 }
  0xd4   : > { %2027 = vmatmul.mubr.msk.bf16.gmra.mrb[4].mxu0 %vm265_vm3, %v2579_v21 }
  0xd5   : > { %2030 = vmatprep.mubr.msk.bf16.mxu0 %vm2306_vm0, %v2305_v0 }
  0xda   : > { %1939 = vmatmul.mubr.msk.bf16.vlgmr.msra.gmra.mrb[12].mxu1 %vm265_vm3, %v2600_v7 }
  0xdb   : > { %1942 = vmatprep.mubr.msk.bf16.mxu1 %vm2306_vm0, %v2305_v0 }
  0xdc   : > { %2031 = vmatmul.mubr.msk.bf16.gmra.mrb[8].mxu0 %vm265_vm3, %v2582_v26 }
  0xdd   : > { %2034 = vmatprep.mubr.msk.bf16.mxu0 %vm2306_vm0, %v2305_v0 }
  0xe2   : > { %1943 = vmatmul.mubr.msk.bf16.gmra.mrb[16].mxu1 %vm265_vm3, %v2607_v46 }
  0xe4   : > { %2035 = vmatmul.mubr.msk.bf16.gmra.mrb[12].mxu0 %vm265_vm3, %v2595_v41 }
  0xe5   : > { %2038 = vmatprep.mubr.msk.bf16.mxu0 %vm2306_vm0, %v2305_v0 }
  0xec   : > { %2039 = vmatmul.mubr.msk.bf16.gmra.mrb[16].mxu0 %vm265_vm3, %v2611_v14 }
 0x185   : > { %v696_v49 = vpop.f32.mrb[0].mxu1 }
 0x186   : > { %v1904_v54 = vpop.f32.mrb[1].mxu1 }
 0x187   : > { %v699_v60 = vpop.f32.mrb[2].mxu1 }
 0x188   : > { %v1905_v13 = vpop.f32.mrb[3].mxu1 }
 0x18d   : > { %v704_v16 = vpop.f32.mrb[4].mxu1 }
 0x18e   : > { %v1908_v21 = vpop.f32.mrb[5].mxu1 }
 0x18f   : > { %v707_v26 = vpop.f32.mrb[6].mxu1 }
 0x190   : > { %v1909_v38 = vpop.f32.mrb[7].mxu1 }
 0x195   : > { %v712_v7 = vpop.f32.mrb[8].mxu1 }
 0x196   : > { %v1912_v46 = vpop.f32.mrb[9].mxu1 }
 0x197   : > { %v715_v8 = vpop.f32.mrb[10].mxu1 }
 0x198   : > { %v1913_v52 = vpop.f32.mrb[11].mxu1 }
 0x19f   : > { %v1469_v41 = vpop.f32.mrb[0].mxu0 }
 0x1a0   : > { %v2046_v55 = vadd.f32 %v1469_v41, %v696_v49  ;;  %v2024_v23 = vpop.f32.mrb[1].mxu0 }
 0x1a1   : > { %v1472_v0 = vpop.f32.mrb[2].mxu0 }
 0x1a2   : > { %v1518_v53 = vmax.f32 %v2046_v55, 0.0  ;;  %v2047_v56 = vadd.f32 %v1472_v0, %v699_v60  ;;  %v2025_v14 = vpop.f32.mrb[3].mxu0 }
 0x1a4   : > { %v1753_v61 = vpack.c.bf16 %v1518_v53, %v1518_v53  ;;  %v1519_v62 = vmax.f32 %v2047_v56, 0.0 }
 0x1a6   : > { %1569 = vst.msk [vmem:[%s2772_s6] sm:$0xf] %vm1568_vm8, %v1753_v61  ;;  %v1754_v63 = vpack.c.bf16 %v1519_v62, %v1519_v62 }
 0x1a7   : > { %v1477_v3 = vpop.f32.mrb[4].mxu0 }
 0x1a8   : > { %1570 = vst.msk [vmem:[%s2772_s6 + $0x4] sm:$0xf] %vm1568_vm8, %v1754_v63  ;;  %v2048_v29 = vadd.f32 %v1477_v3, %v704_v16  ;;  %v2028_v30 = vpop.f32.mrb[5].mxu0 }
 0x1a9   : > { %v1480_v5 = vpop.f32.mrb[6].mxu0 }
 0x1aa   : > { %v1520_v9 = vmax.f32 %v2048_v29, 0.0  ;;  %v2049_v11 = vadd.f32 %v1480_v5, %v707_v26  ;;  %v2029_v19 = vpop.f32.mrb[7].mxu0 }
 0x1ac   : > { %v1755_v12 = vpack.c.bf16 %v1520_v9, %v1520_v9  ;;  %v1521_v10 = vmax.f32 %v2049_v11, 0.0 }
 0x1ad   : > { %v893_v35 = vpop.f32.mrb[12].mxu1 }
 0x1ae   : > { %v1940_v20 = vpop.f32.mrb[13].mxu1  ;;  %1571 = vst.msk [vmem:[%s2772_s6 + $0x8] sm:$0xf] %vm1568_vm8, %v1755_v12  ;;  %v1756_v24 = vpack.c.bf16 %v1521_v10, %v1521_v10 }
 0x1af   : > { %v896_v44 = vpop.f32.mrb[14].mxu1  ;;  %v1485_v22 = vpop.f32.mrb[8].mxu0 }
 0x1b0   : > { %v1941_v6 = vpop.f32.mrb[15].mxu1  ;;  %1572 = vst.msk [vmem:[%s2772_s6 + $0xc] sm:$0xf] %vm1568_vm8, %v1756_v24  ;;  %v2050_v57 = vadd.f32 %v1485_v22, %v712_v7  ;;  %v2032_v25 = vpop.f32.mrb[9].mxu0 }
 0x1b1   : > { %v1488_v40 = vpop.f32.mrb[10].mxu0 }
 0x1b2   : > { %v1522_v28 = vmax.f32 %v2050_v57, 0.0  ;;  %v2051_v31 = vadd.f32 %v1488_v40, %v715_v8  ;;  %v2033_v39 = vpop.f32.mrb[11].mxu0 }
 0x1b4   : > { %v1757_v17 = vpack.c.bf16 %v1522_v28, %v1522_v28  ;;  %v1523_v58 = vmax.f32 %v2051_v31, 0.0 }
 0x1b5   : > { %v901_v32 = vpop.f32.mrb[16].mxu1 }
 0x1b6   : > { %v1944_v33 = vpop.f32.mrb[17].mxu1  ;;  %1573 = vst.msk [vmem:[%s2772_s6 + $0x10] sm:$0xf] %vm1568_vm8, %v1757_v17  ;;  %v1758_v1 = vpack.c.bf16 %v1523_v58, %v1523_v58 }
 0x1b7   : > { %v904_v34 = vpop.f32.mrb[18].mxu1  ;;  %v1493_v36 = vpop.f32.mrb[12].mxu0 }
 0x1b8   : > { %v1945_v18 = vpop.f32.mrb[19].mxu1  ;;  %1574 = vst.msk [vmem:[%s2772_s6 + $0x14] sm:$0xf] %vm1568_vm8, %v1758_v1  ;;  %v2052_v37 = vadd.f32 %v1493_v36, %v893_v35  ;;  %v2036_v42 = vpop.f32.mrb[13].mxu0 }
 0x1b9   : > { %v1496_v43 = vpop.f32.mrb[14].mxu0 }
 0x1ba   : > { %v1524_v45 = vmax.f32 %v2052_v37, 0.0  ;;  %v2053_v59 = vadd.f32 %v1496_v43, %v896_v44  ;;  %v2037_v27 = vpop.f32.mrb[15].mxu0 }
 0x1bc   : > { %v1759_v15 = vpack.c.bf16 %v1524_v45, %v1524_v45  ;;  %v1525_v47 = vmax.f32 %v2053_v59, 0.0 }
 0x1be   : > { %1575 = vst.msk [vmem:[%s2772_s6 + $0x18] sm:$0xf] %vm1568_vm8, %v1759_v15  ;;  %v1760_v48 = vpack.c.bf16 %v1525_v47, %v1525_v47 }
 0x1bf   : > { %v1501_v2 = vpop.f32.mrb[16].mxu0 }
 0x1c0   : > { %1576 = vst.msk [vmem:[%s2772_s6 + $0x1c] sm:$0xf] %vm1568_vm8, %v1760_v48  ;;  %v2054_v50 = vadd.f32 %v1501_v2, %v901_v32  ;;  %v2040_v51 = vpop.f32.mrb[17].mxu0 }
 0x1c1   : > { %v1504_v4 = vpop.f32.mrb[18].mxu0 }
 0x1c2   : > { %v1526_v49 = vmax.f32 %v2054_v50, 0.0  ;;  %v2055_v54 = vadd.f32 %v1504_v4, %v904_v34  ;;  %v2041_v60 = vpop.f32.mrb[19].mxu0 }
 0x1c4   : > { %v1761_v13 = vpack.c.bf16 %v1526_v49, %v1526_v49  ;;  %v1527_v16 = vmax.f32 %v2055_v54, 0.0 }
 0x1c6   : > { %1577 = vst.msk [vmem:[%s2772_s6 + $0x20] sm:$0xf] %vm1568_vm8, %v1761_v13  ;;  %v1762_v21 = vpack.c.bf16 %v1527_v16, %v1527_v16 }
 0x1c8   : > { %1578 = vst.msk [vmem:[%s2772_s6 + $0x24] sm:$0xf] %vm1568_vm8, %v1762_v21 }
 0x1c9 PF: > { %s13_s9 = sadd.s32 1, %s2300_s9  }
 0x1ca   : > { %p10_p3 = scmp.ge.s32.totalorder %s13_s9, 4  }
 0x1cc   :  { %12 = sbr.rel (!%p10_p3) target bundleno = 1 (0x1), region = 71 }
 0x1d3   :  { %1600 = vsyncpa [#allocation3], 1 }
 0x1d4   :  { %1602 = vsyncpa [#allocation3 + $0x1], 1 }

// kernel: _lambda_.8
= control target key start
LH: loop header
LB: loop body
LE: loop exit
PB: predicated region body
PF: predicated region fallthrough
CT: control target
= control target key end

     0   :  { %7 = vsyncpa [#allocation3], 0  ;;  %s5209_s9 = smov 0   ;;  %s6115_s0 = inlined_call_operand.vmem [shape: bf16[2,342,16], index: 0, kind: input, shape index: {}]   ;;  %s6116_s1 = inlined_call_operand.hbm [shape: bf16[9,16,32], index: 1, kind: input, shape index: {}]   ;;  %s6117_s2 = inlined_call_operand.vmem [shape: bf16[2,288,32], index: 2, kind: output, shape index: {}]  }
   0x1 LB: > { %s5215_s10 = sadd.s32 4294967295, %s5189_s9   ;;  %p3929_p0 = scmp.ge.s32.totalorder %s5189_s9, 1  ;;  %s5189_s9 = sphi %s5209_s9, %s13_s9  }
   0x2   : > { %p91_p1 = scmp.lt.s32.totalorder %s5189_s9, 3  ;;  %s5191_s11 = smov [#allocation2]  }
   0x3   : > { %s103_s12 = sshll.u32 %s5191_s11, 4  ;;  %p6118_p3 = scmp.eq.s32.totalorder %s5215_s10, 0  ;;  %s104_s12 = int_to_ptr.vmem [resolvable:$true] %s103_s12 }
   0x4   : > { %p5219_p2 = pnand %p3929_p0, %p91_p1  ;;  %s5151_s17 = scalar_lea.hbm %s6116_s1, 1152 }
   0x5   : > { %p5152_p6 = scmp.ne.s32.totalorder %s6116_s1, %s5151_s17  ;;  %p5158_p10 = scmp.lt.u32.totalorder %s5151_s17, %s6116_s1 }
   0x6   : > { %s6120_s13 = scalar_select %p5219_p2, 1, 0 }
   0x7   : > { %p5052_p4 = pneg %p5219_p2 }
   0x9   : > { %p5228_p5 = pnand %p6118_p3, %p5052_p4 }
   0xb   : > { %p5153_p7 = pneg %p5228_p5 }
   0xd   : > { %p5154_p8 = pnand %p5153_p7, %p5152_p6 }
   0xf   : > { %p5155_p9 = pneg %p5154_p8 }
  0x11   : > { %p5160_p11 = pnand %p5158_p10, %p5155_p9 }
  0x13   : > { %5163 = shalt.err (!%p5160_p11)
}
  0x14   : > { %s5164_s22 = scalar_lea.vmem %s104_s12, 1152  ;;  %p5172_p1 = scmp.lt.s32.totalorder %s104_s12, %s104_s12 }
  0x15   : > { %p5165_p12 = scmp.ne.s32.totalorder %s104_s12, %s5164_s22  ;;  %p5173_p4 = scmp.lt.s32.totalorder %s5164_s22, %s5164_s22 }
  0x17   : > { %p5167_p13 = pnand %p5165_p12, %p5153_p7  ;;  %p5174_p3 = por %p5173_p4, %p5172_p1 }
  0x19   : > { %p5168_p0 = pneg %p5167_p13 }
  0x1b   : > { %p5175_p2 = pnand %p5174_p3, %p5168_p0 }
  0x1d   : > { %5178 = shalt.err (!%p5175_p2)
}
  0x1e   : > { %s5192_s23 = smov 64   ;;  %s5193_s24 = smov 4  }
  0x1f   : > { %5055 = dma.hbm_to_vmem [thread:$0]  (!%p5228_p5), %s6116_s1, 1152, %s104_s12, [#allocation3], %s5192_s23, %s5192_s23, %s5193_s24  }
  0x20   : > { %p6122_p6 = scmp.ne.s32.totalorder %s6120_s13, 0 }
  0x21   : > { %p6123_p8 = scmp.eq.s32.totalorder (!%p6122_p6), %s5215_s10, 0 }
  0x22   : > { %127 = sbr.rel (%p6122_p6) target bundleno = 603 (0x25b), region = 28 }
  0x29   : > { %5184 = dma.done.wait (%p6123_p8), [#allocation3], 1152   ;;  %p6124_p7 = pmov %p6123_p8 }
  0x2a   : > { %p149_p2 = scmp.lt.s32.totalorder %s5215_s10, 1  ;;  %v5069_v0 = vld [vmem:[#allocation2 + $0x20] sm:$0xff]   ;;  %vm295_vm0 = vsmask.f32 7424  ;;  %v5070_v1 = vld [vmem:[#allocation2 + $0x8] sm:$0xff]   ;;  %vm450_vm1 = vcmask 130048  }
  0x2b   : > { %5186 = vsyncadd (%p6124_p7), [#allocation3], 4294966144  ;;  %4566 = vmatprep.subr.bf16.mxu0 %v5069_v0  ;;  %4414 = vmatprep.subr.bf16.mxu1 %v5070_v1  ;;  %vm1669_vm2 = vsmask.f32 6400  ;;  %v5075_v13 = vld [vmem:[#allocation2 + $0x28] sm:$0xff]   ;;  %v5079_v36 = vld [vmem:[#allocation2] sm:$0xff]  }
  0x2c   : > { %s6126_s10 = smov (!%p149_p2, %s5215_s10), 1  ;;  %4567 = vmatpush3.bf16.msra.mxu0 %v5069_v0  ;;  %4415 = vmatpush3.bf16.msra.mxu1 %v5070_v1  ;;  %vm2120_vm3 = vcmask 1045504   ;;  %vm908_vm4 = vcmask 1046528   ;;  %vm2881_vm5 = vsmask.f32 5376  ;;  %vm3332_vm6 = vcmask 1044480  }
  0x2d   : > { %s5046_s27 = smul.u32 172, %s6126_s10  ;;  %4604 = vmatprep.subr.bf16.mxu0 %v5075_v13  ;;  %4452 = vmatprep.subr.bf16.mxu1 %v5079_v36  ;;  %vm3823_vm7 = vcmask 257024  }
  0x2e   : > { %s5047_s3 = smul.u32 144, %s6126_s10 }
  0x2f   : > { %s5262_s30 = scalar_lea.vmem %s6115_s0, %s5046_s27 }
  0x30   : > { %v160_v2 = vld [vmem:[%s5262_s30] sm:$0xf]  ;;  %v5266_v3 = vld [vmem:[%s5262_s30 + $0x4] sm:$0xf]  ;;  %v5272_v5 = vld [vmem:[%s5262_s30 + $0x8] sm:$0xff]   ;;  %s6030_s6 = scalar_lea.vmem %s6117_s2, %s5047_s3 }
  0x31   : > { %v5269_v4 = vcombine.low %v160_v2, %v5266_v3  ;;  %v1219_v6 = vld [vmem:[%s5262_s30 + $0x8] sm:$0xe]  ;;  %v5276_v7 = vld [vmem:[%s5262_s30 + $0xc] sm:$0xf]  ;;  %v304_v10 = vshll.u32 %v5272_v5, 16  ;;  %v308_v11 = vshrl.u32 %v5272_v5, 16 }
  0x32   : > { %v5283_v12 = vld [vmem:[%s5262_s30 + $0x10] sm:$0xff]   ;;  %v5286_v14 = vcombine.low %v1219_v6, %v5276_v7  ;;  %v5296_v22 = vld [vmem:[%s5262_s30 + $0x18] sm:$0xff]   ;;  %v5309_v42 = vld [vmem:[%s5262_s30 + $0x20] sm:$0xff]  }
  0x33   : > { %v297_v8 = vshrl.u32 %v5269_v4, 16  ;;  %v299_v9 = vshll.u32 %v5269_v4, 16  ;;  %v306_v16 = vrot.slane %v304_v10, 1  ;;  %v1679_v17 = vshrl.u32 %v5283_v12, 16  ;;  %v5293_v21 = vld [vmem:[%s5262_s30 + $0x10] sm:$0xff]   ;;  %v5303_v34 = vld [vmem:[%s5262_s30 + $0x18] sm:$0xff]  }
  0x34   : > { %v1682_v18 = vshll.u32 %v5283_v12, 16  ;;  %v1671_v19 = vshrl.u32 %v5286_v14, 16  ;;  %v1674_v20 = vshll.u32 %v5286_v14, 16  ;;  %v312_v29 = vshll.u32 %v5293_v21, 16  ;;  %v5312_v43 = vld [vmem:[%s5262_s30 + $0x20] sm:$0xff]   ;;  %v5318_v48 = vld [vmem:[%s5262_s30 + $0x28] sm:$0xff]  }
  0x35   : > { %v301_v15 = vrot.slane %v299_v9, 1  ;;  %v310_v24 = vor.u32 %v308_v11, %v306_v16  ;;  %v1681_v25 = vrot.slane %v1679_v17, 1  ;;  %v1688_v30 = vshrl.u32 %v5296_v22, 16  ;;  %v5325_v53 = vld [vmem:[%s5262_s30 + $0x28] sm:$0xff]   ;;  %v5336_v2 = vld [vmem:[%s5262_s30 + $0x30] sm:$0xff]   ;;  %v5345_v17 = vld [vmem:[%s5262_s30 + $0x38] sm:$0xff]  }
  0x36   : > { %v1684_v26 = vrot.slane %v1682_v18, 2  ;;  %v1673_v27 = vrot.slane %v1671_v19, 1  ;;  %v1676_v28 = vrot.slane %v1674_v20, 2  ;;  %v1691_v33 = vshll.u32 %v5296_v22, 16  ;;  %v5340_v9 = vld [vmem:[%s5262_s30 + $0x30] sm:$0xff]  }
  0x37   : > { %v302_v23 = vor.u32 %v301_v15, %v297_v8  ;;  %v316_v35 = vshrl.u32 %v5293_v21, 16  ;;  %v314_v38 = vrot.slane %v312_v29, 1  ;;  %v1690_v39 = vrot.slane %v1688_v30, 1 }
  0x38   : > { %v1685_v32 = vor.u32 %v1684_v26, %v1681_v25  ;;  %v1677_v37 = vor.u32 %v1676_v28, %v1673_v27  ;;  %v1693_v40 = vrot.slane %v1691_v33, 2  ;;  %v320_v41 = vshll.u32 %v5303_v34, 16  ;;  %v5358_v28 = vld [vmem:[%s5262_s30 + $0x40] sm:$0xff]  }
  0x39   : > { %v307_v31 = vsel %vm295_vm0, %v302_v23, %v306_v16  ;;  %v315_v45 = vsel %vm295_vm0, %v310_v24, %v314_v38  ;;  %v318_v46 = vor.u32 %v316_v35, %v314_v38  ;;  %v324_v47 = vshrl.u32 %v5303_v34, 16  ;;  %v5351_v23 = vld [vmem:[%s5262_s30 + $0x38] sm:$0xff]  }
  0x3a   : > { %4416 = vmatprep.mubr.msk.bf16.mxu1 %vm450_vm1, %v307_v31  ;;  %v1686_v44 = vsel %vm1669_vm2, %v1677_v37, %v1685_v32  ;;  %v1694_v49 = vor.u32 %v1693_v40, %v1690_v39  ;;  %v322_v50 = vrot.slane %v320_v41, 1  ;;  %v1697_v51 = vshrl.u32 %v5309_v42, 16 }
  0x3b   : > { %4568 = vmatprep.mubr.msk.bf16.mxu0 %vm450_vm1, %v1686_v44  ;;  %4417 = vmatmul.mubr.msk.bf16.vlgmr.msra.gmra.mrb[0].mxu1 %vm450_vm1, %v315_v45  ;;  %v1700_v52 = vshll.u32 %v5309_v42, 16  ;;  %v328_v54 = vshll.u32 %v5312_v43, 16  ;;  %v1706_v55 = vshrl.u32 %v5318_v48, 16  ;;  %v1709_v56 = vshll.u32 %v5318_v48, 16  ;;  %v5369_v44 = vld [vmem:[%s5262_s30 + $0x40] sm:$0xff]  }
  0x3c   : > { %4453 = vmatpush3.bf16.msra.mxu1 %v5079_v36  ;;  %v332_v57 = vshrl.u32 %v5312_v43, 16  ;;  %v1695_v58 = vsel %vm1669_vm2, %v1685_v32, %v1694_v49  ;;  %v323_v59 = vsel %vm295_vm0, %v318_v46, %v322_v50  ;;  %v1699_v60 = vrot.slane %v1697_v51, 1 }
  0x3d   : > { %v1702_v61 = vrot.slane %v1700_v52, 2  ;;  %4569 = vmatmul.mubr.msk.bf16.vlgmr.msra.gmra.mrb[0].mxu0 %vm450_vm1, %v1695_v58  ;;  %4420 = vmatprep.mubr.msk.bf16.mxu1 %vm450_vm1, %v323_v59  ;;  %v326_v62 = vor.u32 %v324_v47, %v322_v50  ;;  %v330_v63 = vrot.slane %v328_v54, 1  ;;  %v1708_v0 = vrot.slane %v1706_v55, 1  ;;  %v5375_v54 = vld [vmem:[%s5262_s30 + $0x48] sm:$0xff]  }
  0x3e   : > { %v1711_v1 = vrot.slane %v1709_v56, 2  ;;  %4605 = vmatpush3.bf16.msra.mxu0 %v5075_v13  ;;  %v336_v8 = vshll.u32 %v5325_v53, 16  ;;  %v1715_v16 = vshrl.u32 %v5336_v2, 16  ;;  %v1718_v20 = vshll.u32 %v5336_v2, 16  ;;  %v5378_v55 = vld [vmem:[%s5262_s30 + $0x48] sm:$0xff]  }
  0x3f   : > { %v1703_v6 = vor.u32 %v1702_v61, %v1699_v60  ;;  %v331_v10 = vsel %vm295_vm0, %v326_v62, %v330_v63  ;;  %v334_v15 = vor.u32 %v332_v57, %v330_v63  ;;  %v340_v13 = vshrl.u32 %v5325_v53, 16 }
  0x40   : > { %v1712_v11 = vor.u32 %v1711_v1, %v1708_v0  ;;  %v338_v19 = vrot.slane %v336_v8, 1  ;;  %v1717_v25 = vrot.slane %v1715_v16, 1  ;;  %v344_v26 = vshll.u32 %v5340_v9, 16  ;;  %v5389_v0 = vld [vmem:[%s5262_s30 + $0x50] sm:$0xff]  }
  0x41   : > { %v1704_v18 = vsel %vm1669_vm2, %v1694_v49, %v1703_v6  ;;  %v1724_v27 = vshrl.u32 %v5345_v17, 16  ;;  %v1720_v30 = vrot.slane %v1718_v20, 2  ;;  %v1727_v32 = vshll.u32 %v5345_v17, 16  ;;  %v5392_v1 = vld [vmem:[%s5262_s30 + $0x50] sm:$0xff]  }
  0x42   : > { %4572 = vmatprep.mubr.msk.bf16.mxu0 %vm450_vm1, %v1704_v18  ;;  %v1713_v24 = vsel %vm1669_vm2, %v1703_v6, %v1712_v11  ;;  %v339_v29 = vsel %vm295_vm0, %v334_v15, %v338_v19  ;;  %v342_v31 = vor.u32 %v340_v13, %v338_v19  ;;  %v346_v33 = vrot.slane %v344_v26, 1  ;;  %v5397_v15 = vld [vmem:[%s5262_s30 + $0x58] sm:$0xff]  }
  0x43   : > { %4421 = vmatmul.mubr.msk.bf16.gmra.mrb[4].mxu1 %vm450_vm1, %v331_v10  ;;  %v1726_v35 = vrot.slane %v1724_v27, 1  ;;  %v348_v36 = vshrl.u32 %v5340_v9, 16  ;;  %v352_v37 = vshll.u32 %v5351_v23, 16  ;;  %v1721_v38 = vor.u32 %v1720_v30, %v1717_v25  ;;  %v5404_v25 = vld [vmem:[%s5262_s30 + $0x58] sm:$0xff]  }
  0x44   : > { %4424 = vmatprep.mubr.msk.bf16.mxu1 %vm450_vm1, %v339_v29  ;;  %v1729_v39 = vrot.slane %v1727_v32, 2  ;;  %v1733_v40 = vshrl.u32 %v5358_v28, 16  ;;  %v1736_v41 = vshll.u32 %v5358_v28, 16  ;;  %v356_v47 = vshrl.u32 %v5351_v23, 16 }
  0x45   : > { %4573 = vmatmul.mubr.msk.bf16.gmra.mrb[4].mxu0 %vm450_vm1, %v1713_v24  ;;  %v350_v45 = vor.u32 %v348_v36, %v346_v33  ;;  %v354_v46 = vrot.slane %v352_v37, 1  ;;  %v1722_v49 = vsel %vm1669_vm2, %v1712_v11, %v1721_v38  ;;  %v347_v56 = vsel %vm295_vm0, %v342_v31, %v346_v33  ;;  %v5411_v33 = vld [vmem:[#allocation2 + $0x30] sm:$0xff]   ;;  %v2113_v37 = vld [vmem:[%s5262_s30 + $0x8] sm:$0xc] }
  0x46   : > { %v1730_v50 = vor.u32 %v1729_v39, %v1726_v35  ;;  %v1735_v51 = vrot.slane %v1733_v40, 1  ;;  %v1738_v52 = vrot.slane %v1736_v41, 2  ;;  %4576 = vmatprep.mubr.msk.bf16.mxu0 %vm450_vm1, %v1722_v49  ;;  %v360_v57 = vshll.u32 %v5369_v44, 16  ;;  %4642 = vmatprep.subr.bf16.mxu0 %v5411_v33 }
  0x47   : > { %v364_v58 = vshrl.u32 %v5369_v44, 16  ;;  %v355_v59 = vsel %vm295_vm0, %v350_v45, %v354_v46  ;;  %v1742_v61 = vshrl.u32 %v5375_v54, 16  ;;  %v1745_v62 = vshll.u32 %v5375_v54, 16 }
  0x48   : > { %v1739_v60 = vor.u32 %v1738_v52, %v1735_v51  ;;  %v368_v63 = vshll.u32 %v5378_v55, 16  ;;  %v1731_v6 = vsel %vm1669_vm2, %v1721_v38, %v1730_v50  ;;  %v362_v8 = vrot.slane %v360_v57, 1 }
  0x49   : > { %v1744_v10 = vrot.slane %v1742_v61, 1  ;;  %v1747_v11 = vrot.slane %v1745_v62, 2  ;;  %v358_v18 = vor.u32 %v356_v47, %v354_v46  ;;  %v1751_v19 = vshrl.u32 %v5389_v0, 16 }
  0x4a   : > { %v1740_v16 = vsel %vm1669_vm2, %v1730_v50, %v1739_v60  ;;  %v366_v20 = vor.u32 %v364_v58, %v362_v8  ;;  %v370_v13 = vrot.slane %v368_v63, 1  ;;  %v1754_v24 = vshll.u32 %v5389_v0, 16  ;;  %v5423_v50 = vld [vmem:[%s5262_s30 + $0x60] sm:$0xff]  }
  0x4b   : > { %4425 = vmatmul.mubr.msk.bf16.gmra.mrb[8].mxu1 %vm450_vm1, %v347_v56  ;;  %v1753_v26 = vrot.slane %v1751_v19, 1  ;;  %v376_v27 = vshll.u32 %v5392_v1, 16  ;;  %v1748_v29 = vor.u32 %v1747_v11, %v1744_v10  ;;  %v1760_v31 = vshrl.u32 %v5397_v15, 16 }
  0x4c   : > { %4428 = vmatprep.mubr.msk.bf16.mxu1 %vm450_vm1, %v355_v59  ;;  %v1756_v30 = vrot.slane %v1754_v24, 2  ;;  %v1763_v32 = vshll.u32 %v5397_v15, 16  ;;  %v363_v35 = vsel %vm295_vm0, %v358_v18, %v362_v8  ;;  %v372_v36 = vshrl.u32 %v5378_v55, 16  ;;  %v5429_v59 = vld [vmem:[%s5262_s30 + $0x68] sm:$0xff]  }
  0x4d   : > { %4577 = vmatmul.mubr.msk.bf16.gmra.mrb[8].mxu0 %vm450_vm1, %v1731_v6  ;;  %v371_v38 = vsel %vm295_vm0, %v366_v20, %v370_v13  ;;  %v380_v40 = vshrl.u32 %v5392_v1, 16  ;;  %v384_v41 = vshll.u32 %v5404_v25, 16  ;;  %v1749_v45 = vsel %vm1669_vm2, %v1739_v60, %v1748_v29  ;;  %v5448_v20 = vld [vmem:[%s5262_s30 + $0x70] sm:$0xff]  }
  0x4e   : > { %4580 = vmatprep.mubr.msk.bf16.mxu0 %vm450_vm1, %v1740_v16  ;;  %v1757_v39 = vor.u32 %v1756_v30, %v1753_v26  ;;  %v378_v46 = vrot.slane %v376_v27, 1  ;;  %v1762_v47 = vrot.slane %v1760_v31, 1  ;;  %v1765_v49 = vrot.slane %v1763_v32, 2  ;;  %v5442_v16 = vld [vmem:[#allocation2 + $0x10] sm:$0xff]   ;;  %v5454_v27 = vld [vmem:[%s5262_s30 + $0x78] sm:$0xff]  }
  0x4f   : > { %v374_v52 = vor.u32 %v372_v36, %v370_v13  ;;  %v4071_v56 = vcombine.low %v2113_v37, %v5276_v7  ;;  %v386_v58 = vrot.slane %v384_v41, 1  ;;  %v392_v61 = vshll.u32 %v5423_v50, 16  ;;  %4490 = vmatprep.subr.bf16.mxu1 %v5442_v16 }
  0x50   : > { %v1758_v51 = vsel %vm1669_vm2, %v1748_v29, %v1757_v39  ;;  %v382_v57 = vor.u32 %v380_v40, %v378_v46  ;;  %v5433_v60 = vor.u32 %v1765_v49, %v1762_v47  ;;  %v2122_v6 = vrot.slane %v5283_v12, 2  ;;  %v5474_v47 = vld [vmem:[%s5262_s30 + $0x88] sm:$0xff]   ;;  %v5476_v49 = vld [vmem:[#allocation2 + $0x38] sm:$0xff]  }
  0x51   : > { %v379_v62 = vsel %vm295_vm0, %v374_v52, %v378_v46  ;;  %v2121_v63 = vrot.slane %v4071_v56, 2  ;;  %v388_v7 = vshrl.u32 %v5404_v25, 16  ;;  %v396_v10 = vshrl.u32 %v5423_v50, 16 }
  0x52   : > { %v387_v8 = vsel %vm295_vm0, %v382_v57, %v386_v58  ;;  %v400_v11 = vshll.u32 %v5429_v59, 16  ;;  %v1767_v18 = vsel %vm1669_vm2, %v1757_v39, %v5433_v60  ;;  %v394_v19 = vrot.slane %v392_v61, 1  ;;  %v5467_v39 = vld [vmem:[%s5262_s30 + $0x80] sm:$0xff]  }
  0x53   : > { %4429 = vmatmul.mubr.msk.bf16.gmra.mrb[12].mxu1 %vm450_vm1, %v363_v35  ;;  %v2123_v12 = vsel %vm2120_vm3, %v2121_v63, %v2122_v6  ;;  %v390_v13 = vor.u32 %v388_v7, %v386_v58  ;;  %v2124_v29 = vrot.slane %v5296_v22, 2  ;;  %v408_v30 = vshll.u32 %v5448_v20, 16  ;;  %v5491_v63 = vld [vmem:[%s5262_s30 + $0x90] ss:$0 sps:$4 sm:$0x11]  }
  0x54   : > { %4432 = vmatprep.mubr.msk.bf16.mxu1 %vm450_vm1, %v371_v38  ;;  %v398_v24 = vor.u32 %v396_v10, %v394_v19  ;;  %v402_v26 = vrot.slane %v400_v11, 1  ;;  %v2126_v32 = vrot.slane %v5309_v42, 2  ;;  %v404_v35 = vshrl.u32 %v5429_v59, 16 }
  0x55   : > { %4581 = vmatmul.mubr.msk.bf16.gmra.mrb[12].mxu0 %vm450_vm1, %v1749_v45  ;;  %v395_v31 = vsel %vm295_vm0, %v390_v13, %v394_v19  ;;  %v412_v37 = vshrl.u32 %v5448_v20, 16  ;;  %v416_v38 = vshll.u32 %v5454_v27, 16  ;;  %v2125_v22 = vsel %vm2120_vm3, %v2122_v6, %v2124_v29 }
  0x56   : > { %4584 = vmatprep.mubr.msk.bf16.mxu0 %vm450_vm1, %v1758_v51  ;;  %v403_v36 = vsel %vm295_vm0, %v398_v24, %v402_v26  ;;  %v410_v40 = vrot.slane %v408_v30, 1  ;;  %v2127_v41 = vsel %vm2120_vm3, %v2124_v29, %v2126_v32  ;;  %v406_v42 = vor.u32 %v404_v35, %v402_v26 }
  0x57   : > { %v418_v46 = vrot.slane %v416_v38, 1  ;;  %v2128_v51 = vrot.slane %v5318_v48, 2  ;;  %v424_v52 = vshll.u32 %v5467_v39, 16  ;;  %v2130_v57 = vrot.slane %v5336_v2, 2  ;;  %v5526_v38 = vld [vmem:[#allocation2 + $0x18] sm:$0xff]  }
  0x58   : > { %v414_v45 = vor.u32 %v412_v37, %v410_v40  ;;  %v411_v56 = vsel %vm295_vm0, %v406_v42, %v410_v40  ;;  %v420_v58 = vshrl.u32 %v5454_v27, 16  ;;  %v432_v48 = vshll.u32 %v5474_v47, 16  ;;  %v5520_v37 = vld [vmem:[%s5262_s30 + $0x60] sm:$0xff]  }
  0x59   : > { %v426_v6 = vrot.slane %v424_v52, 1  ;;  %v2131_v2 = vsel %vm2120_vm3, %v2128_v51, %v2130_v57  ;;  %v2132_v11 = vrot.slane %v5345_v17, 2  ;;  %v2134_v19 = vrot.slane %v5358_v28, 2 }
  0x5a   : > { %v419_v61 = vsel %vm295_vm0, %v414_v45, %v418_v46  ;;  %v422_v7 = vor.u32 %v420_v58, %v418_v46  ;;  %v434_v10 = vrot.slane %v432_v48, 1  ;;  %v440_v13 = vshll.u32 %v5491_v63, 16  ;;  %v5566_v58 = vld [vmem:[%s5262_s30 + $0x88] sm:$0xff]  }
  0x5b   : > { %4433 = vmatmul.mubr.msk.bf16.gmra.mrb[16].mxu1 %vm450_vm1, %v379_v62  ;;  %v428_v62 = vshrl.u32 %v5467_v39, 16  ;;  %v2133_v26 = vsel %vm2120_vm3, %v2130_v57, %v2132_v11  ;;  %v2135_v29 = vsel %vm2120_vm3, %v2132_v11, %v2134_v19  ;;  %v2136_v28 = vrot.slane %v5375_v54, 2 }
  0x5c   : > { %4436 = vmatprep.mubr.msk.bf16.mxu1 %vm450_vm1, %v387_v8  ;;  %v442_v30 = vrot.slane %v440_v13, 1  ;;  %v2140_v54 = vrot.slane %v5397_v15, 2  ;;  %v5539_v15 = vld [vmem:[%s5262_s30 + $0x70] sm:$0xff]   ;;  %v2152_v48 = vrot.slane %v5566_v58, 2 }
  0x5d   : > { %4585 = vmatmul.mubr.msk.bf16.gmra.mrb[16].mxu0 %vm450_vm1, %v1767_v18  ;;  %v430_v8 = vor.u32 %v428_v62, %v426_v6  ;;  %v427_v18 = vsel %vm295_vm0, %v422_v7, %v426_v6  ;;  %v2137_v35 = vsel %vm2120_vm3, %v2134_v19, %v2136_v28  ;;  %v2146_v42 = vrot.slane %v5539_v15, 2  ;;  %v5572_v62 = vld [vmem:[%s5262_s30 + $0x90] sm:$0xff]  }
  0x5e   : > { %4606 = vmatprep.mubr.msk.bf16.mxu0 %vm450_vm1, %v2123_v12  ;;  %v436_v12 = vshrl.u32 %v5474_v47, 16  ;;  %v2431_v6 = vld [vmem:[%s5262_s30 + $0x10] sm:$0xc] }
  0x5f   : > { %v435_v24 = vsel %vm295_vm0, %v430_v8, %v434_v10  ;;  %v5586_v8 = vld [vmem:[%s5262_s30 + $0x98] ss:$0 sps:$4 sm:$0x33]  }
  0x60   : > { %v438_v17 = vor.u32 %v436_v12, %v434_v10  ;;  %v2156_v19 = vrot.slane %v5586_v8, 2 }
  0x63   : > { %4437 = vmatmul.mubr.msk.bf16.gmra.mrb[20].mxu1 %vm450_vm1, %v395_v31  ;;  %v443_v31 = vsel %vm295_vm0, %v438_v17, %v442_v30  ;;  %v5612_v17 = vld [vmem:[%s5262_s30 + $0x28] sm:$0xff]  }
  0x64   : > { %4440 = vmatprep.mubr.msk.bf16.mxu1 %vm450_vm1, %v403_v36 }
  0x65   : > { %4607 = vmatmul.mubr.msk.bf16.vlgmr.msra.gmra.mrb[0].mxu0 %vm450_vm1, %v2125_v22  ;;  %v5532_v22 = vld [vmem:[%s5262_s30 + $0x68] sm:$0xff]  }
  0x66   : > { %4643 = vmatpush3.bf16.msra.mxu0 %v5411_v33  ;;  %4610 = vmatprep.mubr.msk.bf16.mxu0 %vm450_vm1, %v2127_v41  ;;  %v2129_v33 = vsel %vm2120_vm3, %v2126_v32, %v2128_v51  ;;  %v2138_v32 = vrot.slane %v5389_v0, 2  ;;  %v2142_v0 = vrot.slane %v5520_v37, 2  ;;  %v2144_v41 = vrot.slane %v5532_v22, 2  ;;  %v5556_v51 = vld [vmem:[%s5262_s30 + $0x80] sm:$0xff]  }
  0x67   : > { %4680 = vmatprep.subr.bf16.mxu0 %v5476_v49 }
  0x68   : > { %v2139_v36 = vsel %vm2120_vm3, %v2136_v28, %v2138_v32  ;;  %v2143_v40 = vsel %vm2120_vm3, %v2140_v54, %v2142_v0  ;;  %v2145_v45 = vsel %vm2120_vm3, %v2142_v0, %v2144_v41  ;;  %v2147_v46 = vsel %vm2120_vm3, %v2144_v41, %v2146_v42  ;;  %v5642_v41 = vld [vmem:[%s5262_s30 + $0x40] sm:$0xff]  }
  0x69   : > { %v2569_v28 = vrot.slane %v5612_v17, 2 }
  0x6b   : > { %4441 = vmatmul.mubr.msk.bf16.gmra.mrb[24].mxu1 %vm450_vm1, %v411_v56  ;;  %v2150_v56 = vrot.slane %v5556_v51, 2 }
  0x6c   : > { %4444 = vmatprep.mubr.msk.bf16.mxu1 %vm450_vm1, %v419_v61 }
  0x6d   : > { %4611 = vmatmul.mubr.msk.bf16.gmra.mrb[4].mxu0 %vm450_vm1, %v2129_v33  ;;  %v2154_v33 = vrot.slane %v5572_v62, 2  ;;  %v2153_v7 = vsel %vm2120_vm3, %v2150_v56, %v2152_v48 }
  0x6e   : > { %4614 = vmatprep.mubr.msk.bf16.mxu0 %vm450_vm1, %v2131_v2  ;;  %v5580_v2 = vld [vmem:[%s5262_s30 + $0x14] sm:$0xf] }
  0x6f   : > { %v2155_v10 = vsel %vm2120_vm3, %v2152_v48, %v2154_v33  ;;  %v5592_v11 = vcombine.low %v2431_v6, %v5580_v2 }
  0x71   : > { %v2564_v12 = vrot.slane %v5592_v11, 2 }
  0x73   : > { %4445 = vmatmul.mubr.msk.bf16.gmra.mrb[28].mxu1 %vm450_vm1, %v427_v18  ;;  %v5595_v18 = vld [vmem:[%s5262_s30 + $0x18] sm:$0xff]  }
  0x74   : > { %4448 = vmatprep.mubr.msk.bf16.mxu1 %vm450_vm1, %v435_v24  ;;  %v2565_v13 = vrot.slane %v5595_v18, 2  ;;  %v2157_v24 = vsel %vm2120_vm3, %v2154_v33, %v2156_v19  ;;  %v5666_v33 = vld [vmem:[%s5262_s30 + $0x58] sm:$0xff]  }
  0x75   : > { %4615 = vmatmul.mubr.msk.bf16.gmra.mrb[8].mxu0 %vm450_vm1, %v2133_v26  ;;  %v5606_v26 = vld [vmem:[%s5262_s30 + $0x20] sm:$0xff]  }
  0x76   : > { %4618 = vmatprep.mubr.msk.bf16.mxu0 %vm450_vm1, %v2135_v29  ;;  %v2566_v29 = vsel %vm2120_vm3, %v2564_v12, %v2565_v13  ;;  %v2567_v30 = vrot.slane %v5606_v26, 2 }
  0x7b   : > { %4449 = vmatmul.mubr.msk.bf16.gmra.mrb[32].mxu1 %vm450_vm1, %v443_v31  ;;  %v2568_v31 = vsel %vm2120_vm3, %v2565_v13, %v2567_v30  ;;  %v5678_v13 = vld [vmem:[%s5262_s30 + $0x60] sm:$0xff]  }
  0x7c   : > { %4454 = vmatprep.mubr.msk.bf16.mxu1 %vm450_vm1, %v5269_v4  ;;  %v2141_v4 = vsel %vm2120_vm3, %v2138_v32, %v2140_v54  ;;  %v5622_v32 = vld [vmem:[%s5262_s30 + $0x30] sm:$0xff]   ;;  %v5630_v54 = vld [vmem:[#allocation2 + $0x40] sm:$0xff]  }
  0x7d   : > { %4619 = vmatmul.mubr.msk.bf16.gmra.mrb[12].mxu0 %vm450_vm1, %v2137_v35  ;;  %v2570_v35 = vsel %vm2120_vm3, %v2567_v30, %v2569_v28  ;;  %v2571_v0 = vrot.slane %v5622_v32, 2  ;;  %v914_v30 = vrot.slane %v5303_v34, 1 }
  0x7e   : > { %4622 = vmatprep.mubr.msk.bf16.mxu0 %vm450_vm1, %v2139_v36  ;;  %v5628_v36 = vld [vmem:[%s5262_s30 + $0x38] sm:$0xff]  }
  0x83   : > { %4455 = vmatmul.mubr.msk.bf16.vlgmr.msra.gmra.mrb[0].mxu1 %vm450_vm1, %v5272_v5 }
  0x84   : > { %4458 = vmatprep.mubr.msk.bf16.mxu1 %vm450_vm1, %v5293_v21  ;;  %4491 = vmatpush3.bf16.msra.mxu1 %v5442_v16  ;;  %v5550_v16 = vld [vmem:[%s5262_s30 + $0x78] sm:$0xff]  }
  0x85   : > { %4528 = vmatprep.subr.bf16.mxu1 %v5526_v38  ;;  %4623 = vmatmul.mubr.msk.bf16.gmra.mrb[16].mxu0 %vm450_vm1, %v2141_v4  ;;  %v2148_v52 = vrot.slane %v5550_v16, 2  ;;  %v2573_v4 = vrot.slane %v5628_v36, 2 }
  0x86   : > { %4626 = vmatprep.mubr.msk.bf16.mxu0 %vm450_vm1, %v2143_v40  ;;  %v2572_v40 = vsel %vm2120_vm3, %v2569_v28, %v2571_v0  ;;  %v2583_v28 = vrot.slane %v5678_v13, 2 }
  0x87   : > { %v2149_v57 = vsel %vm2120_vm3, %v2146_v42, %v2148_v52  ;;  %v2151_v61 = vsel %vm2120_vm3, %v2148_v52, %v2150_v56  ;;  %v5648_v42 = vld [vmem:[%s5262_s30 + $0x48] sm:$0xff]  }
  0x88   : > { %v2577_v52 = vrot.slane %v5648_v42, 2 }
  0x8b   : > { %4459 = vmatmul.mubr.msk.bf16.gmra.mrb[4].mxu1 %vm450_vm1, %v5303_v34 }
  0x8c   : > { %4462 = vmatprep.mubr.msk.bf16.mxu1 %vm450_vm1, %v5312_v43 }
  0x8d   : > { %4627 = vmatmul.mubr.msk.bf16.gmra.mrb[20].mxu0 %vm450_vm1, %v2145_v45  ;;  %v901_v45 = vld [vmem:[%s5262_s30] sm:$0xe] }
  0x8e   : > { %4630 = vmatprep.mubr.msk.bf16.mxu0 %vm450_vm1, %v2147_v46  ;;  %v2575_v46 = vrot.slane %v5642_v41, 2  ;;  %v3993_v56 = vcombine.low %v901_v45, %v5266_v3  ;;  %v918_v45 = vrot.slane %v5325_v53, 1 }
  0x90   : > { %v2578_v48 = vsel %vm2120_vm3, %v2575_v46, %v2577_v52  ;;  %v909_v6 = vrot.slane %v3993_v56, 1 }
  0x93   : > { %4463 = vmatmul.mubr.msk.bf16.gmra.mrb[8].mxu1 %vm450_vm1, %v5325_v53 }
  0x94   : > { %4466 = vmatprep.mubr.msk.bf16.mxu1 %vm450_vm1, %v5340_v9 }
  0x95   : > { %4631 = vmatmul.mubr.msk.bf16.gmra.mrb[24].mxu0 %vm450_vm1, %v2149_v57  ;;  %v2576_v57 = vsel %vm2120_vm3, %v2573_v4, %v2575_v46  ;;  %v5706_v46 = vld [vmem:[#allocation2 + $0x20] sm:$0xff]  }
  0x96   : > { %4634 = vmatprep.mubr.msk.bf16.mxu0 %vm450_vm1, %v2151_v61  ;;  %v5660_v61 = vld [vmem:[%s5262_s30 + $0x50] sm:$0xff]  }
  0x97   : > { %v2579_v3 = vrot.slane %v5660_v61, 2 }
  0x99   : > { %v2580_v12 = vsel %vm2120_vm3, %v2577_v52, %v2579_v3 }
  0x9b   : > { %4467 = vmatmul.mubr.msk.bf16.gmra.mrb[12].mxu1 %vm450_vm1, %v5351_v23 }
  0x9c   : > { %4470 = vmatprep.mubr.msk.bf16.mxu1 %vm450_vm1, %v5369_v44 }
  0x9d   : > { %4635 = vmatmul.mubr.msk.bf16.gmra.mrb[28].mxu0 %vm450_vm1, %v2153_v7  ;;  %v910_v7 = vrot.slane %v5272_v5, 1 }
  0x9e   : > { %4638 = vmatprep.mubr.msk.bf16.mxu0 %vm450_vm1, %v2155_v10  ;;  %v2581_v10 = vrot.slane %v5666_v33, 2 }
  0x9f   : > { %v911_v19 = vsel %vm908_vm4, %v909_v6, %v910_v7  ;;  %v920_v6 = vrot.slane %v5340_v9, 1 }
  0xa0   : > { %v2582_v5 = vsel %vm2120_vm3, %v2579_v3, %v2581_v10  ;;  %v922_v3 = vrot.slane %v5351_v23, 1  ;;  %v5740_v23 = vld [vmem:[%s5262_s30 + $0x98] sm:$0xff]  }
  0xa3   : > { %4471 = vmatmul.mubr.msk.bf16.gmra.mrb[16].mxu1 %vm450_vm1, %v5378_v55 }
  0xa4   : > { %4474 = vmatprep.mubr.msk.bf16.mxu1 %vm450_vm1, %v5392_v1 }
  0xa5   : > { %4639 = vmatmul.mubr.msk.bf16.gmra.mrb[32].mxu0 %vm450_vm1, %v2157_v24  ;;  %v912_v24 = vrot.slane %v5293_v21, 1  ;;  %v2584_v21 = vsel %vm2120_vm3, %v2581_v10, %v2583_v28 }
  0xa6   : > { %4644 = vmatprep.mubr.msk.bf16.mxu0 %vm450_vm1, %v2566_v29  ;;  %v5684_v29 = vld [vmem:[%s5262_s30 + $0x68] sm:$0xff]  }
  0xab   : > { %4475 = vmatmul.mubr.msk.bf16.gmra.mrb[20].mxu1 %vm450_vm1, %v5404_v25 }
  0xac   : > { %4478 = vmatprep.mubr.msk.bf16.mxu1 %vm450_vm1, %v5423_v50 }
  0xad   : > { %4645 = vmatmul.mubr.msk.bf16.vlgmr.msra.gmra.mrb[0].mxu0 %vm450_vm1, %v2568_v31  ;;  %v913_v31 = vsel %vm908_vm4, %v910_v7, %v912_v24  ;;  %v5724_v7 = vld [vmem:[%s5262_s30 + $0x88] sm:$0xff]  }
  0xae   : > { %4681 = vmatpush3.bf16.msra.mxu0 %v5476_v49  ;;  %4648 = vmatprep.mubr.msk.bf16.mxu0 %vm450_vm1, %v2570_v35  ;;  %v2574_v49 = vsel %vm2120_vm3, %v2571_v0, %v2573_v4  ;;  %v2585_v35 = vrot.slane %v5684_v29, 2  ;;  %v915_v0 = vsel %vm908_vm4, %v912_v24, %v914_v30  ;;  %v5696_v4 = vld [vmem:[%s5262_s30 + $0x70] sm:$0xff]   ;;  %v924_v24 = vrot.slane %v5369_v44, 1 }
  0xaf   : > { %4718 = vmatprep.subr.bf16.mxu0 %v5630_v54  ;;  %v2587_v52 = vrot.slane %v5696_v4, 2  ;;  %v2597_v44 = vrot.slane %v5740_v23, 2 }
  0xb0   : > { %v2586_v34 = vsel %vm2120_vm3, %v2583_v28, %v2585_v35 }
  0xb1   : > { %v2588_v53 = vsel %vm2120_vm3, %v2585_v35, %v2587_v52  ;;  %v925_v35 = vsel %vm908_vm4, %v922_v3, %v924_v24 }
  0xb3   : > { %4479 = vmatmul.mubr.msk.bf16.gmra.mrb[24].mxu1 %vm450_vm1, %v5429_v59 }
  0xb4   : > { %4482 = vmatprep.mubr.msk.bf16.mxu1 %vm450_vm1, %v5448_v20 }
  0xb5   : > { %4649 = vmatmul.mubr.msk.bf16.gmra.mrb[4].mxu0 %vm450_vm1, %v2572_v40  ;;  %v916_v40 = vrot.slane %v5312_v43, 1 }
  0xb6   : > { %4652 = vmatprep.mubr.msk.bf16.mxu0 %vm450_vm1, %v2574_v49  ;;  %v5703_v49 = vld [vmem:[%s5262_s30 + $0x78] sm:$0xff]  }
  0xb7   : > { %v917_v56 = vsel %vm908_vm4, %v914_v30, %v916_v40  ;;  %v2589_v43 = vrot.slane %v5703_v49, 2  ;;  %v5737_v30 = vld [vmem:[%s5262_s30 + $0x90] sm:$0xff]  }
  0xbb   : > { %4483 = vmatmul.mubr.msk.bf16.gmra.mrb[28].mxu1 %vm450_vm1, %v5454_v27 }
  0xbc   : > { %4486 = vmatprep.mubr.msk.bf16.mxu1 %vm450_vm1, %v5467_v39 }
  0xbd   : > { %4653 = vmatmul.mubr.msk.bf16.gmra.mrb[8].mxu0 %vm450_vm1, %v2576_v57  ;;  %v5718_v57 = vld [vmem:[%s5262_s30 + $0x80] sm:$0xff]  }
  0xbe   : > { %4656 = vmatprep.mubr.msk.bf16.mxu0 %vm450_vm1, %v2578_v48  ;;  %v2590_v48 = vsel %vm2120_vm3, %v2587_v52, %v2589_v43  ;;  %v2591_v10 = vrot.slane %v5718_v57, 2 }
  0xc0   : > { %v2592_v9 = vsel %vm2120_vm3, %v2589_v43, %v2591_v10  ;;  %v928_v43 = vrot.slane %v5392_v1, 1  ;;  %v2903_v1 = vshll.u32 %v5606_v26, 16 }
  0xc3   : > { %4487 = vmatmul.mubr.msk.bf16.gmra.mrb[32].mxu1 %vm450_vm1, %v5474_v47 }
  0xc4   : > { %4492 = vmatprep.mubr.msk.bf16.mxu1 %vm450_vm1, %v911_v19  ;;  %v921_v19 = vsel %vm908_vm4, %v918_v45, %v920_v6 }
  0xc5   : > { %4657 = vmatmul.mubr.msk.bf16.gmra.mrb[12].mxu0 %vm450_vm1, %v2580_v12  ;;  %v2593_v12 = vrot.slane %v5724_v7, 2 }
  0xc6   : > { %4660 = vmatprep.mubr.msk.bf16.mxu0 %vm450_vm1, %v2582_v5  ;;  %v923_v5 = vsel %vm908_vm4, %v920_v6, %v922_v3  ;;  %v930_v3 = vrot.slane %v5404_v25, 1 }
  0xc7   : > { %v2594_v28 = vsel %vm2120_vm3, %v2591_v10, %v2593_v12 }
  0xcb   : > { %4493 = vmatmul.mubr.msk.bf16.vlgmr.msra.gmra.mrb[0].mxu1 %vm450_vm1, %v913_v31  ;;  %v926_v31 = vrot.slane %v5378_v55, 1 }
  0xcc   : > { %4496 = vmatprep.mubr.msk.bf16.mxu1 %vm450_vm1, %v915_v0  ;;  %4529 = vmatpush3.bf16.msra.mxu1 %v5526_v38  ;;  %v919_v38 = vsel %vm908_vm4, %v916_v40, %v918_v45  ;;  %v2595_v0 = vrot.slane %v5737_v30, 2  ;;  %v2891_v40 = vshrl.u32 %v5595_v18, 16  ;;  %v2894_v45 = vshll.u32 %v5595_v18, 16 }
  0xcd   : > { %4756 = vmatprep.subr.bf16.mxu1 %v5706_v46  ;;  %4661 = vmatmul.mubr.msk.bf16.gmra.mrb[16].mxu0 %vm450_vm1, %v2584_v21  ;;  %v2883_v21 = vshrl.u32 %v5592_v11, 16  ;;  %v927_v55 = vsel %vm908_vm4, %v924_v24, %v926_v31  ;;  %v929_v10 = vsel %vm908_vm4, %v926_v31, %v928_v43  ;;  %v2909_v24 = vshrl.u32 %v5612_v17, 16 }
  0xce   : > { %4664 = vmatprep.mubr.msk.bf16.mxu0 %vm450_vm1, %v2586_v34  ;;  %v2886_v34 = vshll.u32 %v5592_v11, 16  ;;  %v2596_v52 = vsel %vm2120_vm3, %v2593_v12, %v2595_v0  ;;  %v2893_v11 = vrot.slane %v2891_v40, 2  ;;  %v2896_v6 = vrot.slane %v2894_v45, 3 }
  0xcf   : > { %v2900_v12 = vshrl.u32 %v5606_v26, 16  ;;  %v2905_v31 = vrot.slane %v2903_v1, 3  ;;  %v2911_v40 = vrot.slane %v2909_v24, 2  ;;  %v938_v1 = vrot.slane %v5454_v27, 1 }
  0xd0   : > { %v2939_v24 = vshll.u32 %v5642_v41, 16 }
  0xd3   : > { %4497 = vmatmul.mubr.msk.bf16.gmra.mrb[4].mxu1 %vm450_vm1, %v917_v56  ;;  %v2598_v56 = vsel %vm2120_vm3, %v2595_v0, %v2597_v44  ;;  %v2902_v0 = vrot.slane %v2900_v12, 2 }
  0xd4   : > { %4500 = vmatprep.mubr.msk.bf16.mxu1 %vm450_vm1, %v919_v38  ;;  %v5135_v38 = vld [vmem:[%s5262_s30 + $0xa0] ss:$0 sps:$4 sm:$0x33]  }
  0xd5   : > { %4665 = vmatmul.mubr.msk.bf16.gmra.mrb[20].mxu0 %vm450_vm1, %v2588_v53  ;;  %v2885_v53 = vrot.slane %v2883_v21, 2 }
  0xd6   : > { %4668 = vmatprep.mubr.msk.bf16.mxu0 %vm450_vm1, %v2590_v48  ;;  %v2888_v48 = vrot.slane %v2886_v34, 3  ;;  %v932_v34 = vrot.slane %v5423_v50, 1  ;;  %v2930_v50 = vshll.u32 %v5628_v36, 16 }
  0xd8   : > { %v2932_v12 = vrot.slane %v2930_v50, 3 }
  0xdb   : > { %4501 = vmatmul.mubr.msk.bf16.gmra.mrb[8].mxu1 %vm450_vm1, %v921_v19  ;;  %v2599_v19 = vrot.slane %v5135_v38, 2 }
  0xdc   : > { %4504 = vmatprep.mubr.msk.bf16.mxu1 %vm450_vm1, %v923_v5  ;;  %v2889_v5 = vor.u32 %v2888_v48, %v2885_v53  ;;  %v2927_v53 = vshrl.u32 %v5628_v36, 16 }
  0xdd   : > { %4669 = vmatmul.mubr.msk.bf16.gmra.mrb[24].mxu0 %vm450_vm1, %v2592_v9  ;;  %v2897_v9 = vor.u32 %v2896_v6, %v2893_v11  ;;  %v2600_v25 = vsel %vm2120_vm3, %v2597_v44, %v2599_v19  ;;  %v2921_v44 = vshll.u32 %v5622_v32, 16  ;;  %v936_v19 = vrot.slane %v5448_v20, 1 }
  0xde   : > { %4672 = vmatprep.mubr.msk.bf16.mxu0 %vm450_vm1, %v2594_v28  ;;  %v2912_v28 = vshll.u32 %v5612_v17, 16  ;;  %v2945_v20 = vshrl.u32 %v5648_v42, 16 }
  0xdf   : > { %v2898_v21 = vsel %vm2881_vm5, %v2889_v5, %v2897_v9  ;;  %v2923_v6 = vrot.slane %v2921_v44, 3  ;;  %v939_v27 = vsel %vm908_vm4, %v936_v19, %v938_v1  ;;  %v2957_v44 = vshll.u32 %v5660_v61, 16 }
  0xe0   : > { %v2914_v45 = vrot.slane %v2912_v28, 3 }
  0xe2   : > { %v2915_v38 = vor.u32 %v2914_v45, %v2911_v40  ;;  %v2947_v40 = vrot.slane %v2945_v20, 2 }
  0xe3   : > { %4505 = vmatmul.mubr.msk.bf16.gmra.mrb[12].mxu1 %vm450_vm1, %v925_v35  ;;  %v931_v35 = vsel %vm908_vm4, %v928_v43, %v930_v3  ;;  %v933_v43 = vsel %vm908_vm4, %v930_v3, %v932_v34  ;;  %v2929_v3 = vrot.slane %v2927_v53, 2  ;;  %v2963_v53 = vshrl.u32 %v5666_v33, 16 }
  0xe4   : > { %4508 = vmatprep.mubr.msk.bf16.mxu1 %vm450_vm1, %v927_v55  ;;  %v934_v55 = vrot.slane %v5429_v59, 1 }
  0xe5   : > { %4673 = vmatmul.mubr.msk.bf16.gmra.mrb[28].mxu0 %vm450_vm1, %v2596_v52  ;;  %v2906_v52 = vor.u32 %v2905_v31, %v2902_v0  ;;  %v2941_v31 = vrot.slane %v2939_v24, 3  ;;  %v2975_v24 = vshll.u32 %v5678_v13, 16 }
  0xe6   : > { %4676 = vmatprep.mubr.msk.bf16.mxu0 %vm450_vm1, %v2598_v56  ;;  %v2918_v56 = vshrl.u32 %v5622_v32, 16  ;;  %v935_v48 = vsel %vm908_vm4, %v932_v34, %v934_v55  ;;  %v937_v28 = vsel %vm908_vm4, %v934_v55, %v936_v19  ;;  %v940_v34 = vrot.slane %v5467_v39, 1 }
  0xe7   : > { %v2907_v59 = vsel %vm2881_vm5, %v2897_v9, %v2906_v52  ;;  %v2936_v9 = vshrl.u32 %v5642_v41, 16  ;;  %v942_v55 = vrot.slane %v5474_v47, 1  ;;  %v2966_v39 = vshll.u32 %v5666_v33, 16 }
  0xe8   : > { %v2920_v11 = vrot.slane %v2918_v56, 2  ;;  %v2954_v56 = vshrl.u32 %v5660_v61, 16 }
  0xe9   : > { %v2938_v0 = vrot.slane %v2936_v9, 2  ;;  %v943_v50 = vsel %vm908_vm4, %v940_v34, %v942_v55  ;;  %v2968_v19 = vrot.slane %v2966_v39, 3  ;;  %v2972_v9 = vshrl.u32 %v5678_v13, 16 }
  0xea   : > { %v2924_v5 = vor.u32 %v2923_v6, %v2920_v11  ;;  %v944_v6 = vrot.slane %v5491_v63, 1  ;;  %v3002_v39 = vshll.u32 %v5703_v49, 16 }
  0xeb   : > { %4509 = vmatmul.mubr.msk.bf16.gmra.mrb[16].mxu1 %vm450_vm1, %v929_v10  ;;  %v2916_v10 = vsel %vm2881_vm5, %v2906_v52, %v2915_v38  ;;  %v2942_v52 = vor.u32 %v2941_v31, %v2938_v0  ;;  %v5142_v31 = vld [vmem:[%s5262_s30 + $0x18] sm:$0xff]  }
  0xec   : > { %4512 = vmatprep.mubr.msk.bf16.mxu1 %vm450_vm1, %v931_v35  ;;  %v2933_v35 = vor.u32 %v2932_v12, %v2929_v3  ;;  %v1352_v3 = vrot.slane %v5286_v14, 1  ;;  %v5141_v12 = vld [vmem:[%s5262_s30 + $0x10] sm:$0xff]   ;;  %v2984_v14 = vshll.u32 %v5684_v29, 16 }
  0xed   : > { %4677 = vmatmul.mubr.msk.bf16.gmra.mrb[32].mxu0 %vm450_vm1, %v2600_v25  ;;  %v2948_v25 = vshll.u32 %v5648_v42, 16 }
  0xee   : > { %4682 = vmatprep.mubr.msk.bf16.mxu0 %vm450_vm1, %v2898_v21  ;;  %v2934_v21 = vsel %vm2881_vm5, %v2924_v5, %v2933_v35  ;;  %v2943_v47 = vsel %vm2881_vm5, %v2933_v35, %v2942_v52  ;;  %v2981_v35 = vshrl.u32 %v5684_v29, 16 }
  0xef   : > { %v2950_v45 = vrot.slane %v2948_v25, 3 }
  0xf3   : > { %4513 = vmatmul.mubr.msk.bf16.gmra.mrb[20].mxu1 %vm450_vm1, %v933_v43  ;;  %v941_v43 = vsel %vm908_vm4, %v938_v1, %v940_v34  ;;  %v1353_v1 = vrot.slane %v5141_v12, 1  ;;  %v2983_v34 = vrot.slane %v2981_v35, 2  ;;  %v5145_v12 = vld [vmem:[%s5262_s30 + $0x30] sm:$0xff]   ;;  %v3020_v35 = vshll.u32 %v5724_v7, 16 }
  0xf4   : > { %4516 = vmatprep.mubr.msk.bf16.mxu1 %vm450_vm1, %v935_v48  ;;  %v2956_v48 = vrot.slane %v2954_v56, 2  ;;  %v2990_v56 = vshrl.u32 %v5696_v4, 16 }
  0xf5   : > { %4683 = vmatmul.mubr.msk.bf16.vlgmr.msra.gmra.mrb[0].mxu0 %vm450_vm1, %v2907_v59  ;;  %v2959_v59 = vrot.slane %v2957_v44, 3  ;;  %v1354_v20 = vsel %vm908_vm4, %v1352_v3, %v1353_v1  ;;  %v2993_v44 = vshll.u32 %v5696_v4, 16  ;;  %v3004_v3 = vrot.slane %v3002_v39, 3 }
  0xf6   : > { %4719 = vmatpush3.bf16.msra.mxu0 %v5630_v54  ;;  %4686 = vmatprep.mubr.msk.bf16.mxu0 %vm450_vm1, %v2916_v10  ;;  %v2925_v54 = vsel %vm2881_vm5, %v2915_v38, %v2924_v5  ;;  %v2951_v38 = vor.u32 %v2950_v45, %v2947_v40  ;;  %v2965_v10 = vrot.slane %v2963_v53, 2  ;;  %v2986_v40 = vrot.slane %v2984_v14, 3  ;;  %v5143_v45 = vld [vmem:[%s5262_s30 + $0x20] sm:$0xff]  }
  0xf7   : > { %v2960_v5 = vor.u32 %v2959_v59, %v2956_v48  ;;  %v2999_v53 = vshrl.u32 %v5703_v49, 16  ;;  %v2992_v48 = vrot.slane %v2990_v56, 2  ;;  %v2995_v59 = vrot.slane %v2993_v44, 3 }
  0xf8   : > { %v2952_v11 = vsel %vm2881_vm5, %v2942_v52, %v2951_v38  ;;  %v2969_v63 = vor.u32 %v2968_v19, %v2965_v10  ;;  %v3029_v56 = vshll.u32 %v5737_v30, 16 }
  0xf9   : > { %v2961_v25 = vsel %vm2881_vm5, %v2951_v38, %v2960_v5  ;;  %v2987_v38 = vor.u32 %v2986_v40, %v2983_v34  ;;  %v3001_v19 = vrot.slane %v2999_v53, 2  ;;  %v3022_v34 = vrot.slane %v3020_v35, 3  ;;  %v5147_v40 = vld [vmem:[%s5262_s30 + $0x40] sm:$0xff]   ;;  %v3325_v35 = vld [vmem:[%s5262_s30 + $0x10] sm:$0x8] }
  0xfa   : > { %v2970_v0 = vsel %vm2881_vm5, %v2960_v5, %v2969_v63  ;;  %v2996_v5 = vor.u32 %v2995_v59, %v2992_v48  ;;  %v3038_v53 = vshll.u32 %v5740_v23, 16  ;;  %v3031_v48 = vrot.slane %v3029_v56, 3  ;;  %v5874_v59 = vld [vmem:[%s5262_s30 + $0xa0] ss:$0 sps:$4 sm:$0x77]  }
  0xfb   : > { %4517 = vmatmul.mubr.msk.bf16.gmra.mrb[24].mxu1 %vm450_vm1, %v937_v28  ;;  %v945_v28 = vsel %vm908_vm4, %v942_v55, %v944_v6  ;;  %v1357_v55 = vrot.slane %v5143_v45, 1  ;;  %v5144_v6 = vld [vmem:[%s5262_s30 + $0x28] sm:$0xff]   ;;  %v1365_v45 = vrot.slane %v5147_v40, 1 }
  0xfc   : > { %4520 = vmatprep.mubr.msk.bf16.mxu1 %vm450_vm1, %v939_v27  ;;  %v2974_v27 = vrot.slane %v2972_v9, 2  ;;  %v1359_v10 = vrot.slane %v5144_v6, 1  ;;  %v3008_v9 = vshrl.u32 %v5718_v57, 16  ;;  %v5148_v6 = vld [vmem:[%s5262_s30 + $0x48] sm:$0xff]  }
  0xfd   : > { %4687 = vmatmul.mubr.msk.bf16.gmra.mrb[4].mxu0 %vm450_vm1, %v2925_v54  ;;  %v2977_v54 = vrot.slane %v2975_v24, 3  ;;  %v3011_v24 = vshll.u32 %v5718_v57, 16 }
  0xfe   : > { %4690 = vmatprep.mubr.msk.bf16.mxu0 %vm450_vm1, %v2934_v21  ;;  %v1355_v21 = vrot.slane %v5142_v31, 1 }
  0xff   : > { %v2978_v52 = vor.u32 %v2977_v54, %v2974_v27  ;;  %v3013_v27 = vrot.slane %v3011_v24, 3  ;;  %v3047_v24 = vshll.u32 %v5874_v59, 16 }
 0x103   : > { %4521 = vmatmul.mubr.msk.bf16.gmra.mrb[28].mxu1 %vm450_vm1, %v941_v43  ;;  %v1356_v43 = vsel %vm908_vm4, %v1353_v1, %v1355_v21  ;;  %v1361_v1 = vrot.slane %v5145_v12, 1  ;;  %v5149_v12 = vld [vmem:[%s5262_s30 + $0x50] sm:$0xff]  }
 0x104   : > { %4524 = vmatprep.mubr.msk.bf16.mxu1 %vm450_vm1, %v943_v50  ;;  %v1358_v50 = vsel %vm908_vm4, %v1355_v21, %v1357_v55 }
 0x105   : > { %4691 = vmatmul.mubr.msk.bf16.gmra.mrb[8].mxu0 %vm450_vm1, %v2943_v47  ;;  %v2979_v47 = vsel %vm2881_vm5, %v2969_v63, %v2978_v52  ;;  %v3005_v63 = vor.u32 %v3004_v3, %v3001_v19  ;;  %v1362_v14 = vsel %vm908_vm4, %v1359_v10, %v1361_v1  ;;  %v3040_v3 = vrot.slane %v3038_v53, 3 }
 0x106   : > { %4694 = vmatprep.mubr.msk.bf16.mxu0 %vm450_vm1, %v2952_v11  ;;  %v2988_v11 = vsel %vm2881_vm5, %v2978_v52, %v2987_v38  ;;  %v3026_v52 = vshrl.u32 %v5737_v30, 16  ;;  %v3338_v53 = vrot.slane %v5612_v17, 3 }
 0x107   : > { %v3006_v54 = vsel %vm2881_vm5, %v2996_v5, %v3005_v63 }
 0x10b   : > { %4525 = vmatmul.mubr.msk.bf16.gmra.mrb[32].mxu1 %vm450_vm1, %v945_v28  ;;  %v1360_v28 = vsel %vm908_vm4, %v1357_v55, %v1359_v10  ;;  %v1367_v10 = vrot.slane %v5148_v6, 1  ;;  %v3342_v6 = vrot.slane %v5628_v36, 3  ;;  %v3344_v36 = vrot.slane %v5642_v41, 3 }
 0x10c   : > { %4530 = vmatprep.mubr.msk.bf16.mxu1 %vm450_vm1, %v1354_v20  ;;  %v2997_v20 = vsel %vm2881_vm5, %v2987_v38, %v2996_v5  ;;  %v3035_v38 = vshrl.u32 %v5740_v23, 16  ;;  %v1778_v41 = vshrl.u32 %v5532_v22, 16 }
 0x10d   : > { %4695 = vmatmul.mubr.msk.bf16.gmra.mrb[12].mxu0 %vm450_vm1, %v2961_v25  ;;  %v3010_v25 = vrot.slane %v3008_v9, 2  ;;  %v3044_v9 = vshrl.u32 %v5874_v59, 16 }
 0x10e   : > { %4698 = vmatprep.mubr.msk.bf16.mxu0 %vm450_vm1, %v2970_v0  ;;  %v5146_v0 = vld [vmem:[%s5262_s30 + $0x38] sm:$0xff]   ;;  %v3037_v19 = vrot.slane %v3035_v38, 2 }
 0x10f   : > { %v1363_v31 = vrot.slane %v5146_v0, 1  ;;  %v3014_v55 = vor.u32 %v3013_v27, %v3010_v25  ;;  %v3049_v25 = vrot.slane %v3047_v24, 3  ;;  %v3346_v24 = vrot.slane %v5648_v42, 3 }
 0x110   : > { %v1787_v42 = vshrl.u32 %v5539_v15, 16 }
 0x111   : > { %v1364_v44 = vsel %vm908_vm4, %v1361_v1, %v1363_v31  ;;  %v1366_v39 = vsel %vm908_vm4, %v1363_v31, %v1365_v45  ;;  %v1369_v1 = vrot.slane %v5149_v12, 1  ;;  %v4149_v31 = vcombine.low %v3325_v35, %v5580_v2 }
 0x112   : > { %v1383_v12 = vrot.slane %v5566_v58, 1 }
 0x113   : > { %4531 = vmatmul.mubr.msk.bf16.vlgmr.msra.gmra.mrb[0].mxu1 %vm450_vm1, %v1356_v43 }
 0x114   : > { %4534 = vmatprep.mubr.msk.bf16.mxu1 %vm450_vm1, %v1358_v50  ;;  %4757 = vmatpush3.bf16.msra.mxu1 %v5706_v46  ;;  %v3017_v46 = vshrl.u32 %v5724_v7, 16  ;;  %v3015_v50 = vsel %vm2881_vm5, %v3005_v63, %v3014_v55  ;;  %v3041_v63 = vor.u32 %v3040_v3, %v3037_v19 }
 0x115   : > { %4699 = vmatmul.mubr.msk.bf16.gmra.mrb[16].mxu0 %vm450_vm1, %v2979_v47  ;;  %v3028_v47 = vrot.slane %v3026_v52, 2 }
 0x116   : > { %4702 = vmatprep.mubr.msk.bf16.mxu0 %vm450_vm1, %v2988_v11  ;;  %v3019_v21 = vrot.slane %v3017_v46, 2  ;;  %v1370_v46 = vsel %vm908_vm4, %v1367_v10, %v1369_v1 }
 0x117   : > { %v3032_v5 = vor.u32 %v3031_v48, %v3028_v47  ;;  %v1379_v48 = vrot.slane %v5550_v16, 1 }
 0x118   : > { %v3023_v43 = vor.u32 %v3022_v34, %v3019_v21  ;;  %v1373_v21 = vrot.slane %v5520_v37, 1 }
 0x119   : > { %v3042_v27 = vsel %vm2881_vm5, %v3032_v5, %v3041_v63 }
 0x11a   : > { %v3024_v11 = vsel %vm2881_vm5, %v3014_v55, %v3023_v43  ;;  %v3334_v55 = vrot.slane %v5595_v18, 3  ;;  %v3336_v18 = vrot.slane %v5606_v26, 3  ;;  %v3340_v26 = vrot.slane %v5622_v32, 3 }
 0x11b   : > { %4535 = vmatmul.mubr.msk.bf16.gmra.mrb[4].mxu1 %vm450_vm1, %v1360_v28  ;;  %v1368_v28 = vsel %vm908_vm4, %v1365_v45, %v1367_v10  ;;  %v3333_v45 = vrot.slane %v4149_v31, 3  ;;  %v1769_v32 = vshrl.u32 %v5520_v37, 16 }
 0x11c   : > { %4538 = vmatprep.mubr.msk.bf16.mxu1 %vm450_vm1, %v1362_v14  ;;  %v3033_v14 = vsel %vm2881_vm5, %v3023_v43, %v3032_v5  ;;  %v1377_v43 = vrot.slane %v5539_v15, 1  ;;  %v3339_v47 = vsel %vm3332_vm6, %v3336_v18, %v3338_v53  ;;  %v3341_v19 = vsel %vm3332_vm6, %v3338_v53, %v3340_v26 }
 0x11d   : > { %4703 = vmatmul.mubr.msk.bf16.gmra.mrb[20].mxu0 %vm450_vm1, %v2997_v20  ;;  %v3046_v20 = vrot.slane %v3044_v9, 2  ;;  %v3335_v2 = vsel %vm3332_vm6, %v3333_v45, %v3334_v55  ;;  %v3343_v3 = vsel %vm3332_vm6, %v3340_v26, %v3342_v6  ;;  %v1772_v5 = vshll.u32 %v5520_v37, 16 }
 0x11e   : > { %4706 = vmatprep.mubr.msk.bf16.mxu0 %vm450_vm1, %v3006_v54  ;;  %v5150_v54 = vld [vmem:[%s5262_s30 + $0x58] sm:$0xff]   ;;  %v1380_v17 = vsel %vm908_vm4, %v1377_v43, %v1379_v48  ;;  %v3347_v37 = vsel %vm3332_vm6, %v3344_v36, %v3346_v24  ;;  %v1789_v45 = vrot.slane %v1787_v42, 1  ;;  %v1817_v26 = vshll.u32 %v5566_v58, 16 }
 0x11f   : > { %v1371_v0 = vrot.slane %v5150_v54, 1  ;;  %v3050_v34 = vor.u32 %v3049_v25, %v3046_v20  ;;  %v1774_v35 = vrot.slane %v1772_v5, 2  ;;  %v1781_v25 = vshll.u32 %v5532_v22, 16 }
 0x120   : > { %v1790_v54 = vshll.u32 %v5539_v15, 16 }
 0x121   : > { %v1372_v40 = vsel %vm908_vm4, %v1369_v1, %v1371_v0  ;;  %v1374_v52 = vsel %vm908_vm4, %v1371_v0, %v1373_v21  ;;  %v3051_v56 = vsel %vm2881_vm5, %v3041_v63, %v3050_v34  ;;  %v1385_v1 = vrot.slane %v5572_v62, 1 }
 0x122   : > { %v3348_v0 = vrot.slane %v5660_v61, 3  ;;  %v1780_v34 = vrot.slane %v1778_v41, 1 }
 0x123   : > { %4539 = vmatmul.mubr.msk.bf16.gmra.mrb[8].mxu1 %vm450_vm1, %v1364_v44  ;;  %v1375_v44 = vrot.slane %v5532_v22, 1  ;;  %v1386_v63 = vsel %vm908_vm4, %v1383_v12, %v1385_v1 }
 0x124   : > { %4542 = vmatprep.mubr.msk.bf16.mxu1 %vm450_vm1, %v1366_v39  ;;  %v3349_v15 = vsel %vm3332_vm6, %v3346_v24, %v3348_v0  ;;  %v1835_v24 = vshll.u32 %v5586_v8, 16 }
 0x125   : > { %4707 = vmatmul.mubr.msk.bf16.gmra.mrb[24].mxu0 %vm450_vm1, %v3015_v50  ;;  %v1376_v38 = vsel %vm908_vm4, %v1373_v21, %v1375_v44  ;;  %v1378_v39 = vsel %vm908_vm4, %v1375_v44, %v1377_v43  ;;  %v3337_v50 = vsel %vm3332_vm6, %v3334_v55, %v3336_v18  ;;  %v3350_v21 = vrot.slane %v5666_v33, 3 }
 0x126   : > { %4710 = vmatprep.mubr.msk.bf16.mxu0 %vm450_vm1, %v3024_v11  ;;  %v1381_v11 = vrot.slane %v5556_v51, 1  ;;  %v1792_v55 = vrot.slane %v1790_v54, 2  ;;  %v1799_v33 = vshll.u32 %v5550_v16, 16  ;;  %v1805_v44 = vshrl.u32 %v5556_v51, 16 }
 0x127   : > { %v3352_v43 = vrot.slane %v5678_v13, 3  ;;  %v1814_v13 = vshrl.u32 %v5566_v58, 16  ;;  %v3368_v54 = vrot.slane %v5874_v59, 3 }
 0x128   : > { %v1382_v10 = vsel %vm908_vm4, %v1379_v48, %v1381_v11  ;;  %v1384_v9 = vsel %vm908_vm4, %v1381_v11, %v1383_v12 }
 0x129   : > { %v1816_v12 = vrot.slane %v1814_v13, 1 }
 0x12b   : > { %4543 = vmatmul.mubr.msk.bf16.gmra.mrb[12].mxu1 %vm450_vm1, %v1368_v28  ;;  %v5139_v28 = vld [vmem:[%s5262_s30 + $0x98] ss:$0 sps:$4 sm:$0x11]  }
 0x12c   : > { %4546 = vmatprep.mubr.msk.bf16.mxu1 %vm450_vm1, %v1370_v46  ;;  %v1771_v46 = vrot.slane %v1769_v32, 1  ;;  %v1387_v20 = vrot.slane %v5139_v28, 1  ;;  %v3360_v28 = vrot.slane %v5718_v57, 3  ;;  %v3364_v57 = vrot.slane %v5737_v30, 3 }
 0x12d   : > { %4711 = vmatmul.mubr.msk.bf16.gmra.mrb[28].mxu0 %vm450_vm1, %v3033_v14  ;;  %v3345_v14 = vsel %vm3332_vm6, %v3342_v6, %v3344_v36  ;;  %v1826_v6 = vshll.u32 %v5572_v62, 16 }
 0x12e   : > { %4714 = vmatprep.mubr.msk.bf16.mxu0 %vm450_vm1, %v3042_v27  ;;  %v1775_v27 = vor.u32 %v1774_v35, %v1771_v46  ;;  %v1388_v31 = vsel %vm908_vm4, %v1385_v1, %v1387_v20  ;;  %v1819_v1 = vrot.slane %v1817_v26, 2  ;;  %v3362_v46 = vrot.slane %v5724_v7, 3 }
 0x12f   : > { %v1828_v5 = vrot.slane %v1826_v6, 2 }
 0x130   : > { %v1776_v22 = vsel %vm1669_vm2, %v5433_v60, %v1775_v27  ;;  %v1808_v60 = vshll.u32 %v5556_v51, 16  ;;  %v3353_v51 = vsel %vm3332_vm6, %v3350_v21, %v3352_v43 }
 0x133   : > { %4547 = vmatmul.mubr.msk.bf16.gmra.mrb[16].mxu1 %vm450_vm1, %v1372_v40  ;;  %v1783_v40 = vrot.slane %v1781_v25, 2  ;;  %v3366_v25 = vrot.slane %v5740_v23, 3 }
 0x134   : > { %4550 = vmatprep.mubr.msk.bf16.mxu1 %vm450_vm1, %v1374_v52  ;;  %v3351_v52 = vsel %vm3332_vm6, %v3348_v0, %v3350_v21 }
 0x135   : > { %4715 = vmatmul.mubr.msk.bf16.gmra.mrb[32].mxu0 %vm450_vm1, %v3051_v56  ;;  %v1784_v61 = vor.u32 %v1783_v40, %v1780_v34  ;;  %v1796_v56 = vshrl.u32 %v5550_v16, 16  ;;  %v1807_v16 = vrot.slane %v1805_v44, 1  ;;  %v3367_v42 = vsel %vm3332_vm6, %v3364_v57, %v3366_v25 }
 0x136   : > { %4720 = vmatprep.mubr.msk.bf16.mxu0 %vm450_vm1, %v3335_v2  ;;  %v1793_v2 = vor.u32 %v1792_v55, %v1789_v45  ;;  %v3369_v0 = vsel %vm3332_vm6, %v3366_v25, %v3368_v54 }
 0x137   : > { %v1785_v18 = vsel %vm1669_vm2, %v1775_v27, %v1784_v61  ;;  %v1798_v53 = vrot.slane %v1796_v56, 1  ;;  %v3365_v27 = vsel %vm3332_vm6, %v3362_v46, %v3364_v57 }
 0x13b   : > { %4551 = vmatmul.mubr.msk.bf16.gmra.mrb[20].mxu1 %vm450_vm1, %v1376_v38  ;;  %v3354_v38 = vrot.slane %v5684_v29, 3 }
 0x13c   : > { %4554 = vmatprep.mubr.msk.bf16.mxu1 %vm450_vm1, %v1378_v39  ;;  %v1801_v39 = vrot.slane %v1799_v33, 2 }
 0x13d   : > { %4721 = vmatmul.mubr.msk.bf16.vlgmr.msra.gmra.mrb[0].mxu0 %vm450_vm1, %v3337_v50  ;;  %v1794_v50 = vsel %vm1669_vm2, %v1784_v61, %v1793_v2  ;;  %v3355_v48 = vsel %vm3332_vm6, %v3352_v43, %v3354_v38 }
 0x13e   : > { %4724 = vmatprep.mubr.msk.bf16.mxu0 %vm450_vm1, %v3339_v47  ;;  %v1810_v47 = vrot.slane %v1808_v60, 2  ;;  %v1802_v11 = vor.u32 %v1801_v39, %v1798_v53 }
 0x140   : > { %v1811_v29 = vor.u32 %v1810_v47, %v1807_v16 }
 0x142   : > { %v1812_v32 = vsel %vm1669_vm2, %v1802_v11, %v1811_v29 }
 0x143   : > { %4555 = vmatmul.mubr.msk.bf16.gmra.mrb[24].mxu1 %vm450_vm1, %v1380_v17  ;;  %v1823_v17 = vshrl.u32 %v5572_v62, 16 }
 0x144   : > { %4558 = vmatprep.mubr.msk.bf16.mxu1 %vm450_vm1, %v1382_v10  ;;  %v3356_v10 = vrot.slane %v5696_v4, 3  ;;  %v1832_v4 = vshrl.u32 %v5586_v8, 16  ;;  %v3363_v8 = vsel %vm3332_vm6, %v3360_v28, %v3362_v46 }
 0x145   : > { %4725 = vmatmul.mubr.msk.bf16.gmra.mrb[4].mxu0 %vm450_vm1, %v3341_v19  ;;  %v1803_v19 = vsel %vm1669_vm2, %v1793_v2, %v1802_v11  ;;  %v1825_v58 = vrot.slane %v1823_v17, 1 }
 0x146   : > { %4728 = vmatprep.mubr.msk.bf16.mxu0 %vm450_vm1, %v3343_v3  ;;  %v3358_v3 = vrot.slane %v5703_v49, 3  ;;  %v3357_v62 = vsel %vm3332_vm6, %v3354_v38, %v3356_v10  ;;  %v1834_v35 = vrot.slane %v1832_v4, 1 }
 0x147   : > { %v1829_v49 = vor.u32 %v1828_v5, %v1825_v58 }
 0x148   : > { %v3359_v36 = vsel %vm3332_vm6, %v3356_v10, %v3358_v3  ;;  %v3361_v20 = vsel %vm3332_vm6, %v3358_v3, %v3360_v28 }
 0x14b   : > { %4559 = vmatmul.mubr.msk.bf16.gmra.mrb[28].mxu1 %vm450_vm1, %v1384_v9  ;;  %v1820_v9 = vor.u32 %v1819_v1, %v1816_v12 }
 0x14c   : > { %4562 = vmatprep.mubr.msk.bf16.mxu1 %vm450_vm1, %v1386_v63 }
 0x14d   : > { %4729 = vmatmul.mubr.msk.bf16.gmra.mrb[8].mxu0 %vm450_vm1, %v3345_v14  ;;  %v1821_v63 = vsel %vm1669_vm2, %v1811_v29, %v1820_v9  ;;  %v1837_v14 = vrot.slane %v1835_v24, 2 }
 0x14e   : > { %4732 = vmatprep.mubr.msk.bf16.mxu0 %vm450_vm1, %v3347_v37  ;;  %v1830_v37 = vsel %vm1669_vm2, %v1820_v9, %v1829_v49 }
 0x14f   : > { %v1838_v41 = vor.u32 %v1837_v14, %v1834_v35 }
 0x151   : > { %v1839_v7 = vsel %vm1669_vm2, %v1829_v49, %v1838_v41 }
 0x153   : > { %4563 = vmatmul.mubr.msk.bf16.gmra.mrb[32].mxu1 %vm450_vm1, %v1388_v31 }
 0x154   : > { %4588 = vmatprep.mubr.msk.bf16.mxu1 %vm450_vm1, %v1776_v22 }
 0x155   : > { %4733 = vmatmul.mubr.msk.bf16.gmra.mrb[12].mxu0 %vm450_vm1, %v3349_v15 }
 0x156   : > { %4736 = vmatprep.mubr.msk.bf16.mxu0 %vm450_vm1, %v3351_v52 }
 0x15b   : > { %4589 = vmatmul.mubr.msk.bf16.vlgmr.msra.gmra.mrb[20].mxu1 %vm450_vm1, %v1785_v18 }
 0x15c   : > { %4592 = vmatprep.mubr.msk.bf16.mxu1 %vm450_vm1, %v1794_v50 }
 0x15d   : > { %4737 = vmatmul.mubr.msk.bf16.gmra.mrb[16].mxu0 %vm450_vm1, %v3353_v51 }
 0x15e   : > { %4740 = vmatprep.mubr.msk.bf16.mxu0 %vm450_vm1, %v3355_v48 }
 0x163   : > { %4593 = vmatmul.mubr.msk.bf16.gmra.mrb[24].mxu1 %vm450_vm1, %v1803_v19 }
 0x164   : > { %4596 = vmatprep.mubr.msk.bf16.mxu1 %vm450_vm1, %v1812_v32 }
 0x165   : > { %4741 = vmatmul.mubr.msk.bf16.gmra.mrb[20].mxu0 %vm450_vm1, %v3357_v62 }
 0x166   : > { %4744 = vmatprep.mubr.msk.bf16.mxu0 %vm450_vm1, %v3359_v36 }
 0x16b   : > { %4597 = vmatmul.mubr.msk.bf16.gmra.mrb[28].mxu1 %vm450_vm1, %v1821_v63 }
 0x16c   : > { %4600 = vmatprep.mubr.msk.bf16.mxu1 %vm450_vm1, %v1830_v37 }
 0x16d   : > { %4745 = vmatmul.mubr.msk.bf16.gmra.mrb[24].mxu0 %vm450_vm1, %v3361_v20 }
 0x16e   : > { %4748 = vmatprep.mubr.msk.bf16.mxu0 %vm450_vm1, %v3363_v8 }
 0x173   : > { %4601 = vmatmul.mubr.msk.bf16.gmra.mrb[32].mxu1 %vm450_vm1, %v1839_v7 }
 0x175   : > { %4749 = vmatmul.mubr.msk.bf16.gmra.mrb[28].mxu0 %vm450_vm1, %v3365_v27 }
 0x176   : > { %4752 = vmatprep.mubr.msk.bf16.mxu0 %vm450_vm1, %v3367_v42 }
 0x17d   : > { %4753 = vmatmul.mubr.msk.bf16.gmra.mrb[32].mxu0 %vm450_vm1, %v3369_v0 }
 0x1e6   : > { %v4532_v30 = vpop.f32.mrb[0].mxu1 }
 0x1e7   : > { %v1483_v31 = vpop.f32.mrb[1].mxu1 }
 0x1e8   : > { %v4533_v21 = vpop.f32.mrb[2].mxu1 }
 0x1e9   : > { %v1486_v23 = vpop.f32.mrb[3].mxu1 }
 0x1ee   : > { %v4536_v34 = vpop.f32.mrb[4].mxu1 }
 0x1ef   : > { %v1499_v40 = vpop.f32.mrb[5].mxu1 }
 0x1f0   : > { %v4537_v22 = vpop.f32.mrb[6].mxu1 }
 0x1f1   : > { %v1502_v45 = vpop.f32.mrb[7].mxu1 }
 0x1f6   : > { %v4540_v55 = vpop.f32.mrb[8].mxu1 }
 0x1f7   : > { %v1515_v15 = vpop.f32.mrb[9].mxu1 }
 0x1f8   : > { %v4541_v52 = vpop.f32.mrb[10].mxu1 }
 0x1f9   : > { %v1518_v61 = vpop.f32.mrb[11].mxu1 }
 0x1fe   : > { %v6010_v56 = vpop.f32.mrb[12].mxu1 }
 0x1ff   : > { %v6012_v59 = vpop.f32.mrb[13].mxu1 }
 0x200   : > { %v6014_v33 = vpop.f32.mrb[14].mxu1 }
 0x201   : > { %v6016_v2 = vpop.f32.mrb[15].mxu1 }
 0x206   : > { %v6018_v44 = vpop.f32.mrb[16].mxu1 }
 0x207   : > { %v6020_v60 = vpop.f32.mrb[17].mxu1 }
 0x208   : > { %v6022_v43 = vpop.f32.mrb[18].mxu1 }
 0x209   : > { %v6024_v18 = vpop.f32.mrb[19].mxu1 }
 0x210   : > { %v4722_v38 = vpop.f32.mrb[0].mxu0 }
 0x211   : > { %v4758_v53 = vadd.f32 %v4722_v38, %v4532_v30  ;;  %v3464_v39 = vpop.f32.mrb[1].mxu0 }
 0x212   : > { %v4759_v50 = vadd.f32 %v3464_v39, %v1483_v31  ;;  %v4723_v16 = vpop.f32.mrb[2].mxu0 }
 0x213   : > { %v3645_v47 = vmax.f32 %v4758_v53, 0.0  ;;  %v4760_v51 = vadd.f32 %v4723_v16, %v4533_v21  ;;  %v3467_v48 = vpop.f32.mrb[3].mxu0 }
 0x214   : > { %v3643_v11 = vmax.f32 %v4759_v50, 0.0  ;;  %v4761_v13 = vadd.f32 %v3467_v48, %v1486_v23 }
 0x215   : > { %v4209_v26 = vpack.c.bf16 %v3645_v47, %v3645_v47  ;;  %v3646_v29 = vmax.f32 %v4760_v51, 0.0 }
 0x216   : > { %v4207_v17 = vpack.c.bf16 %v3643_v11, %v3643_v11  ;;  %v3644_v6 = vmax.f32 %v4761_v13, 0.0 }
 0x217   : > { %3826 = vst.msk [vmem:[%s6030_s6 + $0x8] sm:$0xf] %vm3823_vm7, %v4209_v26  ;;  %v4210_v10 = vpack.c.bf16 %v3646_v29, %v3646_v29 }
 0x218   : > { %3824 = vst.msk [vmem:[%s6030_s6] sm:$0xf] %vm3823_vm7, %v4207_v17  ;;  %v4208_v19 = vpack.c.bf16 %v3644_v6, %v3644_v6  ;;  %v4726_v3 = vpop.f32.mrb[4].mxu0 }
 0x219   : > { %3827 = vst.msk [vmem:[%s6030_s6 + $0xc] sm:$0xf] %vm3823_vm7, %v4210_v10  ;;  %v4762_v12 = vadd.f32 %v4726_v3, %v4536_v34  ;;  %v3480_v1 = vpop.f32.mrb[5].mxu0 }
 0x21a   : > { %3825 = vst.msk [vmem:[%s6030_s6 + $0x4] sm:$0xf] %vm3823_vm7, %v4208_v19  ;;  %v4763_v32 = vadd.f32 %v3480_v1, %v1499_v40  ;;  %v4727_v58 = vpop.f32.mrb[6].mxu0 }
 0x21b   : > { %v3649_v5 = vmax.f32 %v4762_v12, 0.0  ;;  %v4764_v62 = vadd.f32 %v4727_v58, %v4537_v22  ;;  %v3483_v36 = vpop.f32.mrb[7].mxu0 }
 0x21c   : > { %v3647_v9 = vmax.f32 %v4763_v32, 0.0  ;;  %v4765_v4 = vadd.f32 %v3483_v36, %v1502_v45 }
 0x21d   : > { %v4213_v24 = vpack.c.bf16 %v3649_v5, %v3649_v5  ;;  %v3650_v49 = vmax.f32 %v4764_v62, 0.0 }
 0x21e   : > { %v4211_v28 = vpack.c.bf16 %v3647_v9, %v3647_v9  ;;  %v3648_v63 = vmax.f32 %v4765_v4, 0.0 }
 0x21f   : > { %3830 = vst.msk [vmem:[%s6030_s6 + $0x18] sm:$0xf] %vm3823_vm7, %v4213_v24  ;;  %v4214_v46 = vpack.c.bf16 %v3650_v49, %v3650_v49 }
 0x220   : > { %3828 = vst.msk [vmem:[%s6030_s6 + $0x10] sm:$0xf] %vm3823_vm7, %v4211_v28  ;;  %v4212_v35 = vpack.c.bf16 %v3648_v63, %v3648_v63  ;;  %v4730_v14 = vpop.f32.mrb[8].mxu0 }
 0x221   : > { %3831 = vst.msk [vmem:[%s6030_s6 + $0x1c] sm:$0xf] %vm3823_vm7, %v4214_v46  ;;  %v4766_v37 = vadd.f32 %v4730_v14, %v4540_v55  ;;  %v3496_v20 = vpop.f32.mrb[9].mxu0 }
 0x222   : > { %3829 = vst.msk [vmem:[%s6030_s6 + $0x14] sm:$0xf] %vm3823_vm7, %v4212_v35  ;;  %v4767_v8 = vadd.f32 %v3496_v20, %v1515_v15  ;;  %v4731_v41 = vpop.f32.mrb[10].mxu0 }
 0x223   : > { %v3653_v57 = vmax.f32 %v4766_v37, 0.0  ;;  %v4768_v7 = vadd.f32 %v4731_v41, %v4541_v52  ;;  %v3499_v25 = vpop.f32.mrb[11].mxu0 }
 0x224   : > { %v3651_v27 = vmax.f32 %v4767_v8, 0.0  ;;  %v4769_v42 = vadd.f32 %v3499_v25, %v1518_v61 }
 0x225   : > { %v4217_v54 = vpack.c.bf16 %v3653_v57, %v3653_v57  ;;  %v3654_v0 = vmax.f32 %v4768_v7, 0.0 }
 0x226   : > { %v4215_v30 = vpack.c.bf16 %v3651_v27, %v3651_v27  ;;  %v3652_v31 = vmax.f32 %v4769_v42, 0.0 }
 0x227   : > { %3834 = vst.msk [vmem:[%s6030_s6 + $0x28] sm:$0xf] %vm3823_vm7, %v4217_v54  ;;  %v4218_v21 = vpack.c.bf16 %v3654_v0, %v3654_v0 }
 0x228   : > { %3832 = vst.msk [vmem:[%s6030_s6 + $0x20] sm:$0xf] %vm3823_vm7, %v4215_v30  ;;  %v4216_v23 = vpack.c.bf16 %v3652_v31, %v3652_v31  ;;  %v4734_v34 = vpop.f32.mrb[12].mxu0 }
 0x229   : > { %3835 = vst.msk [vmem:[%s6030_s6 + $0x2c] sm:$0xf] %vm3823_vm7, %v4218_v21  ;;  %v4770_v40 = vadd.f32 %v4734_v34, %v6010_v56  ;;  %v3512_v22 = vpop.f32.mrb[13].mxu0 }
 0x22a   : > { %3833 = vst.msk [vmem:[%s6030_s6 + $0x24] sm:$0xf] %vm3823_vm7, %v4216_v23  ;;  %v4771_v45 = vadd.f32 %v3512_v22, %v6012_v59  ;;  %v4735_v55 = vpop.f32.mrb[14].mxu0 }
 0x22b   : > { %v3657_v15 = vmax.f32 %v4770_v40, 0.0  ;;  %v4772_v52 = vadd.f32 %v4735_v55, %v6014_v33  ;;  %v3515_v61 = vpop.f32.mrb[15].mxu0 }
 0x22c   : > { %v3655_v38 = vmax.f32 %v4771_v45, 0.0  ;;  %v4773_v53 = vadd.f32 %v3515_v61, %v6016_v2 }
 0x22d   : > { %v4221_v39 = vpack.c.bf16 %v3657_v15, %v3657_v15  ;;  %v3658_v50 = vmax.f32 %v4772_v52, 0.0 }
 0x22e   : > { %v4590_v56 = vpop.f32.mrb[20].mxu1  ;;  %v4219_v16 = vpack.c.bf16 %v3655_v38, %v3655_v38  ;;  %v3656_v47 = vmax.f32 %v4773_v53, 0.0 }
 0x22f   : > { %v2014_v51 = vpop.f32.mrb[21].mxu1  ;;  %3838 = vst.msk [vmem:[%s6030_s6 + $0x38] sm:$0xf] %vm3823_vm7, %v4221_v39  ;;  %v4222_v59 = vpack.c.bf16 %v3658_v50, %v3658_v50 }
 0x230   : > { %v4591_v48 = vpop.f32.mrb[22].mxu1  ;;  %3836 = vst.msk [vmem:[%s6030_s6 + $0x30] sm:$0xf] %vm3823_vm7, %v4219_v16  ;;  %v4220_v11 = vpack.c.bf16 %v3656_v47, %v3656_v47  ;;  %v4738_v33 = vpop.f32.mrb[16].mxu0 }
 0x231   : > { %v2017_v13 = vpop.f32.mrb[23].mxu1  ;;  %3839 = vst.msk [vmem:[%s6030_s6 + $0x3c] sm:$0xf] %vm3823_vm7, %v4222_v59  ;;  %v4774_v2 = vadd.f32 %v4738_v33, %v6018_v44  ;;  %v3528_v26 = vpop.f32.mrb[17].mxu0 }
 0x232   : > { %3837 = vst.msk [vmem:[%s6030_s6 + $0x34] sm:$0xf] %vm3823_vm7, %v4220_v11  ;;  %v4775_v29 = vadd.f32 %v3528_v26, %v6020_v60  ;;  %v4739_v17 = vpop.f32.mrb[18].mxu0 }
 0x233   : > { %v3661_v6 = vmax.f32 %v4774_v2, 0.0  ;;  %v4776_v10 = vadd.f32 %v4739_v17, %v6022_v43  ;;  %v3531_v19 = vpop.f32.mrb[19].mxu0 }
 0x234   : > { %v3659_v3 = vmax.f32 %v4775_v29, 0.0  ;;  %v4777_v12 = vadd.f32 %v3531_v19, %v6024_v18 }
 0x235   : > { %v4225_v1 = vpack.c.bf16 %v3661_v6, %v3661_v6  ;;  %v3662_v32 = vmax.f32 %v4776_v10, 0.0 }
 0x236   : > { %v4594_v44 = vpop.f32.mrb[24].mxu1  ;;  %v4223_v58 = vpack.c.bf16 %v3659_v3, %v3659_v3  ;;  %v3660_v5 = vmax.f32 %v4777_v12, 0.0 }
 0x237   : > { %v2030_v62 = vpop.f32.mrb[25].mxu1  ;;  %3842 = vst.msk [vmem:[%s6030_s6 + $0x48] sm:$0xf] %vm3823_vm7, %v4225_v1  ;;  %v4226_v60 = vpack.c.bf16 %v3662_v32, %v3662_v32 }
 0x238   : > { %v4595_v36 = vpop.f32.mrb[26].mxu1  ;;  %3840 = vst.msk [vmem:[%s6030_s6 + $0x40] sm:$0xf] %vm3823_vm7, %v4223_v58  ;;  %v4224_v9 = vpack.c.bf16 %v3660_v5, %v3660_v5  ;;  %v4742_v43 = vpop.f32.mrb[20].mxu0 }
 0x239   : > { %v2033_v4 = vpop.f32.mrb[27].mxu1  ;;  %3843 = vst.msk [vmem:[%s6030_s6 + $0x4c] sm:$0xf] %vm3823_vm7, %v4226_v60  ;;  %v4778_v24 = vadd.f32 %v4742_v43, %v4590_v56  ;;  %v3544_v18 = vpop.f32.mrb[21].mxu0 }
 0x23a   : > { %3841 = vst.msk [vmem:[%s6030_s6 + $0x44] sm:$0xf] %vm3823_vm7, %v4224_v9  ;;  %v4779_v49 = vadd.f32 %v3544_v18, %v2014_v51  ;;  %v4743_v28 = vpop.f32.mrb[22].mxu0 }
 0x23b   : > { %v3665_v63 = vmax.f32 %v4778_v24, 0.0  ;;  %v4780_v46 = vadd.f32 %v4743_v28, %v4591_v48  ;;  %v3547_v35 = vpop.f32.mrb[23].mxu0 }
 0x23c   : > { %v3663_v14 = vmax.f32 %v4779_v49, 0.0  ;;  %v4781_v37 = vadd.f32 %v3547_v35, %v2017_v13 }
 0x23d   : > { %v4229_v20 = vpack.c.bf16 %v3665_v63, %v3665_v63  ;;  %v3666_v8 = vmax.f32 %v4780_v46, 0.0 }
 0x23e   : > { %v4598_v41 = vpop.f32.mrb[28].mxu1  ;;  %v4227_v57 = vpack.c.bf16 %v3663_v14, %v3663_v14  ;;  %v3664_v7 = vmax.f32 %v4781_v37, 0.0 }
 0x23f   : > { %v2046_v25 = vpop.f32.mrb[29].mxu1  ;;  %3846 = vst.msk [vmem:[%s6030_s6 + $0x58] sm:$0xf] %vm3823_vm7, %v4229_v20  ;;  %v4230_v27 = vpack.c.bf16 %v3666_v8, %v3666_v8 }
 0x240   : > { %v4599_v42 = vpop.f32.mrb[30].mxu1  ;;  %3844 = vst.msk [vmem:[%s6030_s6 + $0x50] sm:$0xf] %vm3823_vm7, %v4227_v57  ;;  %v4228_v54 = vpack.c.bf16 %v3664_v7, %v3664_v7  ;;  %v4746_v0 = vpop.f32.mrb[24].mxu0 }
 0x241   : > { %v2049_v30 = vpop.f32.mrb[31].mxu1  ;;  %3847 = vst.msk [vmem:[%s6030_s6 + $0x5c] sm:$0xf] %vm3823_vm7, %v4230_v27  ;;  %v4782_v31 = vadd.f32 %v4746_v0, %v4594_v44  ;;  %v3560_v21 = vpop.f32.mrb[25].mxu0 }
 0x242   : > { %3845 = vst.msk [vmem:[%s6030_s6 + $0x54] sm:$0xf] %vm3823_vm7, %v4228_v54  ;;  %v4783_v23 = vadd.f32 %v3560_v21, %v2030_v62  ;;  %v4747_v34 = vpop.f32.mrb[26].mxu0 }
 0x243   : > { %v3669_v40 = vmax.f32 %v4782_v31, 0.0  ;;  %v4784_v22 = vadd.f32 %v4747_v34, %v4595_v36  ;;  %v3563_v45 = vpop.f32.mrb[27].mxu0 }
 0x244   : > { %v3667_v55 = vmax.f32 %v4783_v23, 0.0  ;;  %v4785_v15 = vadd.f32 %v3563_v45, %v2033_v4 }
 0x245   : > { %v4233_v52 = vpack.c.bf16 %v3669_v40, %v3669_v40  ;;  %v3670_v61 = vmax.f32 %v4784_v22, 0.0 }
 0x246   : > { %v4602_v38 = vpop.f32.mrb[32].mxu1  ;;  %v4231_v53 = vpack.c.bf16 %v3667_v55, %v3667_v55  ;;  %v3668_v39 = vmax.f32 %v4785_v15, 0.0 }
 0x247   : > { %v2062_v50 = vpop.f32.mrb[33].mxu1  ;;  %3850 = vst.msk [vmem:[%s6030_s6 + $0x68] sm:$0xf] %vm3823_vm7, %v4233_v52  ;;  %v4234_v56 = vpack.c.bf16 %v3670_v61, %v3670_v61 }
 0x248   : > { %v4603_v16 = vpop.f32.mrb[34].mxu1  ;;  %3848 = vst.msk [vmem:[%s6030_s6 + $0x60] sm:$0xf] %vm3823_vm7, %v4231_v53  ;;  %v4232_v47 = vpack.c.bf16 %v3668_v39, %v3668_v39  ;;  %v4750_v51 = vpop.f32.mrb[28].mxu0 }
 0x249   : > { %v2065_v59 = vpop.f32.mrb[35].mxu1  ;;  %3851 = vst.msk [vmem:[%s6030_s6 + $0x6c] sm:$0xf] %vm3823_vm7, %v4234_v56  ;;  %v4786_v48 = vadd.f32 %v4750_v51, %v4598_v41  ;;  %v3576_v11 = vpop.f32.mrb[29].mxu0 }
 0x24a   : > { %3849 = vst.msk [vmem:[%s6030_s6 + $0x64] sm:$0xf] %vm3823_vm7, %v4232_v47  ;;  %v4787_v33 = vadd.f32 %v3576_v11, %v2046_v25  ;;  %v4751_v13 = vpop.f32.mrb[30].mxu0 }
 0x24b   : > { %v3673_v2 = vmax.f32 %v4786_v48, 0.0  ;;  %v4788_v26 = vadd.f32 %v4751_v13, %v4599_v42  ;;  %v3579_v29 = vpop.f32.mrb[31].mxu0 }
 0x24c   : > { %v3671_v17 = vmax.f32 %v4787_v33, 0.0  ;;  %v4789_v6 = vadd.f32 %v3579_v29, %v2049_v30 }
 0x24d   : > { %v4237_v10 = vpack.c.bf16 %v3673_v2, %v3673_v2  ;;  %v3674_v19 = vmax.f32 %v4788_v26, 0.0 }
 0x24e   : > { %v4235_v3 = vpack.c.bf16 %v3671_v17, %v3671_v17  ;;  %v3672_v12 = vmax.f32 %v4789_v6, 0.0 }
 0x24f   : > { %3854 = vst.msk [vmem:[%s6030_s6 + $0x78] sm:$0xf] %vm3823_vm7, %v4237_v10  ;;  %v4238_v1 = vpack.c.bf16 %v3674_v19, %v3674_v19 }
 0x250   : > { %3852 = vst.msk [vmem:[%s6030_s6 + $0x70] sm:$0xf] %vm3823_vm7, %v4235_v3  ;;  %v4236_v32 = vpack.c.bf16 %v3672_v12, %v3672_v12  ;;  %v4754_v44 = vpop.f32.mrb[32].mxu0 }
 0x251   : > { %3855 = vst.msk [vmem:[%s6030_s6 + $0x7c] sm:$0xf] %vm3823_vm7, %v4238_v1  ;;  %v4790_v58 = vadd.f32 %v4754_v44, %v4602_v38  ;;  %v3592_v5 = vpop.f32.mrb[33].mxu0 }
 0x252   : > { %3853 = vst.msk [vmem:[%s6030_s6 + $0x74] sm:$0xf] %vm3823_vm7, %v4236_v32  ;;  %v4791_v62 = vadd.f32 %v3592_v5, %v2062_v50  ;;  %v4755_v60 = vpop.f32.mrb[34].mxu0 }
 0x253   : > { %v3677_v36 = vmax.f32 %v4790_v58, 0.0  ;;  %v4792_v9 = vadd.f32 %v4755_v60, %v4603_v16  ;;  %v3595_v43 = vpop.f32.mrb[35].mxu0 }
 0x254   : > { %v3675_v4 = vmax.f32 %v4791_v62, 0.0  ;;  %v4793_v24 = vadd.f32 %v3595_v43, %v2065_v59 }
 0x255   : > { %v4241_v18 = vpack.c.bf16 %v3677_v36, %v3677_v36  ;;  %v3678_v49 = vmax.f32 %v4792_v9, 0.0 }
 0x256   : > { %v4239_v28 = vpack.c.bf16 %v3675_v4, %v3675_v4  ;;  %v3676_v63 = vmax.f32 %v4793_v24, 0.0 }
 0x257   : > { %3858 = vst.msk [vmem:[%s6030_s6 + $0x88] sm:$0xf] %vm3823_vm7, %v4241_v18  ;;  %v4242_v46 = vpack.c.bf16 %v3678_v49, %v3678_v49 }
 0x258   : > { %3856 = vst.msk [vmem:[%s6030_s6 + $0x80] sm:$0xf] %vm3823_vm7, %v4239_v28  ;;  %v4240_v35 = vpack.c.bf16 %v3676_v63, %v3676_v63 }
 0x259   : > { %3859 = vst.msk [vmem:[%s6030_s6 + $0x8c] sm:$0xf] %vm3823_vm7, %v4242_v46 }
 0x25a   : > { %3857 = vst.msk [vmem:[%s6030_s6 + $0x84] sm:$0xf] %vm3823_vm7, %v4240_v35 }
 0x25b PF: > { %s13_s9 = sadd.s32 1, %s5189_s9  }
 0x25c   : > { %p10_p3 = scmp.ge.s32.totalorder %s13_s9, 4  }
 0x25e   :  { %12 = sbr.rel (!%p10_p3) target bundleno = 1 (0x1), region = 71 }
 0x265   :  { %3881 = vsyncpa [#allocation3], 1 }
 0x266   :  { %3883 = vsyncpa [#allocation3 + $0x1], 1 }

// kernel: _lambda_.9
= control target key start
LH: loop header
LB: loop body
LE: loop exit
PB: predicated region body
PF: predicated region fallthrough
CT: control target
= control target key end

     0   :  { %s16985_s9 = smov 0   ;;  %s19770_s0 = inlined_call_operand.vmem [shape: bf16[2,1190,8], index: 0, kind: input, shape index: {}]   ;;  %s19771_s1 = inlined_call_operand.vmem [shape: bf16[9,8,12], index: 1, kind: input, shape index: {}]   ;;  %s19772_s2 = inlined_call_operand.vmem [shape: f32[2,1088,12], index: 2, kind: output, shape index: {}]  }
   0x1 LB: > { %s12371_s10 = sadd.s32 4294967295, %s16968_s9   ;;  %p12375_p0 = scmp.ge.s32.totalorder %s16968_s9, 1  ;;  %s16968_s9 = sphi %s16985_s9, %s12_s9  }
   0x2   : > { %p112_p1 = scmp.lt.s32.totalorder %s16968_s9, 3 }
   0x4   : > { %p113_p2 = pnand %p12375_p0, %p112_p1 }
   0x6   : > { %116 = sbr.rel (%p113_p2) target bundleno = 1479 (0x5c7), region = 28 }
   0xd   : > { %v12378_v0 = vld [vmem:[%s19771_s1 + $0x4] sm:$0xf]  ;;  %vm1382_vm0 = vcmask 1043456   ;;  %v12792_v1 = vld [vmem:[%s19771_s1 + $0x10] sm:$0xf]  ;;  %p134_p3 = scmp.lt.s32.totalorder %s12371_s10, 1 }
   0xe   : > { %16165 = vmatprep.subr.msk.bf16.mxu1 %vm1382_vm0, %v12378_v0  ;;  %16169 = vmatprep.subr.msk.bf16.mxu0 %vm1382_vm0, %v12792_v1  ;;  %v1384_v2 = vsel %vm1382_vm0, %v12378_v0, 0  ;;  %v17003_v3 = vsel %vm1382_vm0, %v12792_v1, 0  ;;  %v281_v4 = vld [vmem:[%s19771_s1] sm:$0xf]  ;;  %v12862_v5 = vld [vmem:[%s19771_s1 + $0x14] sm:$0xf] }
   0xf   : > { %19829 = vst [vmem:[#allocation2_spill] sm:$0xff] %v17003_v3  ;;  %13834 = vmatpush3.bf16.msra.mxu1 %v1384_v2  ;;  %14386 = vmatpush3.bf16.msra.mxu0 %v17003_v3  ;;  %s19972_s10 = smov (!%p134_p3, %s12371_s10), 1  ;;  %vm628_vm1 = vsmask.f32 7424  ;;  %vm1177_vm2 = vcmask 64512   ;;  %v2100_v6 = vsel %vm1382_vm0, %v281_v4, 0 }
  0x10   : > { %16166 = vmatprep.subr.msk.bf16.mxu1 %vm1382_vm0, %v281_v4  ;;  %s16175_s19 = smul.u32 596, %s19972_s10  ;;  %16171 = vmatprep.subr.msk.bf16.mxu0 %vm1382_vm0, %v12862_v5  ;;  %vm5288_vm3 = vsmask.f32 6400  ;;  %v17030_v12 = vsel %vm1382_vm0, %v12862_v5, 0  ;;  %vm6835_vm4 = vcmask 1045504   ;;  %vm2685_vm5 = vcmask 1046528  }
  0x11   : > { %vm9438_vm6 = vsmask.f32 5376  ;;  %vm10985_vm7 = vcmask 1044480   ;;  %s16176_s7 = smul.u32 1088, %s19972_s10  ;;  %vm12179_vm8 = vcmask 97280  }
  0x12   : > { %s17020_s22 = scalar_lea.vmem %s19770_s0, %s16175_s19 }
  0x13   : > { %v145_v7 = vld [vmem:[%s17020_s22] sm:$0xf]  ;;  %v146_v8 = vld [vmem:[%s17020_s22 + $0x4] sm:$0xf]  ;;  %v16186_v10 = vld [vmem:[%s17020_s22 + $0x8] sm:$0xff]   ;;  %s19374_s11 = scalar_lea.vmem %s19772_s2, %s16176_s7 }
  0x14   : > { %v17025_v9 = vcombine.low %v145_v7, %v146_v8  ;;  %v3743_v11 = vld [vmem:[%s17020_s22 + $0x10] sm:$0xe]  ;;  %v3744_v13 = vld [vmem:[%s17020_s22 + $0x14] sm:$0xf]  ;;  %v637_v16 = vshll.u32 %v16186_v10, 16  ;;  %v641_v17 = vshrl.u32 %v16186_v10, 16 }
  0x15   : > { %v16188_v18 = vld [vmem:[%s17020_s22 + $0x18] sm:$0xff]   ;;  %v16189_v19 = vld [vmem:[%s17020_s22 + $0x10] sm:$0xff]   ;;  %v17037_v20 = vcombine.low %v3743_v11, %v3744_v13  ;;  %v16190_v28 = vld [vmem:[%s17020_s22 + $0x20] sm:$0xff]  }
  0x16   : > { %v630_v14 = vshrl.u32 %v17025_v9, 16  ;;  %v632_v15 = vshll.u32 %v17025_v9, 16  ;;  %v639_v22 = vrot.slane %v637_v16, 1  ;;  %v5298_v23 = vshrl.u32 %v16188_v18, 16  ;;  %v16191_v33 = vld [vmem:[%s17020_s22 + $0x18] sm:$0xff]   ;;  %v16192_v34 = vld [vmem:[%s17020_s22 + $0x28] sm:$0xff]  }
  0x17   : > { %19830 = vst [vmem:[#allocation3_spill] sm:$0xff] %v17037_v20  ;;  %v5301_v24 = vshll.u32 %v16188_v18, 16  ;;  %v5290_v25 = vshrl.u32 %v17037_v20, 16  ;;  %v5293_v26 = vshll.u32 %v17037_v20, 16  ;;  %v645_v27 = vshll.u32 %v16189_v19, 16  ;;  %v16193_v47 = vld [vmem:[%s17020_s22 + $0x20] sm:$0xff]  }
  0x18   : > { %v634_v21 = vrot.slane %v632_v15, 1  ;;  %v643_v30 = vor.u32 %v641_v17, %v639_v22  ;;  %v5300_v31 = vrot.slane %v5298_v23, 1  ;;  %v5307_v38 = vshrl.u32 %v16190_v28, 16  ;;  %v16194_v48 = vld [vmem:[%s17020_s22 + $0x30] sm:$0xff]   ;;  %v16195_v53 = vld [vmem:[%s17020_s22 + $0x28] sm:$0xff]   ;;  %v16196_v58 = vld [vmem:[%s17020_s22 + $0x38] sm:$0xff]  }
  0x19   : > { %v5303_v32 = vrot.slane %v5301_v24, 2  ;;  %v5292_v35 = vrot.slane %v5290_v25, 1  ;;  %v5295_v36 = vrot.slane %v5293_v26, 2  ;;  %v647_v37 = vrot.slane %v645_v27, 1  ;;  %v16197_v63 = vld [vmem:[%s17020_s22 + $0x30] sm:$0xff]   ;;  %v16198_v15 = vld [vmem:[%s17020_s22 + $0x40] sm:$0xff]  }
  0x1a   : > { %v635_v29 = vor.u32 %v634_v21, %v630_v14  ;;  %v5310_v41 = vshll.u32 %v16190_v28, 16  ;;  %v649_v42 = vshrl.u32 %v16189_v19, 16  ;;  %v5309_v45 = vrot.slane %v5307_v38, 1  ;;  %v16199_v25 = vld [vmem:[%s17020_s22 + $0x38] sm:$0xff]   ;;  %v16201_v38 = vld [vmem:[%s17020_s22 + $0x40] sm:$0xff]  }
  0x1b   : > { %v5304_v40 = vor.u32 %v5303_v32, %v5300_v31  ;;  %v5296_v43 = vor.u32 %v5295_v36, %v5292_v35  ;;  %v648_v44 = vsel %vm628_vm1, %v643_v30, %v647_v37  ;;  %v653_v46 = vshll.u32 %v16191_v33, 16 }
  0x1c   : > { %v640_v39 = vsel %vm628_vm1, %v635_v29, %v639_v22  ;;  %v5312_v49 = vrot.slane %v5310_v41, 2  ;;  %v651_v50 = vor.u32 %v649_v42, %v647_v37  ;;  %v5316_v51 = vshrl.u32 %v16192_v34, 16 }
  0x1d   : > { %13835 = vmatprep.mubr.msk.bf16.mxu1 %vm1177_vm2, %v640_v39  ;;  %v5319_v52 = vshll.u32 %v16192_v34, 16  ;;  %v5305_v54 = vsel %vm5288_vm3, %v5296_v43, %v5304_v40  ;;  %v655_v55 = vrot.slane %v653_v46, 1  ;;  %v657_v56 = vshrl.u32 %v16191_v33, 16  ;;  %v16200_v33 = vld [vmem:[%s17020_s22 + $0x48] sm:$0xff]   ;;  %v16202_v46 = vld [vmem:[%s17020_s22 + $0x50] sm:$0xff]  }
  0x1e   : > { %13836 = vmatmul.mubr.msk.bf16.vlgmr.msra.gmra.mrb[0].mxu1 %vm1177_vm2, %v648_v44  ;;  %v661_v57 = vshll.u32 %v16193_v47, 16  ;;  %14387 = vmatprep.mubr.msk.bf16.mxu0 %vm1177_vm2, %v5305_v54  ;;  %v5313_v59 = vor.u32 %v5312_v49, %v5309_v45  ;;  %v5318_v60 = vrot.slane %v5316_v51, 1  ;;  %v5325_v62 = vshrl.u32 %v16194_v48, 16 }
  0x1f   : > { %13972 = vmatpush3.bf16.msra.mxu1 %v2100_v6  ;;  %v5321_v61 = vrot.slane %v5319_v52, 2  ;;  %v656_v0 = vsel %vm628_vm1, %v651_v50, %v655_v55  ;;  %v659_v1 = vor.u32 %v657_v56, %v655_v55  ;;  %v5328_v4 = vshll.u32 %v16194_v48, 16  ;;  %v16204_v55 = vld [vmem:[%s17020_s22 + $0x58] sm:$0xff]  }
  0x20   : > { %v663_v2 = vrot.slane %v661_v57, 1  ;;  %v5314_v5 = vsel %vm5288_vm3, %v5304_v40, %v5313_v59  ;;  %13839 = vmatprep.mubr.msk.bf16.mxu1 %vm1177_vm2, %v656_v0  ;;  %v5327_v7 = vrot.slane %v5325_v62, 1  ;;  %v665_v8 = vshrl.u32 %v16193_v47, 16  ;;  %v16203_v47 = vld [vmem:[%s17020_s22 + $0x48] sm:$0xff]  }
  0x21   : > { %v5322_v6 = vor.u32 %v5321_v61, %v5318_v60  ;;  %14388 = vmatmul.mubr.msk.bf16.vlgmr.msra.gmra.mrb[0].mxu0 %vm1177_vm2, %v5314_v5  ;;  %v5330_v11 = vrot.slane %v5328_v4, 2  ;;  %v669_v13 = vshll.u32 %v16195_v53, 16  ;;  %v5334_v14 = vshrl.u32 %v16196_v58, 16 }
  0x22   : > { %v664_v10 = vsel %vm628_vm1, %v659_v1, %v663_v2  ;;  %14524 = vmatpush3.bf16.msra.mxu0 %v17030_v12  ;;  %v667_v17 = vor.u32 %v665_v8, %v663_v2  ;;  %v5337_v18 = vshll.u32 %v16196_v58, 16  ;;  %v673_v19 = vshrl.u32 %v16195_v53, 16  ;;  %v16206_v2 = vld [vmem:[%s17020_s22 + $0x60] sm:$0xff]  }
  0x23   : > { %v5323_v16 = vsel %vm5288_vm3, %v5313_v59, %v5322_v6  ;;  %v5331_v21 = vor.u32 %v5330_v11, %v5327_v7  ;;  %v671_v22 = vrot.slane %v669_v13, 1  ;;  %v5336_v23 = vrot.slane %v5334_v14, 1  ;;  %v16207_v13 = vld [vmem:[%s17020_s22 + $0x58] sm:$0xff]  }
  0x24   : > { %14391 = vmatprep.mubr.msk.bf16.mxu0 %vm1177_vm2, %v5323_v16  ;;  %v677_v24 = vshll.u32 %v16197_v63, 16  ;;  %v5339_v26 = vrot.slane %v5337_v18, 2  ;;  %v5343_v27 = vshrl.u32 %v16198_v15, 16  ;;  %v5346_v28 = vshll.u32 %v16198_v15, 16  ;;  %v16208_v18 = vld [vmem:[%s17020_s22 + $0x68] sm:$0xff]  }
  0x25   : > { %v681_v12 = vshrl.u32 %v16197_v63, 16  ;;  %v5332_v29 = vsel %vm5288_vm3, %v5322_v6, %v5331_v21  ;;  %v672_v30 = vsel %vm628_vm1, %v667_v17, %v671_v22  ;;  %v675_v31 = vor.u32 %v673_v19, %v671_v22  ;;  %v16205_v63 = vld [vmem:[%s17020_s22 + $0x50] sm:$0xff]  }
  0x26   : > { %13840 = vmatmul.mubr.msk.bf16.gmra.mrb[4].mxu1 %vm1177_vm2, %v664_v10  ;;  %v679_v32 = vrot.slane %v677_v24, 1  ;;  %v5340_v34 = vor.u32 %v5339_v26, %v5336_v23  ;;  %v5345_v35 = vrot.slane %v5343_v27, 1  ;;  %v5348_v36 = vrot.slane %v5346_v28, 2  ;;  %v16209_v28 = vld [vmem:[%s17020_s22 + $0x60] sm:$0xff]  }
  0x27   : > { %13843 = vmatprep.mubr.msk.bf16.mxu1 %vm1177_vm2, %v672_v30  ;;  %v685_v37 = vshll.u32 %v16199_v25, 16  ;;  %v5352_v40 = vshrl.u32 %v16200_v33, 16  ;;  %v5355_v41 = vshll.u32 %v16200_v33, 16  ;;  %v689_v45 = vshrl.u32 %v16199_v25, 16 }
  0x28   : > { %v683_v39 = vor.u32 %v681_v12, %v679_v32  ;;  %v5341_v42 = vsel %vm5288_vm3, %v5331_v21, %v5340_v34  ;;  %v680_v43 = vsel %vm628_vm1, %v675_v31, %v679_v32  ;;  %v693_v50 = vshll.u32 %v16201_v38, 16  ;;  %v16210_v12 = vld [vmem:[%s17020_s22 + $0x70] sm:$0xff]   ;;  %v16211_v31 = vld [vmem:[%s17020_s22 + $0x68] sm:$0xff]  }
  0x29   : > { %v687_v44 = vrot.slane %v685_v37, 1  ;;  %14392 = vmatmul.mubr.msk.bf16.gmra.mrb[4].mxu0 %vm1177_vm2, %v5332_v29  ;;  %v5354_v48 = vrot.slane %v5352_v40, 1  ;;  %v5357_v49 = vrot.slane %v5355_v41, 2  ;;  %v697_v51 = vshrl.u32 %v16201_v38, 16  ;;  %v16212_v40 = vld [vmem:[%s17020_s22 + $0x78] sm:$0xff]  }
  0x2a   : > { %14395 = vmatprep.mubr.msk.bf16.mxu0 %vm1177_vm2, %v5341_v42  ;;  %v5349_v52 = vor.u32 %v5348_v36, %v5345_v35  ;;  %v5361_v54 = vshrl.u32 %v16202_v46, 16  ;;  %v695_v57 = vrot.slane %v693_v50, 1  ;;  %v5364_v58 = vshll.u32 %v16202_v46, 16  ;;  %v16214_v50 = vld [vmem:[%s17020_s22 + $0x80] sm:$0xff]  }
  0x2b   : > { %v688_v53 = vsel %vm628_vm1, %v683_v39, %v687_v44  ;;  %v5358_v56 = vor.u32 %v5357_v49, %v5354_v48  ;;  %v701_v59 = vshll.u32 %v16203_v47, 16  ;;  %v5370_v61 = vshrl.u32 %v16204_v55, 16  ;;  %v16213_v49 = vld [vmem:[%s17020_s22 + $0x70] sm:$0xff]  }
  0x2c   : > { %v5363_v60 = vrot.slane %v5361_v54, 1  ;;  %v5373_v62 = vshll.u32 %v16204_v55, 16  ;;  %v691_v0 = vor.u32 %v689_v45, %v687_v44  ;;  %v5366_v1 = vrot.slane %v5364_v58, 2 }
  0x2d   : > { %v5350_v4 = vsel %vm5288_vm3, %v5340_v34, %v5349_v52  ;;  %v699_v5 = vor.u32 %v697_v51, %v695_v57  ;;  %v703_v6 = vrot.slane %v701_v59, 1  ;;  %v5359_v7 = vsel %vm5288_vm3, %v5349_v52, %v5358_v56 }
  0x2e   : > { %13844 = vmatmul.mubr.msk.bf16.gmra.mrb[8].mxu1 %vm1177_vm2, %v680_v43  ;;  %v5372_v8 = vrot.slane %v5370_v61, 1  ;;  %v5375_v10 = vrot.slane %v5373_v62, 2  ;;  %v709_v11 = vshll.u32 %v16205_v63, 16  ;;  %v696_v14 = vsel %vm628_vm1, %v691_v0, %v695_v57  ;;  %v16215_v62 = vld [vmem:[%s17020_s22 + $0x78] sm:$0xff]  }
  0x2f   : > { %13847 = vmatprep.mubr.msk.bf16.mxu1 %vm1177_vm2, %v688_v53  ;;  %v5367_v15 = vor.u32 %v5366_v1, %v5363_v60  ;;  %v705_v16 = vshrl.u32 %v16203_v47, 16  ;;  %v5379_v17 = vshrl.u32 %v16206_v2, 16  ;;  %v704_v19 = vsel %vm628_vm1, %v699_v5, %v703_v6 }
  0x30   : > { %v5382_v21 = vshll.u32 %v16206_v2, 16  ;;  %v713_v22 = vshrl.u32 %v16205_v63, 16  ;;  %v717_v23 = vshll.u32 %v16207_v13, 16  ;;  %v5376_v24 = vor.u32 %v5375_v10, %v5372_v8 }
  0x31   : > { %14396 = vmatmul.mubr.msk.bf16.gmra.mrb[8].mxu0 %vm1177_vm2, %v5350_v4  ;;  %v5388_v25 = vshrl.u32 %v16208_v18, 16  ;;  %v5391_v26 = vshll.u32 %v16208_v18, 16  ;;  %v711_v27 = vrot.slane %v709_v11, 1  ;;  %v707_v29 = vor.u32 %v705_v16, %v703_v6  ;;  %v16216_v4 = vld [vmem:[%s17020_s22 + $0x88] sm:$0xff]  }
  0x32   : > { %14399 = vmatprep.mubr.msk.bf16.mxu0 %vm1177_vm2, %v5359_v7  ;;  %v5381_v30 = vrot.slane %v5379_v17, 1  ;;  %v5368_v32 = vsel %vm5288_vm3, %v5358_v56, %v5367_v15  ;;  %v5384_v33 = vrot.slane %v5382_v21, 2  ;;  %v719_v35 = vrot.slane %v717_v23, 1  ;;  %v16218_v23 = vld [vmem:[%s17020_s22 + $0x90] sm:$0xff]  }
  0x33   : > { %v715_v34 = vor.u32 %v713_v22, %v711_v27  ;;  %v5377_v36 = vsel %vm5288_vm3, %v5367_v15, %v5376_v24  ;;  %v5390_v37 = vrot.slane %v5388_v25, 1  ;;  %v5393_v38 = vrot.slane %v5391_v26, 2  ;;  %v16217_v22 = vld [vmem:[%s17020_s22 + $0x80] sm:$0xff]  }
  0x34   : > { %v721_v39 = vshrl.u32 %v16207_v13, 16  ;;  %v725_v41 = vshll.u32 %v16209_v28, 16  ;;  %v5397_v42 = vshrl.u32 %v16210_v12, 16  ;;  %v712_v43 = vsel %vm628_vm1, %v707_v29, %v711_v27 }
  0x35   : > { %v5400_v44 = vshll.u32 %v16210_v12, 16  ;;  %v733_v45 = vshll.u32 %v16211_v31, 16  ;;  %v5385_v46 = vor.u32 %v5384_v33, %v5381_v30  ;;  %v720_v47 = vsel %vm628_vm1, %v715_v34, %v719_v35 }
  0x36   : > { %13848 = vmatmul.mubr.msk.bf16.gmra.mrb[12].mxu1 %vm1177_vm2, %v696_v14  ;;  %v729_v48 = vshrl.u32 %v16209_v28, 16  ;;  %v5394_v51 = vor.u32 %v5393_v38, %v5390_v37  ;;  %v5406_v52 = vshrl.u32 %v16212_v40, 16  ;;  %v5409_v53 = vshll.u32 %v16212_v40, 16  ;;  %v16220_v28 = vld [vmem:[%s17020_s22 + $0x98] sm:$0xff]  }
  0x37   : > { %13851 = vmatprep.mubr.msk.bf16.mxu1 %vm1177_vm2, %v704_v19  ;;  %v727_v54 = vrot.slane %v725_v41, 1  ;;  %v5399_v55 = vrot.slane %v5397_v42, 1  ;;  %v723_v56 = vor.u32 %v721_v39, %v719_v35  ;;  %v5402_v57 = vrot.slane %v5400_v44, 2 }
  0x38   : > { %v735_v58 = vrot.slane %v733_v45, 1  ;;  %v5386_v59 = vsel %vm5288_vm3, %v5376_v24, %v5385_v46  ;;  %v741_v61 = vshll.u32 %v16213_v49, 16  ;;  %v5395_v63 = vsel %vm5288_vm3, %v5385_v46, %v5394_v51  ;;  %v16219_v24 = vld [vmem:[%s17020_s22 + $0x88] sm:$0xff]   ;;  %v16222_v45 = vld [vmem:[%s17020_s22 + $0xa0] sm:$0xff]  }
  0x39   : > { %14400 = vmatmul.mubr.msk.bf16.gmra.mrb[12].mxu0 %vm1177_vm2, %v5368_v32  ;;  %v731_v60 = vor.u32 %v729_v48, %v727_v54  ;;  %v5408_v0 = vrot.slane %v5406_v52, 1  ;;  %v5411_v1 = vrot.slane %v5409_v53, 2  ;;  %v5415_v2 = vshrl.u32 %v16214_v50, 16  ;;  %v16223_v53 = vld [vmem:[%s17020_s22 + $0x98] sm:$0xff]  }
  0x3a   : > { %14403 = vmatprep.mubr.msk.bf16.mxu0 %vm1177_vm2, %v5377_v36  ;;  %v737_v5 = vshrl.u32 %v16211_v31, 16  ;;  %v5418_v6 = vshll.u32 %v16214_v50, 16  ;;  %v728_v7 = vsel %vm628_vm1, %v723_v56, %v727_v54  ;;  %v5403_v8 = vor.u32 %v5402_v57, %v5399_v55  ;;  %v16224_v56 = vld [vmem:[%s17020_s22 + $0xa8] sm:$0xff]  }
  0x3b   : > { %v736_v10 = vsel %vm628_vm1, %v731_v60, %v735_v58  ;;  %v743_v11 = vrot.slane %v741_v61, 1  ;;  %v745_v13 = vshrl.u32 %v16213_v49, 16  ;;  %v749_v14 = vshll.u32 %v16215_v62, 16 }
  0x3c   : > { %v5412_v15 = vor.u32 %v5411_v1, %v5408_v0  ;;  %v5417_v16 = vrot.slane %v5415_v2, 1  ;;  %v5424_v17 = vshrl.u32 %v16216_v4, 16  ;;  %v5427_v18 = vshll.u32 %v16216_v4, 16 }
  0x3d   : > { %v739_v19 = vor.u32 %v737_v5, %v735_v58  ;;  %v5420_v21 = vrot.slane %v5418_v6, 2  ;;  %v5404_v25 = vsel %vm5288_vm3, %v5394_v51, %v5403_v8  ;;  %v747_v26 = vor.u32 %v745_v13, %v743_v11  ;;  %v16226_v13 = vld [vmem:[%s17020_s22 + $0xb0] sm:$0xff]  }
  0x3e   : > { %13852 = vmatmul.mubr.msk.bf16.gmra.mrb[16].mxu1 %vm1177_vm2, %v712_v43  ;;  %v751_v27 = vrot.slane %v749_v14, 1  ;;  %v5413_v12 = vsel %vm5288_vm3, %v5403_v8, %v5412_v15  ;;  %v5426_v29 = vrot.slane %v5424_v17, 1  ;;  %v5429_v30 = vrot.slane %v5427_v18, 2  ;;  %v16221_v43 = vld [vmem:[%s17020_s22 + $0x90] sm:$0xff]   ;;  %v16227_v17 = vld [vmem:[%s17020_s22 + $0xa8] sm:$0xff]  }
  0x3f   : > { %13855 = vmatprep.mubr.msk.bf16.mxu1 %vm1177_vm2, %v720_v47  ;;  %v744_v31 = vsel %vm628_vm1, %v739_v19, %v743_v11  ;;  %v5421_v32 = vor.u32 %v5420_v21, %v5417_v16  ;;  %v757_v33 = vshll.u32 %v16217_v22, 16  ;;  %v753_v34 = vshrl.u32 %v16215_v62, 16 }
  0x40   : > { %v5433_v35 = vshrl.u32 %v16218_v23, 16  ;;  %v5436_v36 = vshll.u32 %v16218_v23, 16  ;;  %v761_v37 = vshrl.u32 %v16217_v22, 16  ;;  %v752_v38 = vsel %vm628_vm1, %v747_v26, %v751_v27  ;;  %v16228_v22 = vld [vmem:[%s17020_s22 + $0xb8] sm:$0xff]  }
  0x41   : > { %14404 = vmatmul.mubr.msk.bf16.gmra.mrb[16].mxu0 %vm1177_vm2, %v5386_v59  ;;  %v765_v39 = vshll.u32 %v16219_v24, 16  ;;  %v5442_v40 = vshrl.u32 %v16220_v28, 16  ;;  %v5430_v41 = vor.u32 %v5429_v30, %v5426_v29  ;;  %v5445_v42 = vshll.u32 %v16220_v28, 16 }
  0x42   : > { %14407 = vmatprep.mubr.msk.bf16.mxu0 %vm1177_vm2, %v5395_v63  ;;  %v759_v44 = vrot.slane %v757_v33, 1  ;;  %v5422_v46 = vsel %vm5288_vm3, %v5412_v15, %v5421_v32  ;;  %v755_v47 = vor.u32 %v753_v34, %v751_v27  ;;  %v5435_v48 = vrot.slane %v5433_v35, 1  ;;  %v16229_v35 = vld [vmem:[%s17020_s22 + $0xb0] sm:$0xff]  }
  0x43   : > { %v5438_v49 = vrot.slane %v5436_v36, 2  ;;  %v767_v51 = vrot.slane %v765_v39, 1  ;;  %v5444_v52 = vrot.slane %v5442_v40, 1  ;;  %v5431_v54 = vsel %vm5288_vm3, %v5421_v32, %v5430_v41 }
  0x44   : > { %v763_v50 = vor.u32 %v761_v37, %v759_v44  ;;  %v5447_v55 = vrot.slane %v5445_v42, 2  ;;  %v769_v57 = vshrl.u32 %v16219_v24, 16  ;;  %v773_v58 = vshll.u32 %v16221_v43, 16 }
  0x45   : > { %v5451_v59 = vshrl.u32 %v16222_v45, 16  ;;  %v760_v60 = vsel %vm628_vm1, %v755_v47, %v759_v44  ;;  %v5454_v61 = vshll.u32 %v16222_v45, 16  ;;  %v5439_v62 = vor.u32 %v5438_v49, %v5435_v48  ;;  %v16232_v47 = vld [vmem:[%s17020_s22 + $0xc8] sm:$0xff]  }
  0x46   : > { %13856 = vmatmul.mubr.msk.bf16.gmra.mrb[20].mxu1 %vm1177_vm2, %v728_v7  ;;  %v768_v63 = vsel %vm628_vm1, %v763_v50, %v767_v51  ;;  %v777_v0 = vshrl.u32 %v16221_v43, 16  ;;  %v781_v1 = vshll.u32 %v16223_v53, 16  ;;  %v5448_v2 = vor.u32 %v5447_v55, %v5444_v52  ;;  %v16231_v43 = vld [vmem:[%s17020_s22 + $0xb8] sm:$0xff]  }
  0x47   : > { %13859 = vmatprep.mubr.msk.bf16.mxu1 %vm1177_vm2, %v736_v10  ;;  %v5460_v4 = vshrl.u32 %v16224_v56, 16  ;;  %v5463_v5 = vshll.u32 %v16224_v56, 16  ;;  %v771_v6 = vor.u32 %v769_v57, %v767_v51  ;;  %v775_v7 = vrot.slane %v773_v58, 1  ;;  %v16225_v10 = vld [vmem:[%s17020_s22 + $0xa0] sm:$0xff]  }
  0x48   : > { %v5453_v8 = vrot.slane %v5451_v59, 1  ;;  %v5456_v11 = vrot.slane %v5454_v61, 2  ;;  %v5440_v14 = vsel %vm5288_vm3, %v5430_v41, %v5439_v62  ;;  %v783_v16 = vrot.slane %v781_v1, 1  ;;  %v16233_v61 = vld [vmem:[%s17020_s22 + $0xc0] sm:$0xff]  }
  0x49   : > { %14408 = vmatmul.mubr.msk.bf16.gmra.mrb[20].mxu0 %vm1177_vm2, %v5404_v25  ;;  %v779_v15 = vor.u32 %v777_v0, %v775_v7  ;;  %v5449_v18 = vsel %vm5288_vm3, %v5439_v62, %v5448_v2  ;;  %v5462_v19 = vrot.slane %v5460_v4, 1  ;;  %v5465_v21 = vrot.slane %v5463_v5, 2  ;;  %v16234_v62 = vld [vmem:[%s17020_s22 + $0xd0] sm:$0xff]  }
  0x4a   : > { %14411 = vmatprep.mubr.msk.bf16.mxu0 %vm1177_vm2, %v5413_v12  ;;  %v776_v23 = vsel %vm628_vm1, %v771_v6, %v775_v7  ;;  %v789_v24 = vshll.u32 %v16225_v10, 16  ;;  %v5457_v25 = vor.u32 %v5456_v11, %v5453_v8  ;;  %v785_v26 = vshrl.u32 %v16223_v53, 16  ;;  %v16235_v6 = vld [vmem:[%s17020_s22 + $0xc8] sm:$0xff]   ;;  %v16236_v11 = vld [vmem:[%s17020_s22 + $0xd8] sm:$0xff]  }
  0x4b   : > { %v5469_v27 = vshrl.u32 %v16226_v13, 16  ;;  %v5472_v28 = vshll.u32 %v16226_v13, 16  ;;  %v784_v12 = vsel %vm628_vm1, %v779_v15, %v783_v16  ;;  %v793_v29 = vshrl.u32 %v16225_v10, 16 }
  0x4c   : > { %v797_v30 = vshll.u32 %v16227_v17, 16  ;;  %v5478_v32 = vshrl.u32 %v16228_v22, 16  ;;  %v5481_v33 = vshll.u32 %v16228_v22, 16  ;;  %v791_v34 = vrot.slane %v789_v24, 1 }
  0x4d   : > { %v5458_v36 = vsel %vm5288_vm3, %v5448_v2, %v5457_v25  ;;  %v787_v37 = vor.u32 %v785_v26, %v783_v16  ;;  %v5471_v39 = vrot.slane %v5469_v27, 1  ;;  %v5474_v40 = vrot.slane %v5472_v28, 2  ;;  %v16237_v28 = vld [vmem:[%s17020_s22 + $0xd0] sm:$0xff]  }
  0x4e   : > { %13860 = vmatmul.mubr.msk.bf16.gmra.mrb[24].mxu1 %vm1177_vm2, %v744_v31  ;;  %v5466_v31 = vor.u32 %v5465_v21, %v5462_v19  ;;  %v795_v41 = vor.u32 %v793_v29, %v791_v34  ;;  %v799_v42 = vrot.slane %v797_v30, 1  ;;  %v5480_v45 = vrot.slane %v5478_v32, 1 }
  0x4f   : > { %13863 = vmatprep.mubr.msk.bf16.mxu1 %vm1177_vm2, %v752_v38  ;;  %v16230_v38 = vld [vmem:[%s17020_s22 + $0xc0] sm:$0xff]   ;;  %v805_v48 = vshll.u32 %v16229_v35, 16  ;;  %v792_v49 = vsel %vm628_vm1, %v787_v37, %v791_v34  ;;  %v801_v50 = vshrl.u32 %v16227_v17, 16  ;;  %v5475_v53 = vor.u32 %v5474_v40, %v5471_v39 }
  0x50   : > { %v5467_v44 = vsel %vm5288_vm3, %v5457_v25, %v5466_v31  ;;  %v5487_v51 = vshrl.u32 %v16230_v38, 16  ;;  %v5490_v52 = vshll.u32 %v16230_v38, 16  ;;  %v809_v55 = vshrl.u32 %v16229_v35, 16  ;;  %v16240_v35 = vld [vmem:[%s17020_s22 + $0xe8] sm:$0xff]  }
  0x51   : > { %14412 = vmatmul.mubr.msk.bf16.gmra.mrb[24].mxu0 %vm1177_vm2, %v5422_v46  ;;  %v5483_v46 = vrot.slane %v5481_v33, 2  ;;  %v813_v56 = vshll.u32 %v16231_v43, 16  ;;  %v5496_v58 = vshrl.u32 %v16232_v47, 16  ;;  %v5499_v59 = vshll.u32 %v16232_v47, 16 }
  0x52   : > { %14415 = vmatprep.mubr.msk.bf16.mxu0 %vm1177_vm2, %v5431_v54  ;;  %v800_v54 = vsel %vm628_vm1, %v795_v41, %v799_v42  ;;  %v5489_v0 = vrot.slane %v5487_v51, 1  ;;  %v5492_v1 = vrot.slane %v5490_v52, 2  ;;  %v5476_v2 = vsel %vm5288_vm3, %v5466_v31, %v5475_v53  ;;  %v16239_v31 = vld [vmem:[%s17020_s22 + $0xd8] sm:$0xff]   ;;  %v16241_v52 = vld [vmem:[%s17020_s22 + $0xe0] sm:$0xff]  }
  0x53   : > { %v5484_v57 = vor.u32 %v5483_v46, %v5480_v45  ;;  %v815_v5 = vrot.slane %v813_v56, 1  ;;  %v5498_v8 = vrot.slane %v5496_v58, 1  ;;  %v5501_v10 = vrot.slane %v5499_v59, 2 }
  0x54   : > { %v821_v13 = vshll.u32 %v16233_v61, 16  ;;  %v817_v16 = vshrl.u32 %v16231_v43, 16  ;;  %v5508_v17 = vshll.u32 %v16234_v62, 16  ;;  %v825_v21 = vshrl.u32 %v16233_v61, 16 }
  0x55   : > { %v5485_v7 = vsel %vm5288_vm3, %v5475_v53, %v5484_v57  ;;  %v829_v22 = vshll.u32 %v16235_v6, 16  ;;  %v5514_v24 = vshrl.u32 %v16236_v11, 16  ;;  %v5517_v25 = vshll.u32 %v16236_v11, 16  ;;  %v16242_v53 = vld [vmem:[%s17020_s22 + $0xf0] sm:$0xff]  }
  0x56   : > { %13864 = vmatmul.mubr.msk.bf16.gmra.mrb[28].mxu1 %vm1177_vm2, %v760_v60  ;;  %v807_v60 = vrot.slane %v805_v48, 1  ;;  %v823_v26 = vrot.slane %v821_v13, 1  ;;  %v819_v29 = vor.u32 %v817_v16, %v815_v5  ;;  %v5510_v30 = vrot.slane %v5508_v17, 2 }
  0x57   : > { %13867 = vmatprep.mubr.msk.bf16.mxu1 %vm1177_vm2, %v768_v63  ;;  %v803_v63 = vor.u32 %v801_v50, %v799_v42  ;;  %v831_v34 = vrot.slane %v829_v22, 1  ;;  %v5516_v37 = vrot.slane %v5514_v24, 1  ;;  %v5519_v38 = vrot.slane %v5517_v25, 2  ;;  %v16245_v22 = vld [vmem:[%s17020_s22 + $0xf0] sm:$0xff]  }
  0x58   : > { %v811_v4 = vor.u32 %v809_v55, %v807_v60  ;;  %v827_v33 = vor.u32 %v825_v21, %v823_v26  ;;  %v833_v39 = vshrl.u32 %v16235_v6, 16  ;;  %v837_v40 = vshll.u32 %v16237_v28, 16 }
  0x59   : > { %14416 = vmatmul.mubr.msk.bf16.gmra.mrb[28].mxu0 %vm1177_vm2, %v5440_v14  ;;  %v5505_v14 = vshrl.u32 %v16234_v62, 16  ;;  %v808_v15 = vsel %vm628_vm1, %v803_v63, %v807_v60  ;;  %v824_v42 = vsel %vm628_vm1, %v819_v29, %v823_v26  ;;  %v841_v47 = vshrl.u32 %v16237_v28, 16  ;;  %v16243_v62 = vld [vmem:[%s17020_s22 + $0xe8] sm:$0xff]  }
  0x5a   : > { %14419 = vmatprep.mubr.msk.bf16.mxu0 %vm1177_vm2, %v5449_v18  ;;  %v5493_v18 = vor.u32 %v5492_v1, %v5489_v0  ;;  %v816_v19 = vsel %vm628_vm1, %v811_v4, %v815_v5  ;;  %v832_v46 = vsel %vm628_vm1, %v827_v33, %v831_v34  ;;  %v5532_v48 = vshrl.u32 %v16240_v35, 16  ;;  %v16244_v1 = vld [vmem:[%s17020_s22 + $0xf8] sm:$0xff]   ;;  %v16248_v28 = vld [vmem:[%s17020_s22 + $0x108] sm:$0xff]  }
  0x5b   : > { %v5507_v27 = vrot.slane %v5505_v14, 1  ;;  %v5535_v50 = vshll.u32 %v16240_v35, 16  ;;  %v839_v51 = vrot.slane %v837_v40, 1  ;;  %v835_v55 = vor.u32 %v833_v39, %v831_v34 }
  0x5c   : > { %v5494_v32 = vsel %vm5288_vm3, %v5484_v57, %v5493_v18  ;;  %v5534_v61 = vrot.slane %v5532_v48, 1  ;;  %v853_v4 = vshll.u32 %v16241_v52, 16  ;;  %v5541_v5 = vshrl.u32 %v16242_v53, 16  ;;  %v16250_v48 = vld [vmem:[%s17020_s22 + $0x110] sm:$0xff]  }
  0x5d   : > { %v5511_v45 = vor.u32 %v5510_v30, %v5507_v27  ;;  %v843_v60 = vor.u32 %v841_v47, %v839_v51  ;;  %v5537_v0 = vrot.slane %v5535_v50, 2  ;;  %v5544_v6 = vshll.u32 %v16242_v53, 16  ;;  %v16247_v27 = vld [vmem:[%s17020_s22 + $0xf8] sm:$0xff]   ;;  %v16251_v53 = vld [vmem:[%s17020_s22 + $0x108] sm:$0xff]  }
  0x5e   : > { %13868 = vmatmul.mubr.msk.bf16.gmra.mrb[32].mxu1 %vm1177_vm2, %v776_v23  ;;  %v5502_v23 = vor.u32 %v5501_v10, %v5498_v8  ;;  %v857_v11 = vshrl.u32 %v16241_v52, 16  ;;  %v861_v13 = vshll.u32 %v16243_v62, 16  ;;  %v5553_v16 = vshll.u32 %v16244_v1, 16 }
  0x5f   : > { %13871 = vmatprep.mubr.msk.bf16.mxu1 %vm1177_vm2, %v784_v12  ;;  %v16238_v12 = vld [vmem:[%s17020_s22 + $0xe0] sm:$0xff]   ;;  %v5538_v14 = vor.u32 %v5537_v0, %v5534_v61  ;;  %v5546_v21 = vrot.slane %v5544_v6, 2  ;;  %v869_v33 = vshll.u32 %v16245_v22, 16  ;;  %v865_v34 = vshrl.u32 %v16243_v62, 16 }
  0x60   : > { %v5523_v41 = vshrl.u32 %v16238_v12, 16  ;;  %v5526_v43 = vshll.u32 %v16238_v12, 16  ;;  %v5512_v59 = vsel %vm5288_vm3, %v5502_v23, %v5511_v45  ;;  %v863_v26 = vrot.slane %v861_v13, 1 }
  0x61   : > { %14420 = vmatmul.mubr.msk.bf16.gmra.mrb[32].mxu0 %vm1177_vm2, %v5458_v36  ;;  %v5503_v36 = vsel %vm5288_vm3, %v5493_v18, %v5502_v23  ;;  %v855_v18 = vrot.slane %v853_v4, 1  ;;  %v16246_v23 = vld [vmem:[%s17020_s22 + $0x100] sm:$0xff]   ;;  %v5555_v30 = vrot.slane %v5553_v16, 2  ;;  %v877_v39 = vshll.u32 %v16247_v27, 16 }
  0x62   : > { %14423 = vmatprep.mubr.msk.bf16.mxu0 %vm1177_vm2, %v5467_v44  ;;  %v845_v44 = vshll.u32 %v16239_v31, 16  ;;  %v5525_v56 = vrot.slane %v5523_v41, 1  ;;  %v5528_v57 = vrot.slane %v5526_v43, 2  ;;  %v5559_v35 = vshrl.u32 %v16246_v23, 16 }
  0x63   : > { %v859_v25 = vor.u32 %v857_v11, %v855_v18  ;;  %v5568_v40 = vshrl.u32 %v16248_v28, 16  ;;  %v871_v43 = vrot.slane %v869_v33, 1  ;;  %v5577_v61 = vshrl.u32 %v16250_v48, 16  ;;  %v6829_v33 = vld [vmem:[%s17020_s22 + $0x10] sm:$0xc] }
  0x64   : > { %v847_v58 = vrot.slane %v845_v44, 1  ;;  %v5529_v8 = vor.u32 %v5528_v57, %v5525_v56  ;;  %v16249_v44 = vld [vmem:[%s17020_s22 + $0x100] sm:$0xff]   ;;  %v5561_v47 = vrot.slane %v5559_v35, 1  ;;  %v16252_v57 = vld [vmem:[%s17020_s22 + $0x118] sm:$0xff]   ;;  %v5580_v62 = vshll.u32 %v16250_v48, 16 }
  0x65   : > { %v5570_v52 = vrot.slane %v5568_v40, 1  ;;  %v5589_v6 = vshll.u32 %v16252_v57, 16  ;;  %v5579_v11 = vrot.slane %v5577_v61, 1 }
  0x66   : > { %13872 = vmatmul.mubr.msk.bf16.gmra.mrb[36].mxu1 %vm1177_vm2, %v792_v49  ;;  %v5520_v49 = vor.u32 %v5519_v38, %v5516_v37  ;;  %v848_v10 = vsel %vm628_vm1, %v843_v60, %v847_v58  ;;  %v5539_v12 = vsel %vm5288_vm3, %v5529_v8, %v5538_v14  ;;  %v873_v37 = vshrl.u32 %v16245_v22, 16 }
  0x67   : > { %13875 = vmatprep.mubr.msk.bf16.mxu1 %vm1177_vm2, %v800_v54  ;;  %v17193_v54 = vld [vmem:[%s19771_s1 + $0x18] sm:$0xf]  ;;  %v864_v38 = vsel %vm628_vm1, %v859_v25, %v863_v26  ;;  %v5582_v13 = vrot.slane %v5580_v62, 2  ;;  %v5591_v22 = vrot.slane %v5589_v6, 2 }
  0x68   : > { %16172 = vmatprep.subr.msk.bf16.mxu0 %vm1382_vm0, %v17193_v54  ;;  %v5521_v63 = vsel %vm5288_vm3, %v5511_v45, %v5520_v49  ;;  %v5530_v24 = vsel %vm5288_vm3, %v5520_v49, %v5529_v8  ;;  %v875_v50 = vor.u32 %v873_v37, %v871_v43  ;;  %v16253_v8 = vld [vmem:[%s17020_s22 + $0x110] sm:$0xff]   ;;  %v16260_v62 = vld [vmem:[%s17020_s22 + $0x138] sm:$0xff]  }
  0x69   : > { %14424 = vmatmul.mubr.msk.bf16.gmra.mrb[36].mxu0 %vm1177_vm2, %v5476_v2  ;;  %v849_v2 = vshrl.u32 %v16239_v31, 16 }
  0x6a   : > { %14427 = vmatprep.mubr.msk.bf16.mxu0 %vm1177_vm2, %v5485_v7  ;;  %v840_v7 = vsel %vm628_vm1, %v835_v55, %v839_v51  ;;  %v879_v51 = vrot.slane %v877_v39, 1 }
  0x6b   : > { %v851_v17 = vor.u32 %v849_v2, %v847_v58  ;;  %v881_v58 = vshrl.u32 %v16247_v27, 16  ;;  %v893_v2 = vshll.u32 %v16251_v53, 16 }
  0x6c   : > { %v880_v0 = vsel %vm628_vm1, %v875_v50, %v879_v51 }
  0x6d   : > { %v856_v31 = vsel %vm628_vm1, %v851_v17, %v855_v18  ;;  %v895_v17 = vrot.slane %v893_v2, 1  ;;  %v16255_v18 = vld [vmem:[%s17020_s22 + $0x118] sm:$0xff]  }
  0x6e   : > { %13876 = vmatmul.mubr.msk.bf16.gmra.mrb[40].mxu1 %vm1177_vm2, %v808_v15  ;;  %v5550_v15 = vshrl.u32 %v16244_v1, 16  ;;  %v889_v1 = vshrl.u32 %v16249_v44, 16 }
  0x6f   : > { %13879 = vmatprep.mubr.msk.bf16.mxu1 %vm1177_vm2, %v816_v19  ;;  %v5543_v19 = vrot.slane %v5541_v5, 1  ;;  %v5586_v5 = vshrl.u32 %v16252_v57, 16  ;;  %v16259_v57 = vld [vmem:[%s17020_s22 + $0x130] sm:$0xff]  }
  0x70   : > { %v5552_v29 = vrot.slane %v5550_v15, 1 }
  0x71   : > { %14428 = vmatmul.mubr.msk.bf16.gmra.mrb[40].mxu0 %vm1177_vm2, %v5494_v32  ;;  %v5547_v32 = vor.u32 %v5546_v21, %v5543_v19  ;;  %v5588_v21 = vrot.slane %v5586_v5, 1 }
  0x72   : > { %14431 = vmatprep.mubr.msk.bf16.mxu0 %vm1177_vm2, %v5503_v36  ;;  %v5562_v36 = vshll.u32 %v16246_v23, 16  ;;  %v5556_v41 = vor.u32 %v5555_v30, %v5552_v29  ;;  %v897_v23 = vshrl.u32 %v16251_v53, 16  ;;  %v905_v29 = vshrl.u32 %v16253_v8, 16  ;;  %v16670_v53 = vld [vmem:[%s17020_s22 + $0x18] sm:$0xff]  }
  0x73   : > { %v5548_v45 = vsel %vm5288_vm3, %v5538_v14, %v5547_v32  ;;  %v16254_v14 = vld [vmem:[%s17020_s22 + $0x120] sm:$0xff]   ;;  %v909_v30 = vshll.u32 %v16255_v18, 16 }
  0x74   : > { %v5564_v49 = vrot.slane %v5562_v36, 2  ;;  %v5557_v55 = vsel %vm5288_vm3, %v5547_v32, %v5556_v41  ;;  %v5595_v27 = vshrl.u32 %v16254_v14, 16  ;;  %v899_v36 = vor.u32 %v897_v23, %v895_v17 }
  0x75   : > { %v911_v40 = vrot.slane %v909_v30, 1  ;;  %v16674_v30 = vld [vmem:[%s17020_s22 + $0x38] sm:$0xff]  }
  0x76   : > { %13880 = vmatmul.mubr.msk.bf16.gmra.mrb[44].mxu1 %vm1177_vm2, %v824_v42  ;;  %v5571_v42 = vshll.u32 %v16248_v28, 16  ;;  %v5598_v28 = vshll.u32 %v16254_v14, 16  ;;  %v5597_v37 = vrot.slane %v5595_v27, 1  ;;  %v16261_v14 = vld [vmem:[%s17020_s22 + $0x140] sm:$0xff]   ;;  %v945_v27 = vshrl.u32 %v16260_v62, 16 }
  0x77   : > { %13883 = vmatprep.mubr.msk.bf16.mxu1 %vm1177_vm2, %v832_v46  ;;  %v867_v46 = vor.u32 %v865_v34, %v863_v26  ;;  %v5583_v26 = vor.u32 %v5582_v13, %v5579_v11  ;;  %v16257_v34 = vld [vmem:[%s17020_s22 + $0x120] sm:$0xff]   ;;  %v949_v23 = vshll.u32 %v16261_v14, 16 }
  0x78   : > { %v5573_v56 = vrot.slane %v5571_v42, 2  ;;  %v921_v50 = vshrl.u32 %v16257_v34, 16 }
  0x79   : > { %14432 = vmatmul.mubr.msk.bf16.gmra.mrb[44].mxu0 %vm1177_vm2, %v5512_v59  ;;  %v885_v59 = vshll.u32 %v16249_v44, 16  ;;  %v872_v60 = vsel %vm628_vm1, %v867_v46, %v871_v43  ;;  %v16669_v43 = vld [vmem:[%s17020_s22 + $0x14] sm:$0xf] }
  0x7a   : > { %14435 = vmatprep.mubr.msk.bf16.mxu0 %vm1177_vm2, %v5521_v63  ;;  %v5565_v63 = vor.u32 %v5564_v49, %v5561_v47  ;;  %v5574_v4 = vor.u32 %v5573_v56, %v5570_v52  ;;  %v12863_v44 = vcombine.low %v6829_v33, %v16669_v43  ;;  %v913_v47 = vshrl.u32 %v16255_v18, 16  ;;  %v16263_v33 = vld [vmem:[%s17020_s22 + $0x150] sm:$0xff]  }
  0x7c   : > { %v5566_v15 = vsel %vm5288_vm3, %v5556_v41, %v5565_v63  ;;  %v5575_v19 = vsel %vm5288_vm3, %v5565_v63, %v5574_v4  ;;  %v5584_v35 = vsel %vm5288_vm3, %v5574_v4, %v5583_v26  ;;  %v16258_v41 = vld [vmem:[%s17020_s22 + $0x128] sm:$0xff]   ;;  %v6836_v52 = vrot.slane %v12863_v44, 2  ;;  %v16671_v4 = vld [vmem:[%s17020_s22 + $0x20] sm:$0xff]  }
  0x7d   : > { %v929_v2 = vshrl.u32 %v16258_v41, 16  ;;  %v6839_v5 = vrot.slane %v16671_v4, 2  ;;  %v16675_v44 = vld [vmem:[%s17020_s22 + $0x40] sm:$0xff]  }
  0x7e   : > { %13884 = vmatmul.mubr.msk.bf16.gmra.mrb[48].mxu1 %vm1177_vm2, %v840_v7  ;;  %v887_v7 = vrot.slane %v885_v59, 1 }
  0x7f   : > { %13887 = vmatprep.mubr.msk.bf16.mxu1 %vm1177_vm2, %v848_v10  ;;  %v883_v10 = vor.u32 %v881_v58, %v879_v51  ;;  %v925_v51 = vshll.u32 %v16258_v41, 16  ;;  %v915_v58 = vor.u32 %v913_v47, %v911_v40  ;;  %v16265_v41 = vld [vmem:[%s17020_s22 + $0x160] sm:$0xff]   ;;  %v969_v47 = vshrl.u32 %v16263_v33, 16 }
  0x80   : > { %v891_v16 = vor.u32 %v889_v1, %v887_v7  ;;  %v985_v4 = vshrl.u32 %v16265_v41, 16 }
  0x81   : > { %14436 = vmatmul.mubr.msk.bf16.gmra.mrb[48].mxu0 %vm1177_vm2, %v5530_v24  ;;  %v901_v24 = vshll.u32 %v16253_v8, 16  ;;  %v888_v25 = vsel %vm628_vm1, %v883_v10, %v887_v7  ;;  %v927_v61 = vrot.slane %v925_v51, 1  ;;  %v937_v7 = vshrl.u32 %v16259_v57, 16  ;;  %v16672_v10 = vld [vmem:[%s17020_s22 + $0x28] sm:$0xff]  }
  0x82   : > { %14439 = vmatprep.mubr.msk.bf16.mxu0 %vm1177_vm2, %v5539_v12  ;;  %v896_v12 = vsel %vm628_vm1, %v891_v16, %v895_v17  ;;  %v941_v8 = vshll.u32 %v16260_v62, 16  ;;  %v6841_v11 = vrot.slane %v16672_v10, 2  ;;  %v16676_v51 = vld [vmem:[%s17020_s22 + $0x48] sm:$0xff]  }
  0x83   : > { %v903_v32 = vrot.slane %v901_v24, 1 }
  0x84   : > { %v943_v18 = vrot.slane %v941_v8, 1  ;;  %v16679_v8 = vld [vmem:[%s17020_s22 + $0x60] sm:$0xff]  }
  0x85   : > { %v907_v39 = vor.u32 %v905_v29, %v903_v32  ;;  %v904_v46 = vsel %vm628_vm1, %v899_v36, %v903_v32  ;;  %v951_v32 = vrot.slane %v949_v23, 1  ;;  %v6855_v10 = vrot.slane %v16679_v8, 2  ;;  %v16270_v23 = vld [vmem:[%s17020_s22 + $0x188] sm:$0xff]  }
  0x86   : > { %13888 = vmatmul.mubr.msk.bf16.gmra.mrb[52].mxu1 %vm1177_vm2, %v856_v31  ;;  %v5592_v31 = vor.u32 %v5591_v22, %v5588_v21  ;;  %v8717_v21 = vsel %vm1382_vm0, %v17193_v54, 0  ;;  %v6842_v22 = vsel %vm6835_vm4, %v6839_v5, %v6841_v11 }
  0x87   : > { %13891 = vmatprep.mubr.msk.bf16.mxu1 %vm1177_vm2, %v864_v38  ;;  %v5600_v38 = vrot.slane %v5598_v28, 2  ;;  %v912_v49 = vsel %vm628_vm1, %v907_v39, %v911_v40  ;;  %v17283_v28 = vld [vmem:[%s19771_s1 + $0x8] sm:$0xf]  ;;  %v965_v40 = vshll.u32 %v16263_v33, 16 }
  0x88   : > { %v5593_v42 = vsel %vm5288_vm3, %v5583_v26, %v5592_v31  ;;  %16167 = vmatprep.subr.msk.bf16.mxu1 %vm1382_vm0, %v17283_v28 }
  0x89   : > { %14440 = vmatmul.mubr.msk.bf16.gmra.mrb[52].mxu0 %vm1177_vm2, %v5548_v45  ;;  %v917_v45 = vshll.u32 %v16257_v34, 16  ;;  %v17252_v48 = vor.u32 %v5600_v38, %v5597_v37  ;;  %v947_v34 = vor.u32 %v945_v27, %v943_v18  ;;  %v16264_v38 = vld [vmem:[%s17020_s22 + $0x158] sm:$0xff]  }
  0x8a   : > { %14443 = vmatprep.mubr.msk.bf16.mxu0 %vm1177_vm2, %v5557_v55  ;;  %v6837_v55 = vrot.slane %v16670_v53, 2  ;;  %v16677_v53 = vld [vmem:[%s17020_s22 + $0x50] sm:$0xff]  }
  0x8b   : > { %19831 = vst [vmem:[#allocation4_spill] sm:$0xff] %v17252_v48  ;;  %v919_v56 = vrot.slane %v917_v45, 1  ;;  %v5602_v59 = vsel %vm5288_vm3, %v5592_v31, %v17252_v48  ;;  %v6845_v31 = vrot.slane %v16674_v30, 2  ;;  %v6847_v45 = vrot.slane %v16675_v44, 2  ;;  %v16682_v44 = vld [vmem:[%s17020_s22 + $0x78] sm:$0xff]  }
  0x8c   : > { %v6838_v63 = vsel %vm6835_vm4, %v6836_v52, %v6837_v55  ;;  %v6840_v16 = vsel %vm6835_vm4, %v6837_v55, %v6839_v5  ;;  %v6849_v52 = vrot.slane %v16676_v51, 2  ;;  %v6851_v55 = vrot.slane %v16677_v53, 2  ;;  %v17857_v48 = vld [vmem:[%s17020_s22 + $0x58] sm:$0xff]  }
  0x8d   : > { %v920_v1 = vsel %vm628_vm1, %v915_v58, %v919_v56  ;;  %19836 = vst [vmem:[#allocation9_spill] sm:$0xff] %v17857_v48  ;;  %v8388_v20 = vrot.slane %v17857_v48, 2 }
  0x8e   : > { %13892 = vmatmul.mubr.msk.bf16.gmra.mrb[56].mxu1 %vm1177_vm2, %v872_v60  ;;  %v923_v60 = vor.u32 %v921_v50, %v919_v56  ;;  %v16266_v50 = vld [vmem:[%s17020_s22 + $0x168] sm:$0xff]   ;;  %v967_v56 = vrot.slane %v965_v40, 1 }
  0x8f   : > { %13895 = vmatprep.mubr.msk.bf16.mxu1 %vm1177_vm2, %v880_v0  ;;  %v933_v0 = vshll.u32 %v16259_v57, 16  ;;  %v981_v57 = vshll.u32 %v16265_v41, 16  ;;  %v989_v62 = vshll.u32 %v16266_v50, 16 }
  0x90   : > { %v928_v6 = vsel %vm628_vm1, %v923_v60, %v927_v61  ;;  %v971_v60 = vor.u32 %v969_v47, %v967_v56 }
  0x91   : > { %14444 = vmatmul.mubr.msk.bf16.gmra.mrb[56].mxu0 %vm1177_vm2, %v5566_v15  ;;  %v935_v13 = vrot.slane %v933_v0, 1  ;;  %v931_v15 = vor.u32 %v929_v2, %v927_v61  ;;  %v16267_v0 = vld [vmem:[%s17020_s22 + $0x170] sm:$0xff]   ;;  %v977_v2 = vshrl.u32 %v16264_v38, 16 }
  0x92   : > { %14447 = vmatprep.mubr.msk.bf16.mxu0 %vm1177_vm2, %v5575_v19  ;;  %v16262_v19 = vld [vmem:[%s17020_s22 + $0x148] sm:$0xff]  }
  0x93   : > { %v939_v17 = vor.u32 %v937_v7, %v935_v13  ;;  %v936_v24 = vsel %vm628_vm1, %v931_v15, %v935_v13  ;;  %v957_v29 = vshll.u32 %v16262_v19, 16  ;;  %v961_v43 = vshrl.u32 %v16262_v19, 16 }
  0x94   : > { %v983_v13 = vrot.slane %v981_v57, 1  ;;  %v997_v19 = vshll.u32 %v16267_v0, 16 }
  0x95   : > { %v944_v54 = vsel %vm628_vm1, %v939_v17, %v943_v18  ;;  %v959_v37 = vrot.slane %v957_v29, 1  ;;  %v993_v18 = vshrl.u32 %v16266_v50, 16  ;;  %v16681_v29 = vld [vmem:[%s17020_s22 + $0x70] sm:$0xff]  }
  0x96   : > { %13896 = vmatmul.mubr.msk.bf16.gmra.mrb[60].mxu1 %vm1177_vm2, %v888_v25  ;;  %v16673_v25 = vld [vmem:[%s17020_s22 + $0x30] sm:$0xff]   ;;  %v987_v17 = vor.u32 %v985_v4, %v983_v13  ;;  %v6859_v30 = vrot.slane %v16681_v29, 2 }
  0x97   : > { %13899 = vmatprep.mubr.msk.bf16.mxu1 %vm1177_vm2, %v896_v12  ;;  %v6843_v26 = vrot.slane %v16673_v25, 2  ;;  %v953_v12 = vshrl.u32 %v16261_v14, 16  ;;  %v963_v58 = vor.u32 %v961_v43, %v959_v37  ;;  %v991_v14 = vrot.slane %v989_v62, 1  ;;  %v16685_v4 = vld [vmem:[%s17020_s22 + $0x90] sm:$0xff]  }
  0x98   : > { %v1001_v25 = vshrl.u32 %v16267_v0, 16 }
  0x99   : > { %14448 = vmatmul.mubr.msk.bf16.gmra.mrb[60].mxu0 %vm1177_vm2, %v5584_v35  ;;  %v6844_v35 = vsel %vm6835_vm4, %v6841_v11, %v6843_v26  ;;  %v955_v36 = vor.u32 %v953_v12, %v951_v32  ;;  %v6846_v39 = vsel %vm6835_vm4, %v6843_v26, %v6845_v31  ;;  %v16268_v11 = vld [vmem:[%s17020_s22 + $0x178] sm:$0xff]   ;;  %v992_v27 = vsel %vm628_vm1, %v987_v17, %v991_v14 }
  0x9a   : > { %14451 = vmatprep.mubr.msk.bf16.mxu0 %vm1177_vm2, %v5593_v42  ;;  %v952_v42 = vsel %vm628_vm1, %v947_v34, %v951_v32  ;;  %v1005_v26 = vshll.u32 %v16268_v11, 16  ;;  %v995_v33 = vor.u32 %v993_v18, %v991_v14  ;;  %v1009_v41 = vshrl.u32 %v16268_v11, 16 }
  0x9e   : > { %13900 = vmatmul.mubr.msk.bf16.gmra.mrb[64].mxu1 %vm1177_vm2, %v904_v46  ;;  %v960_v46 = vsel %vm628_vm1, %v955_v36, %v959_v37  ;;  %v1007_v36 = vrot.slane %v1005_v26, 1  ;;  %v1021_v37 = vshll.u32 %v16270_v23, 16  ;;  %v16276_v26 = vld [vmem:[%s17020_s22 + $0x1b8] sm:$0xff]  }
  0x9f   : > { %13903 = vmatprep.mubr.msk.bf16.mxu1 %vm1177_vm2, %v912_v49  ;;  %v973_v49 = vshll.u32 %v16264_v38, 16 }
  0xa0   : > { %v1023_v51 = vrot.slane %v1021_v37, 1 }
  0xa1   : > { %14452 = vmatmul.mubr.msk.bf16.gmra.mrb[64].mxu0 %vm1177_vm2, %v5602_v59  ;;  %v6848_v59 = vsel %vm6835_vm4, %v6845_v31, %v6847_v45  ;;  %v975_v61 = vrot.slane %v973_v49, 1  ;;  %v999_v31 = vrot.slane %v997_v19, 1  ;;  %v16272_v49 = vld [vmem:[%s17020_s22 + $0x198] sm:$0xff]  }
  0xa2   : > { %14525 = vmatprep.mubr.msk.bf16.mxu0 %vm1177_vm2, %v6838_v63  ;;  %v6850_v63 = vsel %vm6835_vm4, %v6847_v45, %v6849_v52  ;;  %v6861_v45 = vrot.slane %v16682_v44, 2  ;;  %v1041_v18 = vshrl.u32 %v16272_v49, 16 }
  0xa3   : > { %v976_v5 = vsel %vm628_vm1, %v971_v60, %v975_v61  ;;  %v979_v15 = vor.u32 %v977_v2, %v975_v61  ;;  %v1000_v40 = vsel %vm628_vm1, %v995_v33, %v999_v31  ;;  %v16274_v60 = vld [vmem:[%s17020_s22 + $0x1a8] sm:$0xff]   ;;  %v16277_v33 = vld [vmem:[%s17020_s22 + $0x1c0] sm:$0xff]  }
  0xa4   : > { %v1053_v14 = vshll.u32 %v16274_v60, 16 }
  0xa6   : > { %13904 = vmatmul.mubr.msk.bf16.gmra.mrb[68].mxu1 %vm1177_vm2, %v920_v1  ;;  %v968_v1 = vsel %vm628_vm1, %v963_v58, %v967_v56  ;;  %v1025_v56 = vshrl.u32 %v16270_v23, 16  ;;  %v16273_v58 = vld [vmem:[%s17020_s22 + $0x1a0] sm:$0xff]  }
  0xa7   : > { %13907 = vmatprep.mubr.msk.bf16.mxu1 %vm1177_vm2, %v928_v6  ;;  %v16678_v6 = vld [vmem:[%s17020_s22 + $0x58] sm:$0xff]   ;;  %v1049_v19 = vshrl.u32 %v16273_v58, 16 }
  0xa8   : > { %v6853_v7 = vrot.slane %v16678_v6, 2  ;;  %v1027_v8 = vor.u32 %v1025_v56, %v1023_v51  ;;  %v1073_v56 = vshrl.u32 %v16276_v26, 16 }
  0xa9   : > { %14526 = vmatmul.mubr.msk.bf16.vlgmr.msra.gmra.mrb[0].mxu0 %vm1177_vm2, %v6840_v16  ;;  %v6852_v16 = vsel %vm6835_vm4, %v6849_v52, %v6851_v55  ;;  %v1011_v52 = vor.u32 %v1009_v41, %v1007_v36 }
  0xaa   : > { %14662 = vmatpush3.bf16.msra.mxu0 %v8717_v21  ;;  %14529 = vmatprep.mubr.msk.bf16.mxu0 %vm1177_vm2, %v6842_v22  ;;  %v16269_v21 = vld [vmem:[%s17020_s22 + $0x180] sm:$0xff]   ;;  %v6854_v22 = vsel %vm6835_vm4, %v6851_v55, %v6853_v7  ;;  %v6856_v34 = vsel %vm6835_vm4, %v6853_v7, %v6855_v10  ;;  %v1045_v7 = vshll.u32 %v16273_v58, 16 }
  0xab   : > { %v1013_v32 = vshll.u32 %v16269_v21, 16 }
  0xad   : > { %v1015_v50 = vrot.slane %v1013_v32, 1 }
  0xae   : > { %13908 = vmatmul.mubr.msk.bf16.gmra.mrb[72].mxu1 %vm1177_vm2, %v936_v24  ;;  %v984_v24 = vsel %vm628_vm1, %v979_v15, %v983_v13 }
  0xaf   : > { %13911 = vmatprep.mubr.msk.bf16.mxu1 %vm1177_vm2, %v944_v54  ;;  %v16680_v54 = vld [vmem:[%s17020_s22 + $0x68] sm:$0xff]   ;;  %v1016_v61 = vsel %vm628_vm1, %v1011_v52, %v1015_v50 }
  0xb0   : > { %v6857_v12 = vrot.slane %v16680_v54, 2  ;;  %v1055_v54 = vrot.slane %v1053_v14, 1 }
  0xb1   : > { %14530 = vmatmul.mubr.msk.bf16.gmra.mrb[4].mxu0 %vm1177_vm2, %v6844_v35  ;;  %v1003_v35 = vor.u32 %v1001_v25, %v999_v31  ;;  %v1057_v31 = vshrl.u32 %v16274_v60, 16 }
  0xb2   : > { %14533 = vmatprep.mubr.msk.bf16.mxu0 %vm1177_vm2, %v6846_v39  ;;  %v6858_v38 = vsel %vm6835_vm4, %v6855_v10, %v6857_v12  ;;  %v16271_v39 = vld [vmem:[%s17020_s22 + $0x190] sm:$0xff]   ;;  %v6860_v53 = vsel %vm6835_vm4, %v6857_v12, %v6859_v30 }
  0xb3   : > { %v1008_v43 = vsel %vm628_vm1, %v1003_v35, %v1007_v36  ;;  %v1029_v57 = vshll.u32 %v16271_v39, 16  ;;  %v1033_v62 = vshrl.u32 %v16271_v39, 16  ;;  %v16278_v35 = vld [vmem:[%s17020_s22 + $0x1c8] sm:$0xff]  }
  0xb5   : > { %v1031_v6 = vrot.slane %v1029_v57, 1  ;;  %v1081_v57 = vshrl.u32 %v16277_v33, 16 }
  0xb6   : > { %13912 = vmatmul.mubr.msk.bf16.gmra.mrb[76].mxu1 %vm1177_vm2, %v952_v42  ;;  %v1017_v42 = vshrl.u32 %v16269_v21, 16 }
  0xb7   : > { %13915 = vmatprep.mubr.msk.bf16.mxu1 %vm1177_vm2, %v960_v46  ;;  %v16683_v46 = vld [vmem:[%s17020_s22 + $0x80] sm:$0xff]   ;;  %v1035_v11 = vor.u32 %v1033_v62, %v1031_v6  ;;  %v1032_v17 = vsel %vm628_vm1, %v1027_v8, %v1031_v6  ;;  %v1089_v6 = vshrl.u32 %v16278_v35, 16 }
  0xb8   : > { %v6863_v47 = vrot.slane %v16683_v46, 2  ;;  %v1019_v55 = vor.u32 %v1017_v42, %v1015_v50  ;;  %v16689_v42 = vld [vmem:[%s17020_s22 + $0xb0] sm:$0xff]   ;;  %v1059_v46 = vor.u32 %v1057_v31, %v1055_v54 }
  0xb9   : > { %14534 = vmatmul.mubr.msk.bf16.gmra.mrb[8].mxu0 %vm1177_vm2, %v6848_v59  ;;  %v6862_v59 = vsel %vm6835_vm4, %v6859_v30, %v6861_v45 }
  0xba   : > { %14537 = vmatprep.mubr.msk.bf16.mxu0 %vm1177_vm2, %v6850_v63  ;;  %v1037_v63 = vshll.u32 %v16272_v49, 16  ;;  %v1024_v0 = vsel %vm628_vm1, %v1019_v55, %v1023_v51  ;;  %v6864_v10 = vsel %vm6835_vm4, %v6861_v45, %v6863_v47  ;;  %v1077_v45 = vshll.u32 %v16277_v33, 16  ;;  %v16694_v33 = vld [vmem:[%s17020_s22 + $0xd8] sm:$0xff]  }
  0xbb   : > { %v1085_v51 = vshll.u32 %v16278_v35, 16 }
  0xbc   : > { %v1039_v13 = vrot.slane %v1037_v63, 1  ;;  %v17391_v63 = vld [vmem:[%s17020_s22 + $0x1d8] sm:$0xff]  }
  0xbd   : > { %v1101_v14 = vshll.u32 %v17391_v63, 16 }
  0xbe   : > { %13916 = vmatmul.mubr.msk.bf16.gmra.mrb[80].mxu1 %vm1177_vm2, %v968_v1  ;;  %v16684_v1 = vld [vmem:[%s17020_s22 + $0x88] sm:$0xff]   ;;  %v1040_v21 = vsel %vm628_vm1, %v1035_v11, %v1039_v13  ;;  %v1043_v12 = vor.u32 %v1041_v18, %v1039_v13  ;;  %v16693_v18 = vld [vmem:[%s17020_s22 + $0xd0] sm:$0xff]  }
  0xbf   : > { %13919 = vmatprep.mubr.msk.bf16.mxu1 %vm1177_vm2, %v976_v5  ;;  %v6865_v2 = vrot.slane %v16684_v1, 2  ;;  %v6867_v5 = vrot.slane %v16685_v4, 2  ;;  %v1087_v1 = vrot.slane %v1085_v51, 1 }
  0xc1   : > { %14538 = vmatmul.mubr.msk.bf16.gmra.mrb[12].mxu0 %vm1177_vm2, %v6852_v16  ;;  %v6866_v15 = vsel %vm6835_vm4, %v6863_v47, %v6865_v2  ;;  %v16275_v16 = vld [vmem:[%s17020_s22 + $0x1b0] sm:$0xff]   ;;  %v6868_v29 = vsel %vm6835_vm4, %v6865_v2, %v6867_v5 }
  0xc2   : > { %14541 = vmatprep.mubr.msk.bf16.mxu0 %vm1177_vm2, %v6854_v22  ;;  %v16686_v22 = vld [vmem:[%s17020_s22 + $0x98] sm:$0xff]   ;;  %v1061_v32 = vshll.u32 %v16275_v16, 16  ;;  %v1065_v37 = vshrl.u32 %v16275_v16, 16  ;;  %v16692_v16 = vld [vmem:[%s17020_s22 + $0xc8] sm:$0xff]  }
  0xc3   : > { %v6869_v23 = vrot.slane %v16686_v22, 2 }
  0xc4   : > { %v1063_v44 = vrot.slane %v1061_v32, 1 }
  0xc6   : > { %13920 = vmatmul.mubr.msk.bf16.gmra.mrb[84].mxu1 %vm1177_vm2, %v984_v24  ;;  %v16687_v24 = vld [vmem:[%s17020_s22 + $0xa0] sm:$0xff]   ;;  %v1067_v49 = vor.u32 %v1065_v37, %v1063_v44  ;;  %v1064_v55 = vsel %vm628_vm1, %v1059_v46, %v1063_v44 }
  0xc7   : > { %13923 = vmatprep.mubr.msk.bf16.mxu1 %vm1177_vm2, %v992_v27  ;;  %v6871_v25 = vrot.slane %v16687_v24, 2  ;;  %v1047_v27 = vrot.slane %v1045_v7, 1  ;;  %v1091_v24 = vor.u32 %v1089_v6, %v1087_v1  ;;  %v16695_v46 = vld [vmem:[%s17020_s22 + $0xe0] sm:$0xff]  }
  0xc9   : > { %14542 = vmatmul.mubr.msk.bf16.gmra.mrb[16].mxu0 %vm1177_vm2, %v6856_v34  ;;  %v1051_v30 = vor.u32 %v1049_v19, %v1047_v27  ;;  %v6870_v34 = vsel %vm6835_vm4, %v6867_v5, %v6869_v23  ;;  %v1048_v36 = vsel %vm628_vm1, %v1043_v12, %v1047_v27  ;;  %v6872_v47 = vsel %vm6835_vm4, %v6869_v23, %v6871_v25 }
  0xca   : > { %14545 = vmatprep.mubr.msk.bf16.mxu0 %vm1177_vm2, %v6858_v38  ;;  %v1069_v38 = vshll.u32 %v16276_v26, 16  ;;  %v6883_v19 = vrot.slane %v16693_v18, 2  ;;  %v1105_v23 = vshrl.u32 %v17391_v63, 16  ;;  %v1103_v27 = vrot.slane %v1101_v14, 1 }
  0xcb   : > { %v1056_v39 = vsel %vm628_vm1, %v1051_v30, %v1055_v54 }
  0xcc   : > { %v1071_v50 = vrot.slane %v1069_v38, 1  ;;  %v1107_v37 = vor.u32 %v1105_v23, %v1103_v27  ;;  %v17472_v23 = vld [vmem:[%s17020_s22 + $0x218] sm:$0xff]  }
  0xce   : > { %13924 = vmatmul.mubr.msk.bf16.gmra.mrb[88].mxu1 %vm1177_vm2, %v1000_v40  ;;  %v16688_v40 = vld [vmem:[%s17020_s22 + $0xa8] sm:$0xff]   ;;  %v1072_v58 = vsel %vm628_vm1, %v1067_v49, %v1071_v50  ;;  %v1075_v2 = vor.u32 %v1073_v56, %v1071_v50 }
  0xcf   : > { %13927 = vmatprep.mubr.msk.bf16.mxu1 %vm1177_vm2, %v1008_v43  ;;  %v6873_v41 = vrot.slane %v16688_v40, 2  ;;  %v6875_v43 = vrot.slane %v16689_v42, 2 }
  0xd1   : > { %14546 = vmatmul.mubr.msk.bf16.gmra.mrb[20].mxu0 %vm1177_vm2, %v6860_v53  ;;  %v6874_v52 = vsel %vm6835_vm4, %v6871_v25, %v6873_v41  ;;  %v17382_v53 = vld [vmem:[%s17020_s22 + $0x1d0] sm:$0xff]   ;;  %v6876_v4 = vsel %vm6835_vm4, %v6873_v41, %v6875_v43  ;;  %v17432_v41 = vld [vmem:[%s17020_s22 + $0x1f8] sm:$0xff]  }
  0xd2   : > { %14549 = vmatprep.mubr.msk.bf16.mxu0 %vm1177_vm2, %v6862_v59  ;;  %v16690_v59 = vld [vmem:[%s17020_s22 + $0xb8] sm:$0xff]   ;;  %v1093_v7 = vshll.u32 %v17382_v53, 16  ;;  %v1097_v13 = vshrl.u32 %v17382_v53, 16  ;;  %v1133_v51 = vshll.u32 %v17432_v41, 16 }
  0xd3   : > { %v6877_v60 = vrot.slane %v16690_v59, 2 }
  0xd4   : > { %v1095_v22 = vrot.slane %v1093_v7, 1 }
  0xd5   : > { %v6878_v8 = vsel %vm6835_vm4, %v6875_v43, %v6877_v60 }
  0xd6   : > { %13928 = vmatmul.mubr.msk.bf16.gmra.mrb[92].mxu1 %vm1177_vm2, %v1016_v61  ;;  %v16691_v61 = vld [vmem:[%s17020_s22 + $0xc0] sm:$0xff]   ;;  %v1099_v26 = vor.u32 %v1097_v13, %v1095_v22  ;;  %v16698_v13 = vld [vmem:[%s17020_s22 + $0xf8] sm:$0xff]  }
  0xd7   : > { %13931 = vmatprep.mubr.msk.bf16.mxu1 %vm1177_vm2, %v1024_v0  ;;  %v6879_v62 = vrot.slane %v16691_v61, 2  ;;  %v1079_v0 = vrot.slane %v1077_v45, 1  ;;  %v1135_v61 = vrot.slane %v1133_v51, 1  ;;  %v6893_v14 = vrot.slane %v16698_v13, 2  ;;  %v17518_v13 = vld [vmem:[%s17020_s22 + $0x8] sm:$0xff]  }
  0xd8   : > { %v1104_v32 = vsel %vm628_vm1, %v1099_v26, %v1103_v27 }
  0xd9   : > { %14550 = vmatmul.mubr.msk.bf16.gmra.mrb[24].mxu0 %vm1177_vm2, %v6864_v10  ;;  %v1083_v5 = vor.u32 %v1081_v57, %v1079_v0  ;;  %v17399_v10 = vld [vmem:[%s17020_s22 + $0x1e0] sm:$0xff]   ;;  %v1080_v11 = vsel %vm628_vm1, %v1075_v2, %v1079_v0  ;;  %v6880_v25 = vsel %vm6835_vm4, %v6877_v60, %v6879_v62 }
  0xda   : > { %14553 = vmatprep.mubr.msk.bf16.mxu0 %vm1177_vm2, %v6866_v15  ;;  %v1109_v54 = vshll.u32 %v17399_v10, 16  ;;  %v1113_v30 = vshrl.u32 %v17399_v10, 16  ;;  %v17447_v57 = vld [vmem:[%s17020_s22 + $0x200] sm:$0xff]  }
  0xdb   : > { %v1088_v15 = vsel %vm628_vm1, %v1083_v5, %v1087_v1  ;;  %v1141_v1 = vshll.u32 %v17447_v57, 16  ;;  %v16697_v5 = vld [vmem:[%s17020_s22 + $0xf0] sm:$0xff]  }
  0xdc   : > { %v1111_v35 = vrot.slane %v1109_v54, 1  ;;  %v6891_v6 = vrot.slane %v16697_v5, 2  ;;  %v16699_v54 = vld [vmem:[%s17020_s22 + $0x100] sm:$0xff]  }
  0xde   : > { %13932 = vmatmul.mubr.msk.bf16.gmra.mrb[96].mxu1 %vm1177_vm2, %v1032_v17  ;;  %v6881_v17 = vrot.slane %v16692_v16, 2  ;;  %v1112_v44 = vsel %vm628_vm1, %v1107_v37, %v1111_v35  ;;  %v17467_v16 = vld [vmem:[%s17020_s22 + $0x210] sm:$0xff]   ;;  %v16289_v37 = vld [vmem:[%s17020_s22 + $0x220] ss:$0 sps:$4 sm:$0x11]  }
  0xdf   : > { %13935 = vmatprep.mubr.msk.bf16.mxu1 %vm1177_vm2, %v1040_v21  ;;  %v17410_v21 = vld [vmem:[%s17020_s22 + $0x1e8] sm:$0xff]  }
  0xe0   : > { %v6882_v12 = vsel %vm6835_vm4, %v6879_v62, %v6881_v17  ;;  %v1117_v31 = vshll.u32 %v17410_v21, 16  ;;  %v6884_v38 = vsel %vm6835_vm4, %v6881_v17, %v6883_v19  ;;  %v1121_v45 = vshrl.u32 %v17410_v21, 16  ;;  %v17452_v62 = vld [vmem:[%s17020_s22 + $0x208] sm:$0xff]  }
  0xe1   : > { %14554 = vmatmul.mubr.msk.bf16.gmra.mrb[28].mxu0 %vm1177_vm2, %v6868_v29  ;;  %v1096_v29 = vsel %vm628_vm1, %v1091_v24, %v1095_v22  ;;  %v6894_v24 = vsel %vm6835_vm4, %v6891_v6, %v6893_v14  ;;  %v1153_v27 = vshrl.u32 %v17452_v62, 16 }
  0xe2   : > { %14557 = vmatprep.mubr.msk.bf16.mxu0 %vm1177_vm2, %v6870_v34  ;;  %v6885_v34 = vrot.slane %v16694_v33, 2  ;;  %v1119_v40 = vrot.slane %v1117_v31, 1  ;;  %v1165_v31 = vshll.u32 %v17472_v23, 16 }
  0xe4   : > { %v6886_v42 = vsel %vm6835_vm4, %v6883_v19, %v6885_v34 }
  0xe6   : > { %13936 = vmatmul.mubr.msk.bf16.gmra.mrb[100].mxu1 %vm1177_vm2, %v1048_v36  ;;  %v17427_v36 = vld [vmem:[%s17020_s22 + $0x1f0] sm:$0xff]  }
  0xe7   : > { %13939 = vmatprep.mubr.msk.bf16.mxu1 %vm1177_vm2, %v1056_v39  ;;  %v1115_v39 = vor.u32 %v1113_v30, %v1111_v35  ;;  %v1125_v43 = vshll.u32 %v17427_v36, 16  ;;  %v1129_v50 = vshrl.u32 %v17427_v36, 16  ;;  %v1161_v30 = vshrl.u32 %v17467_v16, 16 }
  0xe9   : > { %14558 = vmatmul.mubr.msk.bf16.gmra.mrb[32].mxu0 %vm1177_vm2, %v6872_v47  ;;  %v6887_v47 = vrot.slane %v16695_v46, 2  ;;  %v1120_v49 = vsel %vm628_vm1, %v1115_v39, %v1119_v40  ;;  %v1127_v56 = vrot.slane %v1125_v43, 1  ;;  %v16701_v46 = vld [vmem:[%s17020_s22 + $0x110] sm:$0xff]  }
  0xea   : > { %14561 = vmatprep.mubr.msk.bf16.mxu0 %vm1177_vm2, %v6874_v52  ;;  %v16696_v52 = vld [vmem:[%s17020_s22 + $0xe8] sm:$0xff]  }
  0xeb   : > { %v6888_v59 = vsel %vm6835_vm4, %v6885_v34, %v6887_v47  ;;  %v1131_v60 = vor.u32 %v1129_v50, %v1127_v56  ;;  %v16702_v50 = vld [vmem:[%s17020_s22 + $0x118] sm:$0xff]  }
  0xec   : > { %v6901_v51 = vrot.slane %v16702_v50, 2  ;;  %v17589_v50 = vld [vmem:[%s17020_s22 + $0x48] sm:$0xff]  }
  0xed   : > { %v1136_v7 = vsel %vm628_vm1, %v1131_v60, %v1135_v61 }
  0xee   : > { %13940 = vmatmul.mubr.msk.bf16.gmra.mrb[104].mxu1 %vm1177_vm2, %v1064_v55  ;;  %v6889_v55 = vrot.slane %v16696_v52, 2 }
  0xef   : > { %13943 = vmatprep.mubr.msk.bf16.mxu1 %vm1177_vm2, %v1072_v58  ;;  %v1123_v58 = vor.u32 %v1121_v45, %v1119_v40  ;;  %v1167_v40 = vrot.slane %v1165_v31, 1  ;;  %v1173_v45 = vshll.u32 %v16289_v37, 16  ;;  %v17557_v31 = vld [vmem:[%s17020_s22 + $0x28] sm:$0xff]  }
  0xf0   : > { %v6890_v0 = vsel %vm6835_vm4, %v6887_v47, %v6889_v55  ;;  %v6892_v18 = vsel %vm6835_vm4, %v6889_v55, %v6891_v6  ;;  %v6899_v47 = vrot.slane %v16701_v46, 2  ;;  %v16292_v6 = vld [vmem:[%s17020_s22 + $0x138] sm:$0xff]   ;;  %v16298_v37 = vld [vmem:[%s17020_s22 + $0x168] sm:$0xff]  }
  0xf1   : > { %14562 = vmatmul.mubr.msk.bf16.gmra.mrb[36].mxu0 %vm1177_vm2, %v6876_v4  ;;  %v1128_v2 = vsel %vm628_vm1, %v1123_v58, %v1127_v56  ;;  %v1137_v4 = vshrl.u32 %v17432_v41, 16  ;;  %v1175_v55 = vrot.slane %v1173_v45, 1  ;;  %v16300_v46 = vld [vmem:[%s17020_s22 + $0x178] sm:$0xff]  }
  0xf2   : > { %14565 = vmatprep.mubr.msk.bf16.mxu0 %vm1177_vm2, %v6878_v8  ;;  %v1145_v8 = vshrl.u32 %v17447_v57, 16  ;;  %v6902_v58 = vsel %vm6835_vm4, %v6899_v47, %v6901_v51 }
  0xf3   : > { %v1139_v17 = vor.u32 %v1137_v4, %v1135_v61  ;;  %v16703_v61 = vld [vmem:[%s17020_s22 + $0x120] sm:$0xff]   ;;  %v16291_v4 = vld [vmem:[%s17020_s22 + $0x130] sm:$0xff]  }
  0xf6   : > { %13944 = vmatmul.mubr.msk.bf16.gmra.mrb[108].mxu1 %vm1177_vm2, %v1080_v11  ;;  %v1149_v11 = vshll.u32 %v17452_v62, 16 }
  0xf7   : > { %13947 = vmatprep.mubr.msk.bf16.mxu1 %vm1177_vm2, %v1088_v15  ;;  %v1143_v15 = vrot.slane %v1141_v1, 1 }
  0xf8   : > { %v1151_v22 = vrot.slane %v1149_v11, 1  ;;  %v6909_v11 = vrot.slane %v16292_v6, 2 }
  0xf9   : > { %14566 = vmatmul.mubr.msk.bf16.gmra.mrb[40].mxu0 %vm1177_vm2, %v6880_v25  ;;  %v1147_v19 = vor.u32 %v1145_v8, %v1143_v15  ;;  %v1157_v25 = vshll.u32 %v17467_v16, 16  ;;  %v1144_v26 = vsel %vm628_vm1, %v1139_v17, %v1143_v15  ;;  %v6907_v8 = vrot.slane %v16291_v4, 2  ;;  %v16293_v15 = vld [vmem:[%s17020_s22 + $0x140] sm:$0xff]   ;;  %v16294_v17 = vld [vmem:[%s17020_s22 + $0x148] sm:$0xff]  }
  0xfa   : > { %14569 = vmatprep.mubr.msk.bf16.mxu0 %vm1177_vm2, %v6882_v12  ;;  %v6895_v12 = vrot.slane %v16699_v54, 2  ;;  %v1155_v35 = vor.u32 %v1153_v27, %v1151_v22  ;;  %v16295_v27 = vld [vmem:[%s17020_s22 + $0x150] sm:$0xff]  }
  0xfb   : > { %v1159_v34 = vrot.slane %v1157_v25, 1  ;;  %v17546_v25 = vld [vmem:[%s17020_s22 + $0x20] sm:$0xff]  }
  0xfd   : > { %v1163_v39 = vor.u32 %v1161_v30, %v1159_v34  ;;  %v1160_v43 = vsel %vm628_vm1, %v1155_v35, %v1159_v34  ;;  %v16297_v34 = vld [vmem:[%s17020_s22 + $0x160] sm:$0xff]  }
  0xfe   : > { %13948 = vmatmul.mubr.msk.bf16.gmra.mrb[112].mxu1 %vm1177_vm2, %v1096_v29  ;;  %v1152_v29 = vsel %vm628_vm1, %v1147_v19, %v1151_v22  ;;  %v17536_v19 = vld [vmem:[%s19771_s1 + $0x1c] sm:$0xf]  ;;  %v6913_v22 = vrot.slane %v16294_v17, 2  ;;  %v16306_v17 = vld [vmem:[%s17020_s22 + $0x1a8] sm:$0xff]  }
  0xff   : > { %13951 = vmatprep.mubr.msk.bf16.mxu1 %vm1177_vm2, %v1104_v32  ;;  %v16700_v32 = vld [vmem:[%s17020_s22 + $0x108] sm:$0xff]   ;;  %16173 = vmatprep.subr.msk.bf16.mxu0 %vm1382_vm0, %v17536_v19 }
 0x100   : > { %v6897_v33 = vrot.slane %v16700_v32, 2  ;;  %v17562_v32 = vld [vmem:[%s17020_s22 + $0x30] sm:$0xff]  }
 0x101   : > { %14570 = vmatmul.mubr.msk.bf16.gmra.mrb[44].mxu0 %vm1177_vm2, %v6884_v38  ;;  %v6896_v38 = vsel %vm6835_vm4, %v6893_v14, %v6895_v12 }
 0x102   : > { %14573 = vmatprep.mubr.msk.bf16.mxu0 %vm1177_vm2, %v6886_v42  ;;  %v6898_v42 = vsel %vm6835_vm4, %v6895_v12, %v6897_v33  ;;  %v6900_v56 = vsel %vm6835_vm4, %v6897_v33, %v6899_v47  ;;  %v16296_v12 = vld [vmem:[%s17020_s22 + $0x158] sm:$0xff]  }
 0x103   : > { %v6917_v30 = vrot.slane %v16296_v12, 2  ;;  %v16307_v12 = vld [vmem:[%s17020_s22 + $0x1b0] sm:$0xff]  }
 0x106   : > { %13952 = vmatmul.mubr.msk.bf16.gmra.mrb[116].mxu1 %vm1177_vm2, %v1112_v44  ;;  %v1169_v44 = vshrl.u32 %v17472_v23, 16 }
 0x107   : > { %13955 = vmatprep.mubr.msk.bf16.mxu1 %vm1177_vm2, %v1120_v49  ;;  %v1168_v49 = vsel %vm628_vm1, %v1163_v39, %v1167_v40  ;;  %v6921_v39 = vrot.slane %v16298_v37, 2  ;;  %v17658_v37 = vld [vmem:[%s17020_s22 + $0x90] sm:$0xff]  }
 0x108   : > { %v1171_v52 = vor.u32 %v1169_v44, %v1167_v40  ;;  %v17573_v40 = vld [vmem:[%s17020_s22 + $0x38] sm:$0xff]   ;;  %v16299_v44 = vld [vmem:[%s17020_s22 + $0x170] sm:$0xff]  }
 0x109   : > { %14574 = vmatmul.mubr.msk.bf16.gmra.mrb[48].mxu0 %vm1177_vm2, %v6888_v59  ;;  %v16290_v59 = vld [vmem:[%s17020_s22 + $0x128] sm:$0xff]   ;;  %v6923_v47 = vrot.slane %v16299_v44, 2 }
 0x10a   : > { %14577 = vmatprep.mubr.msk.bf16.mxu0 %vm1177_vm2, %v6890_v0  ;;  %v1176_v60 = vsel %vm628_vm1, %v1171_v52, %v1175_v55  ;;  %v6903_v0 = vrot.slane %v16703_v61, 2  ;;  %v6905_v1 = vrot.slane %v16290_v59, 2  ;;  %v16301_v55 = vld [vmem:[%s17020_s22 + $0x180] sm:$0xff]   ;;  %v17605_v61 = vld [vmem:[%s17020_s22 + $0x58] sm:$0xff]   ;;  %v16310_v44 = vld [vmem:[%s17020_s22 + $0x1c8] sm:$0xff]  }
 0x10b   : > { %v6924_v52 = vsel %vm6835_vm4, %v6921_v39, %v6923_v47  ;;  %v6927_v59 = vrot.slane %v16301_v55, 2  ;;  %v16311_v55 = vld [vmem:[%s17020_s22 + $0x1d0] sm:$0xff]  }
 0x10c   : > { %v6906_v5 = vsel %vm6835_vm4, %v6903_v0, %v6905_v1  ;;  %v6908_v14 = vsel %vm6835_vm4, %v6905_v1, %v6907_v8 }
 0x10e   : > { %13956 = vmatmul.mubr.msk.bf16.gmra.mrb[120].mxu1 %vm1177_vm2, %v1128_v2  ;;  %v6904_v2 = vsel %vm6835_vm4, %v6901_v51, %v6903_v0  ;;  %v17594_v51 = vld [vmem:[%s17020_s22 + $0x50] sm:$0xff]   ;;  %v17610_v0 = vld [vmem:[%s17020_s22 + $0x60] sm:$0xff]  }
 0x10f   : > { %13959 = vmatprep.mubr.msk.bf16.mxu1 %vm1177_vm2, %v1136_v7  ;;  %v3028_v7 = vsel %vm1382_vm0, %v17283_v28, 0  ;;  %v6910_v28 = vsel %vm6835_vm4, %v6907_v8, %v6909_v11  ;;  %v17621_v8 = vld [vmem:[%s17020_s22 + $0x68] sm:$0xff]  }
 0x111   : > { %14578 = vmatmul.mubr.msk.bf16.gmra.mrb[52].mxu0 %vm1177_vm2, %v6892_v18  ;;  %v6911_v18 = vrot.slane %v16293_v15, 2  ;;  %v16305_v15 = vld [vmem:[%s17020_s22 + $0x1a0] sm:$0xff]  }
 0x112   : > { %14581 = vmatprep.mubr.msk.bf16.mxu0 %vm1177_vm2, %v6894_v24  ;;  %v17541_v24 = vld [vmem:[%s17020_s22 + $0x18] sm:$0xff]  }
 0x113   : > { %v6914_v54 = vsel %vm6835_vm4, %v6911_v18, %v6913_v22 }
 0x116   : > { %13960 = vmatmul.mubr.msk.bf16.gmra.mrb[124].mxu1 %vm1177_vm2, %v1144_v26  ;;  %v6912_v26 = vsel %vm6835_vm4, %v6909_v11, %v6911_v18  ;;  %v17626_v11 = vld [vmem:[%s17020_s22 + $0x70] sm:$0xff]   ;;  %v6935_v18 = vrot.slane %v16305_v15, 2 }
 0x117   : > { %13963 = vmatprep.mubr.msk.bf16.mxu1 %vm1177_vm2, %v1152_v29  ;;  %v6915_v29 = vrot.slane %v16295_v27, 2  ;;  %v17642_v27 = vld [vmem:[%s17020_s22 + $0x80] sm:$0xff]  }
 0x119   : > { %14582 = vmatmul.mubr.msk.bf16.gmra.mrb[56].mxu0 %vm1177_vm2, %v6896_v38  ;;  %v6916_v33 = vsel %vm6835_vm4, %v6913_v22, %v6915_v29  ;;  %v6918_v35 = vsel %vm6835_vm4, %v6915_v29, %v6917_v30  ;;  %v6919_v38 = vrot.slane %v16297_v34, 2  ;;  %v6937_v22 = vrot.slane %v16306_v17, 2  ;;  %v17706_v17 = vld [vmem:[%s17020_s22 + $0xc0] sm:$0xff]  }
 0x11a   : > { %14585 = vmatprep.mubr.msk.bf16.mxu0 %vm1177_vm2, %v6898_v42  ;;  %v17578_v42 = vld [vmem:[%s17020_s22 + $0x40] sm:$0xff]  }
 0x11b   : > { %v6922_v45 = vsel %vm6835_vm4, %v6919_v38, %v6921_v39  ;;  %v6938_v29 = vsel %vm6835_vm4, %v6935_v18, %v6937_v22  ;;  %v16309_v39 = vld [vmem:[%s17020_s22 + $0x1c0] sm:$0xff]  }
 0x11e   : > { %13964 = vmatmul.mubr.msk.bf16.gmra.mrb[128].mxu1 %vm1177_vm2, %v1160_v43  ;;  %v6920_v43 = vsel %vm6835_vm4, %v6917_v30, %v6919_v38  ;;  %v16308_v30 = vld [vmem:[%s17020_s22 + $0x1b8] sm:$0xff]  }
 0x11f   : > { %13967 = vmatprep.mubr.msk.bf16.mxu1 %vm1177_vm2, %v1168_v49  ;;  %v6925_v49 = vrot.slane %v16300_v46, 2  ;;  %v6941_v34 = vrot.slane %v16308_v30, 2  ;;  %v6945_v46 = vrot.slane %v16310_v44, 2  ;;  %v16318_v44 = vld [vmem:[%s17020_s22 + $0x208] sm:$0xff]  }
 0x121   : > { %14586 = vmatmul.mubr.msk.bf16.gmra.mrb[60].mxu0 %vm1177_vm2, %v6900_v56  ;;  %v6926_v56 = vsel %vm6835_vm4, %v6923_v47, %v6925_v49  ;;  %v6928_v1 = vsel %vm6835_vm4, %v6925_v49, %v6927_v59  ;;  %v17669_v47 = vld [vmem:[%s17020_s22 + $0x98] sm:$0xff]   ;;  %v17674_v49 = vld [vmem:[%s17020_s22 + $0xa0] sm:$0xff]  }
 0x122   : > { %14589 = vmatprep.mubr.msk.bf16.mxu0 %vm1177_vm2, %v6902_v58  ;;  %v16302_v58 = vld [vmem:[%s17020_s22 + $0x188] sm:$0xff]  }
 0x126   : > { %13968 = vmatmul.mubr.msk.bf16.gmra.mrb[132].mxu1 %vm1177_vm2, %v1176_v60  ;;  %v6929_v60 = vrot.slane %v16302_v58, 2  ;;  %v16312_v58 = vld [vmem:[%s17020_s22 + $0x1d8] sm:$0xff]  }
 0x127   : > { %13973 = vmatprep.mubr.msk.bf16.mxu1 %vm1177_vm2, %v17025_v9  ;;  %v17523_v9 = vld [vmem:[%s17020_s22 + $0x10] sm:$0xff]  }
 0x128   : > { %v6930_v4 = vsel %vm6835_vm4, %v6927_v59, %v6929_v60  ;;  %v6947_v59 = vrot.slane %v16311_v55, 2  ;;  %v17738_v55 = vld [vmem:[%s17020_s22 + $0xe0] sm:$0xff]  }
 0x129   : > { %14590 = vmatmul.mubr.msk.bf16.gmra.mrb[64].mxu0 %vm1177_vm2, %v6904_v2  ;;  %v16303_v2 = vld [vmem:[%s17020_s22 + $0x190] sm:$0xff]  }
 0x12a   : > { %14593 = vmatprep.mubr.msk.bf16.mxu0 %vm1177_vm2, %v6906_v5  ;;  %v16304_v5 = vld [vmem:[%s17020_s22 + $0x198] sm:$0xff]   ;;  %v6931_v6 = vrot.slane %v16303_v2, 2  ;;  %v17690_v2 = vld [vmem:[%s17020_s22 + $0xb0] sm:$0xff]  }
 0x12e   : > { %13974 = vmatmul.mubr.msk.bf16.vlgmr.msra.gmra.mrb[0].mxu1 %vm1177_vm2, %v17518_v13 }
 0x12f   : > { %14110 = vmatpush3.bf16.msra.mxu1 %v3028_v7  ;;  %13977 = vmatprep.mubr.msk.bf16.mxu1 %vm1177_vm2, %v17523_v9  ;;  %v6933_v7 = vrot.slane %v16304_v5, 2  ;;  %v16313_v5 = vld [vmem:[%s17020_s22 + $0x1e0] sm:$0xff]  }
 0x131   : > { %14594 = vmatmul.mubr.msk.bf16.gmra.mrb[68].mxu0 %vm1177_vm2, %v6908_v14  ;;  %v6932_v14 = vsel %vm6835_vm4, %v6929_v60, %v6931_v6  ;;  %v6949_v60 = vrot.slane %v16312_v58, 2  ;;  %v16319_v58 = vld [vmem:[%s17020_s22 + $0x210] sm:$0xff]  }
 0x132   : > { %14597 = vmatprep.mubr.msk.bf16.mxu0 %vm1177_vm2, %v6910_v28  ;;  %v6934_v28 = vsel %vm6835_vm4, %v6931_v6, %v6933_v7 }
 0x133   : > { %v6950_v6 = vsel %vm6835_vm4, %v6947_v59, %v6949_v60 }
 0x136   : > { %13978 = vmatmul.mubr.msk.bf16.gmra.mrb[4].mxu1 %vm1177_vm2, %v17541_v24 }
 0x137   : > { %13981 = vmatprep.mubr.msk.bf16.mxu1 %vm1177_vm2, %v17546_v25 }
 0x139   : > { %14598 = vmatmul.mubr.msk.bf16.gmra.mrb[72].mxu0 %vm1177_vm2, %v6912_v26  ;;  %v17637_v26 = vld [vmem:[%s17020_s22 + $0x78] sm:$0xff]  }
 0x13a   : > { %14601 = vmatprep.mubr.msk.bf16.mxu0 %vm1177_vm2, %v6914_v54  ;;  %v6936_v54 = vsel %vm6835_vm4, %v6933_v7, %v6935_v18  ;;  %v16314_v7 = vld [vmem:[%s17020_s22 + $0x1e8] sm:$0xff]  }
 0x13b   : > { %v6953_v15 = vrot.slane %v16314_v7, 2  ;;  %v17754_v7 = vld [vmem:[%s17020_s22 + $0xf0] sm:$0xff]  }
 0x13e   : > { %13982 = vmatmul.mubr.msk.bf16.gmra.mrb[8].mxu1 %vm1177_vm2, %v17557_v31 }
 0x13f   : > { %13985 = vmatprep.mubr.msk.bf16.mxu1 %vm1177_vm2, %v17562_v32 }
 0x141   : > { %14602 = vmatmul.mubr.msk.bf16.gmra.mrb[76].mxu0 %vm1177_vm2, %v6916_v33  ;;  %v6939_v33 = vrot.slane %v16307_v12, 2  ;;  %v16316_v12 = vld [vmem:[%s17020_s22 + $0x1f8] sm:$0xff]  }
 0x142   : > { %14605 = vmatprep.mubr.msk.bf16.mxu0 %vm1177_vm2, %v6918_v35  ;;  %v17653_v35 = vld [vmem:[%s17020_s22 + $0x88] sm:$0xff]   ;;  %v6957_v30 = vrot.slane %v16316_v12, 2 }
 0x143   : > { %v6940_v38 = vsel %vm6835_vm4, %v6937_v22, %v6939_v33  ;;  %v16315_v22 = vld [vmem:[%s17020_s22 + $0x1f0] sm:$0xff]  }
 0x146   : > { %13986 = vmatmul.mubr.msk.bf16.gmra.mrb[12].mxu1 %vm1177_vm2, %v17573_v40 }
 0x147   : > { %13989 = vmatprep.mubr.msk.bf16.mxu1 %vm1177_vm2, %v17578_v42 }
 0x149   : > { %14606 = vmatmul.mubr.msk.bf16.gmra.mrb[80].mxu0 %vm1177_vm2, %v6920_v43  ;;  %v6942_v43 = vsel %vm6835_vm4, %v6939_v33, %v6941_v34  ;;  %v17717_v33 = vld [vmem:[%s17020_s22 + $0xc8] sm:$0xff]  }
 0x14a   : > { %14609 = vmatprep.mubr.msk.bf16.mxu0 %vm1177_vm2, %v6922_v45  ;;  %v6943_v45 = vrot.slane %v16309_v39, 2  ;;  %v16317_v39 = vld [vmem:[%s17020_s22 + $0x200] sm:$0xff]  }
 0x14e   : > { %13990 = vmatmul.mubr.msk.bf16.gmra.mrb[16].mxu1 %vm1177_vm2, %v17589_v50 }
 0x14f   : > { %13993 = vmatprep.mubr.msk.bf16.mxu1 %vm1177_vm2, %v17594_v51 }
 0x151   : > { %14610 = vmatmul.mubr.msk.bf16.gmra.mrb[84].mxu0 %vm1177_vm2, %v6924_v52  ;;  %v6944_v52 = vsel %vm6835_vm4, %v6941_v34, %v6943_v45  ;;  %v17722_v34 = vld [vmem:[%s17020_s22 + $0xd0] sm:$0xff]  }
 0x152   : > { %14613 = vmatprep.mubr.msk.bf16.mxu0 %vm1177_vm2, %v6926_v56  ;;  %v6946_v56 = vsel %vm6835_vm4, %v6943_v45, %v6945_v46  ;;  %v6959_v45 = vrot.slane %v16317_v39, 2  ;;  %v17772_v39 = vld [vmem:[%s17020_s22 + $0x100] sm:$0xff]  }
 0x156   : > { %13994 = vmatmul.mubr.msk.bf16.gmra.mrb[20].mxu1 %vm1177_vm2, %v17605_v61 }
 0x157   : > { %13997 = vmatprep.mubr.msk.bf16.mxu1 %vm1177_vm2, %v17610_v0 }
 0x159   : > { %14614 = vmatmul.mubr.msk.bf16.gmra.mrb[88].mxu0 %vm1177_vm2, %v6928_v1  ;;  %v17685_v1 = vld [vmem:[%s17020_s22 + $0xa8] sm:$0xff]  }
 0x15a   : > { %14617 = vmatprep.mubr.msk.bf16.mxu0 %vm1177_vm2, %v6930_v4  ;;  %v6948_v4 = vsel %vm6835_vm4, %v6945_v46, %v6947_v59  ;;  %v6961_v46 = vrot.slane %v16318_v44, 2  ;;  %v16323_v44 = vld [vmem:[%s17020_s22 + $0x230] ss:$0 sps:$4 sm:$0x33]  }
 0x15c   : > { %v6962_v59 = vsel %vm6835_vm4, %v6959_v45, %v6961_v46 }
 0x15e   : > { %13998 = vmatmul.mubr.msk.bf16.gmra.mrb[24].mxu1 %vm1177_vm2, %v17621_v8 }
 0x15f   : > { %14001 = vmatprep.mubr.msk.bf16.mxu1 %vm1177_vm2, %v17626_v11 }
 0x161   : > { %14618 = vmatmul.mubr.msk.bf16.gmra.mrb[92].mxu0 %vm1177_vm2, %v6932_v14  ;;  %v6951_v14 = vrot.slane %v16313_v5, 2 }
 0x162   : > { %14621 = vmatprep.mubr.msk.bf16.mxu0 %vm1177_vm2, %v6934_v28  ;;  %v17701_v28 = vld [vmem:[%s17020_s22 + $0xb8] sm:$0xff]  }
 0x163   : > { %v6952_v18 = vsel %vm6835_vm4, %v6949_v60, %v6951_v14  ;;  %v16320_v60 = vld [vmem:[%s17020_s22 + $0x218] sm:$0xff]  }
 0x164   : > { %v6965_v5 = vrot.slane %v16320_v60, 2 }
 0x166   : > { %14002 = vmatmul.mubr.msk.bf16.gmra.mrb[28].mxu1 %vm1177_vm2, %v17637_v26 }
 0x167   : > { %14005 = vmatprep.mubr.msk.bf16.mxu1 %vm1177_vm2, %v17642_v27 }
 0x169   : > { %14622 = vmatmul.mubr.msk.bf16.gmra.mrb[96].mxu0 %vm1177_vm2, %v6936_v54  ;;  %v6954_v54 = vsel %vm6835_vm4, %v6951_v14, %v6953_v15 }
 0x16a   : > { %14625 = vmatprep.mubr.msk.bf16.mxu0 %vm1177_vm2, %v6938_v29  ;;  %v6955_v29 = vrot.slane %v16315_v22, 2  ;;  %v16322_v22 = vld [vmem:[%s17020_s22 + $0x228] sm:$0xff]  }
 0x16b   : > { %v6969_v12 = vrot.slane %v16322_v22, 2  ;;  %v17804_v22 = vld [vmem:[%s17020_s22 + $0x38] sm:$0xff]  }
 0x16e   : > { %14006 = vmatmul.mubr.msk.bf16.gmra.mrb[32].mxu1 %vm1177_vm2, %v17653_v35 }
 0x16f   : > { %14009 = vmatprep.mubr.msk.bf16.mxu1 %vm1177_vm2, %v17658_v37 }
 0x171   : > { %14626 = vmatmul.mubr.msk.bf16.gmra.mrb[100].mxu0 %vm1177_vm2, %v6940_v38  ;;  %v6956_v38 = vsel %vm6835_vm4, %v6953_v15, %v6955_v29  ;;  %v16321_v15 = vld [vmem:[%s17020_s22 + $0x220] sm:$0xff]  }
 0x172   : > { %14629 = vmatprep.mubr.msk.bf16.mxu0 %vm1177_vm2, %v6942_v43  ;;  %v6958_v43 = vsel %vm6835_vm4, %v6955_v29, %v6957_v30  ;;  %v17765_v29 = vld [vmem:[%s17020_s22 + $0xf8] sm:$0xff]  }
 0x176   : > { %14010 = vmatmul.mubr.msk.bf16.gmra.mrb[36].mxu1 %vm1177_vm2, %v17669_v47 }
 0x177   : > { %14013 = vmatprep.mubr.msk.bf16.mxu1 %vm1177_vm2, %v17674_v49 }
 0x179   : > { %14630 = vmatmul.mubr.msk.bf16.gmra.mrb[104].mxu0 %vm1177_vm2, %v6944_v52  ;;  %v17733_v52 = vld [vmem:[%s17020_s22 + $0xd8] sm:$0xff]  }
 0x17a   : > { %14633 = vmatprep.mubr.msk.bf16.mxu0 %vm1177_vm2, %v6946_v56  ;;  %v6960_v56 = vsel %vm6835_vm4, %v6957_v30, %v6959_v45  ;;  %v7893_v30 = vld [vmem:[%s17020_s22 + $0x20] sm:$0xc] }
 0x17e   : > { %14014 = vmatmul.mubr.msk.bf16.gmra.mrb[40].mxu1 %vm1177_vm2, %v17685_v1 }
 0x17f   : > { %14017 = vmatprep.mubr.msk.bf16.mxu1 %vm1177_vm2, %v17690_v2 }
 0x181   : > { %14634 = vmatmul.mubr.msk.bf16.gmra.mrb[108].mxu0 %vm1177_vm2, %v6948_v4  ;;  %v6963_v4 = vrot.slane %v16319_v58, 2  ;;  %v6971_v58 = vrot.slane %v16323_v44, 2  ;;  %v17822_v44 = vld [vmem:[%s17020_s22 + $0x40] sm:$0xff]  }
 0x182   : > { %14637 = vmatprep.mubr.msk.bf16.mxu0 %vm1177_vm2, %v6950_v6  ;;  %v17749_v6 = vld [vmem:[%s17020_s22 + $0xe8] sm:$0xff]   ;;  %19832 = vst [vmem:[#allocation5_spill] sm:$0xff] %v17822_v44 }
 0x183   : > { %v6964_v14 = vsel %vm6835_vm4, %v6961_v46, %v6963_v4 }
 0x186   : > { %14018 = vmatmul.mubr.msk.bf16.gmra.mrb[44].mxu1 %vm1177_vm2, %v17701_v28 }
 0x187   : > { %14021 = vmatprep.mubr.msk.bf16.mxu1 %vm1177_vm2, %v17706_v17 }
 0x189   : > { %14638 = vmatmul.mubr.msk.bf16.gmra.mrb[112].mxu0 %vm1177_vm2, %v6952_v18  ;;  %v6966_v18 = vsel %vm6835_vm4, %v6963_v4, %v6965_v5  ;;  %v17789_v4 = vld [vmem:[%s17020_s22 + $0x108] sm:$0xff]  }
 0x18a   : > { %14641 = vmatprep.mubr.msk.bf16.mxu0 %vm1177_vm2, %v6954_v54  ;;  %v6967_v54 = vrot.slane %v16321_v15, 2  ;;  %v17800_v15 = vld [vmem:[%s17020_s22 + $0x30] sm:$0xff]  }
 0x18c   : > { %v6970_v45 = vsel %vm6835_vm4, %v6967_v54, %v6969_v12 }
 0x18e   : > { %14022 = vmatmul.mubr.msk.bf16.gmra.mrb[48].mxu1 %vm1177_vm2, %v17717_v33 }
 0x18f   : > { %14025 = vmatprep.mubr.msk.bf16.mxu1 %vm1177_vm2, %v17722_v34 }
 0x191   : > { %14642 = vmatmul.mubr.msk.bf16.gmra.mrb[116].mxu0 %vm1177_vm2, %v6956_v38  ;;  %v7894_v38 = vld [vmem:[%s17020_s22 + $0x24] sm:$0xf] }
 0x192   : > { %14645 = vmatprep.mubr.msk.bf16.mxu0 %vm1177_vm2, %v6958_v43  ;;  %v6968_v43 = vsel %vm6835_vm4, %v6965_v5, %v6967_v54  ;;  %v17779_v46 = vcombine.low %v7893_v30, %v7894_v38  ;;  %v17794_v5 = vld [vmem:[%s17020_s22 + $0x110] sm:$0xff]   ;;  %v8378_v54 = vrot.slane %v17800_v15, 2  ;;  %v8380_v30 = vrot.slane %v17804_v22, 2  ;;  %v17811_v38 = vld [vmem:[%s17020_s22 + $0x118] sm:$0xff]  }
 0x196   : > { %14026 = vmatmul.mubr.msk.bf16.gmra.mrb[52].mxu1 %vm1177_vm2, %v17733_v52 }
 0x197   : > { %14029 = vmatprep.mubr.msk.bf16.mxu1 %vm1177_vm2, %v17738_v55 }
 0x199   : > { %14646 = vmatmul.mubr.msk.bf16.gmra.mrb[120].mxu0 %vm1177_vm2, %v6960_v56  ;;  %v17782_v56 = vld [vmem:[%s17020_s22 + $0x28] sm:$0xff]  }
 0x19a   : > { %14649 = vmatprep.mubr.msk.bf16.mxu0 %vm1177_vm2, %v6962_v59  ;;  %v8375_v59 = vrot.slane %v17779_v46, 2  ;;  %v8376_v60 = vrot.slane %v17782_v56, 2 }
 0x19e   : > { %14030 = vmatmul.mubr.msk.bf16.gmra.mrb[56].mxu1 %vm1177_vm2, %v17749_v6 }
 0x19f   : > { %14033 = vmatprep.mubr.msk.bf16.mxu1 %vm1177_vm2, %v17754_v7 }
 0x1a1   : > { %14650 = vmatmul.mubr.msk.bf16.gmra.mrb[124].mxu0 %vm1177_vm2, %v6964_v14  ;;  %v6972_v14 = vsel %vm6835_vm4, %v6969_v12, %v6971_v58  ;;  %v17816_v12 = vld [vmem:[%s17020_s22 + $0x120] sm:$0xff]   ;;  %v8381_v58 = vsel %vm6835_vm4, %v8378_v54, %v8380_v30 }
 0x1a2   : > { %14653 = vmatprep.mubr.msk.bf16.mxu0 %vm1177_vm2, %v6966_v18  ;;  %v8377_v18 = vsel %vm6835_vm4, %v8375_v59, %v8376_v60  ;;  %v17828_v59 = vld [vmem:[%s17020_s22 + $0x48] sm:$0xff]  }
 0x1a3   : > { %19833 = vst [vmem:[#allocation6_spill] sm:$0xff] %v17828_v59 }
 0x1a6   : > { %14034 = vmatmul.mubr.msk.bf16.gmra.mrb[60].mxu1 %vm1177_vm2, %v17765_v29 }
 0x1a7   : > { %14037 = vmatprep.mubr.msk.bf16.mxu1 %vm1177_vm2, %v17772_v39 }
 0x1a9   : > { %14654 = vmatmul.mubr.msk.bf16.gmra.mrb[128].mxu0 %vm1177_vm2, %v6968_v43  ;;  %v8379_v43 = vsel %vm6835_vm4, %v8376_v60, %v8378_v54  ;;  %v8382_v60 = vrot.slane %v17822_v44, 2  ;;  %v17847_v54 = vld [vmem:[%s17020_s22 + $0x130] sm:$0xff]   ;;  %v16347_v44 = vld [vmem:[%s17020_s22 + $0xd8] sm:$0xff]  }
 0x1aa   : > { %14657 = vmatprep.mubr.msk.bf16.mxu0 %vm1177_vm2, %v6970_v45  ;;  %v10264_v45 = vsel %vm1382_vm0, %v17536_v19, 0  ;;  %v8384_v19 = vrot.slane %v17828_v59, 2  ;;  %19834 = vst [vmem:[#allocation7_spill] sm:$0xff] %v17847_v54  ;;  %v18012_v59 = vld [vmem:[%s17020_s22 + $0x1a8] sm:$0xff]  }
 0x1ab   : > { %19863 = vst [vmem:[#allocation36_spill] sm:$0xff] %v18012_v59 }
 0x1ae   : > { %14038 = vmatmul.mubr.msk.bf16.gmra.mrb[64].mxu1 %vm1177_vm2, %v17789_v4 }
 0x1af   : > { %14041 = vmatprep.mubr.msk.bf16.mxu1 %vm1177_vm2, %v17794_v5 }
 0x1b1   : > { %14658 = vmatmul.mubr.msk.bf16.gmra.mrb[132].mxu0 %vm1177_vm2, %v6972_v14  ;;  %v17834_v14 = vld [vmem:[%s19771_s1 + $0xc] sm:$0xf] }
 0x1b2   : > { %14663 = vmatprep.mubr.msk.bf16.mxu0 %vm1177_vm2, %v8377_v18  ;;  %16168 = vmatprep.subr.msk.bf16.mxu1 %vm1382_vm0, %v17834_v14  ;;  %v17842_v18 = vld [vmem:[%s17020_s22 + $0x128] sm:$0xff]  }
 0x1b6   : > { %14042 = vmatmul.mubr.msk.bf16.gmra.mrb[68].mxu1 %vm1177_vm2, %v17811_v38 }
 0x1b7   : > { %14045 = vmatprep.mubr.msk.bf16.mxu1 %vm1177_vm2, %v17816_v12 }
 0x1b9   : > { %14664 = vmatmul.mubr.msk.bf16.vlgmr.msra.gmra.mrb[0].mxu0 %vm1177_vm2, %v8379_v43  ;;  %v8383_v43 = vsel %vm6835_vm4, %v8380_v30, %v8382_v60  ;;  %v17869_v30 = vld [vmem:[%s17020_s22 + $0x140] sm:$0xff]  }
 0x1ba   : > { %14800 = vmatpush3.bf16.msra.mxu0 %v10264_v45  ;;  %14667 = vmatprep.mubr.msk.bf16.mxu0 %vm1177_vm2, %v8381_v58  ;;  %v17853_v45 = vld [vmem:[%s17020_s22 + $0x50] sm:$0xff]   ;;  %v8385_v58 = vsel %vm6835_vm4, %v8382_v60, %v8384_v19  ;;  %19838 = vst [vmem:[#allocation11_spill] sm:$0xff] %v17869_v30 }
 0x1bb   : > { %19835 = vst [vmem:[#allocation8_spill] sm:$0xff] %v17853_v45  ;;  %v8386_v3 = vrot.slane %v17853_v45, 2  ;;  %v17879_v45 = vld [vmem:[%s17020_s22 + $0x68] sm:$0xff]  }
 0x1bc   : > { %19840 = vst [vmem:[#allocation13_spill] sm:$0xff] %v17879_v45 }
 0x1bd   : > { %v8387_v60 = vsel %vm6835_vm4, %v8384_v19, %v8386_v3  ;;  %v17891_v19 = vld [vmem:[%s17020_s22 + $0x150] sm:$0xff]  }
 0x1be   : > { %14046 = vmatmul.mubr.msk.bf16.gmra.mrb[72].mxu1 %vm1177_vm2, %v17842_v18  ;;  %19842 = vst [vmem:[#allocation15_spill] sm:$0xff] %v17891_v19 }
 0x1bf   : > { %14049 = vmatprep.mubr.msk.bf16.mxu1 %vm1177_vm2, %v17847_v54  ;;  %v17864_v54 = vld [vmem:[%s17020_s22 + $0x138] sm:$0xff]  }
 0x1c0   : > { %19837 = vst [vmem:[#allocation10_spill] sm:$0xff] %v17864_v54 }
 0x1c1   : > { %14668 = vmatmul.mubr.msk.bf16.gmra.mrb[4].mxu0 %vm1177_vm2, %v8383_v43  ;;  %v17875_v43 = vld [vmem:[%s17020_s22 + $0x60] sm:$0xff]  }
 0x1c2   : > { %14671 = vmatprep.mubr.msk.bf16.mxu0 %vm1177_vm2, %v8385_v58  ;;  %19839 = vst [vmem:[#allocation12_spill] sm:$0xff] %v17875_v43  ;;  %v8389_v58 = vsel %vm6835_vm4, %v8386_v3, %v8388_v20  ;;  %v8390_v48 = vrot.slane %v17875_v43, 2  ;;  %v17901_v43 = vld [vmem:[%s17020_s22 + $0x78] sm:$0xff]  }
 0x1c3   : > { %19844 = vst [vmem:[#allocation17_spill] sm:$0xff] %v17901_v43 }
 0x1c4   : > { %v8391_v3 = vsel %vm6835_vm4, %v8388_v20, %v8390_v48  ;;  %v17913_v20 = vld [vmem:[%s17020_s22 + $0x160] sm:$0xff]  }
 0x1c5   : > { %19846 = vst [vmem:[#allocation19_spill] sm:$0xff] %v17913_v20 }
 0x1c6   : > { %14050 = vmatmul.mubr.msk.bf16.gmra.mrb[76].mxu1 %vm1177_vm2, %v17864_v54  ;;  %v8392_v54 = vrot.slane %v17879_v45, 2 }
 0x1c7   : > { %14053 = vmatprep.mubr.msk.bf16.mxu1 %vm1177_vm2, %v17869_v30  ;;  %v17886_v30 = vld [vmem:[%s17020_s22 + $0x148] sm:$0xff]  }
 0x1c8   : > { %19841 = vst [vmem:[#allocation14_spill] sm:$0xff] %v17886_v30 }
 0x1c9   : > { %14672 = vmatmul.mubr.msk.bf16.gmra.mrb[8].mxu0 %vm1177_vm2, %v8387_v60  ;;  %v17897_v60 = vld [vmem:[%s17020_s22 + $0x70] sm:$0xff]  }
 0x1ca   : > { %14675 = vmatprep.mubr.msk.bf16.mxu0 %vm1177_vm2, %v8389_v58  ;;  %19843 = vst [vmem:[#allocation16_spill] sm:$0xff] %v17897_v60  ;;  %v8393_v58 = vsel %vm6835_vm4, %v8390_v48, %v8392_v54  ;;  %v8394_v45 = vrot.slane %v17897_v60, 2  ;;  %v17923_v60 = vld [vmem:[%s17020_s22 + $0x88] sm:$0xff]  }
 0x1cb   : > { %19848 = vst [vmem:[#allocation21_spill] sm:$0xff] %v17923_v60 }
 0x1cc   : > { %v8395_v48 = vsel %vm6835_vm4, %v8392_v54, %v8394_v45  ;;  %v17935_v54 = vld [vmem:[%s17020_s22 + $0x170] sm:$0xff]  }
 0x1cd   : > { %19850 = vst [vmem:[#allocation23_spill] sm:$0xff] %v17935_v54 }
 0x1ce   : > { %14054 = vmatmul.mubr.msk.bf16.gmra.mrb[80].mxu1 %vm1177_vm2, %v17886_v30  ;;  %v8396_v30 = vrot.slane %v17901_v43, 2 }
 0x1cf   : > { %14057 = vmatprep.mubr.msk.bf16.mxu1 %vm1177_vm2, %v17891_v19  ;;  %v17908_v19 = vld [vmem:[%s17020_s22 + $0x158] sm:$0xff]  }
 0x1d0   : > { %19845 = vst [vmem:[#allocation18_spill] sm:$0xff] %v17908_v19 }
 0x1d1   : > { %14676 = vmatmul.mubr.msk.bf16.gmra.mrb[12].mxu0 %vm1177_vm2, %v8391_v3  ;;  %v17919_v3 = vld [vmem:[%s17020_s22 + $0x80] sm:$0xff]  }
 0x1d2   : > { %14679 = vmatprep.mubr.msk.bf16.mxu0 %vm1177_vm2, %v8393_v58  ;;  %19847 = vst [vmem:[#allocation20_spill] sm:$0xff] %v17919_v3  ;;  %v8397_v58 = vsel %vm6835_vm4, %v8394_v45, %v8396_v30  ;;  %v8398_v43 = vrot.slane %v17919_v3, 2  ;;  %v17945_v3 = vld [vmem:[%s17020_s22 + $0x98] sm:$0xff]  }
 0x1d3   : > { %19852 = vst [vmem:[#allocation25_spill] sm:$0xff] %v17945_v3 }
 0x1d4   : > { %v8399_v45 = vsel %vm6835_vm4, %v8396_v30, %v8398_v43  ;;  %v17957_v30 = vld [vmem:[%s17020_s22 + $0x180] sm:$0xff]  }
 0x1d5   : > { %19854 = vst [vmem:[#allocation27_spill] sm:$0xff] %v17957_v30 }
 0x1d6   : > { %14058 = vmatmul.mubr.msk.bf16.gmra.mrb[84].mxu1 %vm1177_vm2, %v17908_v19  ;;  %v8400_v19 = vrot.slane %v17923_v60, 2 }
 0x1d7   : > { %14061 = vmatprep.mubr.msk.bf16.mxu1 %vm1177_vm2, %v17913_v20  ;;  %v17930_v20 = vld [vmem:[%s17020_s22 + $0x168] sm:$0xff]  }
 0x1d8   : > { %19849 = vst [vmem:[#allocation22_spill] sm:$0xff] %v17930_v20 }
 0x1d9   : > { %14680 = vmatmul.mubr.msk.bf16.gmra.mrb[16].mxu0 %vm1177_vm2, %v8395_v48  ;;  %v17941_v48 = vld [vmem:[%s17020_s22 + $0x90] sm:$0xff]  }
 0x1da   : > { %14683 = vmatprep.mubr.msk.bf16.mxu0 %vm1177_vm2, %v8397_v58  ;;  %19851 = vst [vmem:[#allocation24_spill] sm:$0xff] %v17941_v48  ;;  %v8401_v58 = vsel %vm6835_vm4, %v8398_v43, %v8400_v19  ;;  %v8402_v60 = vrot.slane %v17941_v48, 2  ;;  %v17967_v48 = vld [vmem:[%s17020_s22 + $0xa8] sm:$0xff]  }
 0x1db   : > { %19856 = vst [vmem:[#allocation29_spill] sm:$0xff] %v17967_v48 }
 0x1dc   : > { %v8403_v43 = vsel %vm6835_vm4, %v8400_v19, %v8402_v60  ;;  %v17979_v19 = vld [vmem:[%s17020_s22 + $0x190] sm:$0xff]  }
 0x1dd   : > { %19858 = vst [vmem:[#allocation31_spill] sm:$0xff] %v17979_v19 }
 0x1de   : > { %14062 = vmatmul.mubr.msk.bf16.gmra.mrb[88].mxu1 %vm1177_vm2, %v17930_v20  ;;  %v8404_v20 = vrot.slane %v17945_v3, 2 }
 0x1df   : > { %14065 = vmatprep.mubr.msk.bf16.mxu1 %vm1177_vm2, %v17935_v54  ;;  %v17952_v54 = vld [vmem:[%s17020_s22 + $0x178] sm:$0xff]  }
 0x1e0   : > { %19853 = vst [vmem:[#allocation26_spill] sm:$0xff] %v17952_v54 }
 0x1e1   : > { %14684 = vmatmul.mubr.msk.bf16.gmra.mrb[20].mxu0 %vm1177_vm2, %v8399_v45  ;;  %v17963_v45 = vld [vmem:[%s17020_s22 + $0xa0] sm:$0xff]  }
 0x1e2   : > { %14687 = vmatprep.mubr.msk.bf16.mxu0 %vm1177_vm2, %v8401_v58  ;;  %19855 = vst [vmem:[#allocation28_spill] sm:$0xff] %v17963_v45  ;;  %v8405_v58 = vsel %vm6835_vm4, %v8402_v60, %v8404_v20  ;;  %v8406_v3 = vrot.slane %v17963_v45, 2  ;;  %v17989_v45 = vld [vmem:[%s17020_s22 + $0xb8] sm:$0xff]  }
 0x1e3   : > { %19860 = vst [vmem:[#allocation33_spill] sm:$0xff] %v17989_v45 }
 0x1e4   : > { %v8407_v60 = vsel %vm6835_vm4, %v8404_v20, %v8406_v3  ;;  %v18001_v20 = vld [vmem:[%s17020_s22 + $0x1a0] sm:$0xff]  }
 0x1e5   : > { %19862 = vst [vmem:[#allocation35_spill] sm:$0xff] %v18001_v20 }
 0x1e6   : > { %14066 = vmatmul.mubr.msk.bf16.gmra.mrb[92].mxu1 %vm1177_vm2, %v17952_v54  ;;  %v8408_v54 = vrot.slane %v17967_v48, 2 }
 0x1e7   : > { %14069 = vmatprep.mubr.msk.bf16.mxu1 %vm1177_vm2, %v17957_v30  ;;  %v17974_v30 = vld [vmem:[%s17020_s22 + $0x188] sm:$0xff]  }
 0x1e8   : > { %19857 = vst [vmem:[#allocation30_spill] sm:$0xff] %v17974_v30 }
 0x1e9   : > { %14688 = vmatmul.mubr.msk.bf16.gmra.mrb[24].mxu0 %vm1177_vm2, %v8403_v43  ;;  %v17985_v43 = vld [vmem:[%s17020_s22 + $0xb0] sm:$0xff]  }
 0x1ea   : > { %14691 = vmatprep.mubr.msk.bf16.mxu0 %vm1177_vm2, %v8405_v58  ;;  %19859 = vst [vmem:[#allocation32_spill] sm:$0xff] %v17985_v43  ;;  %v8409_v58 = vsel %vm6835_vm4, %v8406_v3, %v8408_v54  ;;  %v8410_v48 = vrot.slane %v17985_v43, 2  ;;  %v16345_v43 = vld [vmem:[%s17020_s22 + $0xc8] sm:$0xff]  }
 0x1ec   : > { %v8411_v3 = vsel %vm6835_vm4, %v8408_v54, %v8410_v48 }
 0x1ee   : > { %14070 = vmatmul.mubr.msk.bf16.gmra.mrb[96].mxu1 %vm1177_vm2, %v17974_v30  ;;  %v8412_v30 = vrot.slane %v17989_v45, 2 }
 0x1ef   : > { %14073 = vmatprep.mubr.msk.bf16.mxu1 %vm1177_vm2, %v17979_v19  ;;  %v17996_v19 = vld [vmem:[%s17020_s22 + $0x198] sm:$0xff]  }
 0x1f0   : > { %19861 = vst [vmem:[#allocation34_spill] sm:$0xff] %v17996_v19 }
 0x1f1   : > { %14692 = vmatmul.mubr.msk.bf16.gmra.mrb[28].mxu0 %vm1177_vm2, %v8407_v60  ;;  %v16344_v60 = vld [vmem:[%s17020_s22 + $0xc0] sm:$0xff]  }
 0x1f2   : > { %14695 = vmatprep.mubr.msk.bf16.mxu0 %vm1177_vm2, %v8409_v58  ;;  %v8413_v58 = vsel %vm6835_vm4, %v8410_v48, %v8412_v30  ;;  %v8414_v45 = vrot.slane %v16344_v60, 2  ;;  %v16346_v48 = vld [vmem:[%s17020_s22 + $0xd0] sm:$0xff]   ;;  %v8420_v60 = vrot.slane %v16347_v44, 2 }
 0x1f4   : > { %v8415_v54 = vsel %vm6835_vm4, %v8412_v30, %v8414_v45 }
 0x1f6   : > { %14074 = vmatmul.mubr.msk.bf16.gmra.mrb[100].mxu1 %vm1177_vm2, %v17996_v19  ;;  %v8416_v19 = vrot.slane %v16345_v43, 2  ;;  %v8418_v43 = vrot.slane %v16346_v48, 2 }
 0x1f7   : > { %14077 = vmatprep.mubr.msk.bf16.mxu1 %vm1177_vm2, %v18001_v20  ;;  %v16757_v20 = vld [vmem:[%s17020_s22 + $0x1b0] sm:$0xff]  }
 0x1f8   : > { %v8419_v30 = vsel %vm6835_vm4, %v8416_v19, %v8418_v43 }
 0x1f9   : > { %14696 = vmatmul.mubr.msk.bf16.gmra.mrb[32].mxu0 %vm1177_vm2, %v8411_v3  ;;  %v8417_v3 = vsel %vm6835_vm4, %v8414_v45, %v8416_v19  ;;  %v16348_v45 = vld [vmem:[%s17020_s22 + $0xe0] sm:$0xff]  }
 0x1fa   : > { %14699 = vmatprep.mubr.msk.bf16.mxu0 %vm1177_vm2, %v8413_v58  ;;  %v18025_v58 = vld [vmem:[%s17020_s22 + $0x1b8] sm:$0xff]   ;;  %v8422_v44 = vrot.slane %v16348_v45, 2 }
 0x1fb   : > { %19864 = vst [vmem:[#allocation37_spill] sm:$0xff] %v18025_v58 }
 0x1fc   : > { %v8423_v19 = vsel %vm6835_vm4, %v8420_v60, %v8422_v44 }
 0x1fe   : > { %14078 = vmatmul.mubr.msk.bf16.gmra.mrb[104].mxu1 %vm1177_vm2, %v18012_v59  ;;  %v16349_v59 = vld [vmem:[%s17020_s22 + $0xe8] sm:$0xff]  }
 0x1ff   : > { %14081 = vmatprep.mubr.msk.bf16.mxu1 %vm1177_vm2, %v16757_v20  ;;  %v16759_v20 = vld [vmem:[%s17020_s22 + $0x1c0] sm:$0xff]   ;;  %v8424_v48 = vrot.slane %v16349_v59, 2 }
 0x201   : > { %14700 = vmatmul.mubr.msk.bf16.gmra.mrb[36].mxu0 %vm1177_vm2, %v8415_v54  ;;  %v8421_v54 = vsel %vm6835_vm4, %v8418_v43, %v8420_v60  ;;  %v8425_v43 = vsel %vm6835_vm4, %v8422_v44, %v8424_v48  ;;  %v16352_v60 = vld [vmem:[%s17020_s22 + $0x100] sm:$0xff]  }
 0x202   : > { %14703 = vmatprep.mubr.msk.bf16.mxu0 %vm1177_vm2, %v8417_v3  ;;  %v16760_v3 = vld [vmem:[%s17020_s22 + $0x1c8] sm:$0xff]   ;;  %v8430_v44 = vrot.slane %v16352_v60, 2  ;;  %v16761_v60 = vld [vmem:[%s17020_s22 + $0x4] sm:$0xf] }
 0x206   : > { %14082 = vmatmul.mubr.msk.bf16.gmra.mrb[108].mxu1 %vm1177_vm2, %v18025_v58  ;;  %v16351_v58 = vld [vmem:[%s17020_s22 + $0xf8] sm:$0xff]  }
 0x207   : > { %14085 = vmatprep.mubr.msk.bf16.mxu1 %vm1177_vm2, %v16759_v20  ;;  %v16350_v20 = vld [vmem:[%s17020_s22 + $0xf0] sm:$0xff]   ;;  %v8428_v59 = vrot.slane %v16351_v58, 2 }
 0x209   : > { %14704 = vmatmul.mubr.msk.bf16.gmra.mrb[40].mxu0 %vm1177_vm2, %v8419_v30  ;;  %v8426_v30 = vrot.slane %v16350_v20, 2 }
 0x20a   : > { %14707 = vmatprep.mubr.msk.bf16.mxu0 %vm1177_vm2, %v8421_v54  ;;  %v16353_v54 = vld [vmem:[%s17020_s22 + $0x108] sm:$0xff]  }
 0x20b   : > { %v8429_v45 = vsel %vm6835_vm4, %v8426_v30, %v8428_v59  ;;  %v8432_v58 = vrot.slane %v16353_v54, 2  ;;  %v16358_v54 = vld [vmem:[%s17020_s22 + $0x130] sm:$0xff]  }
 0x20e   : > { %14086 = vmatmul.mubr.msk.bf16.gmra.mrb[112].mxu1 %vm1177_vm2, %v16760_v3  ;;  %v16355_v3 = vld [vmem:[%s17020_s22 + $0x118] sm:$0xff]  }
 0x20f   : > { %14089 = vmatprep.mubr.msk.bf16.mxu1 %vm1177_vm2, %v17382_v53  ;;  %v8427_v53 = vsel %vm6835_vm4, %v8424_v48, %v8426_v30  ;;  %v8433_v48 = vsel %vm6835_vm4, %v8430_v44, %v8432_v58  ;;  %v8436_v20 = vrot.slane %v16355_v3, 2  ;;  %v16357_v30 = vld [vmem:[%s17020_s22 + $0x128] sm:$0xff]  }
 0x211   : > { %14708 = vmatmul.mubr.msk.bf16.gmra.mrb[44].mxu0 %vm1177_vm2, %v8423_v19 }
 0x212   : > { %14711 = vmatprep.mubr.msk.bf16.mxu0 %vm1177_vm2, %v8425_v43 }
 0x216   : > { %14090 = vmatmul.mubr.msk.bf16.gmra.mrb[116].mxu1 %vm1177_vm2, %v17391_v63  ;;  %v8431_v63 = vsel %vm6835_vm4, %v8428_v59, %v8430_v44  ;;  %v2679_v59 = vld [vmem:[%s17020_s22] sm:$0xe] }
 0x217   : > { %14093 = vmatprep.mubr.msk.bf16.mxu1 %vm1177_vm2, %v17399_v10  ;;  %v16354_v10 = vld [vmem:[%s17020_s22 + $0x110] sm:$0xff]  }
 0x218   : > { %v8434_v19 = vrot.slane %v16354_v10, 2  ;;  %v16360_v10 = vld [vmem:[%s17020_s22 + $0x138] sm:$0xff]  }
 0x219   : > { %14712 = vmatmul.mubr.msk.bf16.gmra.mrb[48].mxu0 %vm1177_vm2, %v8427_v53 }
 0x21a   : > { %14715 = vmatprep.mubr.msk.bf16.mxu0 %vm1177_vm2, %v8429_v45  ;;  %v8437_v43 = vsel %vm6835_vm4, %v8434_v19, %v8436_v20  ;;  %v12585_v45 = vcombine.low %v2679_v59, %v16761_v60  ;;  %v16363_v60 = vld [vmem:[%s17020_s22 + $0x150] sm:$0xff]  }
 0x21c   : > { %v2686_v44 = vrot.slane %v12585_v45, 1  ;;  %v2695_v45 = vrot.slane %v17557_v31, 1 }
 0x21e   : > { %14094 = vmatmul.mubr.msk.bf16.gmra.mrb[120].mxu1 %vm1177_vm2, %v17410_v21  ;;  %v8435_v21 = vsel %vm6835_vm4, %v8432_v58, %v8434_v19  ;;  %v2687_v58 = vrot.slane %v17518_v13, 1  ;;  %v2689_v13 = vrot.slane %v17523_v9, 1  ;;  %v16361_v19 = vld [vmem:[%s17020_s22 + $0x140] sm:$0xff]  }
 0x21f   : > { %14097 = vmatprep.mubr.msk.bf16.mxu1 %vm1177_vm2, %v17427_v36  ;;  %v16356_v36 = vld [vmem:[%s17020_s22 + $0x120] sm:$0xff]   ;;  %v8446_v9 = vrot.slane %v16361_v19, 2 }
 0x220   : > { %v8438_v53 = vrot.slane %v16356_v36, 2  ;;  %v16362_v36 = vld [vmem:[%s17020_s22 + $0x148] sm:$0xff]  }
 0x221   : > { %14716 = vmatmul.mubr.msk.bf16.gmra.mrb[52].mxu0 %vm1177_vm2, %v8431_v63  ;;  %v8448_v59 = vrot.slane %v16362_v36, 2  ;;  %v16367_v36 = vld [vmem:[%s17020_s22 + $0x170] sm:$0xff]  }
 0x222   : > { %14719 = vmatprep.mubr.msk.bf16.mxu0 %vm1177_vm2, %v8433_v48  ;;  %v2688_v48 = vsel %vm2685_vm5, %v2686_v44, %v2687_v58  ;;  %v18125_v44 = vld [vmem:[%s19771_s1 + $0x20] sm:$0xf] }
 0x223   : > { %16174 = vmatprep.subr.msk.bf16.mxu0 %vm1382_vm0, %v18125_v44 }
 0x226   : > { %14098 = vmatmul.mubr.msk.bf16.gmra.mrb[124].mxu1 %vm1177_vm2, %v17432_v41  ;;  %v8440_v41 = vrot.slane %v16357_v30, 2 }
 0x227   : > { %14101 = vmatprep.mubr.msk.bf16.mxu1 %vm1177_vm2, %v17447_v57  ;;  %v8439_v57 = vsel %vm6835_vm4, %v8436_v20, %v8438_v53  ;;  %v2691_v20 = vrot.slane %v17541_v24, 1  ;;  %v2693_v24 = vrot.slane %v17546_v25, 1 }
 0x228   : > { %v8441_v63 = vsel %vm6835_vm4, %v8438_v53, %v8440_v41 }
 0x229   : > { %14720 = vmatmul.mubr.msk.bf16.gmra.mrb[56].mxu0 %vm1177_vm2, %v8435_v21  ;;  %v2692_v30 = vsel %vm2685_vm5, %v2689_v13, %v2691_v20  ;;  %v2694_v25 = vsel %vm2685_vm5, %v2691_v20, %v2693_v24  ;;  %v2696_v31 = vsel %vm2685_vm5, %v2693_v24, %v2695_v45 }
 0x22a   : > { %14723 = vmatprep.mubr.msk.bf16.mxu0 %vm1177_vm2, %v8437_v43  ;;  %v2690_v43 = vsel %vm2685_vm5, %v2687_v58, %v2689_v13  ;;  %v16366_v13 = vld [vmem:[%s17020_s22 + $0x168] sm:$0xff]  }
 0x22e   : > { %14102 = vmatmul.mubr.msk.bf16.gmra.mrb[128].mxu1 %vm1177_vm2, %v17452_v62  ;;  %v8442_v62 = vrot.slane %v16358_v54, 2  ;;  %v8450_v54 = vrot.slane %v16363_v60, 2  ;;  %v16369_v60 = vld [vmem:[%s17020_s22 + $0x180] sm:$0xff]  }
 0x22f   : > { %14105 = vmatprep.mubr.msk.bf16.mxu1 %vm1177_vm2, %v17467_v16  ;;  %v8444_v16 = vrot.slane %v16360_v10, 2 }
 0x230   : > { %v8443_v3 = vsel %vm6835_vm4, %v8440_v41, %v8442_v62  ;;  %v8449_v41 = vsel %vm6835_vm4, %v8446_v9, %v8448_v59  ;;  %v8451_v10 = vsel %vm6835_vm4, %v8448_v59, %v8450_v54  ;;  %v8458_v59 = vrot.slane %v16367_v36, 2 }
 0x231   : > { %14724 = vmatmul.mubr.msk.bf16.gmra.mrb[60].mxu0 %vm1177_vm2, %v8439_v57  ;;  %v8445_v21 = vsel %vm6835_vm4, %v8442_v62, %v8444_v16  ;;  %v8447_v53 = vsel %vm6835_vm4, %v8444_v16, %v8446_v9  ;;  %v16364_v57 = vld [vmem:[%s17020_s22 + $0x158] sm:$0xff]   ;;  %v16365_v62 = vld [vmem:[%s17020_s22 + $0x160] sm:$0xff]  }
 0x232   : > { %14727 = vmatprep.mubr.msk.bf16.mxu0 %vm1177_vm2, %v8441_v63  ;;  %v8452_v58 = vrot.slane %v16364_v57, 2  ;;  %v2697_v63 = vrot.slane %v17562_v32, 1  ;;  %v8454_v19 = vrot.slane %v16365_v62, 2  ;;  %v8456_v32 = vrot.slane %v16366_v13, 2  ;;  %v16368_v9 = vld [vmem:[%s17020_s22 + $0x178] sm:$0xff]  }
 0x233   : > { %v16372_v62 = vld [vmem:[%s17020_s22 + $0x198] sm:$0xff]  }
 0x234   : > { %v8453_v16 = vsel %vm6835_vm4, %v8450_v54, %v8452_v58 }
 0x236   : > { %14106 = vmatmul.mubr.msk.bf16.gmra.mrb[132].mxu1 %vm1177_vm2, %v17472_v23  ;;  %v4567_v23 = vsel %vm1382_vm0, %v17834_v14, 0  ;;  %v16762_v14 = vld [vmem:[%s19771_s1 + $0x10] sm:$0xf] }
 0x237   : > { %14111 = vmatprep.mubr.msk.bf16.mxu1 %vm1177_vm2, %v2688_v48  ;;  %v2699_v48 = vrot.slane %v17573_v40, 1  ;;  %v2701_v40 = vrot.slane %v17578_v42, 1  ;;  %v8460_v42 = vrot.slane %v16368_v9, 2  ;;  %v16375_v9 = vld [vmem:[%s17020_s22 + $0x1b0] sm:$0xff]  }
 0x239   : > { %14728 = vmatmul.mubr.msk.bf16.gmra.mrb[64].mxu0 %vm1177_vm2, %v8443_v3  ;;  %v2698_v3 = vsel %vm2685_vm5, %v2695_v45, %v2697_v63  ;;  %v2700_v20 = vsel %vm2685_vm5, %v2697_v63, %v2699_v48  ;;  %v2707_v45 = vrot.slane %v17605_v61, 1  ;;  %v2709_v61 = vrot.slane %v17610_v0, 1 }
 0x23a   : > { %14731 = vmatprep.mubr.msk.bf16.mxu0 %vm1177_vm2, %v8445_v21  ;;  %v8455_v21 = vsel %vm6835_vm4, %v8452_v58, %v8454_v19  ;;  %v16371_v58 = vld [vmem:[%s17020_s22 + $0x190] sm:$0xff]   ;;  %v2711_v63 = vrot.slane %v17621_v8, 1  ;;  %v8468_v0 = vrot.slane %v16372_v62, 2  ;;  %v2713_v8 = vrot.slane %v17626_v11, 1 }
 0x23c   : > { %v2712_v13 = vsel %vm2685_vm5, %v2709_v61, %v2711_v63 }
 0x23e   : > { %14112 = vmatmul.mubr.msk.bf16.vlgmr.msra.gmra.mrb[0].mxu1 %vm1177_vm2, %v2690_v43  ;;  %v2703_v43 = vrot.slane %v17589_v50, 1  ;;  %v2705_v50 = vrot.slane %v17594_v51, 1 }
 0x23f   : > { %14248 = vmatpush3.bf16.msra.mxu1 %v4567_v23  ;;  %14115 = vmatprep.mubr.msk.bf16.mxu1 %vm1177_vm2, %v2692_v30  ;;  %v8457_v23 = vsel %vm6835_vm4, %v8454_v19, %v8456_v32  ;;  %v2702_v30 = vsel %vm2685_vm5, %v2699_v48, %v2701_v40  ;;  %v2710_v48 = vsel %vm2685_vm5, %v2707_v45, %v2709_v61  ;;  %v16373_v19 = vld [vmem:[%s17020_s22 + $0x1a0] sm:$0xff]  }
 0x240   : > { %16170 = vmatprep.subr.msk.bf16.mxu1 %vm1382_vm0, %v16762_v14  ;;  %v2704_v24 = vsel %vm2685_vm5, %v2701_v40, %v2703_v43  ;;  %v8461_v14 = vsel %vm6835_vm4, %v8458_v59, %v8460_v42  ;;  %v2706_v57 = vsel %vm2685_vm5, %v2703_v43, %v2705_v50  ;;  %v2708_v54 = vsel %vm2685_vm5, %v2705_v50, %v2707_v45  ;;  %v16374_v40 = vld [vmem:[%s17020_s22 + $0x1a8] sm:$0xff]   ;;  %v16377_v45 = vld [vmem:[%s17020_s22 + $0x1c0] sm:$0xff]  }
 0x241   : > { %14732 = vmatmul.mubr.msk.bf16.gmra.mrb[68].mxu0 %vm1177_vm2, %v8447_v53  ;;  %v8459_v53 = vsel %vm6835_vm4, %v8456_v32, %v8458_v59  ;;  %v8470_v36 = vrot.slane %v16373_v19, 2  ;;  %v8472_v11 = vrot.slane %v16374_v40, 2  ;;  %v8474_v50 = vrot.slane %v16375_v9, 2  ;;  %v16382_v19 = vld [vmem:[%s17020_s22 + $0x1e8] sm:$0xff]  }
 0x242   : > { %14735 = vmatprep.mubr.msk.bf16.mxu0 %vm1177_vm2, %v8449_v41  ;;  %v16370_v41 = vld [vmem:[%s17020_s22 + $0x188] sm:$0xff]  }
 0x243   : > { %v8464_v51 = vrot.slane %v16370_v41, 2  ;;  %v8473_v59 = vsel %vm6835_vm4, %v8470_v36, %v8472_v11 }
 0x246   : > { %14116 = vmatmul.mubr.msk.bf16.gmra.mrb[4].mxu1 %vm1177_vm2, %v2694_v25  ;;  %v8462_v25 = vrot.slane %v16369_v60, 2  ;;  %v8475_v60 = vsel %vm6835_vm4, %v8472_v11, %v8474_v50 }
 0x247   : > { %14119 = vmatprep.mubr.msk.bf16.mxu1 %vm1177_vm2, %v2696_v31 }
 0x248   : > { %v8463_v31 = vsel %vm6835_vm4, %v8460_v42, %v8462_v25 }
 0x249   : > { %14736 = vmatmul.mubr.msk.bf16.gmra.mrb[72].mxu0 %vm1177_vm2, %v8451_v10  ;;  %v8465_v10 = vsel %vm6835_vm4, %v8462_v25, %v8464_v51 }
 0x24a   : > { %14739 = vmatprep.mubr.msk.bf16.mxu0 %vm1177_vm2, %v8453_v16  ;;  %v8466_v16 = vrot.slane %v16371_v58, 2  ;;  %v2727_v58 = vrot.slane %v17685_v1, 1  ;;  %v2729_v1 = vrot.slane %v17690_v2, 1  ;;  %v8488_v2 = vrot.slane %v16382_v19, 2 }
 0x24c   : > { %v8469_v32 = vsel %vm6835_vm4, %v8466_v16, %v8468_v0 }
 0x24e   : > { %14120 = vmatmul.mubr.msk.bf16.gmra.mrb[8].mxu1 %vm1177_vm2, %v2698_v3  ;;  %v8467_v3 = vsel %vm6835_vm4, %v8464_v51, %v8466_v16 }
 0x24f   : > { %14123 = vmatprep.mubr.msk.bf16.mxu1 %vm1177_vm2, %v2700_v20  ;;  %v2715_v20 = vrot.slane %v17637_v26, 1  ;;  %v2717_v26 = vrot.slane %v17642_v27, 1 }
 0x251   : > { %14740 = vmatmul.mubr.msk.bf16.gmra.mrb[76].mxu0 %vm1177_vm2, %v8455_v21  ;;  %v2714_v21 = vsel %vm2685_vm5, %v2711_v63, %v2713_v8  ;;  %v2716_v43 = vsel %vm2685_vm5, %v2713_v8, %v2715_v20  ;;  %v2718_v42 = vsel %vm2685_vm5, %v2715_v20, %v2717_v26  ;;  %v2731_v8 = vrot.slane %v17701_v28, 1 }
 0x252   : > { %14743 = vmatprep.mubr.msk.bf16.mxu0 %vm1177_vm2, %v8457_v23  ;;  %v8471_v23 = vsel %vm6835_vm4, %v8468_v0, %v8470_v36  ;;  %v16381_v0 = vld [vmem:[%s17020_s22 + $0x1e0] sm:$0xff]   ;;  %v2730_v20 = vsel %vm2685_vm5, %v2727_v58, %v2729_v1  ;;  %v2733_v28 = vrot.slane %v17706_v17, 1  ;;  %v16383_v36 = vld [vmem:[%s17020_s22 + $0x1f0] sm:$0xff]  }
 0x253   : > { %v2732_v40 = vsel %vm2685_vm5, %v2729_v1, %v2731_v8  ;;  %v8490_v9 = vrot.slane %v16383_v36, 2  ;;  %v2751_v1 = vrot.slane %v17789_v4, 1  ;;  %v9448_v4 = vshrl.u32 %v17782_v56, 16  ;;  %v16393_v36 = vld [vmem:[%s17020_s22 + $0x240] ss:$0 sps:$4 sm:$0x33]  }
 0x256   : > { %14124 = vmatmul.mubr.msk.bf16.gmra.mrb[12].mxu1 %vm1177_vm2, %v2702_v30  ;;  %v2719_v30 = vrot.slane %v17653_v35, 1  ;;  %v2721_v35 = vrot.slane %v17658_v37, 1 }
 0x257   : > { %14127 = vmatprep.mubr.msk.bf16.mxu1 %vm1177_vm2, %v2704_v24  ;;  %v16376_v24 = vld [vmem:[%s17020_s22 + $0x1b8] sm:$0xff]  }
 0x258   : > { %v8476_v27 = vrot.slane %v16376_v24, 2  ;;  %v2722_v25 = vsel %vm2685_vm5, %v2719_v30, %v2721_v35  ;;  %v16385_v24 = vld [vmem:[%s17020_s22 + $0x200] sm:$0xff]  }
 0x259   : > { %14744 = vmatmul.mubr.msk.bf16.gmra.mrb[80].mxu0 %vm1177_vm2, %v8459_v53  ;;  %v2720_v53 = vsel %vm2685_vm5, %v2717_v26, %v2719_v30  ;;  %v16384_v26 = vld [vmem:[%s17020_s22 + $0x1f8] sm:$0xff]  }
 0x25a   : > { %14747 = vmatprep.mubr.msk.bf16.mxu0 %vm1177_vm2, %v8461_v14  ;;  %v2723_v14 = vrot.slane %v17669_v47, 1  ;;  %v8477_v41 = vsel %vm6835_vm4, %v8474_v50, %v8476_v27  ;;  %v2725_v47 = vrot.slane %v17674_v49, 1  ;;  %v8492_v17 = vrot.slane %v16384_v26, 2 }
 0x25c   : > { %v2724_v51 = vsel %vm2685_vm5, %v2721_v35, %v2723_v14  ;;  %v2726_v62 = vsel %vm2685_vm5, %v2723_v14, %v2725_v47  ;;  %v2728_v16 = vsel %vm2685_vm5, %v2725_v47, %v2727_v58  ;;  %v8493_v50 = vsel %vm6835_vm4, %v8490_v9, %v8492_v17  ;;  %v16387_v14 = vld [vmem:[%s17020_s22 + $0x210] sm:$0xff]  }
 0x25d   : > { %v8494_v35 = vrot.slane %v16385_v24, 2  ;;  %v9469_v24 = vshll.u32 %v17804_v22, 16 }
 0x25e   : > { %14128 = vmatmul.mubr.msk.bf16.gmra.mrb[16].mxu1 %vm1177_vm2, %v2706_v57  ;;  %v16378_v57 = vld [vmem:[%s17020_s22 + $0x1c8] sm:$0xff]  }
 0x25f   : > { %14131 = vmatprep.mubr.msk.bf16.mxu1 %vm1177_vm2, %v2708_v54  ;;  %v8478_v54 = vrot.slane %v16377_v45, 2  ;;  %v8480_v37 = vrot.slane %v16378_v57, 2  ;;  %v8495_v45 = vsel %vm6835_vm4, %v8492_v17, %v8494_v35  ;;  %v9460_v17 = vshll.u32 %v17800_v15, 16 }
 0x261   : > { %14748 = vmatmul.mubr.msk.bf16.gmra.mrb[84].mxu0 %vm1177_vm2, %v8463_v31  ;;  %v8479_v61 = vsel %vm6835_vm4, %v8476_v27, %v8478_v54  ;;  %v16379_v31 = vld [vmem:[%s17020_s22 + $0x1d0] sm:$0xff]   ;;  %v8481_v63 = vsel %vm6835_vm4, %v8478_v54, %v8480_v37 }
 0x262   : > { %14751 = vmatprep.mubr.msk.bf16.mxu0 %vm1177_vm2, %v8465_v10  ;;  %v16380_v10 = vld [vmem:[%s17020_s22 + $0x1d8] sm:$0xff]  }
 0x263   : > { %v8484_v49 = vrot.slane %v16380_v10, 2 }
 0x266   : > { %14132 = vmatmul.mubr.msk.bf16.gmra.mrb[20].mxu1 %vm1177_vm2, %v2710_v48  ;;  %v8482_v48 = vrot.slane %v16379_v31, 2  ;;  %v2747_v31 = vrot.slane %v17765_v29, 1 }
 0x267   : > { %14135 = vmatprep.mubr.msk.bf16.mxu1 %vm1177_vm2, %v2712_v13 }
 0x268   : > { %v8483_v13 = vsel %vm6835_vm4, %v8480_v37, %v8482_v48 }
 0x269   : > { %14752 = vmatmul.mubr.msk.bf16.gmra.mrb[88].mxu0 %vm1177_vm2, %v8467_v3  ;;  %v8485_v3 = vsel %vm6835_vm4, %v8482_v48, %v8484_v49 }
 0x26a   : > { %14755 = vmatprep.mubr.msk.bf16.mxu0 %vm1177_vm2, %v8469_v32  ;;  %v8486_v32 = vrot.slane %v16381_v0, 2 }
 0x26c   : > { %v8489_v11 = vsel %vm6835_vm4, %v8486_v32, %v8488_v2 }
 0x26e   : > { %14136 = vmatmul.mubr.msk.bf16.gmra.mrb[24].mxu1 %vm1177_vm2, %v2714_v21  ;;  %v8487_v21 = vsel %vm6835_vm4, %v8484_v49, %v8486_v32  ;;  %v16391_v49 = vld [vmem:[%s17020_s22 + $0x230] sm:$0xff]   ;;  %v9443_v32 = vshll.u32 %v17779_v46, 16 }
 0x26f   : > { %14139 = vmatprep.mubr.msk.bf16.mxu1 %vm1177_vm2, %v2716_v43  ;;  %v2735_v43 = vrot.slane %v17717_v33, 1  ;;  %v2737_v33 = vrot.slane %v17722_v34, 1 }
 0x270   : > { %v9445_v26 = vrot.slane %v9443_v32, 3 }
 0x271   : > { %14756 = vmatmul.mubr.msk.bf16.gmra.mrb[92].mxu0 %vm1177_vm2, %v8471_v23  ;;  %v2734_v23 = vsel %vm2685_vm5, %v2731_v8, %v2733_v28  ;;  %v2736_v30 = vsel %vm2685_vm5, %v2733_v28, %v2735_v43  ;;  %v2738_v27 = vsel %vm2685_vm5, %v2735_v43, %v2737_v33  ;;  %v2755_v43 = vrot.slane %v17811_v38, 1 }
 0x272   : > { %14759 = vmatprep.mubr.msk.bf16.mxu0 %vm1177_vm2, %v8473_v59  ;;  %v8491_v59 = vsel %vm6835_vm4, %v8488_v2, %v8490_v9  ;;  %v2753_v2 = vrot.slane %v17794_v5, 1  ;;  %v8510_v9 = vrot.slane %v16393_v36, 2  ;;  %v9466_v38 = vshrl.u32 %v17804_v22, 16 }
 0x274   : > { %v2756_v5 = vsel %vm2685_vm5, %v2753_v2, %v2755_v43 }
 0x276   : > { %14140 = vmatmul.mubr.msk.bf16.gmra.mrb[28].mxu1 %vm1177_vm2, %v2718_v42  ;;  %v2739_v42 = vrot.slane %v17733_v52, 1  ;;  %v2741_v52 = vrot.slane %v17738_v55, 1 }
 0x277   : > { %14143 = vmatprep.mubr.msk.bf16.mxu1 %vm1177_vm2, %v2720_v53  ;;  %v16386_v53 = vld [vmem:[%s17020_s22 + $0x208] sm:$0xff]  }
 0x278   : > { %v8496_v34 = vrot.slane %v16386_v53, 2  ;;  %v2742_v54 = vsel %vm2685_vm5, %v2739_v42, %v2741_v52 }
 0x279   : > { %14760 = vmatmul.mubr.msk.bf16.gmra.mrb[96].mxu0 %vm1177_vm2, %v8475_v60  ;;  %v2740_v60 = vsel %vm2685_vm5, %v2737_v33, %v2739_v42  ;;  %v2757_v42 = vrot.slane %v17816_v12, 1  ;;  %v19865_v12 = vld [vmem:[#allocation5_spill] sm:$0xff] }
 0x27a   : > { %14763 = vmatprep.mubr.msk.bf16.mxu0 %vm1177_vm2, %v8477_v41  ;;  %v2743_v41 = vrot.slane %v17749_v6, 1  ;;  %v8497_v57 = vsel %vm6835_vm4, %v8494_v35, %v8496_v34  ;;  %v2745_v6 = vrot.slane %v17754_v7, 1  ;;  %v2759_v35 = vrot.slane %v17842_v18, 1 }
 0x27b   : > { %v2758_v22 = vsel %vm2685_vm5, %v2755_v43, %v2757_v42 }
 0x27c   : > { %v2744_v37 = vsel %vm2685_vm5, %v2741_v52, %v2743_v41  ;;  %v2746_v10 = vsel %vm2685_vm5, %v2743_v41, %v2745_v6  ;;  %v2748_v48 = vsel %vm2685_vm5, %v2745_v6, %v2747_v31  ;;  %v9478_v41 = vshll.u32 %v19865_v12, 16 }
 0x27e   : > { %14144 = vmatmul.mubr.msk.bf16.gmra.mrb[32].mxu1 %vm1177_vm2, %v2722_v25  ;;  %v16388_v25 = vld [vmem:[%s17020_s22 + $0x218] sm:$0xff]  }
 0x27f   : > { %14147 = vmatprep.mubr.msk.bf16.mxu1 %vm1177_vm2, %v2724_v51  ;;  %v8498_v51 = vrot.slane %v16387_v14, 2  ;;  %v8500_v55 = vrot.slane %v16388_v25, 2  ;;  %v9475_v14 = vshrl.u32 %v19865_v12, 16  ;;  %v19866_v25 = vld [vmem:[#allocation6_spill] sm:$0xff] }
 0x280   : > { %v9484_v18 = vshrl.u32 %v19866_v25, 16 }
 0x281   : > { %14764 = vmatmul.mubr.msk.bf16.gmra.mrb[100].mxu0 %vm1177_vm2, %v8479_v61  ;;  %v8499_v47 = vsel %vm6835_vm4, %v8496_v34, %v8498_v51  ;;  %v16389_v61 = vld [vmem:[%s17020_s22 + $0x220] sm:$0xff]   ;;  %v8501_v58 = vsel %vm6835_vm4, %v8498_v51, %v8500_v55  ;;  %v9471_v34 = vrot.slane %v9469_v24, 3  ;;  %v19867_v51 = vld [vmem:[#allocation7_spill] sm:$0xff]  ;;  %v9477_v6 = vrot.slane %v9475_v14, 2  ;;  %v19878_v14 = vld [vmem:[#allocation17_spill] sm:$0xff] }
 0x282   : > { %14767 = vmatprep.mubr.msk.bf16.mxu0 %vm1177_vm2, %v8481_v63  ;;  %v16390_v63 = vld [vmem:[%s17020_s22 + $0x228] sm:$0xff]  }
 0x283   : > { %v8504_v7 = vrot.slane %v16390_v63, 2 }
 0x286   : > { %14148 = vmatmul.mubr.msk.bf16.gmra.mrb[36].mxu1 %vm1177_vm2, %v2726_v62  ;;  %v8502_v62 = vrot.slane %v16389_v61, 2  ;;  %v19868_v61 = vld [vmem:[#allocation10_spill] sm:$0xff] }
 0x287   : > { %14151 = vmatprep.mubr.msk.bf16.mxu1 %vm1177_vm2, %v2728_v16  ;;  %v2749_v16 = vrot.slane %v17772_v39, 1  ;;  %v9440_v39 = vshrl.u32 %v17779_v46, 16  ;;  %v9450_v46 = vrot.slane %v9448_v4, 2  ;;  %v19872_v4 = vld [vmem:[#allocation14_spill] sm:$0xff] }
 0x288   : > { %v8503_v29 = vsel %vm6835_vm4, %v8500_v55, %v8502_v62  ;;  %v8505_v0 = vsel %vm6835_vm4, %v8502_v62, %v8504_v7 }
 0x289   : > { %14768 = vmatmul.mubr.msk.bf16.gmra.mrb[104].mxu0 %vm1177_vm2, %v8483_v13  ;;  %v16392_v13 = vld [vmem:[%s17020_s22 + $0x238] sm:$0xff]   ;;  %v2750_v8 = vsel %vm2685_vm5, %v2747_v31, %v2749_v16  ;;  %v2752_v19 = vsel %vm2685_vm5, %v2749_v16, %v2751_v1  ;;  %v2763_v31 = vrot.slane %v19868_v61, 1 }
 0x28a   : > { %14771 = vmatprep.mubr.msk.bf16.mxu0 %vm1177_vm2, %v8485_v3  ;;  %v8506_v3 = vrot.slane %v16391_v49, 2 }
 0x28c   : > { %v8507_v28 = vsel %vm6835_vm4, %v8504_v7, %v8506_v3 }
 0x28e   : > { %14152 = vmatmul.mubr.msk.bf16.gmra.mrb[40].mxu1 %vm1177_vm2, %v2730_v20  ;;  %v8508_v20 = vrot.slane %v16392_v13, 2 }
 0x28f   : > { %14155 = vmatprep.mubr.msk.bf16.mxu1 %vm1177_vm2, %v2732_v40  ;;  %v9451_v40 = vshll.u32 %v17782_v56, 16  ;;  %v2754_v56 = vsel %vm2685_vm5, %v2751_v1, %v2753_v2 }
 0x291   : > { %14772 = vmatmul.mubr.msk.bf16.gmra.mrb[108].mxu0 %vm1177_vm2, %v8487_v21  ;;  %v8509_v21 = vsel %vm6835_vm4, %v8506_v3, %v8508_v20  ;;  %v19871_v3 = vld [vmem:[#allocation11_spill] sm:$0xff] }
 0x292   : > { %14775 = vmatprep.mubr.msk.bf16.mxu0 %vm1177_vm2, %v8489_v11  ;;  %v9442_v11 = vrot.slane %v9440_v39, 2 }
 0x294   : > { %v9446_v33 = vor.u32 %v9445_v26, %v9442_v11  ;;  %v19873_v26 = vld [vmem:[#allocation12_spill] sm:$0xff] }
 0x296   : > { %14156 = vmatmul.mubr.msk.bf16.gmra.mrb[44].mxu1 %vm1177_vm2, %v2734_v23  ;;  %v9453_v23 = vrot.slane %v9451_v40, 3  ;;  %v2767_v40 = vrot.slane %v19872_v4, 1 }
 0x297   : > { %14159 = vmatprep.mubr.msk.bf16.mxu1 %vm1177_vm2, %v2736_v30  ;;  %v9457_v30 = vshrl.u32 %v17800_v15, 16 }
 0x299   : > { %14776 = vmatmul.mubr.msk.bf16.gmra.mrb[112].mxu0 %vm1177_vm2, %v8491_v59  ;;  %v9454_v59 = vor.u32 %v9453_v23, %v9450_v46  ;;  %v9459_v53 = vrot.slane %v9457_v30, 2  ;;  %v9511_v46 = vshrl.u32 %v19873_v26, 16  ;;  %v9514_v23 = vshll.u32 %v19873_v26, 16  ;;  %v19886_v26 = vld [vmem:[#allocation25_spill] sm:$0xff] }
 0x29a   : > { %14779 = vmatprep.mubr.msk.bf16.mxu0 %vm1177_vm2, %v8493_v50  ;;  %v8511_v50 = vsel %vm6835_vm4, %v8508_v20, %v8510_v9  ;;  %v19874_v9 = vld [vmem:[#allocation13_spill] sm:$0xff] }
 0x29b   : > { %v9455_v15 = vsel %vm9438_vm6, %v9446_v33, %v9454_v59  ;;  %v9523_v30 = vshll.u32 %v19874_v9, 16  ;;  %v9516_v24 = vrot.slane %v9514_v23, 3  ;;  %v9577_v23 = vshll.u32 %v19886_v26, 16 }
 0x29e   : > { %14160 = vmatmul.mubr.msk.bf16.gmra.mrb[48].mxu1 %vm1177_vm2, %v2738_v27  ;;  %v9462_v27 = vrot.slane %v9460_v17, 3  ;;  %v19875_v17 = vld [vmem:[#allocation15_spill] sm:$0xff] }
 0x29f   : > { %14163 = vmatprep.mubr.msk.bf16.mxu1 %vm1177_vm2, %v2740_v60  ;;  %v9468_v60 = vrot.slane %v9466_v38, 2  ;;  %v2769_v33 = vrot.slane %v19875_v17, 1  ;;  %v9513_v38 = vrot.slane %v9511_v46, 2  ;;  %v9574_v46 = vshrl.u32 %v19886_v26, 16 }
 0x2a0   : > { %v9463_v52 = vor.u32 %v9462_v27, %v9459_v53 }
 0x2a1   : > { %14780 = vmatmul.mubr.msk.bf16.gmra.mrb[116].mxu0 %vm1177_vm2, %v8495_v45  ;;  %v2760_v45 = vsel %vm2685_vm5, %v2757_v42, %v2759_v35  ;;  %v19876_v42 = vld [vmem:[#allocation18_spill] sm:$0xff] }
 0x2a2   : > { %14783 = vmatprep.mubr.msk.bf16.mxu0 %vm1177_vm2, %v8497_v57  ;;  %v9472_v57 = vor.u32 %v9471_v34, %v9468_v60  ;;  %v9464_v55 = vsel %vm9438_vm6, %v9454_v59, %v9463_v52  ;;  %v9517_v60 = vor.u32 %v9516_v24, %v9513_v38  ;;  %v9576_v24 = vrot.slane %v9574_v46, 2 }
 0x2a4   : > { %v9473_v63 = vsel %vm9438_vm6, %v9463_v52, %v9472_v57 }
 0x2a6   : > { %14164 = vmatmul.mubr.msk.bf16.gmra.mrb[52].mxu1 %vm1177_vm2, %v2742_v54  ;;  %v9487_v54 = vshll.u32 %v19866_v25, 16  ;;  %v19879_v25 = vld [vmem:[#allocation19_spill] sm:$0xff] }
 0x2a7   : > { %14167 = vmatprep.mubr.msk.bf16.mxu1 %vm1177_vm2, %v2744_v37  ;;  %v2761_v37 = vrot.slane %v19867_v51, 1 }
 0x2a8   : > { %v9489_v62 = vrot.slane %v9487_v54, 3 }
 0x2a9   : > { %14784 = vmatmul.mubr.msk.bf16.gmra.mrb[120].mxu0 %vm1177_vm2, %v8499_v47  ;;  %v9480_v47 = vrot.slane %v9478_v41, 3  ;;  %v2764_v16 = vsel %vm2685_vm5, %v2761_v37, %v2763_v31  ;;  %v9538_v41 = vshrl.u32 %v19878_v14, 16 }
 0x2aa   : > { %14787 = vmatprep.mubr.msk.bf16.mxu0 %vm1177_vm2, %v8501_v58  ;;  %v11328_v58 = vsel %vm1382_vm0, %v18125_v44, 0  ;;  %v19870_v44 = vld [vmem:[#allocation9_spill] sm:$0xff] }
 0x2ab   : > { %v9481_v7 = vor.u32 %v9480_v47, %v9477_v6  ;;  %v9540_v61 = vrot.slane %v9538_v41, 2 }
 0x2ad   : > { %v9482_v20 = vsel %vm9438_vm6, %v9472_v57, %v9481_v7  ;;  %v9541_v57 = vshll.u32 %v19878_v14, 16 }
 0x2ae   : > { %14168 = vmatmul.mubr.msk.bf16.gmra.mrb[56].mxu1 %vm1177_vm2, %v2746_v10  ;;  %v9486_v10 = vrot.slane %v9484_v18, 2  ;;  %v2773_v18 = vrot.slane %v19879_v25, 1 }
 0x2af   : > { %14171 = vmatprep.mubr.msk.bf16.mxu1 %vm1177_vm2, %v2748_v48  ;;  %v2762_v48 = vsel %vm2685_vm5, %v2759_v35, %v2761_v37  ;;  %v9525_v35 = vrot.slane %v9523_v30, 3 }
 0x2b0   : > { %v9490_v13 = vor.u32 %v9489_v62, %v9486_v10  ;;  %v19881_v62 = vld [vmem:[#allocation20_spill] sm:$0xff] }
 0x2b1   : > { %14788 = vmatmul.mubr.msk.bf16.gmra.mrb[124].mxu0 %vm1177_vm2, %v8503_v29  ;;  %v19869_v29 = vld [vmem:[#allocation8_spill] sm:$0xff] }
 0x2b2   : > { %14791 = vmatprep.mubr.msk.bf16.mxu0 %vm1177_vm2, %v8505_v0  ;;  %v9493_v49 = vshrl.u32 %v19869_v29, 16  ;;  %v9496_v1 = vshll.u32 %v19869_v29, 16  ;;  %v9502_v0 = vshrl.u32 %v19870_v44, 16  ;;  %v9491_v2 = vsel %vm9438_vm6, %v9481_v7, %v9490_v13  ;;  %v19882_v29 = vld [vmem:[#allocation21_spill] sm:$0xff] }
 0x2b3   : > { %v9550_v7 = vshll.u32 %v19881_v62, 16 }
 0x2b4   : > { %v9495_v39 = vrot.slane %v9493_v49, 2  ;;  %v9498_v32 = vrot.slane %v9496_v1, 3  ;;  %v9556_v49 = vshrl.u32 %v19882_v29, 16  ;;  %v9559_v1 = vshll.u32 %v19882_v29, 16 }
 0x2b6   : > { %14172 = vmatmul.mubr.msk.bf16.gmra.mrb[60].mxu1 %vm1177_vm2, %v2750_v8  ;;  %v9505_v8 = vshll.u32 %v19870_v44, 16  ;;  %v9499_v43 = vor.u32 %v9498_v32, %v9495_v39  ;;  %v9558_v32 = vrot.slane %v9556_v49, 2  ;;  %v9561_v4 = vrot.slane %v9559_v1, 3 }
 0x2b7   : > { %14175 = vmatprep.mubr.msk.bf16.mxu1 %vm1177_vm2, %v2752_v19  ;;  %v2765_v19 = vrot.slane %v19871_v3, 1  ;;  %v9552_v3 = vrot.slane %v9550_v7, 3 }
 0x2b8   : > { %v9500_v59 = vsel %vm9438_vm6, %v9490_v13, %v9499_v43  ;;  %v19883_v13 = vld [vmem:[#allocation23_spill] sm:$0xff] }
 0x2b9   : > { %14792 = vmatmul.mubr.msk.bf16.gmra.mrb[128].mxu0 %vm1177_vm2, %v8507_v28  ;;  %v9504_v28 = vrot.slane %v9502_v0, 2  ;;  %v2766_v36 = vsel %vm2685_vm5, %v2763_v31, %v2765_v19  ;;  %v2768_v11 = vsel %vm2685_vm5, %v2765_v19, %v2767_v40  ;;  %v9543_v31 = vrot.slane %v9541_v57, 3  ;;  %v19884_v19 = vld [vmem:[#allocation26_spill] sm:$0xff] }
 0x2ba   : > { %14795 = vmatprep.mubr.msk.bf16.mxu0 %vm1177_vm2, %v8509_v21  ;;  %v9507_v21 = vrot.slane %v9505_v8, 3  ;;  %v2777_v44 = vrot.slane %v19883_v13, 1 }
 0x2be   : > { %14176 = vmatmul.mubr.msk.bf16.gmra.mrb[64].mxu1 %vm1177_vm2, %v2754_v56  ;;  %v9508_v56 = vor.u32 %v9507_v21, %v9504_v28  ;;  %v19885_v21 = vld [vmem:[#allocation24_spill] sm:$0xff] }
 0x2bf   : > { %14179 = vmatprep.mubr.msk.bf16.mxu1 %vm1177_vm2, %v2756_v5  ;;  %v9520_v5 = vshrl.u32 %v19874_v9, 16 }
 0x2c0   : > { %v9509_v53 = vsel %vm9438_vm6, %v9499_v43, %v9508_v56  ;;  %v9518_v54 = vsel %vm9438_vm6, %v9508_v56, %v9517_v60  ;;  %v9568_v43 = vshll.u32 %v19885_v21, 16  ;;  %v19887_v56 = vld [vmem:[#allocation27_spill] sm:$0xff] }
 0x2c1   : > { %14796 = vmatmul.mubr.msk.bf16.gmra.mrb[132].mxu0 %vm1177_vm2, %v8511_v50  ;;  %v2771_v50 = vrot.slane %v19876_v42, 1  ;;  %v9522_v27 = vrot.slane %v9520_v5, 2  ;;  %v2781_v9 = vrot.slane %v19887_v56, 1  ;;  %v9579_v42 = vrot.slane %v9577_v23, 3 }
 0x2c2   : > { %14801 = vmatprep.mubr.msk.bf16.mxu0 %vm1177_vm2, %v9455_v15  ;;  %v2770_v15 = vsel %vm2685_vm5, %v2767_v40, %v2769_v33  ;;  %v9570_v17 = vrot.slane %v9568_v43, 3 }
 0x2c3   : > { %v2772_v34 = vsel %vm2685_vm5, %v2769_v33, %v2771_v50  ;;  %v9526_v12 = vor.u32 %v9525_v35, %v9522_v27  ;;  %v19888_v33 = vld [vmem:[#allocation30_spill] sm:$0xff]  ;;  %v19889_v35 = vld [vmem:[#allocation28_spill] sm:$0xff] }
 0x2c5   : > { %v9527_v47 = vsel %vm9438_vm6, %v9517_v60, %v9526_v12  ;;  %v9586_v60 = vshll.u32 %v19889_v35, 16 }
 0x2c6   : > { %14180 = vmatmul.mubr.msk.bf16.gmra.mrb[68].mxu1 %vm1177_vm2, %v2758_v22  ;;  %v19877_v22 = vld [vmem:[#allocation16_spill] sm:$0xff] }
 0x2c7   : > { %14183 = vmatprep.mubr.msk.bf16.mxu1 %vm1177_vm2, %v2760_v45  ;;  %v9529_v52 = vshrl.u32 %v19877_v22, 16  ;;  %v9532_v45 = vshll.u32 %v19877_v22, 16  ;;  %v19890_v22 = vld [vmem:[#allocation29_spill] sm:$0xff]  ;;  %v9588_v25 = vrot.slane %v9586_v60, 3 }
 0x2c9   : > { %14802 = vmatmul.mubr.msk.bf16.vlgmr.msra.gmra.mrb[0].mxu0 %vm1177_vm2, %v9464_v55  ;;  %v9531_v51 = vrot.slane %v9529_v52, 2  ;;  %v9534_v37 = vrot.slane %v9532_v45, 3  ;;  %v19880_v55 = vld [vmem:[#allocation22_spill] sm:$0xff]  ;;  %v9592_v52 = vshrl.u32 %v19890_v22, 16  ;;  %v9595_v45 = vshll.u32 %v19890_v22, 16 }
 0x2ca   : > { %14938 = vmatpush3.bf16.msra.mxu0 %v11328_v58  ;;  %14805 = vmatprep.mubr.msk.bf16.mxu0 %vm1177_vm2, %v9473_v63  ;;  %v2775_v6 = vrot.slane %v19880_v55, 1  ;;  %v2774_v58 = vsel %vm2685_vm5, %v2771_v50, %v2773_v18 }
 0x2cb   : > { %v9535_v63 = vor.u32 %v9534_v37, %v9531_v51  ;;  %v9594_v37 = vrot.slane %v9592_v52, 2  ;;  %v9597_v55 = vrot.slane %v9595_v45, 3 }
 0x2cc   : > { %v2776_v10 = vsel %vm2685_vm5, %v2773_v18, %v2775_v6  ;;  %v2778_v40 = vsel %vm2685_vm5, %v2775_v6, %v2777_v44  ;;  %v19892_v18 = vld [vmem:[#allocation34_spill] sm:$0xff] }
 0x2cd   : > { %v9536_v0 = vsel %vm9438_vm6, %v9526_v12, %v9535_v63  ;;  %v19891_v12 = vld [vmem:[#allocation31_spill] sm:$0xff] }
 0x2ce   : > { %14184 = vmatmul.mubr.msk.bf16.gmra.mrb[72].mxu1 %vm1177_vm2, %v2762_v48  ;;  %v9547_v48 = vshrl.u32 %v19881_v62, 16  ;;  %v2785_v14 = vrot.slane %v19891_v12, 1  ;;  %v19894_v62 = vld [vmem:[#allocation33_spill] sm:$0xff] }
 0x2cf   : > { %14187 = vmatprep.mubr.msk.bf16.mxu1 %vm1177_vm2, %v2764_v16  ;;  %v9544_v16 = vor.u32 %v9543_v31, %v9540_v61  ;;  %v19893_v31 = vld [vmem:[#allocation32_spill] sm:$0xff]  ;;  %v9613_v7 = vshll.u32 %v19894_v62, 16 }
 0x2d0   : > { %v9549_v8 = vrot.slane %v9547_v48, 2  ;;  %v9610_v48 = vshrl.u32 %v19894_v62, 16 }
 0x2d1   : > { %14806 = vmatmul.mubr.msk.bf16.gmra.mrb[4].mxu0 %vm1177_vm2, %v9482_v20  ;;  %v2779_v20 = vrot.slane %v19884_v19, 1  ;;  %v9545_v39 = vsel %vm9438_vm6, %v9535_v63, %v9544_v16  ;;  %v9604_v63 = vshll.u32 %v19893_v31, 16  ;;  %v9615_v19 = vrot.slane %v9613_v7, 3 }
 0x2d2   : > { %14809 = vmatprep.mubr.msk.bf16.mxu0 %vm1177_vm2, %v9491_v2  ;;  %v9553_v2 = vor.u32 %v9552_v3, %v9549_v8  ;;  %v9612_v3 = vrot.slane %v9610_v48, 2 }
 0x2d3   : > { %v2780_v28 = vsel %vm2685_vm5, %v2777_v44, %v2779_v20  ;;  %v2782_v50 = vsel %vm2685_vm5, %v2779_v20, %v2781_v9  ;;  %v9606_v13 = vrot.slane %v9604_v63, 3  ;;  %v19896_v44 = vld [vmem:[#allocation36_spill] sm:$0xff] }
 0x2d4   : > { %v9554_v5 = vsel %vm9438_vm6, %v9544_v16, %v9553_v2  ;;  %v19895_v16 = vld [vmem:[#allocation35_spill] sm:$0xff] }
 0x2d5   : > { %v2789_v29 = vrot.slane %v19895_v16, 1 }
 0x2d6   : > { %14188 = vmatmul.mubr.msk.bf16.gmra.mrb[76].mxu1 %vm1177_vm2, %v2766_v36  ;;  %v9565_v36 = vshrl.u32 %v19885_v21, 16  ;;  %v16764_v21 = vld [vmem:[%s17020_s22 + $0xc8] sm:$0xff]  }
 0x2d7   : > { %14191 = vmatprep.mubr.msk.bf16.mxu1 %vm1177_vm2, %v2768_v11  ;;  %v9562_v11 = vor.u32 %v9561_v4, %v9558_v32  ;;  %v16763_v4 = vld [vmem:[%s17020_s22 + $0xc0] sm:$0xff]   ;;  %v9631_v43 = vshll.u32 %v16764_v21, 16 }
 0x2d8   : > { %v9567_v30 = vrot.slane %v9565_v36, 2  ;;  %v9628_v36 = vshrl.u32 %v16764_v21, 16 }
 0x2d9   : > { %14810 = vmatmul.mubr.msk.bf16.gmra.mrb[8].mxu0 %vm1177_vm2, %v9500_v59  ;;  %v2783_v59 = vrot.slane %v19888_v33, 1  ;;  %v9563_v38 = vsel %vm9438_vm6, %v9553_v2, %v9562_v11  ;;  %v9622_v2 = vshll.u32 %v16763_v4, 16  ;;  %v9633_v33 = vrot.slane %v9631_v43, 3 }
 0x2da   : > { %14813 = vmatprep.mubr.msk.bf16.mxu0 %vm1177_vm2, %v9509_v53  ;;  %v9571_v53 = vor.u32 %v9570_v17, %v9567_v30  ;;  %v9630_v17 = vrot.slane %v9628_v36, 2 }
 0x2db   : > { %v2784_v27 = vsel %vm2685_vm5, %v2781_v9, %v2783_v59  ;;  %v2786_v6 = vsel %vm2685_vm5, %v2783_v59, %v2785_v14  ;;  %v9624_v56 = vrot.slane %v9622_v2, 3  ;;  %v19897_v9 = vld [vmem:[#allocation37_spill] sm:$0xff] }
 0x2dc   : > { %v9572_v41 = vsel %vm9438_vm6, %v9562_v11, %v9571_v53  ;;  %v16765_v11 = vld [vmem:[%s17020_s22 + $0x1b0] sm:$0xff]  }
 0x2dd   : > { %v2793_v26 = vrot.slane %v16765_v11, 1 }
 0x2de   : > { %14192 = vmatmul.mubr.msk.bf16.gmra.mrb[80].mxu1 %vm1177_vm2, %v2770_v15  ;;  %v9583_v15 = vshrl.u32 %v19889_v35, 16  ;;  %v16767_v35 = vld [vmem:[%s17020_s22 + $0xd8] sm:$0xff]  }
 0x2df   : > { %14195 = vmatprep.mubr.msk.bf16.mxu1 %vm1177_vm2, %v2772_v34  ;;  %v9580_v34 = vor.u32 %v9579_v42, %v9576_v24  ;;  %v16766_v42 = vld [vmem:[%s17020_s22 + $0xd0] sm:$0xff]   ;;  %v9649_v60 = vshll.u32 %v16767_v35, 16 }
 0x2e0   : > { %v9585_v57 = vrot.slane %v9583_v15, 2  ;;  %v9646_v15 = vshrl.u32 %v16767_v35, 16 }
 0x2e1   : > { %14814 = vmatmul.mubr.msk.bf16.gmra.mrb[12].mxu0 %vm1177_vm2, %v9518_v54  ;;  %v2787_v54 = vrot.slane %v19892_v18, 1  ;;  %v9581_v51 = vsel %vm9438_vm6, %v9571_v53, %v9580_v34  ;;  %v9640_v53 = vshll.u32 %v16766_v42, 16  ;;  %v9651_v18 = vrot.slane %v9649_v60, 3 }
 0x2e2   : > { %14817 = vmatprep.mubr.msk.bf16.mxu0 %vm1177_vm2, %v9527_v47  ;;  %v9589_v47 = vor.u32 %v9588_v25, %v9585_v57  ;;  %v9648_v25 = vrot.slane %v9646_v15, 2 }
 0x2e3   : > { %v2788_v61 = vsel %vm2685_vm5, %v2785_v14, %v2787_v54  ;;  %v2790_v20 = vsel %vm2685_vm5, %v2787_v54, %v2789_v29  ;;  %v9642_v12 = vrot.slane %v9640_v53, 3  ;;  %v16769_v14 = vld [vmem:[%s17020_s22 + $0x1c8] sm:$0xff]  }
 0x2e4   : > { %v9590_v49 = vsel %vm9438_vm6, %v9580_v34, %v9589_v47  ;;  %v16768_v34 = vld [vmem:[%s17020_s22 + $0x1c0] sm:$0xff]  }
 0x2e5   : > { %v2797_v22 = vrot.slane %v16768_v34, 1 }
 0x2e6   : > { %14196 = vmatmul.mubr.msk.bf16.gmra.mrb[84].mxu1 %vm1177_vm2, %v2774_v58  ;;  %v9601_v58 = vshrl.u32 %v19893_v31, 16  ;;  %v16771_v31 = vld [vmem:[%s17020_s22 + $0xe8] sm:$0xff]  }
 0x2e7   : > { %14199 = vmatprep.mubr.msk.bf16.mxu1 %vm1177_vm2, %v2776_v10  ;;  %v9598_v10 = vor.u32 %v9597_v55, %v9594_v37  ;;  %v16770_v55 = vld [vmem:[%s17020_s22 + $0xe0] sm:$0xff]   ;;  %v9667_v63 = vshll.u32 %v16771_v31, 16 }
 0x2e8   : > { %v9603_v1 = vrot.slane %v9601_v58, 2  ;;  %v9664_v58 = vshrl.u32 %v16771_v31, 16 }
 0x2e9   : > { %14818 = vmatmul.mubr.msk.bf16.gmra.mrb[16].mxu0 %vm1177_vm2, %v9536_v0  ;;  %v2791_v0 = vrot.slane %v19896_v44, 1  ;;  %v9599_v8 = vsel %vm9438_vm6, %v9589_v47, %v9598_v10  ;;  %v9658_v47 = vshll.u32 %v16770_v55, 16  ;;  %v9669_v44 = vrot.slane %v9667_v63, 3 }
 0x2ea   : > { %14821 = vmatprep.mubr.msk.bf16.mxu0 %vm1177_vm2, %v9545_v39  ;;  %v9607_v39 = vor.u32 %v9606_v13, %v9603_v1  ;;  %v9666_v13 = vrot.slane %v9664_v58, 2 }
 0x2eb   : > { %v2792_v32 = vsel %vm2685_vm5, %v2789_v29, %v2791_v0  ;;  %v2794_v59 = vsel %vm2685_vm5, %v2791_v0, %v2793_v26  ;;  %v9660_v16 = vrot.slane %v9658_v47, 3  ;;  %v16773_v29 = vld [vmem:[%s17020_s22 + $0x1d8] sm:$0xff]  }
 0x2ec   : > { %v9608_v46 = vsel %vm9438_vm6, %v9598_v10, %v9607_v39  ;;  %v16772_v10 = vld [vmem:[%s17020_s22 + $0x1d0] sm:$0xff]  }
 0x2ed   : > { %v2801_v62 = vrot.slane %v16772_v10, 1 }
 0x2ee   : > { %14200 = vmatmul.mubr.msk.bf16.gmra.mrb[88].mxu1 %vm1177_vm2, %v2778_v40  ;;  %v9619_v40 = vshrl.u32 %v16763_v4, 16  ;;  %v16775_v4 = vld [vmem:[%s17020_s22 + $0xf8] sm:$0xff]  }
 0x2ef   : > { %14203 = vmatprep.mubr.msk.bf16.mxu1 %vm1177_vm2, %v2780_v28  ;;  %v9616_v28 = vor.u32 %v9615_v19, %v9612_v3  ;;  %v16774_v19 = vld [vmem:[%s17020_s22 + $0xf0] sm:$0xff]   ;;  %v9685_v2 = vshll.u32 %v16775_v4, 16 }
 0x2f0   : > { %v9621_v23 = vrot.slane %v9619_v40, 2  ;;  %v9682_v40 = vshrl.u32 %v16775_v4, 16 }
 0x2f1   : > { %14822 = vmatmul.mubr.msk.bf16.gmra.mrb[20].mxu0 %vm1177_vm2, %v9554_v5  ;;  %v2795_v5 = vrot.slane %v19897_v9, 1  ;;  %v9617_v30 = vsel %vm9438_vm6, %v9607_v39, %v9616_v28  ;;  %v9676_v39 = vshll.u32 %v16774_v19, 16  ;;  %v9687_v9 = vrot.slane %v9685_v2, 3 }
 0x2f2   : > { %14825 = vmatprep.mubr.msk.bf16.mxu0 %vm1177_vm2, %v9563_v38  ;;  %v9625_v38 = vor.u32 %v9624_v56, %v9621_v23  ;;  %v9684_v56 = vrot.slane %v9682_v40, 2 }
 0x2f3   : > { %v2796_v24 = vsel %vm2685_vm5, %v2793_v26, %v2795_v5  ;;  %v2798_v54 = vsel %vm2685_vm5, %v2795_v5, %v2797_v22  ;;  %v9678_v11 = vrot.slane %v9676_v39, 3  ;;  %v16777_v26 = vld [vmem:[%s17020_s22 + $0x1e8] sm:$0xff]  }
 0x2f4   : > { %v9626_v52 = vsel %vm9438_vm6, %v9616_v28, %v9625_v38  ;;  %v16776_v28 = vld [vmem:[%s17020_s22 + $0x1e0] sm:$0xff]  }
 0x2f5   : > { %v2805_v21 = vrot.slane %v16776_v28, 1 }
 0x2f6   : > { %14204 = vmatmul.mubr.msk.bf16.gmra.mrb[92].mxu1 %vm1177_vm2, %v2782_v50  ;;  %v9637_v50 = vshrl.u32 %v16766_v42, 16  ;;  %v16779_v42 = vld [vmem:[%s17020_s22 + $0x108] sm:$0xff]  }
 0x2f7   : > { %14207 = vmatprep.mubr.msk.bf16.mxu1 %vm1177_vm2, %v2784_v27  ;;  %v9634_v27 = vor.u32 %v9633_v33, %v9630_v17  ;;  %v16778_v33 = vld [vmem:[%s17020_s22 + $0x100] sm:$0xff]   ;;  %v9703_v53 = vshll.u32 %v16779_v42, 16 }
 0x2f8   : > { %v9639_v45 = vrot.slane %v9637_v50, 2  ;;  %v9700_v50 = vshrl.u32 %v16779_v42, 16  ;;  %v16792_v42 = vld [vmem:[%s17020_s22 + $0x220] ss:$0 sps:$4 sm:$0x11]  }
 0x2f9   : > { %14826 = vmatmul.mubr.msk.bf16.gmra.mrb[24].mxu0 %vm1177_vm2, %v9572_v41  ;;  %v2799_v41 = vrot.slane %v16769_v14, 1  ;;  %v9635_v57 = vsel %vm9438_vm6, %v9625_v38, %v9634_v27  ;;  %v9694_v38 = vshll.u32 %v16778_v33, 16  ;;  %v9705_v14 = vrot.slane %v9703_v53, 3 }
 0x2fa   : > { %14829 = vmatprep.mubr.msk.bf16.mxu0 %vm1177_vm2, %v9581_v51  ;;  %v9643_v51 = vor.u32 %v9642_v12, %v9639_v45  ;;  %v9702_v12 = vrot.slane %v9700_v50, 2  ;;  %v2821_v50 = vrot.slane %v16792_v42, 1 }
 0x2fb   : > { %v2800_v37 = vsel %vm2685_vm5, %v2797_v22, %v2799_v41  ;;  %v2802_v0 = vsel %vm2685_vm5, %v2799_v41, %v2801_v62  ;;  %v9696_v34 = vrot.slane %v9694_v38, 3  ;;  %v16781_v22 = vld [vmem:[%s17020_s22 + $0x1f8] sm:$0xff]  }
 0x2fc   : > { %v9644_v48 = vsel %vm9438_vm6, %v9634_v27, %v9643_v51  ;;  %v16780_v27 = vld [vmem:[%s17020_s22 + $0x1f0] sm:$0xff]  }
 0x2fd   : > { %v2809_v35 = vrot.slane %v16780_v27, 1 }
 0x2fe   : > { %14208 = vmatmul.mubr.msk.bf16.gmra.mrb[96].mxu1 %vm1177_vm2, %v2786_v6  ;;  %v9655_v6 = vshrl.u32 %v16770_v55, 16  ;;  %v16783_v55 = vld [vmem:[%s17020_s22 + $0x118] sm:$0xff]  }
 0x2ff   : > { %14211 = vmatprep.mubr.msk.bf16.mxu1 %vm1177_vm2, %v2788_v61  ;;  %v9652_v61 = vor.u32 %v9651_v18, %v9648_v25  ;;  %v16782_v18 = vld [vmem:[%s17020_s22 + $0x110] sm:$0xff]   ;;  %v9721_v47 = vshll.u32 %v16783_v55, 16 }
 0x300   : > { %v9657_v7 = vrot.slane %v9655_v6, 2  ;;  %v9718_v6 = vshrl.u32 %v16783_v55, 16 }
 0x301   : > { %14830 = vmatmul.mubr.msk.bf16.gmra.mrb[28].mxu0 %vm1177_vm2, %v9590_v49  ;;  %v2803_v49 = vrot.slane %v16773_v29, 1  ;;  %v9653_v1 = vsel %vm9438_vm6, %v9643_v51, %v9652_v61  ;;  %v9712_v51 = vshll.u32 %v16782_v18, 16  ;;  %v9723_v29 = vrot.slane %v9721_v47, 3 }
 0x302   : > { %14833 = vmatprep.mubr.msk.bf16.mxu0 %vm1177_vm2, %v9599_v8  ;;  %v9661_v8 = vor.u32 %v9660_v16, %v9657_v7  ;;  %v9720_v16 = vrot.slane %v9718_v6, 2  ;;  %v16796_v6 = vld [vmem:[%s17020_s22 + $0x20] sm:$0xff]  }
 0x303   : > { %v2804_v3 = vsel %vm2685_vm5, %v2801_v62, %v2803_v49  ;;  %v2806_v5 = vsel %vm2685_vm5, %v2803_v49, %v2805_v21  ;;  %v9714_v10 = vrot.slane %v9712_v51, 3  ;;  %v16785_v62 = vld [vmem:[%s17020_s22 + $0x208] sm:$0xff]   ;;  %v4228_v47 = vrot.slane %v16796_v6, 1 }
 0x304   : > { %v9662_v36 = vsel %vm9438_vm6, %v9652_v61, %v9661_v8  ;;  %v16784_v61 = vld [vmem:[%s17020_s22 + $0x200] sm:$0xff]   ;;  %v16795_v51 = vld [vmem:[%s17020_s22 + $0x148] sm:$0xff]  }
 0x305   : > { %v2813_v31 = vrot.slane %v16784_v61, 1  ;;  %v9775_v55 = vshll.u32 %v16795_v51, 16 }
 0x306   : > { %14212 = vmatmul.mubr.msk.bf16.gmra.mrb[100].mxu1 %vm1177_vm2, %v2790_v20  ;;  %v9673_v20 = vshrl.u32 %v16774_v19, 16  ;;  %v16787_v19 = vld [vmem:[%s17020_s22 + $0x128] sm:$0xff]  }
 0x307   : > { %14215 = vmatprep.mubr.msk.bf16.mxu1 %vm1177_vm2, %v2792_v32  ;;  %v9670_v32 = vor.u32 %v9669_v44, %v9666_v13  ;;  %v9739_v39 = vshll.u32 %v16787_v19, 16 }
 0x308   : > { %v9675_v43 = vrot.slane %v9673_v20, 2  ;;  %v9736_v20 = vshrl.u32 %v16787_v19, 16 }
 0x309   : > { %14834 = vmatmul.mubr.msk.bf16.gmra.mrb[32].mxu0 %vm1177_vm2, %v9608_v46  ;;  %v2807_v46 = vrot.slane %v16777_v26, 1  ;;  %v9671_v23 = vsel %vm9438_vm6, %v9661_v8, %v9670_v32  ;;  %v9741_v26 = vrot.slane %v9739_v39, 3  ;;  %v16800_v39 = vld [vmem:[%s17020_s22 + $0x30] sm:$0xff]  }
 0x30a   : > { %14837 = vmatprep.mubr.msk.bf16.mxu0 %vm1177_vm2, %v9617_v30  ;;  %v9679_v30 = vor.u32 %v9678_v11, %v9675_v43  ;;  %v9738_v11 = vrot.slane %v9736_v20, 2  ;;  %v19899_v20 = vld [vmem:[#allocation2_spill] sm:$0xff] }
 0x30b   : > { %v2808_v17 = vsel %vm2685_vm5, %v2805_v21, %v2807_v46  ;;  %v2810_v41 = vsel %vm2685_vm5, %v2807_v46, %v2809_v35  ;;  %v16789_v21 = vld [vmem:[%s17020_s22 + $0x218] sm:$0xff]  }
 0x30c   : > { %v9680_v15 = vsel %vm9438_vm6, %v9670_v32, %v9679_v30  ;;  %v16788_v32 = vld [vmem:[%s17020_s22 + $0x210] sm:$0xff]  }
 0x30d   : > { %v2817_v4 = vrot.slane %v16788_v32, 1  ;;  %v4232_v32 = vrot.slane %v16800_v39, 1 }
 0x30e   : > { %14216 = vmatmul.mubr.msk.bf16.gmra.mrb[104].mxu1 %vm1177_vm2, %v2794_v59  ;;  %v9691_v59 = vshrl.u32 %v16778_v33, 16  ;;  %v16791_v33 = vld [vmem:[%s17020_s22 + $0x138] sm:$0xff]  }
 0x30f   : > { %14219 = vmatprep.mubr.msk.bf16.mxu1 %vm1177_vm2, %v2796_v24  ;;  %v9688_v24 = vor.u32 %v9687_v9, %v9684_v56  ;;  %v16790_v9 = vld [vmem:[%s17020_s22 + $0x130] sm:$0xff]   ;;  %v9757_v38 = vshll.u32 %v16791_v33, 16 }
 0x310   : > { %v9693_v60 = vrot.slane %v9691_v59, 2  ;;  %v9754_v59 = vshrl.u32 %v16791_v33, 16 }
 0x311   : > { %14838 = vmatmul.mubr.msk.bf16.gmra.mrb[36].mxu0 %vm1177_vm2, %v9626_v52  ;;  %v2811_v52 = vrot.slane %v16781_v22, 1  ;;  %v9689_v45 = vsel %vm9438_vm6, %v9679_v30, %v9688_v24  ;;  %v9748_v30 = vshll.u32 %v16790_v9, 16 }
 0x312   : > { %14841 = vmatprep.mubr.msk.bf16.mxu0 %vm1177_vm2, %v9635_v57  ;;  %v9697_v57 = vor.u32 %v9696_v34, %v9693_v60  ;;  %v16793_v60 = vld [vmem:[%s17020_s22 + $0x18] sm:$0xff]  }
 0x313   : > { %v2812_v25 = vsel %vm2685_vm5, %v2809_v35, %v2811_v52  ;;  %v2814_v49 = vsel %vm2685_vm5, %v2811_v52, %v2813_v31  ;;  %v9750_v27 = vrot.slane %v9748_v30, 3  ;;  %v19898_v35 = vld [vmem:[#allocation3_spill] sm:$0xff]  ;;  %v4226_v34 = vrot.slane %v16793_v60, 1 }
 0x314   : > { %v9698_v58 = vsel %vm9438_vm6, %v9688_v24, %v9697_v57  ;;  %v9756_v52 = vrot.slane %v9754_v59, 2 }
 0x316   : > { %14220 = vmatmul.mubr.msk.bf16.gmra.mrb[108].mxu1 %vm1177_vm2, %v2798_v54  ;;  %v9709_v54 = vshrl.u32 %v16782_v18, 16 }
 0x317   : > { %14223 = vmatprep.mubr.msk.bf16.mxu1 %vm1177_vm2, %v2800_v37  ;;  %v9706_v37 = vor.u32 %v9705_v14, %v9702_v12 }
 0x318   : > { %v9711_v63 = vrot.slane %v9709_v54, 2 }
 0x319   : > { %14842 = vmatmul.mubr.msk.bf16.gmra.mrb[40].mxu0 %vm1177_vm2, %v9644_v48  ;;  %v2815_v48 = vrot.slane %v16785_v62, 1  ;;  %v9707_v7 = vsel %vm9438_vm6, %v9697_v57, %v9706_v37  ;;  %v16794_v57 = vld [vmem:[%s17020_s22 + $0x140] sm:$0xff]  }
 0x31a   : > { %14845 = vmatprep.mubr.msk.bf16.mxu0 %vm1177_vm2, %v9653_v1  ;;  %v16786_v1 = vld [vmem:[%s17020_s22 + $0x120] sm:$0xff]   ;;  %v9766_v18 = vshll.u32 %v16794_v57, 16 }
 0x31b   : > { %v9727_v13 = vshrl.u32 %v16786_v1, 16  ;;  %v9730_v44 = vshll.u32 %v16786_v1, 16  ;;  %v2816_v8 = vsel %vm2685_vm5, %v2813_v31, %v2815_v48  ;;  %v2818_v46 = vsel %vm2685_vm5, %v2815_v48, %v2817_v4  ;;  %v16798_v1 = vld [vmem:[%s17020_s22 + $0x150] sm:$0xff]  }
 0x31d   : > { %v9729_v40 = vrot.slane %v9727_v13, 2  ;;  %v9732_v2 = vrot.slane %v9730_v44, 3  ;;  %v9781_v13 = vshrl.u32 %v16798_v1, 16  ;;  %v9784_v44 = vshll.u32 %v16798_v1, 16 }
 0x31e   : > { %14224 = vmatmul.mubr.msk.bf16.gmra.mrb[112].mxu1 %vm1177_vm2, %v2802_v0  ;;  %v9715_v0 = vor.u32 %v9714_v10, %v9711_v63  ;;  %v16797_v63 = vld [vmem:[%s17020_s22 + $0x28] sm:$0xff]  }
 0x31f   : > { %14227 = vmatprep.mubr.msk.bf16.mxu1 %vm1177_vm2, %v2804_v3  ;;  %v9724_v3 = vor.u32 %v9723_v29, %v9720_v16  ;;  %v4230_v10 = vrot.slane %v16797_v63, 1  ;;  %v4229_v16 = vsel %vm2685_vm5, %v4226_v34, %v4228_v47 }
 0x320   : > { %v9716_v28 = vsel %vm9438_vm6, %v9706_v37, %v9715_v0  ;;  %v9772_v37 = vshrl.u32 %v16795_v51, 16  ;;  %v16808_v51 = vld [vmem:[%s17020_s22 + $0x50] sm:$0xff]  }
 0x321   : > { %14846 = vmatmul.mubr.msk.bf16.gmra.mrb[44].mxu0 %vm1177_vm2, %v9662_v36  ;;  %v2819_v36 = vrot.slane %v16789_v21, 1  ;;  %v9725_v43 = vsel %vm9438_vm6, %v9715_v0, %v9724_v3 }
 0x322   : > { %14849 = vmatprep.mubr.msk.bf16.mxu0 %vm1177_vm2, %v9671_v23  ;;  %v9733_v23 = vor.u32 %v9732_v2, %v9729_v40  ;;  %v9774_v48 = vrot.slane %v9772_v37, 2  ;;  %v9783_v40 = vrot.slane %v9781_v13, 2  ;;  %v9786_v2 = vrot.slane %v9784_v44, 3  ;;  %v16811_v13 = vld [vmem:[%s17020_s22 + $0x188] sm:$0xff]  }
 0x323   : > { %v2820_v56 = vsel %vm2685_vm5, %v2817_v4, %v2819_v36  ;;  %v2822_v12 = vsel %vm2685_vm5, %v2819_v36, %v2821_v50  ;;  %v4240_v37 = vrot.slane %v16808_v51, 1  ;;  %v9844_v44 = vshrl.u32 %v16811_v13, 16 }
 0x324   : > { %v9734_v24 = vsel %vm9438_vm6, %v9724_v3, %v9733_v23 }
 0x326   : > { %14228 = vmatmul.mubr.msk.bf16.gmra.mrb[116].mxu1 %vm1177_vm2, %v2806_v5  ;;  %v9745_v5 = vshrl.u32 %v16790_v9, 16 }
 0x327   : > { %14231 = vmatprep.mubr.msk.bf16.mxu1 %vm1177_vm2, %v2808_v17  ;;  %v9742_v17 = vor.u32 %v9741_v26, %v9738_v11  ;;  %v4233_v26 = vsel %vm2685_vm5, %v4230_v10, %v4232_v32 }
 0x328   : > { %v9747_v53 = vrot.slane %v9745_v5, 2 }
 0x329   : > { %14850 = vmatmul.mubr.msk.bf16.gmra.mrb[48].mxu0 %vm1177_vm2, %v9680_v15  ;;  %v4225_v15 = vrot.slane %v19898_v35, 1  ;;  %v9743_v22 = vsel %vm9438_vm6, %v9733_v23, %v9742_v17 }
 0x32a   : > { %14853 = vmatprep.mubr.msk.bf16.mxu0 %vm1177_vm2, %v9689_v45  ;;  %v9759_v45 = vrot.slane %v9757_v38, 3  ;;  %v9751_v14 = vor.u32 %v9750_v27, %v9747_v53  ;;  %v16804_v38 = vld [vmem:[%s17020_s22 + $0x40] sm:$0xff]   ;;  %v16805_v27 = vld [vmem:[%s17020_s22 + $0x48] sm:$0xff]  }
 0x32b   : > { %v4238_v35 = vrot.slane %v16805_v27, 1 }
 0x32c   : > { %v9760_v54 = vor.u32 %v9759_v45, %v9756_v52  ;;  %v9752_v61 = vsel %vm9438_vm6, %v9742_v17, %v9751_v14  ;;  %v16803_v17 = vld [vmem:[%s17020_s22 + $0x168] sm:$0xff]  }
 0x32d   : > { %v9808_v33 = vshrl.u32 %v16803_v17, 16  ;;  %v9811_v59 = vshll.u32 %v16803_v17, 16 }
 0x32e   : > { %14232 = vmatmul.mubr.msk.bf16.gmra.mrb[120].mxu1 %vm1177_vm2, %v2810_v41  ;;  %v4227_v41 = vsel %vm2685_vm5, %v4225_v15, %v4226_v34  ;;  %v9761_v62 = vsel %vm9438_vm6, %v9751_v14, %v9760_v54 }
 0x32f   : > { %14235 = vmatprep.mubr.msk.bf16.mxu1 %vm1177_vm2, %v2812_v25  ;;  %v9763_v25 = vshrl.u32 %v16794_v57, 16  ;;  %v9810_v60 = vrot.slane %v9808_v33, 2  ;;  %v9813_v34 = vrot.slane %v9811_v59, 3 }
 0x331   : > { %14854 = vmatmul.mubr.msk.bf16.gmra.mrb[52].mxu0 %vm1177_vm2, %v9698_v58  ;;  %v9765_v31 = vrot.slane %v9763_v25, 2  ;;  %v9768_v58 = vrot.slane %v9766_v18, 3  ;;  %v9814_v57 = vor.u32 %v9813_v34, %v9810_v60  ;;  %v16807_v25 = vld [vmem:[%s17020_s22 + $0x178] sm:$0xff]   ;;  %v16818_v34 = vld [vmem:[%s17020_s22 + $0x1a0] sm:$0xff]  }
 0x332   : > { %14857 = vmatprep.mubr.msk.bf16.mxu0 %vm1177_vm2, %v9707_v7  ;;  %v9777_v7 = vrot.slane %v9775_v55, 3  ;;  %v9826_v18 = vshrl.u32 %v16807_v25, 16 }
 0x333   : > { %v9769_v29 = vor.u32 %v9768_v58, %v9765_v31 }
 0x334   : > { %v9778_v0 = vor.u32 %v9777_v7, %v9774_v48  ;;  %v9828_v63 = vrot.slane %v9826_v18, 2 }
 0x335   : > { %v9770_v4 = vsel %vm9438_vm6, %v9760_v54, %v9769_v29  ;;  %v9829_v54 = vshll.u32 %v16807_v25, 16 }
 0x336   : > { %14236 = vmatmul.mubr.msk.bf16.gmra.mrb[124].mxu1 %vm1177_vm2, %v2814_v49  ;;  %v4231_v49 = vsel %vm2685_vm5, %v4228_v47, %v4230_v10  ;;  %v9779_v36 = vsel %vm9438_vm6, %v9769_v29, %v9778_v0 }
 0x337   : > { %14239 = vmatprep.mubr.msk.bf16.mxu1 %vm1177_vm2, %v2816_v8  ;;  %v16799_v8 = vld [vmem:[%s17020_s22 + $0x158] sm:$0xff]   ;;  %v9831_v10 = vrot.slane %v9829_v54, 3 }
 0x338   : > { %v9790_v3 = vshrl.u32 %v16799_v8, 16  ;;  %v9793_v19 = vshll.u32 %v16799_v8, 16  ;;  %v16812_v8 = vld [vmem:[%s17020_s22 + $0x60] sm:$0xff]  }
 0x339   : > { %14858 = vmatmul.mubr.msk.bf16.gmra.mrb[56].mxu0 %vm1177_vm2, %v9716_v28  ;;  %v16801_v28 = vld [vmem:[%s17020_s22 + $0x38] sm:$0xff]   ;;  %v9832_v1 = vor.u32 %v9831_v10, %v9828_v63  ;;  %v16822_v10 = vld [vmem:[%s17020_s22 + $0x1b0] sm:$0xff]  }
 0x33a   : > { %14861 = vmatprep.mubr.msk.bf16.mxu0 %vm1177_vm2, %v9725_v43  ;;  %v4234_v21 = vrot.slane %v16801_v28, 1  ;;  %v9792_v43 = vrot.slane %v9790_v3, 2  ;;  %v9795_v11 = vrot.slane %v9793_v19, 3  ;;  %v4244_v3 = vrot.slane %v16812_v8, 1 }
 0x33c   : > { %v4235_v23 = vsel %vm2685_vm5, %v4232_v32, %v4234_v21  ;;  %v9796_v30 = vor.u32 %v9795_v11, %v9792_v43  ;;  %v16813_v32 = vld [vmem:[%s17020_s22 + $0x68] sm:$0xff]   ;;  %v16814_v11 = vld [vmem:[%s17020_s22 + $0x190] sm:$0xff]  }
 0x33e   : > { %14240 = vmatmul.mubr.msk.bf16.gmra.mrb[128].mxu1 %vm1177_vm2, %v2818_v46  ;;  %v9787_v46 = vor.u32 %v9786_v2, %v9783_v40  ;;  %v9846_v2 = vrot.slane %v9844_v44, 2 }
 0x33f   : > { %14243 = vmatprep.mubr.msk.bf16.mxu1 %vm1177_vm2, %v2820_v56  ;;  %v16802_v56 = vld [vmem:[%s17020_s22 + $0x160] sm:$0xff]  }
 0x340   : > { %v9799_v9 = vshrl.u32 %v16802_v56, 16  ;;  %v9802_v5 = vshll.u32 %v16802_v56, 16  ;;  %v9788_v42 = vsel %vm9438_vm6, %v9778_v0, %v9787_v46  ;;  %v9797_v15 = vsel %vm9438_vm6, %v9787_v46, %v9796_v30  ;;  %v16815_v56 = vld [vmem:[%s17020_s22 + $0x198] sm:$0xff]  }
 0x341   : > { %14862 = vmatmul.mubr.msk.bf16.gmra.mrb[60].mxu0 %vm1177_vm2, %v9734_v24  ;;  %v4236_v24 = vrot.slane %v16804_v38, 1  ;;  %v9847_v0 = vshll.u32 %v16811_v13, 16  ;;  %v9856_v46 = vshll.u32 %v16814_v11, 16 }
 0x342   : > { %14865 = vmatprep.mubr.msk.bf16.mxu0 %vm1177_vm2, %v9743_v22  ;;  %v9801_v50 = vrot.slane %v9799_v9, 2  ;;  %v9804_v53 = vrot.slane %v9802_v5, 3  ;;  %v9862_v9 = vshrl.u32 %v16815_v56, 16  ;;  %v9865_v5 = vshll.u32 %v16815_v56, 16 }
 0x343   : > { %v4237_v22 = vsel %vm2685_vm5, %v4234_v21, %v4236_v24  ;;  %v4239_v45 = vsel %vm2685_vm5, %v4236_v24, %v4238_v35  ;;  %v9849_v28 = vrot.slane %v9847_v0, 3  ;;  %v9858_v38 = vrot.slane %v9856_v46, 3  ;;  %v16817_v24 = vld [vmem:[%s17020_s22 + $0x78] sm:$0xff]  }
 0x344   : > { %v9805_v52 = vor.u32 %v9804_v53, %v9801_v50  ;;  %v9864_v53 = vrot.slane %v9862_v9, 2  ;;  %v9867_v27 = vrot.slane %v9865_v5, 3 }
 0x346   : > { %14244 = vmatmul.mubr.msk.bf16.gmra.mrb[132].mxu1 %vm1177_vm2, %v2822_v12  ;;  %v16806_v12 = vld [vmem:[%s17020_s22 + $0x170] sm:$0xff]   ;;  %v9806_v55 = vsel %vm9438_vm6, %v9796_v30, %v9805_v52  ;;  %v9815_v58 = vsel %vm9438_vm6, %v9805_v52, %v9814_v57  ;;  %v9874_v52 = vshll.u32 %v16818_v34, 16 }
 0x347   : > { %14249 = vmatprep.mubr.msk.bf16.mxu1 %vm1177_vm2, %v4227_v41  ;;  %v9817_v14 = vshrl.u32 %v16806_v12, 16  ;;  %v9820_v41 = vshll.u32 %v16806_v12, 16  ;;  %v16816_v30 = vld [vmem:[%s17020_s22 + $0x70] sm:$0xff]   ;;  %v16819_v12 = vld [vmem:[%s17020_s22 + $0x1a8] sm:$0xff]  }
 0x348   : > { %v4248_v17 = vrot.slane %v16816_v30, 1  ;;  %v9876_v51 = vrot.slane %v9874_v52, 3 }
 0x349   : > { %14866 = vmatmul.mubr.msk.bf16.gmra.mrb[64].mxu0 %vm1177_vm2, %v9752_v61  ;;  %v9819_v6 = vrot.slane %v9817_v14, 2  ;;  %v9822_v47 = vrot.slane %v9820_v41, 3  ;;  %v16809_v61 = vld [vmem:[%s17020_s22 + $0x58] sm:$0xff]   ;;  %v9880_v14 = vshrl.u32 %v16819_v12, 16  ;;  %v9883_v41 = vshll.u32 %v16819_v12, 16 }
 0x34a   : > { %14869 = vmatprep.mubr.msk.bf16.mxu0 %vm1177_vm2, %v9761_v62  ;;  %v4242_v31 = vrot.slane %v16809_v61, 1  ;;  %v4241_v62 = vsel %vm2685_vm5, %v4238_v35, %v4240_v37 }
 0x34b   : > { %v9823_v48 = vor.u32 %v9822_v47, %v9819_v6  ;;  %v9882_v47 = vrot.slane %v9880_v14, 2  ;;  %v9885_v61 = vrot.slane %v9883_v41, 3 }
 0x34c   : > { %v4243_v7 = vsel %vm2685_vm5, %v4240_v37, %v4242_v31  ;;  %v4245_v21 = vsel %vm2685_vm5, %v4242_v31, %v4244_v3  ;;  %v16821_v37 = vld [vmem:[%s17020_s22 + $0x88] sm:$0xff]  }
 0x34d   : > { %v9824_v19 = vsel %vm9438_vm6, %v9814_v57, %v9823_v48  ;;  %v9833_v40 = vsel %vm9438_vm6, %v9823_v48, %v9832_v1  ;;  %v16820_v57 = vld [vmem:[%s17020_s22 + $0x80] sm:$0xff]   ;;  %v9892_v48 = vshll.u32 %v16822_v10, 16 }
 0x34e   : > { %14250 = vmatmul.mubr.msk.bf16.vlgmr.msra.gmra.mrb[0].mxu1 %vm1177_vm2, %v4229_v16  ;;  %v16810_v16 = vld [vmem:[%s17020_s22 + $0x180] sm:$0xff]   ;;  %v4252_v25 = vrot.slane %v16820_v57, 1 }
 0x34f   : > { %15076 = vmatpush3.bf16.msra.mxu1 %v19899_v20  ;;  %14253 = vmatprep.mubr.msk.bf16.mxu1 %vm1177_vm2, %v4231_v49  ;;  %v9835_v29 = vshrl.u32 %v16810_v16, 16  ;;  %v9838_v49 = vshll.u32 %v16810_v16, 16  ;;  %v16823_v16 = vld [vmem:[%s17020_s22 + $0x1b8] sm:$0xff]   ;;  %v9894_v8 = vrot.slane %v9892_v48, 3 }
 0x351   : > { %14870 = vmatmul.mubr.msk.bf16.gmra.mrb[68].mxu0 %vm1177_vm2, %v9770_v4  ;;  %v9837_v20 = vrot.slane %v9835_v29, 2  ;;  %v9840_v39 = vrot.slane %v9838_v49, 3  ;;  %v4246_v4 = vrot.slane %v16813_v32, 1  ;;  %v9898_v29 = vshrl.u32 %v16823_v16, 16 }
 0x352   : > { %14873 = vmatprep.mubr.msk.bf16.mxu0 %vm1177_vm2, %v9779_v36  ;;  %v9901_v49 = vshll.u32 %v16823_v16, 16 }
 0x353   : > { %v9841_v36 = vor.u32 %v9840_v39, %v9837_v20  ;;  %v4247_v43 = vsel %vm2685_vm5, %v4244_v3, %v4246_v4  ;;  %v4249_v35 = vsel %vm2685_vm5, %v4246_v4, %v4248_v17  ;;  %v16825_v3 = vld [vmem:[%s17020_s22 + $0x98] sm:$0xff]   ;;  %v9900_v39 = vrot.slane %v9898_v29, 2 }
 0x354   : > { %v9903_v32 = vrot.slane %v9901_v49, 3 }
 0x355   : > { %v9842_v33 = vsel %vm9438_vm6, %v9832_v1, %v9841_v36  ;;  %v16824_v1 = vld [vmem:[%s17020_s22 + $0x90] sm:$0xff]  }
 0x356   : > { %14254 = vmatmul.mubr.msk.bf16.gmra.mrb[4].mxu1 %vm1177_vm2, %v4233_v26  ;;  %v9853_v26 = vshrl.u32 %v16814_v11, 16  ;;  %v4256_v13 = vrot.slane %v16824_v1, 1  ;;  %v16827_v11 = vld [vmem:[%s17020_s22 + $0x1c8] sm:$0xff]  }
 0x357   : > { %14257 = vmatprep.mubr.msk.bf16.mxu1 %vm1177_vm2, %v4235_v23  ;;  %v9850_v23 = vor.u32 %v9849_v28, %v9846_v2  ;;  %v16826_v28 = vld [vmem:[%s17020_s22 + $0x1c0] sm:$0xff]   ;;  %v9919_v46 = vshll.u32 %v16827_v11, 16 }
 0x358   : > { %v9855_v59 = vrot.slane %v9853_v26, 2  ;;  %v9916_v26 = vshrl.u32 %v16827_v11, 16 }
 0x359   : > { %14874 = vmatmul.mubr.msk.bf16.gmra.mrb[72].mxu0 %vm1177_vm2, %v9788_v42  ;;  %v4250_v42 = vrot.slane %v16817_v24, 1  ;;  %v9851_v50 = vsel %vm9438_vm6, %v9841_v36, %v9850_v23  ;;  %v9910_v36 = vshll.u32 %v16826_v28, 16  ;;  %v9921_v24 = vrot.slane %v9919_v46, 3 }
 0x35a   : > { %14877 = vmatprep.mubr.msk.bf16.mxu0 %vm1177_vm2, %v9797_v15  ;;  %v9859_v15 = vor.u32 %v9858_v38, %v9855_v59  ;;  %v9918_v38 = vrot.slane %v9916_v26, 2 }
 0x35b   : > { %v4251_v60 = vsel %vm2685_vm5, %v4248_v17, %v4250_v42  ;;  %v4253_v31 = vsel %vm2685_vm5, %v4250_v42, %v4252_v25  ;;  %v9912_v30 = vrot.slane %v9910_v36, 3  ;;  %v16829_v17 = vld [vmem:[%s17020_s22 + $0xa8] sm:$0xff]  }
 0x35c   : > { %v9860_v18 = vsel %vm9438_vm6, %v9850_v23, %v9859_v15  ;;  %v16828_v23 = vld [vmem:[%s17020_s22 + $0xa0] sm:$0xff]  }
 0x35d   : > { %v4260_v56 = vrot.slane %v16828_v23, 1 }
 0x35e   : > { %14258 = vmatmul.mubr.msk.bf16.gmra.mrb[8].mxu1 %vm1177_vm2, %v4237_v22  ;;  %v9871_v22 = vshrl.u32 %v16818_v34, 16  ;;  %v16831_v34 = vld [vmem:[%s17020_s22 + $0x1d8] sm:$0xff]  }
 0x35f   : > { %14261 = vmatprep.mubr.msk.bf16.mxu1 %vm1177_vm2, %v4239_v45  ;;  %v9868_v45 = vor.u32 %v9867_v27, %v9864_v53  ;;  %v16830_v27 = vld [vmem:[%s17020_s22 + $0x1d0] sm:$0xff]   ;;  %v9937_v52 = vshll.u32 %v16831_v34, 16 }
 0x360   : > { %v9873_v54 = vrot.slane %v9871_v22, 2  ;;  %v9934_v22 = vshrl.u32 %v16831_v34, 16 }
 0x361   : > { %14878 = vmatmul.mubr.msk.bf16.gmra.mrb[76].mxu0 %vm1177_vm2, %v9806_v55  ;;  %v4254_v55 = vrot.slane %v16821_v37, 1  ;;  %v9869_v6 = vsel %vm9438_vm6, %v9859_v15, %v9868_v45  ;;  %v9928_v15 = vshll.u32 %v16830_v27, 16  ;;  %v9939_v37 = vrot.slane %v9937_v52, 3 }
 0x362   : > { %14881 = vmatprep.mubr.msk.bf16.mxu0 %vm1177_vm2, %v9815_v58  ;;  %v9877_v58 = vor.u32 %v9876_v51, %v9873_v54  ;;  %v9936_v51 = vrot.slane %v9934_v22, 2 }
 0x363   : > { %v4255_v63 = vsel %vm2685_vm5, %v4252_v25, %v4254_v55  ;;  %v4257_v4 = vsel %vm2685_vm5, %v4254_v55, %v4256_v13  ;;  %v9930_v57 = vrot.slane %v9928_v15, 3  ;;  %v16833_v25 = vld [vmem:[%s17020_s22 + $0xb8] sm:$0xff]  }
 0x364   : > { %v9878_v44 = vsel %vm9438_vm6, %v9868_v45, %v9877_v58  ;;  %v16832_v45 = vld [vmem:[%s17020_s22 + $0xb0] sm:$0xff]  }
 0x365   : > { %v4264_v12 = vrot.slane %v16832_v45, 1 }
 0x366   : > { %14262 = vmatmul.mubr.msk.bf16.gmra.mrb[12].mxu1 %vm1177_vm2, %v4241_v62  ;;  %v9889_v62 = vshrl.u32 %v16822_v10, 16  ;;  %v16835_v10 = vld [vmem:[%s17020_s22 + $0x1e8] sm:$0xff]  }
 0x367   : > { %14265 = vmatprep.mubr.msk.bf16.mxu1 %vm1177_vm2, %v4243_v7  ;;  %v9886_v7 = vor.u32 %v9885_v61, %v9882_v47  ;;  %v16834_v61 = vld [vmem:[%s17020_s22 + $0x1e0] sm:$0xff]   ;;  %v9955_v48 = vshll.u32 %v16835_v10, 16 }
 0x368   : > { %v9891_v0 = vrot.slane %v9889_v62, 2  ;;  %v9952_v62 = vshrl.u32 %v16835_v10, 16 }
 0x369   : > { %14882 = vmatmul.mubr.msk.bf16.gmra.mrb[80].mxu0 %vm1177_vm2, %v9824_v19  ;;  %v4258_v19 = vrot.slane %v16825_v3, 1  ;;  %v9887_v20 = vsel %vm9438_vm6, %v9877_v58, %v9886_v7  ;;  %v9946_v58 = vshll.u32 %v16834_v61, 16  ;;  %v9957_v3 = vrot.slane %v9955_v48, 3 }
 0x36a   : > { %14885 = vmatprep.mubr.msk.bf16.mxu0 %vm1177_vm2, %v9833_v40  ;;  %v9895_v40 = vor.u32 %v9894_v8, %v9891_v0  ;;  %v9954_v8 = vrot.slane %v9952_v62, 2 }
 0x36b   : > { %v4259_v2 = vsel %vm2685_vm5, %v4256_v13, %v4258_v19  ;;  %v4261_v42 = vsel %vm2685_vm5, %v4258_v19, %v4260_v56  ;;  %v9948_v1 = vrot.slane %v9946_v58, 3  ;;  %v16837_v13 = vld [vmem:[%s17020_s22 + $0xc8] sm:$0xff]  }
 0x36c   : > { %v9896_v9 = vsel %vm9438_vm6, %v9886_v7, %v9895_v40  ;;  %v16836_v7 = vld [vmem:[%s17020_s22 + $0xc0] sm:$0xff]  }
 0x36d   : > { %v4268_v16 = vrot.slane %v16836_v7, 1 }
 0x36e   : > { %14266 = vmatmul.mubr.msk.bf16.gmra.mrb[16].mxu1 %vm1177_vm2, %v4245_v21  ;;  %v9907_v21 = vshrl.u32 %v16826_v28, 16  ;;  %v16839_v28 = vld [vmem:[%s17020_s22 + $0x1f8] sm:$0xff]  }
 0x36f   : > { %14269 = vmatprep.mubr.msk.bf16.mxu1 %vm1177_vm2, %v4247_v43  ;;  %v9904_v43 = vor.u32 %v9903_v32, %v9900_v39  ;;  %v16838_v32 = vld [vmem:[%s17020_s22 + $0x1f0] sm:$0xff]   ;;  %v9973_v36 = vshll.u32 %v16839_v28, 16 }
 0x370   : > { %v9909_v5 = vrot.slane %v9907_v21, 2  ;;  %v9970_v21 = vshrl.u32 %v16839_v28, 16 }
 0x371   : > { %14886 = vmatmul.mubr.msk.bf16.gmra.mrb[84].mxu0 %vm1177_vm2, %v9842_v33  ;;  %v4262_v33 = vrot.slane %v16829_v17, 1  ;;  %v9905_v59 = vsel %vm9438_vm6, %v9895_v40, %v9904_v43  ;;  %v9964_v40 = vshll.u32 %v16838_v32, 16  ;;  %v9975_v17 = vrot.slane %v9973_v36, 3 }
 0x372   : > { %14889 = vmatprep.mubr.msk.bf16.mxu0 %vm1177_vm2, %v9851_v50  ;;  %v9913_v50 = vor.u32 %v9912_v30, %v9909_v5  ;;  %v9972_v30 = vrot.slane %v9970_v21, 2 }
 0x373   : > { %v4263_v53 = vsel %vm2685_vm5, %v4260_v56, %v4262_v33  ;;  %v4265_v55 = vsel %vm2685_vm5, %v4262_v33, %v4264_v12  ;;  %v9966_v23 = vrot.slane %v9964_v40, 3  ;;  %v16841_v56 = vld [vmem:[%s17020_s22 + $0xd8] sm:$0xff]  }
 0x374   : > { %v9914_v14 = vsel %vm9438_vm6, %v9904_v43, %v9913_v50  ;;  %v16840_v43 = vld [vmem:[%s17020_s22 + $0xd0] sm:$0xff]  }
 0x375   : > { %v4272_v11 = vrot.slane %v16840_v43, 1 }
 0x376   : > { %14270 = vmatmul.mubr.msk.bf16.gmra.mrb[20].mxu1 %vm1177_vm2, %v4249_v35  ;;  %v9925_v35 = vshrl.u32 %v16830_v27, 16  ;;  %v16843_v27 = vld [vmem:[%s17020_s22 + $0x208] sm:$0xff]  }
 0x377   : > { %14273 = vmatprep.mubr.msk.bf16.mxu1 %vm1177_vm2, %v4251_v60  ;;  %v9922_v60 = vor.u32 %v9921_v24, %v9918_v38  ;;  %v16842_v24 = vld [vmem:[%s17020_s22 + $0x200] sm:$0xff]   ;;  %v9991_v15 = vshll.u32 %v16843_v27, 16 }
 0x378   : > { %v9927_v41 = vrot.slane %v9925_v35, 2  ;;  %v9988_v35 = vshrl.u32 %v16843_v27, 16 }
 0x379   : > { %14890 = vmatmul.mubr.msk.bf16.gmra.mrb[88].mxu0 %vm1177_vm2, %v9860_v18  ;;  %v4266_v18 = vrot.slane %v16833_v25, 1  ;;  %v9923_v54 = vsel %vm9438_vm6, %v9913_v50, %v9922_v60  ;;  %v9982_v50 = vshll.u32 %v16842_v24, 16  ;;  %v9993_v25 = vrot.slane %v9991_v15, 3 }
 0x37a   : > { %14893 = vmatprep.mubr.msk.bf16.mxu0 %vm1177_vm2, %v9869_v6  ;;  %v9931_v6 = vor.u32 %v9930_v57, %v9927_v41  ;;  %v9990_v57 = vrot.slane %v9988_v35, 2 }
 0x37b   : > { %v4267_v47 = vsel %vm2685_vm5, %v4264_v12, %v4266_v18  ;;  %v4269_v19 = vsel %vm2685_vm5, %v4266_v18, %v4268_v16  ;;  %v9984_v45 = vrot.slane %v9982_v50, 3  ;;  %v16845_v12 = vld [vmem:[%s17020_s22 + $0xe8] sm:$0xff]  }
 0x37c   : > { %v9932_v29 = vsel %vm9438_vm6, %v9922_v60, %v9931_v6  ;;  %v16844_v60 = vld [vmem:[%s17020_s22 + $0xe0] sm:$0xff]  }
 0x37d   : > { %v4276_v34 = vrot.slane %v16844_v60, 1 }
 0x37e   : > { %14274 = vmatmul.mubr.msk.bf16.gmra.mrb[24].mxu1 %vm1177_vm2, %v4253_v31  ;;  %v9943_v31 = vshrl.u32 %v16834_v61, 16  ;;  %v16847_v61 = vld [vmem:[%s17020_s22 + $0x218] sm:$0xff]  }
 0x37f   : > { %14277 = vmatprep.mubr.msk.bf16.mxu1 %vm1177_vm2, %v4255_v63  ;;  %v9940_v63 = vor.u32 %v9939_v37, %v9936_v51  ;;  %v16846_v37 = vld [vmem:[%s17020_s22 + $0x210] sm:$0xff]   ;;  %v10009_v58 = vshll.u32 %v16847_v61, 16 }
 0x380   : > { %v9945_v49 = vrot.slane %v9943_v31, 2  ;;  %v10006_v31 = vshrl.u32 %v16847_v61, 16 }
 0x381   : > { %14894 = vmatmul.mubr.msk.bf16.gmra.mrb[92].mxu0 %vm1177_vm2, %v9878_v44  ;;  %v4270_v44 = vrot.slane %v16837_v13, 1  ;;  %v9941_v0 = vsel %vm9438_vm6, %v9931_v6, %v9940_v63  ;;  %v10000_v6 = vshll.u32 %v16846_v37, 16  ;;  %v10011_v13 = vrot.slane %v10009_v58, 3  ;;  %v18737_v58 = vld [vmem:[%s17020_s22 + $0x128] sm:$0xff]  }
 0x382   : > { %14897 = vmatprep.mubr.msk.bf16.mxu0 %vm1177_vm2, %v9887_v20  ;;  %v9949_v20 = vor.u32 %v9948_v1, %v9945_v49  ;;  %v10008_v1 = vrot.slane %v10006_v31, 2 }
 0x383   : > { %v4271_v39 = vsel %vm2685_vm5, %v4268_v16, %v4270_v44  ;;  %v4273_v33 = vsel %vm2685_vm5, %v4270_v44, %v4272_v11  ;;  %v10002_v7 = vrot.slane %v10000_v6, 3  ;;  %v16849_v16 = vld [vmem:[%s17020_s22 + $0xf8] sm:$0xff]  }
 0x384   : > { %v9950_v26 = vsel %vm9438_vm6, %v9940_v63, %v9949_v20  ;;  %v16848_v63 = vld [vmem:[%s17020_s22 + $0xf0] sm:$0xff]  }
 0x385   : > { %v4280_v10 = vrot.slane %v16848_v63, 1  ;;  %v4294_v63 = vrot.slane %v18737_v58, 1 }
 0x386   : > { %14278 = vmatmul.mubr.msk.bf16.gmra.mrb[28].mxu1 %vm1177_vm2, %v4257_v4  ;;  %v9961_v4 = vshrl.u32 %v16838_v32, 16  ;;  %v16851_v32 = vld [vmem:[%s17020_s22 + $0x228] sm:$0xff]  }
 0x387   : > { %14281 = vmatprep.mubr.msk.bf16.mxu1 %vm1177_vm2, %v4259_v2  ;;  %v9958_v2 = vor.u32 %v9957_v3, %v9954_v8  ;;  %v16850_v3 = vld [vmem:[%s17020_s22 + $0x220] sm:$0xff]   ;;  %v10027_v40 = vshll.u32 %v16851_v32, 16 }
 0x388   : > { %v9963_v46 = vrot.slane %v9961_v4, 2  ;;  %v10024_v4 = vshrl.u32 %v16851_v32, 16  ;;  %v16864_v32 = vld [vmem:[%s17020_s22 + $0x30] sm:$0xff]  }
 0x389   : > { %14898 = vmatmul.mubr.msk.bf16.gmra.mrb[96].mxu0 %vm1177_vm2, %v9896_v9  ;;  %v4274_v9 = vrot.slane %v16841_v56, 1  ;;  %v9959_v5 = vsel %vm9438_vm6, %v9949_v20, %v9958_v2  ;;  %v10018_v20 = vshll.u32 %v16850_v3, 16  ;;  %v10029_v56 = vrot.slane %v10027_v40, 3 }
 0x38a   : > { %14901 = vmatprep.mubr.msk.bf16.mxu0 %vm1177_vm2, %v9905_v59  ;;  %v9967_v59 = vor.u32 %v9966_v23, %v9963_v46  ;;  %v10026_v23 = vrot.slane %v10024_v4, 2  ;;  %v10989_v4 = vrot.slane %v16864_v32, 3 }
 0x38b   : > { %v4275_v38 = vsel %vm2685_vm5, %v4272_v11, %v4274_v9  ;;  %v4277_v18 = vsel %vm2685_vm5, %v4274_v9, %v4276_v34  ;;  %v10020_v43 = vrot.slane %v10018_v20, 3  ;;  %v16853_v11 = vld [vmem:[%s17020_s22 + $0x108] sm:$0xff]  }
 0x38c   : > { %v9968_v22 = vsel %vm9438_vm6, %v9958_v2, %v9967_v59  ;;  %v16852_v2 = vld [vmem:[%s17020_s22 + $0x100] sm:$0xff]  }
 0x38d   : > { %v4284_v28 = vrot.slane %v16852_v2, 1  ;;  %v16865_v2 = vld [vmem:[%s17020_s22 + $0x38] sm:$0xff]  }
 0x38e   : > { %14282 = vmatmul.mubr.msk.bf16.gmra.mrb[32].mxu1 %vm1177_vm2, %v4261_v42  ;;  %v9979_v42 = vshrl.u32 %v16842_v24, 16  ;;  %v16855_v24 = vld [vmem:[%s17020_s22 + $0x238] sm:$0xff]  }
 0x38f   : > { %14285 = vmatprep.mubr.msk.bf16.mxu1 %vm1177_vm2, %v4263_v53  ;;  %v9976_v53 = vor.u32 %v9975_v17, %v9972_v30  ;;  %v16854_v17 = vld [vmem:[%s17020_s22 + $0x230] sm:$0xff]   ;;  %v10045_v50 = vshll.u32 %v16855_v24, 16 }
 0x390   : > { %v9981_v52 = vrot.slane %v9979_v42, 2  ;;  %v10042_v42 = vshrl.u32 %v16855_v24, 16  ;;  %v18791_v24 = vld [vmem:[%s17020_s22 + $0x158] sm:$0xff]  }
 0x391   : > { %14902 = vmatmul.mubr.msk.bf16.gmra.mrb[100].mxu0 %vm1177_vm2, %v9914_v14  ;;  %v4278_v14 = vrot.slane %v16845_v12, 1  ;;  %v9977_v41 = vsel %vm9438_vm6, %v9967_v59, %v9976_v53  ;;  %v10036_v59 = vshll.u32 %v16854_v17, 16 }
 0x392   : > { %14905 = vmatprep.mubr.msk.bf16.mxu0 %vm1177_vm2, %v9923_v54  ;;  %v9985_v54 = vor.u32 %v9984_v45, %v9981_v52  ;;  %v16394_v52 = vld [vmem:[%s17020_s22 + $0x240] ss:$0 sps:$4 sm:$0x77]   ;;  %v10044_v12 = vrot.slane %v10042_v42, 2  ;;  %v4306_v42 = vrot.slane %v18791_v24, 1 }
 0x393   : > { %v4279_v51 = vsel %vm2685_vm5, %v4276_v34, %v4278_v14  ;;  %v4281_v44 = vsel %vm2685_vm5, %v4278_v14, %v4280_v10  ;;  %v10038_v60 = vrot.slane %v10036_v59, 3  ;;  %v16857_v34 = vld [vmem:[%s17020_s22 + $0x118] sm:$0xff]   ;;  %v10047_v14 = vrot.slane %v10045_v50, 3 }
 0x394   : > { %v9986_v62 = vsel %vm9438_vm6, %v9976_v53, %v9985_v54  ;;  %v16856_v53 = vld [vmem:[%s17020_s22 + $0x110] sm:$0xff]  }
 0x395   : > { %v4288_v27 = vrot.slane %v16856_v53, 1 }
 0x396   : > { %14286 = vmatmul.mubr.msk.bf16.gmra.mrb[36].mxu1 %vm1177_vm2, %v4265_v55  ;;  %v9997_v55 = vshrl.u32 %v16846_v37, 16  ;;  %v10979_v37 = vld [vmem:[%s17020_s22 + $0x20] sm:$0x8] }
 0x397   : > { %14289 = vmatprep.mubr.msk.bf16.mxu1 %vm1177_vm2, %v4267_v47  ;;  %v9994_v47 = vor.u32 %v9993_v25, %v9990_v57 }
 0x398   : > { %v9999_v48 = vrot.slane %v9997_v55, 2  ;;  %v16858_v55 = vld [vmem:[%s17020_s22 + $0x120] sm:$0xff]  }
 0x399   : > { %14906 = vmatmul.mubr.msk.bf16.gmra.mrb[104].mxu0 %vm1177_vm2, %v9932_v29  ;;  %v4282_v29 = vrot.slane %v16849_v16, 1  ;;  %v9995_v49 = vsel %vm9438_vm6, %v9985_v54, %v9994_v47  ;;  %v10054_v54 = vshll.u32 %v16394_v52, 16  ;;  %v4292_v6 = vrot.slane %v16858_v55, 1  ;;  %v18822_v55 = vld [vmem:[%s17020_s22 + $0x170] sm:$0xff]  }
 0x39a   : > { %14909 = vmatprep.mubr.msk.bf16.mxu0 %vm1177_vm2, %v9941_v0  ;;  %v10003_v0 = vor.u32 %v10002_v7, %v9999_v48 }
 0x39b   : > { %v4283_v8 = vsel %vm2685_vm5, %v4280_v10, %v4282_v29  ;;  %v4285_v9 = vsel %vm2685_vm5, %v4282_v29, %v4284_v28  ;;  %v10056_v31 = vrot.slane %v10054_v54, 3  ;;  %v4295_v29 = vsel %vm2685_vm5, %v4292_v6, %v4294_v63 }
 0x39c   : > { %v10004_v21 = vsel %vm9438_vm6, %v9994_v47, %v10003_v0 }
 0x39e   : > { %14290 = vmatmul.mubr.msk.bf16.gmra.mrb[40].mxu1 %vm1177_vm2, %v4269_v19  ;;  %v10015_v19 = vshrl.u32 %v16850_v3, 16  ;;  %v18755_v3 = vld [vmem:[%s17020_s22 + $0x138] sm:$0xff]  }
 0x39f   : > { %14293 = vmatprep.mubr.msk.bf16.mxu1 %vm1177_vm2, %v4271_v39  ;;  %v10012_v39 = vor.u32 %v10011_v13, %v10008_v1  ;;  %v16861_v1 = vld [vmem:[%s17020_s22 + $0x28] sm:$0xff]  }
 0x3a0   : > { %v10017_v36 = vrot.slane %v10015_v19, 2  ;;  %v10987_v13 = vrot.slane %v16861_v1, 3  ;;  %v4298_v19 = vrot.slane %v18755_v3, 1 }
 0x3a1   : > { %14910 = vmatmul.mubr.msk.bf16.gmra.mrb[108].mxu0 %vm1177_vm2, %v9950_v26  ;;  %v4286_v26 = vrot.slane %v16853_v11, 1  ;;  %v10013_v46 = vsel %vm9438_vm6, %v10003_v0, %v10012_v39  ;;  %v18773_v11 = vld [vmem:[%s17020_s22 + $0x148] sm:$0xff]  }
 0x3a2   : > { %14913 = vmatprep.mubr.msk.bf16.mxu0 %vm1177_vm2, %v9959_v5  ;;  %v10021_v5 = vor.u32 %v10020_v43, %v10017_v36  ;;  %v10990_v43 = vsel %vm10985_vm7, %v10987_v13, %v10989_v4 }
 0x3a3   : > { %v4287_v30 = vsel %vm2685_vm5, %v4284_v28, %v4286_v26  ;;  %v10991_v28 = vrot.slane %v16865_v2, 3 }
 0x3a4   : > { %v10022_v35 = vsel %vm9438_vm6, %v10012_v39, %v10021_v5 }
 0x3a6   : > { %14294 = vmatmul.mubr.msk.bf16.gmra.mrb[44].mxu1 %vm1177_vm2, %v4273_v33  ;;  %v10033_v33 = vshrl.u32 %v16854_v17, 16 }
 0x3a7   : > { %14297 = vmatprep.mubr.msk.bf16.mxu1 %vm1177_vm2, %v4275_v38  ;;  %v10030_v38 = vor.u32 %v10029_v56, %v10026_v23  ;;  %v16868_v56 = vld [vmem:[%s17020_s22 + $0x40] sm:$0xff]  }
 0x3a8   : > { %v10035_v15 = vrot.slane %v10033_v33, 2  ;;  %v18786_v33 = vld [vmem:[%s17020_s22 + $0x150] sm:$0xff]  }
 0x3a9   : > { %14914 = vmatmul.mubr.msk.bf16.gmra.mrb[112].mxu0 %vm1177_vm2, %v9968_v22  ;;  %v4290_v22 = vrot.slane %v16857_v34, 1  ;;  %v10031_v45 = vsel %vm9438_vm6, %v10021_v5, %v10030_v38  ;;  %v4304_v59 = vrot.slane %v18786_v33, 1 }
 0x3aa   : > { %14917 = vmatprep.mubr.msk.bf16.mxu0 %vm1177_vm2, %v9977_v41  ;;  %v4289_v41 = vsel %vm2685_vm5, %v4286_v26, %v4288_v27  ;;  %v10039_v57 = vor.u32 %v10038_v60, %v10035_v15  ;;  %v4302_v26 = vrot.slane %v18773_v11, 1  ;;  %v16873_v60 = vld [vmem:[%s17020_s22 + $0x58] sm:$0xff]  }
 0x3ab   : > { %v4291_v25 = vsel %vm2685_vm5, %v4288_v27, %v4290_v22  ;;  %v4293_v7 = vsel %vm2685_vm5, %v4290_v22, %v4292_v6  ;;  %v16872_v27 = vld [vmem:[%s17020_s22 + $0x50] sm:$0xff]   ;;  %v4307_v15 = vsel %vm2685_vm5, %v4304_v59, %v4306_v42  ;;  %v10999_v34 = vrot.slane %v16873_v60, 3  ;;  %v18804_v22 = vld [vmem:[%s17020_s22 + $0x160] sm:$0xff]  }
 0x3ac   : > { %v10040_v47 = vsel %vm9438_vm6, %v10030_v38, %v10039_v57  ;;  %v4305_v53 = vsel %vm2685_vm5, %v4302_v26, %v4304_v59  ;;  %v4312_v6 = vrot.slane %v18822_v55, 1  ;;  %v16892_v60 = vld [vmem:[%s17020_s22 + $0xa0] sm:$0xff]  }
 0x3ae   : > { %14298 = vmatmul.mubr.msk.bf16.gmra.mrb[48].mxu1 %vm1177_vm2, %v4277_v18  ;;  %v10051_v18 = vshrl.u32 %v16394_v52, 16  ;;  %v4308_v52 = vrot.slane %v18804_v22, 1 }
 0x3af   : > { %14301 = vmatprep.mubr.msk.bf16.mxu1 %vm1177_vm2, %v4279_v51  ;;  %v10048_v51 = vor.u32 %v10047_v14, %v10044_v12  ;;  %v18809_v12 = vld [vmem:[%s17020_s22 + $0x168] sm:$0xff]  }
 0x3b0   : > { %v10053_v61 = vrot.slane %v10051_v18, 2  ;;  %v4310_v14 = vrot.slane %v18809_v12, 1 }
 0x3b1   : > { %14918 = vmatmul.mubr.msk.bf16.gmra.mrb[116].mxu0 %vm1177_vm2, %v9986_v62  ;;  %v10049_v10 = vsel %vm9438_vm6, %v10039_v57, %v10048_v51  ;;  %v16860_v62 = vld [vmem:[%s17020_s22 + $0x24] sm:$0xf]  ;;  %v4309_v57 = vsel %vm2685_vm5, %v4306_v42, %v4308_v52 }
 0x3b2   : > { %14921 = vmatprep.mubr.msk.bf16.mxu0 %vm1177_vm2, %v9995_v49  ;;  %v13141_v48 = vcombine.low %v10979_v37, %v16860_v62  ;;  %v10057_v16 = vor.u32 %v10056_v31, %v10053_v61  ;;  %v4311_v54 = vsel %vm2685_vm5, %v4308_v52, %v4310_v14  ;;  %v18827_v61 = vld [vmem:[%s17020_s22 + $0x178] sm:$0xff]   ;;  %v16880_v62 = vld [vmem:[%s17020_s22 + $0x70] sm:$0xff]  }
 0x3b3   : > { %v4314_v31 = vrot.slane %v18827_v61, 1 }
 0x3b4   : > { %v10986_v49 = vrot.slane %v13141_v48, 3  ;;  %v11005_v48 = vrot.slane %v16880_v62, 3  ;;  %v18912_v62 = vld [vmem:[%s17020_s22 + $0x1c0] sm:$0xff]  }
 0x3b6   : > { %14302 = vmatmul.mubr.msk.bf16.gmra.mrb[52].mxu1 %vm1177_vm2, %v4281_v44  ;;  %v18750_v44 = vld [vmem:[%s17020_s22 + $0x130] sm:$0xff]   ;;  %v10988_v20 = vsel %vm10985_vm7, %v10986_v49, %v10987_v13  ;;  %v18840_v49 = vld [vmem:[%s17020_s22 + $0x180] sm:$0xff]  }
 0x3b7   : > { %14305 = vmatprep.mubr.msk.bf16.mxu1 %vm1177_vm2, %v4283_v8  ;;  %v4296_v0 = vrot.slane %v18750_v44, 1  ;;  %v10058_v8 = vsel %vm9438_vm6, %v10048_v51, %v10057_v16  ;;  %v16877_v51 = vld [vmem:[%s17020_s22 + $0x68] sm:$0xff]   ;;  %v16881_v16 = vld [vmem:[%s17020_s22 + $0x78] sm:$0xff]   ;;  %v4316_v1 = vrot.slane %v18840_v49, 1 }
 0x3b8   : > { %v11003_v37 = vrot.slane %v16877_v51, 3 }
 0x3b9   : > { %14922 = vmatmul.mubr.msk.bf16.gmra.mrb[120].mxu0 %vm1177_vm2, %v10004_v21  ;;  %v4297_v39 = vsel %vm2685_vm5, %v4294_v63, %v4296_v0  ;;  %v4299_v40 = vsel %vm2685_vm5, %v4296_v0, %v4298_v19  ;;  %v18768_v21 = vld [vmem:[%s17020_s22 + $0x140] sm:$0xff]   ;;  %v18845_v0 = vld [vmem:[%s17020_s22 + $0x188] sm:$0xff]  }
 0x3ba   : > { %14925 = vmatprep.mubr.msk.bf16.mxu0 %vm1177_vm2, %v10013_v46  ;;  %v4300_v36 = vrot.slane %v18768_v21, 1  ;;  %v10992_v46 = vsel %vm10985_vm7, %v10989_v4, %v10991_v28  ;;  %v11006_v13 = vsel %vm10985_vm7, %v11003_v37, %v11005_v48 }
 0x3bc   : > { %v4301_v23 = vsel %vm2685_vm5, %v4298_v19, %v4300_v36  ;;  %v4303_v5 = vsel %vm2685_vm5, %v4300_v36, %v4302_v26  ;;  %v18863_v26 = vld [vmem:[%s17020_s22 + $0x198] sm:$0xff]  }
 0x3be   : > { %14306 = vmatmul.mubr.msk.bf16.gmra.mrb[56].mxu1 %vm1177_vm2, %v4285_v9  ;;  %v10993_v9 = vrot.slane %v16868_v56, 3 }
 0x3bf   : > { %14309 = vmatprep.mubr.msk.bf16.mxu1 %vm1177_vm2, %v4287_v30  ;;  %v16869_v30 = vld [vmem:[%s17020_s22 + $0x48] sm:$0xff]  }
 0x3c0   : > { %v10995_v17 = vrot.slane %v16869_v30, 3  ;;  %v10994_v38 = vsel %vm10985_vm7, %v10991_v28, %v10993_v9  ;;  %v18858_v28 = vld [vmem:[%s17020_s22 + $0x190] sm:$0xff]  }
 0x3c1   : > { %14926 = vmatmul.mubr.msk.bf16.gmra.mrb[124].mxu0 %vm1177_vm2, %v10022_v35  ;;  %v10997_v35 = vrot.slane %v16872_v27, 3  ;;  %v4320_v36 = vrot.slane %v18858_v28, 1 }
 0x3c2   : > { %14929 = vmatprep.mubr.msk.bf16.mxu0 %vm1177_vm2, %v10031_v45  ;;  %v10996_v50 = vsel %vm10985_vm7, %v10993_v9, %v10995_v17  ;;  %v16888_v9 = vld [vmem:[%s17020_s22 + $0x90] sm:$0xff]  }
 0x3c3   : > { %v10998_v45 = vsel %vm10985_vm7, %v10995_v17, %v10997_v35  ;;  %v16889_v17 = vld [vmem:[%s17020_s22 + $0x98] sm:$0xff]  }
 0x3c4   : > { %v11015_v59 = vrot.slane %v16889_v17, 3  ;;  %v16904_v17 = vld [vmem:[%s17020_s22 + $0xd0] sm:$0xff]  }
 0x3c6   : > { %14310 = vmatmul.mubr.msk.bf16.gmra.mrb[60].mxu1 %vm1177_vm2, %v4289_v41  ;;  %v11000_v41 = vsel %vm10985_vm7, %v10997_v35, %v10999_v34 }
 0x3c7   : > { %14313 = vmatprep.mubr.msk.bf16.mxu1 %vm1177_vm2, %v4291_v25  ;;  %v16876_v25 = vld [vmem:[%s17020_s22 + $0x60] sm:$0xff]  }
 0x3c8   : > { %v11001_v18 = vrot.slane %v16876_v25, 3 }
 0x3c9   : > { %14930 = vmatmul.mubr.msk.bf16.gmra.mrb[128].mxu0 %vm1177_vm2, %v10040_v47 }
 0x3ca   : > { %14933 = vmatprep.mubr.msk.bf16.mxu0 %vm1177_vm2, %v10049_v10  ;;  %v11002_v47 = vsel %vm10985_vm7, %v10999_v34, %v11001_v18  ;;  %v11004_v63 = vsel %vm10985_vm7, %v11001_v18, %v11003_v37  ;;  %v4313_v10 = vsel %vm2685_vm5, %v4310_v14, %v4312_v6  ;;  %v11017_v34 = vrot.slane %v16892_v60, 3  ;;  %v18899_v18 = vld [vmem:[%s17020_s22 + $0x1b8] sm:$0xff]  }
 0x3cc   : > { %v11018_v25 = vsel %vm10985_vm7, %v11015_v59, %v11017_v34 }
 0x3ce   : > { %14314 = vmatmul.mubr.msk.bf16.gmra.mrb[64].mxu1 %vm1177_vm2, %v4293_v7  ;;  %v4315_v7 = vsel %vm2685_vm5, %v4312_v6, %v4314_v31  ;;  %v16896_v6 = vld [vmem:[%s17020_s22 + $0xb0] sm:$0xff]  }
 0x3cf   : > { %14317 = vmatprep.mubr.msk.bf16.mxu1 %vm1177_vm2, %v4295_v29  ;;  %v11007_v29 = vrot.slane %v16881_v16, 3  ;;  %v18917_v16 = vld [vmem:[%s17020_s22 + $0x1c8] sm:$0xff]  }
 0x3d1   : > { %14934 = vmatmul.mubr.msk.bf16.gmra.mrb[132].mxu0 %vm1177_vm2, %v10058_v8  ;;  %v4318_v8 = vrot.slane %v18845_v0, 1  ;;  %v11008_v19 = vsel %vm10985_vm7, %v11005_v48, %v11007_v29  ;;  %v4332_v48 = vrot.slane %v18912_v62, 1 }
 0x3d2   : > { %14939 = vmatprep.mubr.msk.bf16.mxu0 %vm1177_vm2, %v10988_v20  ;;  %v4317_v20 = vsel %vm2685_vm5, %v4314_v31, %v4316_v1 }
 0x3d3   : > { %v4319_v4 = vsel %vm2685_vm5, %v4316_v1, %v4318_v8  ;;  %v4321_v56 = vsel %vm2685_vm5, %v4318_v8, %v4320_v36  ;;  %v16900_v8 = vld [vmem:[%s17020_s22 + $0xc0] sm:$0xff]  }
 0x3d6   : > { %14318 = vmatmul.mubr.msk.bf16.gmra.mrb[68].mxu1 %vm1177_vm2, %v4297_v39  ;;  %v16884_v39 = vld [vmem:[%s17020_s22 + $0x80] sm:$0xff]  }
 0x3d7   : > { %14321 = vmatprep.mubr.msk.bf16.mxu1 %vm1177_vm2, %v4299_v40  ;;  %v11009_v32 = vrot.slane %v16884_v39, 3  ;;  %v16885_v40 = vld [vmem:[%s17020_s22 + $0x88] sm:$0xff]  }
 0x3d8   : > { %v11011_v2 = vrot.slane %v16885_v40, 3  ;;  %v16901_v39 = vld [vmem:[%s17020_s22 + $0xc8] sm:$0xff]  }
 0x3d9   : > { %14940 = vmatmul.mubr.msk.bf16.vlgmr.msra.gmra.mrb[0].mxu0 %vm1177_vm2, %v10990_v43  ;;  %v11010_v43 = vsel %vm10985_vm7, %v11007_v29, %v11009_v32  ;;  %v4334_v29 = vrot.slane %v18917_v16, 1 }
 0x3da   : > { %14943 = vmatprep.mubr.msk.bf16.mxu0 %vm1177_vm2, %v10992_v46  ;;  %v4322_v46 = vrot.slane %v18863_v26, 1 }
 0x3dc   : > { %v4323_v30 = vsel %vm2685_vm5, %v4320_v36, %v4322_v46  ;;  %v18935_v36 = vld [vmem:[%s17020_s22 + $0x1d8] sm:$0xff]  }
 0x3de   : > { %14322 = vmatmul.mubr.msk.bf16.gmra.mrb[72].mxu1 %vm1177_vm2, %v4301_v23  ;;  %v11012_v23 = vsel %vm10985_vm7, %v11009_v32, %v11011_v2  ;;  %v11027_v32 = vrot.slane %v16901_v39, 3 }
 0x3df   : > { %14325 = vmatprep.mubr.msk.bf16.mxu1 %vm1177_vm2, %v4303_v5  ;;  %v11013_v5 = vrot.slane %v16888_v9, 3 }
 0x3e1   : > { %14944 = vmatmul.mubr.msk.bf16.gmra.mrb[4].mxu0 %vm1177_vm2, %v10994_v38  ;;  %v18876_v38 = vld [vmem:[%s17020_s22 + $0x1a0] sm:$0xff]   ;;  %v11016_v35 = vsel %vm10985_vm7, %v11013_v5, %v11015_v59  ;;  %v11029_v59 = vrot.slane %v16904_v17, 3 }
 0x3e2   : > { %14947 = vmatprep.mubr.msk.bf16.mxu0 %vm1177_vm2, %v10996_v50  ;;  %v4324_v42 = vrot.slane %v18876_v38, 1  ;;  %v11014_v50 = vsel %vm10985_vm7, %v11011_v2, %v11013_v5  ;;  %v19008_v17 = vld [vmem:[%s17020_s22 + $0x200] sm:$0xff]  }
 0x3e3   : > { %v11030_v60 = vsel %vm10985_vm7, %v11027_v32, %v11029_v59 }
 0x3e6   : > { %14326 = vmatmul.mubr.msk.bf16.gmra.mrb[76].mxu1 %vm1177_vm2, %v4305_v53  ;;  %v18881_v53 = vld [vmem:[%s17020_s22 + $0x1a8] sm:$0xff]  }
 0x3e7   : > { %14329 = vmatprep.mubr.msk.bf16.mxu1 %vm1177_vm2, %v4307_v15  ;;  %v4326_v27 = vrot.slane %v18881_v53, 1  ;;  %v4325_v15 = vsel %vm2685_vm5, %v4322_v46, %v4324_v42 }
 0x3e9   : > { %14948 = vmatmul.mubr.msk.bf16.gmra.mrb[8].mxu0 %vm1177_vm2, %v10998_v45  ;;  %v4327_v52 = vsel %vm2685_vm5, %v4324_v42, %v4326_v27  ;;  %v16893_v45 = vld [vmem:[%s17020_s22 + $0xa8] sm:$0xff]  }
 0x3ea   : > { %14951 = vmatprep.mubr.msk.bf16.mxu0 %vm1177_vm2, %v11000_v41  ;;  %v11019_v14 = vrot.slane %v16893_v45, 3  ;;  %v18894_v41 = vld [vmem:[%s17020_s22 + $0x1b0] sm:$0xff]  }
 0x3ec   : > { %v11020_v51 = vsel %vm10985_vm7, %v11017_v34, %v11019_v14  ;;  %v18961_v34 = vld [vmem:[%s17020_s22 + $0x1e8] sm:$0xff]  }
 0x3ee   : > { %14330 = vmatmul.mubr.msk.bf16.gmra.mrb[80].mxu1 %vm1177_vm2, %v4309_v57  ;;  %v4328_v57 = vrot.slane %v18894_v41, 1 }
 0x3ef   : > { %14333 = vmatprep.mubr.msk.bf16.mxu1 %vm1177_vm2, %v4311_v54  ;;  %v4330_v54 = vrot.slane %v18899_v18, 1 }
 0x3f0   : > { %v4329_v37 = vsel %vm2685_vm5, %v4326_v27, %v4328_v57 }
 0x3f1   : > { %14952 = vmatmul.mubr.msk.bf16.gmra.mrb[12].mxu0 %vm1177_vm2, %v11002_v47  ;;  %v11021_v47 = vrot.slane %v16896_v6, 3  ;;  %v4331_v31 = vsel %vm2685_vm5, %v4328_v57, %v4330_v54 }
 0x3f2   : > { %14955 = vmatprep.mubr.msk.bf16.mxu0 %vm1177_vm2, %v11004_v63  ;;  %v16897_v63 = vld [vmem:[%s17020_s22 + $0xb8] sm:$0xff]  }
 0x3f6   : > { %14334 = vmatmul.mubr.msk.bf16.gmra.mrb[84].mxu1 %vm1177_vm2, %v4313_v10  ;;  %v11023_v10 = vrot.slane %v16897_v63, 3 }
 0x3f7   : > { %14337 = vmatprep.mubr.msk.bf16.mxu1 %vm1177_vm2, %v4315_v7  ;;  %v11022_v7 = vsel %vm10985_vm7, %v11019_v14, %v11021_v47 }
 0x3f8   : > { %v11024_v1 = vsel %vm10985_vm7, %v11021_v47, %v11023_v10 }
 0x3f9   : > { %14956 = vmatmul.mubr.msk.bf16.gmra.mrb[16].mxu0 %vm1177_vm2, %v11006_v13  ;;  %v4333_v13 = vsel %vm2685_vm5, %v4330_v54, %v4332_v48 }
 0x3fa   : > { %14959 = vmatprep.mubr.msk.bf16.mxu0 %vm1177_vm2, %v11008_v19  ;;  %v11025_v19 = vrot.slane %v16900_v8, 3 }
 0x3fc   : > { %v11026_v2 = vsel %vm10985_vm7, %v11023_v10, %v11025_v19  ;;  %v18982_v10 = vld [vmem:[%s17020_s22 + $0x1f0] sm:$0xff]  }
 0x3fe   : > { %14338 = vmatmul.mubr.msk.bf16.gmra.mrb[88].mxu1 %vm1177_vm2, %v4317_v20  ;;  %v4335_v20 = vsel %vm2685_vm5, %v4332_v48, %v4334_v29  ;;  %v4344_v48 = vrot.slane %v18982_v10, 1 }
 0x3ff   : > { %14341 = vmatprep.mubr.msk.bf16.mxu1 %vm1177_vm2, %v4319_v4  ;;  %v18930_v4 = vld [vmem:[%s17020_s22 + $0x1d0] sm:$0xff]  }
 0x400   : > { %v4336_v40 = vrot.slane %v18930_v4, 1 }
 0x401   : > { %14960 = vmatmul.mubr.msk.bf16.gmra.mrb[20].mxu0 %vm1177_vm2, %v11010_v43  ;;  %v4338_v43 = vrot.slane %v18935_v36, 1 }
 0x402   : > { %14963 = vmatprep.mubr.msk.bf16.mxu0 %vm1177_vm2, %v11012_v23  ;;  %v11028_v23 = vsel %vm10985_vm7, %v11025_v19, %v11027_v32  ;;  %v4337_v5 = vsel %vm2685_vm5, %v4334_v29, %v4336_v40  ;;  %v18987_v29 = vld [vmem:[%s17020_s22 + $0x1f8] sm:$0xff]  }
 0x403   : > { %v4339_v42 = vsel %vm2685_vm5, %v4336_v40, %v4338_v43  ;;  %v16912_v40 = vld [vmem:[%s17020_s22 + $0xf0] sm:$0xff]  }
 0x406   : > { %14342 = vmatmul.mubr.msk.bf16.gmra.mrb[92].mxu1 %vm1177_vm2, %v4321_v56 }
 0x407   : > { %14345 = vmatprep.mubr.msk.bf16.mxu1 %vm1177_vm2, %v4323_v30 }
 0x409   : > { %14964 = vmatmul.mubr.msk.bf16.gmra.mrb[24].mxu0 %vm1177_vm2, %v11014_v50  ;;  %v16905_v50 = vld [vmem:[%s17020_s22 + $0xd8] sm:$0xff]  }
 0x40a   : > { %14967 = vmatprep.mubr.msk.bf16.mxu0 %vm1177_vm2, %v11016_v35  ;;  %v11031_v27 = vrot.slane %v16905_v50, 3  ;;  %v18956_v35 = vld [vmem:[%s17020_s22 + $0x1e0] sm:$0xff]   ;;  %v19013_v50 = vld [vmem:[%s17020_s22 + $0x208] sm:$0xff]  }
 0x40c   : > { %v11032_v14 = vsel %vm10985_vm7, %v11029_v59, %v11031_v27  ;;  %v4348_v59 = vrot.slane %v19008_v17, 1 }
 0x40e   : > { %14346 = vmatmul.mubr.msk.bf16.gmra.mrb[96].mxu1 %vm1177_vm2, %v4325_v15  ;;  %v4340_v15 = vrot.slane %v18956_v35, 1 }
 0x40f   : > { %14349 = vmatprep.mubr.msk.bf16.mxu1 %vm1177_vm2, %v4327_v52  ;;  %v4342_v52 = vrot.slane %v18961_v34, 1 }
 0x410   : > { %v4341_v54 = vsel %vm2685_vm5, %v4338_v43, %v4340_v15 }
 0x411   : > { %14968 = vmatmul.mubr.msk.bf16.gmra.mrb[28].mxu0 %vm1177_vm2, %v11018_v25  ;;  %v4343_v47 = vsel %vm2685_vm5, %v4340_v15, %v4342_v52  ;;  %v4345_v39 = vsel %vm2685_vm5, %v4342_v52, %v4344_v48 }
 0x412   : > { %14971 = vmatprep.mubr.msk.bf16.mxu0 %vm1177_vm2, %v11020_v51 }
 0x416   : > { %14350 = vmatmul.mubr.msk.bf16.gmra.mrb[100].mxu1 %vm1177_vm2, %v4329_v37  ;;  %v16908_v37 = vld [vmem:[%s17020_s22 + $0xe0] sm:$0xff]  }
 0x417   : > { %14353 = vmatprep.mubr.msk.bf16.mxu1 %vm1177_vm2, %v4331_v31  ;;  %v11033_v6 = vrot.slane %v16908_v37, 3  ;;  %v16909_v31 = vld [vmem:[%s17020_s22 + $0xe8] sm:$0xff]  }
 0x418   : > { %v11035_v63 = vrot.slane %v16909_v31, 3 }
 0x419   : > { %14972 = vmatmul.mubr.msk.bf16.gmra.mrb[32].mxu0 %vm1177_vm2, %v11022_v7  ;;  %v11034_v7 = vsel %vm10985_vm7, %v11031_v27, %v11033_v6  ;;  %v4350_v27 = vrot.slane %v19013_v50, 1 }
 0x41a   : > { %14975 = vmatprep.mubr.msk.bf16.mxu0 %vm1177_vm2, %v11024_v1  ;;  %v4346_v1 = vrot.slane %v18987_v29, 1  ;;  %v11036_v8 = vsel %vm10985_vm7, %v11033_v6, %v11035_v63  ;;  %v16916_v6 = vld [vmem:[%s17020_s22 + $0x100] sm:$0xff]  }
 0x41b   : > { %v4351_v31 = vsel %vm2685_vm5, %v4348_v59, %v4350_v27 }
 0x41c   : > { %v4347_v43 = vsel %vm2685_vm5, %v4344_v48, %v4346_v1 }
 0x41e   : > { %14354 = vmatmul.mubr.msk.bf16.gmra.mrb[104].mxu1 %vm1177_vm2, %v4333_v13 }
 0x41f   : > { %14357 = vmatprep.mubr.msk.bf16.mxu1 %vm1177_vm2, %v4335_v20 }
 0x421   : > { %v18938_v46 = vpop.f32.mrb[0].mxu1  ;;  %14976 = vmatmul.mubr.msk.bf16.gmra.mrb[36].mxu0 %vm1177_vm2, %v11026_v2  ;;  %v11037_v2 = vrot.slane %v16912_v40, 3 }
 0x422   : > { %v18941_v56 = vpop.f32.mrb[1].mxu1  ;;  %14979 = vmatprep.mubr.msk.bf16.mxu0 %vm1177_vm2, %v11028_v23  ;;  %v16913_v23 = vld [vmem:[%s17020_s22 + $0xf8] sm:$0xff]  }
 0x423   : > { %v18944_v9 = vpop.f32.mrb[2].mxu1 }
 0x424   : > { %v18947_v30 = vpop.f32.mrb[3].mxu1 }
 0x426   : > { %14358 = vmatmul.mubr.msk.bf16.gmra.mrb[108].mxu1 %vm1177_vm2, %v4337_v5  ;;  %v11039_v5 = vrot.slane %v16913_v23, 3 }
 0x427   : > { %14361 = vmatprep.mubr.msk.bf16.mxu1 %vm1177_vm2, %v4339_v42  ;;  %v11038_v42 = vsel %vm10985_vm7, %v11035_v63, %v11037_v2  ;;  %v16917_v63 = vld [vmem:[%s17020_s22 + $0x108] sm:$0xff]  }
 0x428   : > { %v11043_v48 = vrot.slane %v16917_v63, 3 }
 0x429   : > { %v18964_v45 = vpop.f32.mrb[4].mxu1  ;;  %14980 = vmatmul.mubr.msk.bf16.gmra.mrb[40].mxu0 %vm1177_vm2, %v11030_v60  ;;  %v11040_v60 = vsel %vm10985_vm7, %v11037_v2, %v11039_v5 }
 0x42a   : > { %v18967_v57 = vpop.f32.mrb[5].mxu1  ;;  %14983 = vmatprep.mubr.msk.bf16.mxu0 %vm1177_vm2, %v11032_v14 }
 0x42b   : > { %v18970_v25 = vpop.f32.mrb[6].mxu1 }
 0x42c   : > { %v18973_v51 = vpop.f32.mrb[7].mxu1 }
 0x42e   : > { %14362 = vmatmul.mubr.msk.bf16.gmra.mrb[112].mxu1 %vm1177_vm2, %v4341_v54  ;;  %v4349_v54 = vsel %vm2685_vm5, %v4346_v1, %v4348_v59 }
 0x42f   : > { %14365 = vmatprep.mubr.msk.bf16.mxu1 %vm1177_vm2, %v4343_v47  ;;  %v11041_v47 = vrot.slane %v16916_v6, 3 }
 0x431   : > { %v18990_v13 = vpop.f32.mrb[8].mxu1  ;;  %14984 = vmatmul.mubr.msk.bf16.gmra.mrb[44].mxu0 %vm1177_vm2, %v11034_v7  ;;  %v19034_v7 = vld [vmem:[%s17020_s22 + $0x210] sm:$0xff]  }
 0x432   : > { %v18993_v19 = vpop.f32.mrb[9].mxu1  ;;  %14987 = vmatprep.mubr.msk.bf16.mxu0 %vm1177_vm2, %v11036_v8  ;;  %v4352_v1 = vrot.slane %v19034_v7, 1  ;;  %v11042_v8 = vsel %vm10985_vm7, %v11039_v5, %v11041_v47  ;;  %v16920_v5 = vld [vmem:[%s17020_s22 + $0x110] sm:$0xff]  }
 0x433   : > { %v18996_v20 = vpop.f32.mrb[10].mxu1 }
 0x434   : > { %v18999_v32 = vpop.f32.mrb[11].mxu1 }
 0x436   : > { %14366 = vmatmul.mubr.msk.bf16.gmra.mrb[116].mxu1 %vm1177_vm2, %v4345_v39  ;;  %v19039_v39 = vld [vmem:[%s17020_s22 + $0x218] sm:$0xff]  }
 0x437   : > { %14369 = vmatprep.mubr.msk.bf16.mxu1 %vm1177_vm2, %v4347_v43  ;;  %v4354_v40 = vrot.slane %v19039_v39, 1  ;;  %v11044_v43 = vsel %vm10985_vm7, %v11041_v47, %v11043_v48  ;;  %v19060_v47 = vld [vmem:[%s17020_s22 + $0x220] sm:$0xff]  }
 0x438   : > { %19907 = vst [vmem:[#allocation14_spill] sm:$0xff] %v19060_v47 }
 0x439   : > { %v19016_v15 = vpop.f32.mrb[12].mxu1  ;;  %14988 = vmatmul.mubr.msk.bf16.gmra.mrb[48].mxu0 %vm1177_vm2, %v11038_v42  ;;  %v4353_v42 = vsel %vm2685_vm5, %v4350_v27, %v4352_v1  ;;  %v4355_v6 = vsel %vm2685_vm5, %v4352_v1, %v4354_v40  ;;  %v4356_v27 = vrot.slane %v19060_v47, 1  ;;  %v5604_v1 = vshrl.u32 %v18737_v58, 16 }
 0x43a   : > { %v19019_v52 = vpop.f32.mrb[13].mxu1  ;;  %14991 = vmatprep.mubr.msk.bf16.mxu0 %vm1177_vm2, %v11040_v60 }
 0x43b   : > { %19900 = vst [vmem:[#allocation5_spill] sm:$0xff] %v19019_v52  ;;  %v19022_v14 = vpop.f32.mrb[14].mxu1 }
 0x43c   : > { %19901 = vst [vmem:[#allocation6_spill] sm:$0xff] %v19022_v14  ;;  %v19025_v37 = vpop.f32.mrb[15].mxu1 }
 0x43d   : > { %19902 = vst [vmem:[#allocation7_spill] sm:$0xff] %v19025_v37  ;;  %v16924_v37 = vld [vmem:[%s17020_s22 + $0x120] sm:$0xff]  }
 0x43e   : > { %14370 = vmatmul.mubr.msk.bf16.gmra.mrb[120].mxu1 %vm1177_vm2, %v4349_v54  ;;  %v11045_v54 = vrot.slane %v16920_v5, 3  ;;  %v5607_v5 = vshll.u32 %v18737_v58, 16  ;;  %v11049_v14 = vrot.slane %v16924_v37, 3  ;;  %v5622_v37 = vshrl.u32 %v18755_v3, 16 }
 0x43f   : > { %14373 = vmatprep.mubr.msk.bf16.mxu1 %vm1177_vm2, %v4351_v31  ;;  %v16921_v31 = vld [vmem:[%s17020_s22 + $0x118] sm:$0xff]  }
 0x440   : > { %v11047_v63 = vrot.slane %v16921_v31, 3 }
 0x441   : > { %v19042_v2 = vpop.f32.mrb[16].mxu1  ;;  %14992 = vmatmul.mubr.msk.bf16.gmra.mrb[52].mxu0 %vm1177_vm2, %v11042_v8  ;;  %v11046_v8 = vsel %vm10985_vm7, %v11043_v48, %v11045_v54  ;;  %v4357_v48 = vsel %vm2685_vm5, %v4354_v40, %v4356_v27  ;;  %v5613_v40 = vshrl.u32 %v18750_v44, 16 }
 0x442   : > { %19903 = vst [vmem:[#allocation10_spill] sm:$0xff] %v19042_v2  ;;  %v19045_v23 = vpop.f32.mrb[17].mxu1  ;;  %14995 = vmatprep.mubr.msk.bf16.mxu0 %vm1177_vm2, %v11044_v43 }
 0x443   : > { %19904 = vst [vmem:[#allocation8_spill] sm:$0xff] %v19045_v23  ;;  %v19048_v59 = vpop.f32.mrb[18].mxu1  ;;  %v16396_v23 = vld [vmem:[%s17020_s22 + $0x230] ss:$0 sps:$4 sm:$0x11]  }
 0x444   : > { %19905 = vst [vmem:[#allocation9_spill] sm:$0xff] %v19048_v59  ;;  %v19051_v60 = vpop.f32.mrb[19].mxu1 }
 0x445   : > { %19906 = vst [vmem:[#allocation11_spill] sm:$0xff] %v19051_v60  ;;  %v19065_v60 = vld [vmem:[%s17020_s22 + $0x228] sm:$0xff]  }
 0x446   : > { %14374 = vmatmul.mubr.msk.bf16.gmra.mrb[124].mxu1 %vm1177_vm2, %v4353_v42  ;;  %19908 = vst [vmem:[#allocation12_spill] sm:$0xff] %v19065_v60  ;;  %v4358_v43 = vrot.slane %v19065_v60, 1  ;;  %v11048_v42 = vsel %vm10985_vm7, %v11045_v54, %v11047_v63  ;;  %v5609_v60 = vrot.slane %v5607_v5, 2  ;;  %v16925_v54 = vld [vmem:[%s17020_s22 + $0x128] sm:$0xff]  }
 0x447   : > { %14377 = vmatprep.mubr.msk.bf16.mxu1 %vm1177_vm2, %v4355_v6  ;;  %v11051_v52 = vrot.slane %v16925_v54, 3  ;;  %v19915_v54 = vld [vmem:[#allocation4_spill] sm:$0xff] }
 0x448   : > { %v4359_v58 = vsel %vm2685_vm5, %v4356_v27, %v4358_v43  ;;  %v5625_v27 = vshll.u32 %v18755_v3, 16  ;;  %v16926_v3 = vld [vmem:[%s17020_s22 + $0x130] sm:$0xff]  }
 0x449   : > { %v19070_v31 = vpop.f32.mrb[20].mxu1  ;;  %14996 = vmatmul.mubr.msk.bf16.gmra.mrb[56].mxu0 %vm1177_vm2, %v11046_v8  ;;  %v4360_v8 = vrot.slane %v16396_v23, 1  ;;  %v11052_v5 = vsel %vm10985_vm7, %v11049_v14, %v11051_v52 }
 0x44a   : > { %19909 = vst [vmem:[#allocation13_spill] sm:$0xff] %v19070_v31  ;;  %v19073_v6 = vpop.f32.mrb[21].mxu1  ;;  %14999 = vmatprep.mubr.msk.bf16.mxu0 %vm1177_vm2, %v11048_v42  ;;  %v5606_v31 = vrot.slane %v5604_v1, 1  ;;  %v11050_v42 = vsel %vm10985_vm7, %v11047_v63, %v11049_v14  ;;  %v5624_v14 = vrot.slane %v5622_v37, 1  ;;  %v5643_v37 = vshll.u32 %v18773_v11, 16 }
 0x44b   : > { %19910 = vst [vmem:[#allocation15_spill] sm:$0xff] %v19073_v6  ;;  %v19076_v59 = vpop.f32.mrb[22].mxu1  ;;  %v5627_v6 = vrot.slane %v5625_v27, 2 }
 0x44c   : > { %19911 = vst [vmem:[#allocation18_spill] sm:$0xff] %v19076_v59  ;;  %v19080_v2 = vpop.f32.mrb[23].mxu1  ;;  %v5610_v59 = vor.u32 %v5609_v60, %v5606_v31  ;;  %v11053_v31 = vrot.slane %v16926_v3, 3 }
 0x44d   : > { %19912 = vst [vmem:[#allocation16_spill] sm:$0xff] %v19080_v2  ;;  %v5616_v2 = vshll.u32 %v18750_v44, 16  ;;  %v4361_v44 = vsel %vm2685_vm5, %v4358_v43, %v4360_v8  ;;  %v5634_v8 = vshll.u32 %v18768_v21, 16 }
 0x44e   : > { %14378 = vmatmul.mubr.msk.bf16.gmra.mrb[128].mxu1 %vm1177_vm2, %v4357_v48 }
 0x44f   : > { %14381 = vmatprep.mubr.msk.bf16.mxu1 %vm1177_vm2, %v4359_v58  ;;  %v5615_v58 = vrot.slane %v5613_v40, 1  ;;  %v5618_v63 = vrot.slane %v5616_v2, 2  ;;  %v5631_v2 = vshrl.u32 %v18768_v21, 16  ;;  %v11054_v40 = vsel %vm10985_vm7, %v11051_v52, %v11053_v31 }
 0x450   : > { %v5636_v52 = vrot.slane %v5634_v8, 2 }
 0x451   : > { %v19093_v1 = vpop.f32.mrb[24].mxu1  ;;  %15000 = vmatmul.mubr.msk.bf16.gmra.mrb[60].mxu0 %vm1177_vm2, %v11050_v42  ;;  %v5619_v43 = vor.u32 %v5618_v63, %v5615_v58  ;;  %v5628_v42 = vor.u32 %v5627_v6, %v5624_v14  ;;  %v5633_v58 = vrot.slane %v5631_v2, 1  ;;  %v16929_v14 = vld [vmem:[%s17020_s22 + $0x148] sm:$0xff]   ;;  %v5652_v2 = vshll.u32 %v18786_v33, 16 }
 0x452   : > { %19913 = vst [vmem:[#allocation17_spill] sm:$0xff] %v19093_v1  ;;  %v19096_v48 = vpop.f32.mrb[25].mxu1  ;;  %15003 = vmatprep.mubr.msk.bf16.mxu0 %vm1177_vm2, %v11052_v5  ;;  %v5611_v1 = vsel %vm5288_vm3, %v19915_v54, %v5610_v59  ;;  %v5640_v5 = vshrl.u32 %v18773_v11, 16  ;;  %v16928_v11 = vld [vmem:[%s17020_s22 + $0x140] sm:$0xff]  }
 0x453   : > { %19914 = vst [vmem:[#allocation19_spill] sm:$0xff] %v19096_v48  ;;  %v19099_v23 = vpop.f32.mrb[26].mxu1  ;;  %v16927_v48 = vld [vmem:[%s17020_s22 + $0x138] sm:$0xff]   ;;  %v5620_v21 = vsel %vm5288_vm3, %v5610_v59, %v5619_v43  ;;  %v11057_v63 = vrot.slane %v16928_v11, 3  ;;  %v5629_v3 = vsel %vm5288_vm3, %v5619_v43, %v5628_v42  ;;  %v5649_v59 = vshrl.u32 %v18786_v33, 16 }
 0x454   : > { %v19102_v60 = vpop.f32.mrb[27].mxu1  ;;  %v11055_v47 = vrot.slane %v16927_v48, 3  ;;  %v5642_v54 = vrot.slane %v5640_v5, 1  ;;  %v5658_v11 = vshrl.u32 %v18791_v24, 16  ;;  %v5661_v43 = vshll.u32 %v18791_v24, 16  ;;  %v16930_v24 = vld [vmem:[%s17020_s22 + $0x150] sm:$0xff]  }
 0x456   : > { %14382 = vmatmul.mubr.msk.bf16.gmra.mrb[132].mxu1 %vm1177_vm2, %v4361_v44  ;;  %v11056_v48 = vsel %vm10985_vm7, %v11053_v31, %v11055_v47  ;;  %v5645_v31 = vrot.slane %v5643_v37, 2  ;;  %v11058_v8 = vsel %vm10985_vm7, %v11055_v47, %v11057_v63  ;;  %v5654_v47 = vrot.slane %v5652_v2, 2 }
 0x457   : > { %14455 = vmatprep.mubr.msk.bf16.mxu1 %vm1177_vm2, %v5611_v1 }
 0x459   : > { %v19116_v27 = vpop.f32.mrb[28].mxu1  ;;  %15004 = vmatmul.mubr.msk.bf16.gmra.mrb[64].mxu0 %vm1177_vm2, %v11054_v40  ;;  %v5637_v40 = vor.u32 %v5636_v52, %v5633_v58  ;;  %v5651_v52 = vrot.slane %v5649_v59, 1  ;;  %v5670_v59 = vshll.u32 %v18804_v22, 16 }
 0x45a   : > { %v19119_v44 = vpop.f32.mrb[29].mxu1  ;;  %15007 = vmatprep.mubr.msk.bf16.mxu0 %vm1177_vm2, %v11056_v48  ;;  %v5646_v48 = vor.u32 %v5645_v31, %v5642_v54  ;;  %v11061_v54 = vrot.slane %v16930_v24, 3  ;;  %v5676_v24 = vshrl.u32 %v18809_v12, 16 }
 0x45b   : > { %19916 = vst [vmem:[#allocation22_spill] sm:$0xff] %v19119_v44  ;;  %v19122_v1 = vpop.f32.mrb[30].mxu1  ;;  %v11059_v44 = vrot.slane %v16929_v14, 3  ;;  %v5638_v33 = vsel %vm5288_vm3, %v5628_v42, %v5637_v40  ;;  %v5660_v14 = vrot.slane %v5658_v11, 1  ;;  %v5667_v42 = vshrl.u32 %v18804_v22, 16 }
 0x45c   : > { %v19125_v6 = vpop.f32.mrb[31].mxu1  ;;  %v5647_v31 = vsel %vm5288_vm3, %v5637_v40, %v5646_v48  ;;  %v5679_v40 = vshll.u32 %v18809_v12, 16  ;;  %v16932_v12 = vld [vmem:[%s17020_s22 + $0x160] sm:$0xff]  }
 0x45d   : > { %v11060_v37 = vsel %vm10985_vm7, %v11057_v63, %v11059_v44  ;;  %v5663_v63 = vrot.slane %v5661_v43, 2  ;;  %v11062_v2 = vsel %vm10985_vm7, %v11059_v44, %v11061_v54  ;;  %v5672_v44 = vrot.slane %v5670_v59, 2 }
 0x45e   : > { %14456 = vmatmul.mubr.msk.bf16.vlgmr.msra.gmra.mrb[68].mxu1 %vm1177_vm2, %v5620_v21 }
 0x45f   : > { %14459 = vmatprep.mubr.msk.bf16.mxu1 %vm1177_vm2, %v5629_v3 }
 0x461   : > { %v19138_v5 = vpop.f32.mrb[32].mxu1  ;;  %15008 = vmatmul.mubr.msk.bf16.gmra.mrb[68].mxu0 %vm1177_vm2, %v11058_v8  ;;  %v5655_v8 = vor.u32 %v5654_v47, %v5651_v52  ;;  %v5669_v52 = vrot.slane %v5667_v42, 1  ;;  %v5688_v42 = vshll.u32 %v18822_v55, 16 }
 0x462   : > { %19917 = vst [vmem:[#allocation20_spill] sm:$0xff] %v19138_v5  ;;  %v19141_v21 = vpop.f32.mrb[33].mxu1  ;;  %15011 = vmatprep.mubr.msk.bf16.mxu0 %vm1177_vm2, %v11060_v37  ;;  %v16931_v5 = vld [vmem:[%s17020_s22 + $0x158] sm:$0xff]   ;;  %v5664_v37 = vor.u32 %v5663_v63, %v5660_v14  ;;  %v5678_v63 = vrot.slane %v5676_v24, 1 }
 0x463   : > { %19918 = vst [vmem:[#allocation21_spill] sm:$0xff] %v19141_v21  ;;  %v19144_v58 = vpop.f32.mrb[34].mxu1  ;;  %v11063_v21 = vrot.slane %v16931_v5, 3  ;;  %v5656_v22 = vsel %vm5288_vm3, %v5646_v48, %v5655_v8  ;;  %v5685_v48 = vshrl.u32 %v18822_v55, 16 }
 0x464   : > { %v19147_v3 = vpop.f32.mrb[35].mxu1  ;;  %v5665_v14 = vsel %vm5288_vm3, %v5655_v8, %v5664_v37  ;;  %v5697_v8 = vshll.u32 %v18827_v61, 16 }
 0x465   : > { %v11064_v43 = vsel %vm10985_vm7, %v11061_v54, %v11063_v21  ;;  %v5681_v54 = vrot.slane %v5679_v40, 2 }
 0x466   : > { %14460 = vmatmul.mubr.msk.bf16.gmra.mrb[72].mxu1 %vm1177_vm2, %v5638_v33 }
 0x467   : > { %14463 = vmatprep.mubr.msk.bf16.mxu1 %vm1177_vm2, %v5647_v31  ;;  %v11065_v31 = vrot.slane %v16932_v12, 3  ;;  %v5694_v12 = vshrl.u32 %v18827_v61, 16  ;;  %v16934_v61 = vld [vmem:[%s17020_s22 + $0x170] sm:$0xff]  }
 0x469   : > { %v19160_v11 = vpop.f32.mrb[36].mxu1  ;;  %15012 = vmatmul.mubr.msk.bf16.gmra.mrb[72].mxu0 %vm1177_vm2, %v11062_v2  ;;  %v5673_v2 = vor.u32 %v5672_v44, %v5669_v52  ;;  %v11066_v59 = vsel %vm10985_vm7, %v11063_v21, %v11065_v31  ;;  %v5687_v52 = vrot.slane %v5685_v48, 1  ;;  %v5690_v21 = vrot.slane %v5688_v42, 2 }
 0x46a   : > { %19919 = vst [vmem:[#allocation23_spill] sm:$0xff] %v19160_v11  ;;  %v19163_v5 = vpop.f32.mrb[37].mxu1  ;;  %15015 = vmatprep.mubr.msk.bf16.mxu0 %vm1177_vm2, %v11064_v43  ;;  %v16933_v11 = vld [vmem:[%s17020_s22 + $0x168] sm:$0xff]   ;;  %v5682_v43 = vor.u32 %v5681_v54, %v5678_v63  ;;  %v5696_v54 = vrot.slane %v5694_v12, 1  ;;  %v5706_v48 = vshll.u32 %v18840_v49, 16 }
 0x46b   : > { %19920 = vst [vmem:[#allocation26_spill] sm:$0xff] %v19163_v5  ;;  %v19166_v33 = vpop.f32.mrb[38].mxu1  ;;  %v11067_v5 = vrot.slane %v16933_v11, 3  ;;  %v5674_v55 = vsel %vm5288_vm3, %v5664_v37, %v5673_v2  ;;  %v5703_v37 = vshrl.u32 %v18840_v49, 16 }
 0x46c   : > { %v19169_v47 = vpop.f32.mrb[39].mxu1  ;;  %v5683_v63 = vsel %vm5288_vm3, %v5673_v2, %v5682_v43  ;;  %v5715_v2 = vshll.u32 %v18845_v0, 16 }
 0x46d   : > { %v11068_v40 = vsel %vm10985_vm7, %v11065_v31, %v11067_v5  ;;  %v5699_v31 = vrot.slane %v5697_v8, 2 }
 0x46e   : > { %14464 = vmatmul.mubr.msk.bf16.gmra.mrb[76].mxu1 %vm1177_vm2, %v5656_v22 }
 0x46f   : > { %14467 = vmatprep.mubr.msk.bf16.mxu1 %vm1177_vm2, %v5665_v14  ;;  %v11069_v14 = vrot.slane %v16934_v61, 3  ;;  %v5712_v61 = vshrl.u32 %v18845_v0, 16  ;;  %v16936_v0 = vld [vmem:[%s17020_s22 + $0x180] sm:$0xff]  }
 0x471   : > { %v19182_v24 = vpop.f32.mrb[40].mxu1  ;;  %15016 = vmatmul.mubr.msk.bf16.gmra.mrb[76].mxu0 %vm1177_vm2, %v11066_v59  ;;  %v5691_v59 = vor.u32 %v5690_v21, %v5687_v52  ;;  %v11070_v42 = vsel %vm10985_vm7, %v11067_v5, %v11069_v14  ;;  %v5705_v52 = vrot.slane %v5703_v37, 1  ;;  %v5708_v5 = vrot.slane %v5706_v48, 2 }
 0x472   : > { %19921 = vst [vmem:[#allocation24_spill] sm:$0xff] %v19182_v24  ;;  %v19185_v11 = vpop.f32.mrb[41].mxu1  ;;  %15019 = vmatprep.mubr.msk.bf16.mxu0 %vm1177_vm2, %v11068_v40  ;;  %v16935_v24 = vld [vmem:[%s17020_s22 + $0x178] sm:$0xff]   ;;  %v5700_v40 = vor.u32 %v5699_v31, %v5696_v54  ;;  %v5714_v31 = vrot.slane %v5712_v61, 1  ;;  %v5724_v37 = vshll.u32 %v18858_v28, 16 }
 0x473   : > { %19922 = vst [vmem:[#allocation25_spill] sm:$0xff] %v19185_v11  ;;  %v19188_v22 = vpop.f32.mrb[42].mxu1  ;;  %v11071_v11 = vrot.slane %v16935_v24, 3  ;;  %v5692_v49 = vsel %vm5288_vm3, %v5682_v43, %v5691_v59  ;;  %v5721_v43 = vshrl.u32 %v18858_v28, 16 }
 0x474   : > { %v19191_v44 = vpop.f32.mrb[43].mxu1  ;;  %v5701_v54 = vsel %vm5288_vm3, %v5691_v59, %v5700_v40  ;;  %v5733_v59 = vshll.u32 %v18863_v26, 16 }
 0x475   : > { %v11072_v8 = vsel %vm10985_vm7, %v11069_v14, %v11071_v11  ;;  %v5717_v14 = vrot.slane %v5715_v2, 2 }
 0x476   : > { %14468 = vmatmul.mubr.msk.bf16.gmra.mrb[80].mxu1 %vm1177_vm2, %v5674_v55 }
 0x477   : > { %14471 = vmatprep.mubr.msk.bf16.mxu1 %vm1177_vm2, %v5683_v63  ;;  %v11073_v63 = vrot.slane %v16936_v0, 3  ;;  %v5730_v0 = vshrl.u32 %v18863_v26, 16  ;;  %v16938_v26 = vld [vmem:[%s17020_s22 + $0x190] sm:$0xff]  }
 0x479   : > { %v19204_v12 = vpop.f32.mrb[44].mxu1  ;;  %15020 = vmatmul.mubr.msk.bf16.gmra.mrb[80].mxu0 %vm1177_vm2, %v11070_v42  ;;  %v5709_v42 = vor.u32 %v5708_v5, %v5705_v52  ;;  %v11074_v48 = vsel %vm10985_vm7, %v11071_v11, %v11073_v63  ;;  %v5723_v52 = vrot.slane %v5721_v43, 1  ;;  %v5726_v11 = vrot.slane %v5724_v37, 2 }
 0x47a   : > { %19923 = vst [vmem:[#allocation27_spill] sm:$0xff] %v19204_v12  ;;  %v19207_v24 = vpop.f32.mrb[45].mxu1  ;;  %15023 = vmatprep.mubr.msk.bf16.mxu0 %vm1177_vm2, %v11072_v8  ;;  %v16937_v12 = vld [vmem:[%s17020_s22 + $0x188] sm:$0xff]   ;;  %v5718_v8 = vor.u32 %v5717_v14, %v5714_v31  ;;  %v5732_v14 = vrot.slane %v5730_v0, 1  ;;  %v5742_v43 = vshll.u32 %v18876_v38, 16 }
 0x47b   : > { %19924 = vst [vmem:[#allocation30_spill] sm:$0xff] %v19207_v24  ;;  %v19210_v55 = vpop.f32.mrb[46].mxu1  ;;  %v11075_v24 = vrot.slane %v16937_v12, 3  ;;  %v5710_v28 = vsel %vm5288_vm3, %v5700_v40, %v5709_v42  ;;  %v5739_v40 = vshrl.u32 %v18876_v38, 16 }
 0x47c   : > { %v19213_v21 = vpop.f32.mrb[47].mxu1  ;;  %v5719_v31 = vsel %vm5288_vm3, %v5709_v42, %v5718_v8  ;;  %v5751_v42 = vshll.u32 %v18881_v53, 16 }
 0x47d   : > { %v11076_v2 = vsel %vm10985_vm7, %v11073_v63, %v11075_v24  ;;  %v5735_v63 = vrot.slane %v5733_v59, 2 }
 0x47e   : > { %14472 = vmatmul.mubr.msk.bf16.gmra.mrb[84].mxu1 %vm1177_vm2, %v5692_v49 }
 0x47f   : > { %14475 = vmatprep.mubr.msk.bf16.mxu1 %vm1177_vm2, %v5701_v54  ;;  %v11077_v54 = vrot.slane %v16938_v26, 3  ;;  %v5748_v26 = vshrl.u32 %v18881_v53, 16  ;;  %v16940_v53 = vld [vmem:[%s17020_s22 + $0x1a0] sm:$0xff]  }
 0x481   : > { %v19226_v61 = vpop.f32.mrb[48].mxu1  ;;  %15024 = vmatmul.mubr.msk.bf16.gmra.mrb[84].mxu0 %vm1177_vm2, %v11074_v48  ;;  %v5727_v48 = vor.u32 %v5726_v11, %v5723_v52  ;;  %v11078_v37 = vsel %vm10985_vm7, %v11075_v24, %v11077_v54  ;;  %v5741_v52 = vrot.slane %v5739_v40, 1  ;;  %v5744_v24 = vrot.slane %v5742_v43, 2 }
 0x482   : > { %19925 = vst [vmem:[#allocation28_spill] sm:$0xff] %v19226_v61  ;;  %v19229_v12 = vpop.f32.mrb[49].mxu1  ;;  %15027 = vmatprep.mubr.msk.bf16.mxu0 %vm1177_vm2, %v11076_v2  ;;  %v16939_v61 = vld [vmem:[%s17020_s22 + $0x198] sm:$0xff]   ;;  %v5736_v2 = vor.u32 %v5735_v63, %v5732_v14  ;;  %v5750_v63 = vrot.slane %v5748_v26, 1  ;;  %v5760_v40 = vshll.u32 %v18894_v41, 16 }
 0x483   : > { %19926 = vst [vmem:[#allocation29_spill] sm:$0xff] %v19229_v12  ;;  %v19232_v49 = vpop.f32.mrb[50].mxu1  ;;  %v11079_v12 = vrot.slane %v16939_v61, 3  ;;  %v5728_v38 = vsel %vm5288_vm3, %v5718_v8, %v5727_v48  ;;  %v5757_v8 = vshrl.u32 %v18894_v41, 16 }
 0x484   : > { %v19235_v5 = vpop.f32.mrb[51].mxu1  ;;  %v5737_v14 = vsel %vm5288_vm3, %v5727_v48, %v5736_v2  ;;  %v5769_v48 = vshll.u32 %v18899_v18, 16 }
 0x485   : > { %v11080_v59 = vsel %vm10985_vm7, %v11077_v54, %v11079_v12  ;;  %v5753_v54 = vrot.slane %v5751_v42, 2 }
 0x486   : > { %14476 = vmatmul.mubr.msk.bf16.gmra.mrb[88].mxu1 %vm1177_vm2, %v5710_v28 }
 0x487   : > { %14479 = vmatprep.mubr.msk.bf16.mxu1 %vm1177_vm2, %v5719_v31  ;;  %v11081_v31 = vrot.slane %v16940_v53, 3  ;;  %v5766_v53 = vshrl.u32 %v18899_v18, 16  ;;  %v16942_v18 = vld [vmem:[%s17020_s22 + $0x1b0] sm:$0xff]  }
 0x489   : > { %v19248_v0 = vpop.f32.mrb[52].mxu1  ;;  %15028 = vmatmul.mubr.msk.bf16.gmra.mrb[88].mxu0 %vm1177_vm2, %v11078_v37  ;;  %v5745_v37 = vor.u32 %v5744_v24, %v5741_v52  ;;  %v11082_v43 = vsel %vm10985_vm7, %v11079_v12, %v11081_v31  ;;  %v5759_v52 = vrot.slane %v5757_v8, 1  ;;  %v5762_v12 = vrot.slane %v5760_v40, 2 }
 0x48a   : > { %19927 = vst [vmem:[#allocation31_spill] sm:$0xff] %v19248_v0  ;;  %v19251_v61 = vpop.f32.mrb[53].mxu1  ;;  %15031 = vmatprep.mubr.msk.bf16.mxu0 %vm1177_vm2, %v11080_v59  ;;  %v16941_v0 = vld [vmem:[%s17020_s22 + $0x1a8] sm:$0xff]   ;;  %v5754_v59 = vor.u32 %v5753_v54, %v5750_v63  ;;  %v5768_v54 = vrot.slane %v5766_v53, 1  ;;  %v5778_v8 = vshll.u32 %v18912_v62, 16 }
 0x48b   : > { %19928 = vst [vmem:[#allocation34_spill] sm:$0xff] %v19251_v61  ;;  %v19254_v28 = vpop.f32.mrb[54].mxu1  ;;  %v11083_v61 = vrot.slane %v16941_v0, 3  ;;  %v5746_v41 = vsel %vm5288_vm3, %v5736_v2, %v5745_v37  ;;  %v5775_v2 = vshrl.u32 %v18912_v62, 16 }
 0x48c   : > { %v19257_v11 = vpop.f32.mrb[55].mxu1  ;;  %v5755_v63 = vsel %vm5288_vm3, %v5745_v37, %v5754_v59  ;;  %v5787_v37 = vshll.u32 %v18917_v16, 16 }
 0x48d   : > { %v11084_v42 = vsel %vm10985_vm7, %v11081_v31, %v11083_v61  ;;  %v5771_v31 = vrot.slane %v5769_v48, 2 }
 0x48e   : > { %14480 = vmatmul.mubr.msk.bf16.gmra.mrb[92].mxu1 %vm1177_vm2, %v5728_v38 }
 0x48f   : > { %14483 = vmatprep.mubr.msk.bf16.mxu1 %vm1177_vm2, %v5737_v14  ;;  %v11085_v14 = vrot.slane %v16942_v18, 3  ;;  %v5784_v18 = vshrl.u32 %v18917_v16, 16  ;;  %v16944_v16 = vld [vmem:[%s17020_s22 + $0x1c0] sm:$0xff]  }
 0x491   : > { %v19270_v26 = vpop.f32.mrb[56].mxu1  ;;  %15032 = vmatmul.mubr.msk.bf16.gmra.mrb[92].mxu0 %vm1177_vm2, %v11082_v43  ;;  %v5763_v43 = vor.u32 %v5762_v12, %v5759_v52  ;;  %v11086_v40 = vsel %vm10985_vm7, %v11083_v61, %v11085_v14  ;;  %v5777_v52 = vrot.slane %v5775_v2, 1  ;;  %v5780_v61 = vrot.slane %v5778_v8, 2 }
 0x492   : > { %19929 = vst [vmem:[#allocation32_spill] sm:$0xff] %v19270_v26  ;;  %v19273_v0 = vpop.f32.mrb[57].mxu1  ;;  %15035 = vmatprep.mubr.msk.bf16.mxu0 %vm1177_vm2, %v11084_v42  ;;  %v16943_v26 = vld [vmem:[%s17020_s22 + $0x1b8] sm:$0xff]   ;;  %v5772_v42 = vor.u32 %v5771_v31, %v5768_v54  ;;  %v5786_v31 = vrot.slane %v5784_v18, 1  ;;  %v5796_v2 = vshll.u32 %v18930_v4, 16 }
 0x493   : > { %19930 = vst [vmem:[#allocation33_spill] sm:$0xff] %v19273_v0  ;;  %v19276_v38 = vpop.f32.mrb[58].mxu1  ;;  %v11087_v0 = vrot.slane %v16943_v26, 3  ;;  %v5764_v62 = vsel %vm5288_vm3, %v5754_v59, %v5763_v43  ;;  %v5793_v59 = vshrl.u32 %v18930_v4, 16 }
 0x494   : > { %v19279_v24 = vpop.f32.mrb[59].mxu1  ;;  %v5773_v54 = vsel %vm5288_vm3, %v5763_v43, %v5772_v42  ;;  %v5805_v43 = vshll.u32 %v18935_v36, 16 }
 0x495   : > { %v11088_v48 = vsel %vm10985_vm7, %v11085_v14, %v11087_v0  ;;  %v5789_v14 = vrot.slane %v5787_v37, 2 }
 0x496   : > { %14484 = vmatmul.mubr.msk.bf16.gmra.mrb[96].mxu1 %vm1177_vm2, %v5746_v41 }
 0x497   : > { %14487 = vmatprep.mubr.msk.bf16.mxu1 %vm1177_vm2, %v5755_v63  ;;  %v11089_v63 = vrot.slane %v16944_v16, 3  ;;  %v5802_v16 = vshrl.u32 %v18935_v36, 16  ;;  %v16946_v36 = vld [vmem:[%s17020_s22 + $0x1d0] sm:$0xff]  }
 0x499   : > { %v19292_v53 = vpop.f32.mrb[60].mxu1  ;;  %15036 = vmatmul.mubr.msk.bf16.gmra.mrb[96].mxu0 %vm1177_vm2, %v11086_v40  ;;  %v5781_v40 = vor.u32 %v5780_v61, %v5777_v52  ;;  %v11090_v8 = vsel %vm10985_vm7, %v11087_v0, %v11089_v63  ;;  %v5795_v52 = vrot.slane %v5793_v59, 1  ;;  %v5798_v0 = vrot.slane %v5796_v2, 2 }
 0x49a   : > { %19931 = vst [vmem:[#allocation35_spill] sm:$0xff] %v19292_v53  ;;  %v19295_v26 = vpop.f32.mrb[61].mxu1  ;;  %15039 = vmatprep.mubr.msk.bf16.mxu0 %vm1177_vm2, %v11088_v48  ;;  %v16945_v53 = vld [vmem:[%s17020_s22 + $0x1c8] sm:$0xff]   ;;  %v5790_v48 = vor.u32 %v5789_v14, %v5786_v31  ;;  %v5807_v14 = vrot.slane %v5805_v43, 2  ;;  %v5811_v59 = vshrl.u32 %v18956_v35, 16  ;;  %v5814_v2 = vshll.u32 %v18956_v35, 16 }
 0x49b   : > { %19932 = vst [vmem:[#allocation36_spill] sm:$0xff] %v19295_v26  ;;  %v19298_v41 = vpop.f32.mrb[62].mxu1  ;;  %v11091_v26 = vrot.slane %v16945_v53, 3  ;;  %v5782_v4 = vsel %vm5288_vm3, %v5772_v42, %v5781_v40  ;;  %v5799_v42 = vor.u32 %v5798_v0, %v5795_v52  ;;  %v16948_v43 = vld [vmem:[%s17020_s22 + $0x1e0] sm:$0xff]  }
 0x49c   : > { %v19301_v12 = vpop.f32.mrb[63].mxu1  ;;  %v5791_v31 = vsel %vm5288_vm3, %v5781_v40, %v5790_v48  ;;  %v5823_v40 = vshll.u32 %v18961_v34, 16  ;;  %v5813_v52 = vrot.slane %v5811_v59, 1  ;;  %v5816_v0 = vrot.slane %v5814_v2, 2 }
 0x49d   : > { %v11092_v37 = vsel %vm10985_vm7, %v11089_v63, %v11091_v26  ;;  %v5804_v63 = vrot.slane %v5802_v16, 1  ;;  %v5829_v59 = vshrl.u32 %v18982_v10, 16 }
 0x49e   : > { %14488 = vmatmul.mubr.msk.bf16.gmra.mrb[100].mxu1 %vm1177_vm2, %v5764_v62 }
 0x49f   : > { %14491 = vmatprep.mubr.msk.bf16.mxu1 %vm1177_vm2, %v5773_v54  ;;  %v11093_v54 = vrot.slane %v16946_v36, 3  ;;  %v5820_v36 = vshrl.u32 %v18961_v34, 16 }
 0x4a1   : > { %v19314_v18 = vpop.f32.mrb[64].mxu1  ;;  %15040 = vmatmul.mubr.msk.bf16.gmra.mrb[100].mxu0 %vm1177_vm2, %v11090_v8  ;;  %v11094_v8 = vsel %vm10985_vm7, %v11091_v26, %v11093_v54  ;;  %v5822_v26 = vrot.slane %v5820_v36, 1 }
 0x4a2   : > { %19933 = vst [vmem:[#allocation37_spill] sm:$0xff] %v19314_v18  ;;  %v19317_v53 = vpop.f32.mrb[65].mxu1  ;;  %15043 = vmatprep.mubr.msk.bf16.mxu0 %vm1177_vm2, %v11092_v37  ;;  %v5808_v37 = vor.u32 %v5807_v14, %v5804_v63  ;;  %v16949_v63 = vld [vmem:[%s17020_s22 + $0x1e8] sm:$0xff]  }
 0x4a3   : > { %19934 = vst [vmem:[#allocation3_spill] sm:$0xff] %v19317_v53  ;;  %v19320_v62 = vpop.f32.mrb[66].mxu1  ;;  %v16947_v53 = vld [vmem:[%s17020_s22 + $0x1d8] sm:$0xff]   ;;  %v11099_v14 = vrot.slane %v16949_v63, 3 }
 0x4a4   : > { %v19323_v61 = vpop.f32.mrb[67].mxu1  ;;  %v11095_v18 = vrot.slane %v16947_v53, 3  ;;  %v11097_v53 = vrot.slane %v16948_v43, 3  ;;  %v5809_v35 = vsel %vm5288_vm3, %v5799_v42, %v5808_v37  ;;  %v5841_v43 = vshll.u32 %v18987_v29, 16 }
 0x4a5   : > { %19935 = vst [vmem:[#allocation2_spill] sm:$0xff] %v19323_v61 }
 0x4a6   : > { %14492 = vmatmul.mubr.msk.bf16.gmra.mrb[104].mxu1 %vm1177_vm2, %v5782_v4  ;;  %v11096_v16 = vsel %vm10985_vm7, %v11093_v54, %v11095_v18  ;;  %v5800_v4 = vsel %vm5288_vm3, %v5790_v48, %v5799_v42  ;;  %v11098_v34 = vsel %vm10985_vm7, %v11095_v18, %v11097_v53  ;;  %v5817_v48 = vor.u32 %v5816_v0, %v5813_v52 }
 0x4a7   : > { %14495 = vmatprep.mubr.msk.bf16.mxu1 %vm1177_vm2, %v5791_v31  ;;  %v5825_v31 = vrot.slane %v5823_v40, 2  ;;  %v5832_v42 = vshll.u32 %v18982_v10, 16  ;;  %v16950_v10 = vld [vmem:[%s17020_s22 + $0x1f0] sm:$0xff]   ;;  %v5831_v0 = vrot.slane %v5829_v59, 1 }
 0x4a8   : > { %v11101_v52 = vrot.slane %v16950_v10, 3 }
 0x4a9   : > { %15044 = vmatmul.mubr.msk.bf16.gmra.mrb[104].mxu0 %vm1177_vm2, %v11094_v8  ;;  %v5826_v40 = vor.u32 %v5825_v31, %v5822_v26  ;;  %v16951_v26 = vld [vmem:[%s17020_s22 + $0x1f8] sm:$0xff]  }
 0x4aa   : > { %15047 = vmatprep.mubr.msk.bf16.mxu0 %vm1177_vm2, %v11096_v16  ;;  %v5838_v16 = vshrl.u32 %v18987_v29, 16  ;;  %v5834_v29 = vrot.slane %v5832_v42, 2  ;;  %v11103_v31 = vrot.slane %v16951_v26, 3  ;;  %v11102_v63 = vsel %vm10985_vm7, %v11099_v14, %v11101_v52 }
 0x4ac   : > { %v14941_v61 = vpop.f32.mrb[0].mxu0 }
 0x4ad   : > { %v15077_v54 = vadd.f32 %v14941_v61, %v18938_v46  ;;  %v11364_v8 = vpop.f32.mrb[1].mxu0  ;;  %v11100_v61 = vsel %vm10985_vm7, %v11097_v53, %v11099_v14  ;;  %v5843_v53 = vrot.slane %v5841_v43, 2  ;;  %v16952_v43 = vld [vmem:[%s17020_s22 + $0x200] sm:$0xff]  }
 0x4ae   : > { %14496 = vmatmul.mubr.msk.bf16.gmra.mrb[108].mxu1 %vm1177_vm2, %v5800_v4  ;;  %v15078_v2 = vadd.f32 %v11364_v8, %v18941_v56  ;;  %v14942_v36 = vpop.f32.mrb[2].mxu0  ;;  %v5818_v56 = vsel %vm5288_vm3, %v5808_v37, %v5817_v48  ;;  %v5847_v8 = vshrl.u32 %v19008_v17, 16 }
 0x4af   : > { %14499 = vmatprep.mubr.msk.bf16.mxu1 %vm1177_vm2, %v5809_v35  ;;  %16397 = vtanh.f32 %v15077_v54  ;;  %v15079_v46 = vadd.f32 %v14942_v36, %v18944_v9  ;;  %v11367_v18 = vpop.f32.mrb[3].mxu0  ;;  %v5827_v9 = vsel %vm5288_vm3, %v5817_v48, %v5826_v40  ;;  %v5840_v35 = vrot.slane %v5838_v16, 1 }
 0x4b0   : > { %16399 = vtanh.f32 %v15078_v2  ;;  %v15080_v4 = vadd.f32 %v11367_v18, %v18947_v30  ;;  %v5835_v54 = vor.u32 %v5834_v29, %v5831_v0  ;;  %v5850_v48 = vshll.u32 %v19008_v17, 16  ;;  %v16953_v0 = vld [vmem:[%s17020_s22 + $0x208] sm:$0xff]  }
 0x4b1   : > { %16401 = vtanh.f32 %v15079_v46  ;;  %15048 = vmatmul.mubr.msk.bf16.gmra.mrb[108].mxu0 %vm1177_vm2, %v11098_v34  ;;  %v5844_v2 = vor.u32 %v5843_v53, %v5840_v35  ;;  %v5856_v36 = vshrl.u32 %v19013_v50, 16  ;;  %v5859_v16 = vshll.u32 %v19013_v50, 16 }
 0x4b2   : > { %16403 = vtanh.f32 %v15080_v4  ;;  %15051 = vmatprep.mubr.msk.bf16.mxu0 %vm1177_vm2, %v11100_v61  ;;  %v11104_v17 = vsel %vm10985_vm7, %v11101_v52, %v11103_v31  ;;  %v11105_v46 = vrot.slane %v16952_v43, 3  ;;  %v5836_v18 = vsel %vm5288_vm3, %v5826_v40, %v5835_v54 }
 0x4b3   : > { %v5849_v61 = vrot.slane %v5847_v8, 1  ;;  %v5852_v4 = vrot.slane %v5850_v48, 2  ;;  %v5858_v10 = vrot.slane %v5856_v36, 1  ;;  %v5861_v52 = vrot.slane %v5859_v16, 2  ;;  %v16954_v16 = vld [vmem:[%s17020_s22 + $0x210] sm:$0xff]  }
 0x4b4   : > { %v14945_v30 = vpop.f32.mrb[4].mxu0  ;;  %v11107_v29 = vrot.slane %v16953_v0, 3  ;;  %v11106_v35 = vsel %vm10985_vm7, %v11103_v31, %v11105_v46  ;;  %v5874_v48 = vshrl.u32 %v19039_v39, 16  ;;  %v5877_v31 = vshll.u32 %v19039_v39, 16  ;;  %v19937_v0 = vld [vmem:[#allocation5_spill] sm:$0xff] }
 0x4b5   : > { %v15081_v34 = vadd.f32 %v14945_v30, %v18964_v45  ;;  %v11380_v37 = vpop.f32.mrb[5].mxu0  ;;  %v5853_v30 = vor.u32 %v5852_v4, %v5849_v61  ;;  %v5862_v8 = vor.u32 %v5861_v52, %v5858_v10  ;;  %v19936_v10 = vld [vmem:[#allocation14_spill] sm:$0xff] }
 0x4b6   : > { %14500 = vmatmul.mubr.msk.bf16.gmra.mrb[112].mxu1 %vm1177_vm2, %v5818_v56  ;;  %v15082_v59 = vadd.f32 %v11380_v37, %v18967_v57  ;;  %v14946_v42 = vpop.f32.mrb[6].mxu0  ;;  %v5883_v52 = vshrl.u32 %v19936_v10, 16 }
 0x4b7   : > { %14503 = vmatprep.mubr.msk.bf16.mxu1 %vm1177_vm2, %v5827_v9  ;;  %16405 = vtanh.f32 %v15081_v34  ;;  %v15083_v45 = vadd.f32 %v14946_v42, %v18970_v25  ;;  %v11383_v14 = vpop.f32.mrb[7].mxu0  ;;  %v5868_v34 = vshll.u32 %v19034_v7, 16  ;;  %v11108_v42 = vsel %vm10985_vm7, %v11105_v46, %v11107_v29  ;;  %v16955_v46 = vld [vmem:[%s17020_s22 + $0x218] sm:$0xff]  }
 0x4b8   : > { %16407 = vtanh.f32 %v15082_v59  ;;  %v15084_v57 = vadd.f32 %v11383_v14, %v18973_v51  ;;  %v5845_v51 = vsel %vm5288_vm3, %v5835_v54, %v5844_v2  ;;  %v5854_v39 = vsel %vm5288_vm3, %v5844_v2, %v5853_v30 }
 0x4b9   : > { %v16398_v50 = vpop.eup %16397  ;;  %16409 = vtanh.f32 %v15083_v45  ;;  %15052 = vmatmul.mubr.msk.bf16.gmra.mrb[112].mxu0 %vm1177_vm2, %v11102_v63  ;;  %v5865_v63 = vshrl.u32 %v19034_v7, 16  ;;  %v11109_v7 = vrot.slane %v16954_v16, 3  ;;  %v5870_v14 = vrot.slane %v5868_v34, 2 }
 0x4ba   : > { %v16400_v25 = vpop.eup %16399  ;;  %12182 = vst.msk [vmem:[%s19374_s11 + $0x10] sm:$0xff] %vm12179_vm8, %v16398_v50  ;;  %16411 = vtanh.f32 %v15084_v57  ;;  %15055 = vmatprep.mubr.msk.bf16.mxu0 %vm1177_vm2, %v11104_v17  ;;  %v5876_v17 = vrot.slane %v5874_v48, 1  ;;  %v5879_v57 = vrot.slane %v5877_v31, 2  ;;  %v11111_v50 = vrot.slane %v16955_v46, 3  ;;  %v16956_v48 = vld [vmem:[%s17020_s22 + $0x220] sm:$0xff]  }
 0x4bb   : > { %v16402_v56 = vpop.eup %16401  ;;  %12180 = vst.msk [vmem:[%s19374_s11] sm:$0xff] %vm12179_vm8, %v16400_v25  ;;  %v5867_v45 = vrot.slane %v5865_v63, 1  ;;  %v11110_v61 = vsel %vm10985_vm7, %v11107_v29, %v11109_v7  ;;  %v11113_v31 = vrot.slane %v16956_v48, 3 }
 0x4bc   : > { %v16404_v9 = vpop.eup %16403  ;;  %12183 = vst.msk [vmem:[%s19374_s11 + $0x18] sm:$0xff] %vm12179_vm8, %v16402_v56  ;;  %v14949_v40 = vpop.f32.mrb[8].mxu0  ;;  %v5886_v56 = vshll.u32 %v19936_v10, 16  ;;  %v11112_v34 = vsel %vm10985_vm7, %v11109_v7, %v11111_v50 }
 0x4bd   : > { %12181 = vst.msk [vmem:[%s19374_s11 + $0x8] sm:$0xff] %vm12179_vm8, %v16404_v9  ;;  %v15085_v53 = vadd.f32 %v14949_v40, %v18990_v13  ;;  %v11396_v26 = vpop.f32.mrb[9].mxu0  ;;  %v11114_v10 = vsel %vm10985_vm7, %v11111_v50, %v11113_v31 }
 0x4be   : > { %14504 = vmatmul.mubr.msk.bf16.gmra.mrb[116].mxu1 %vm1177_vm2, %v5836_v18  ;;  %v15086_v37 = vadd.f32 %v11396_v26, %v18993_v19  ;;  %v14950_v54 = vpop.f32.mrb[10].mxu0 }
 0x4bf   : > { %14507 = vmatprep.mubr.msk.bf16.mxu1 %vm1177_vm2, %v5845_v51  ;;  %16413 = vtanh.f32 %v15085_v53  ;;  %v15087_v13 = vadd.f32 %v14950_v54, %v18996_v20  ;;  %v11399_v59 = vpop.f32.mrb[11].mxu0  ;;  %v5871_v51 = vor.u32 %v5870_v14, %v5867_v45  ;;  %v19938_v53 = vld [vmem:[#allocation12_spill] sm:$0xff]  ;;  %v16957_v14 = vld [vmem:[%s17020_s22 + $0x228] sm:$0xff]  }
 0x4c0   : > { %16415 = vtanh.f32 %v15086_v37  ;;  %v15088_v36 = vadd.f32 %v11399_v59, %v18999_v32  ;;  %v5863_v32 = vsel %vm5288_vm3, %v5853_v30, %v5862_v8  ;;  %v5892_v26 = vshrl.u32 %v19938_v53, 16  ;;  %v19940_v37 = vld [vmem:[#allocation7_spill] sm:$0xff] }
 0x4c1   : > { %v16406_v19 = vpop.eup %16405  ;;  %16417 = vtanh.f32 %v15087_v13  ;;  %15056 = vmatmul.mubr.msk.bf16.gmra.mrb[116].mxu0 %vm1177_vm2, %v11106_v35  ;;  %v5880_v35 = vor.u32 %v5879_v57, %v5876_v17  ;;  %v5895_v29 = vshll.u32 %v19938_v53, 16  ;;  %v5872_v59 = vsel %vm5288_vm3, %v5862_v8, %v5871_v51  ;;  %v19941_v17 = vld [vmem:[#allocation10_spill] sm:$0xff]  ;;  %v19944_v53 = vld [vmem:[#allocation11_spill] sm:$0xff] }
 0x4c2   : > { %v16408_v20 = vpop.eup %16407  ;;  %12186 = vst.msk [vmem:[%s19374_s11 + $0x30] sm:$0xff] %vm12179_vm8, %v16406_v19  ;;  %16419 = vtanh.f32 %v15088_v36  ;;  %15059 = vmatprep.mubr.msk.bf16.mxu0 %vm1177_vm2, %v11108_v42  ;;  %v5885_v42 = vrot.slane %v5883_v52, 1  ;;  %v5888_v36 = vrot.slane %v5886_v56, 2  ;;  %v5894_v19 = vrot.slane %v5892_v26, 1  ;;  %v19943_v56 = vld [vmem:[#allocation9_spill] sm:$0xff] }
 0x4c3   : > { %v16410_v43 = vpop.eup %16409  ;;  %12184 = vst.msk [vmem:[%s19374_s11 + $0x20] sm:$0xff] %vm12179_vm8, %v16408_v20  ;;  %v5881_v7 = vsel %vm5288_vm3, %v5871_v51, %v5880_v35  ;;  %v11115_v20 = vrot.slane %v16957_v14, 3 }
 0x4c4   : > { %v16412_v18 = vpop.eup %16411  ;;  %12187 = vst.msk [vmem:[%s19374_s11 + $0x38] sm:$0xff] %vm12179_vm8, %v16410_v43  ;;  %v14953_v2 = vpop.f32.mrb[12].mxu0  ;;  %v5889_v46 = vor.u32 %v5888_v36, %v5885_v42  ;;  %v19945_v42 = vld [vmem:[#allocation13_spill] sm:$0xff] }
 0x4c5   : > { %12185 = vst.msk [vmem:[%s19374_s11 + $0x28] sm:$0xff] %vm12179_vm8, %v16412_v18  ;;  %v15089_v4 = vadd.f32 %v14953_v2, %v19016_v15  ;;  %v11412_v25 = vpop.f32.mrb[13].mxu0  ;;  %v19939_v15 = vld [vmem:[#allocation6_spill] sm:$0xff]  ;;  %v16958_v18 = vld [vmem:[%s17020_s22 + $0x230] ss:$0 sps:$4 sm:$0x33]  }
 0x4c6   : > { %14508 = vmatmul.mubr.msk.bf16.gmra.mrb[120].mxu1 %vm1177_vm2, %v5854_v39  ;;  %v15090_v9 = vadd.f32 %v11412_v25, %v19937_v0  ;;  %v14954_v40 = vpop.f32.mrb[14].mxu0  ;;  %v5897_v39 = vrot.slane %v5895_v29, 2  ;;  %v5901_v2 = vshrl.u32 %v16958_v18, 16  ;;  %v5890_v50 = vsel %vm5288_vm3, %v5880_v35, %v5889_v46 }
 0x4c7   : > { %14511 = vmatprep.mubr.msk.bf16.mxu1 %vm1177_vm2, %v5863_v32  ;;  %16421 = vtanh.f32 %v15089_v4  ;;  %v15091_v30 = vadd.f32 %v14954_v40, %v19939_v15  ;;  %v11415_v63 = vpop.f32.mrb[15].mxu0  ;;  %v19942_v4 = vld [vmem:[#allocation8_spill] sm:$0xff]  ;;  %v11116_v40 = vsel %vm10985_vm7, %v11113_v31, %v11115_v20  ;;  %v16960_v31 = vld [vmem:[%s17020_s22 + $0x238] sm:$0xff]  }
 0x4c8   : > { %16423 = vtanh.f32 %v15090_v9  ;;  %v15092_v54 = vadd.f32 %v11415_v63, %v19940_v37  ;;  %v5898_v52 = vor.u32 %v5897_v39, %v5894_v19  ;;  %v5903_v15 = vrot.slane %v5901_v2, 1  ;;  %v19946_v19 = vld [vmem:[#allocation15_spill] sm:$0xff] }
 0x4c9   : > { %v16414_v13 = vpop.eup %16413  ;;  %16425 = vtanh.f32 %v15091_v30  ;;  %15060 = vmatmul.mubr.msk.bf16.gmra.mrb[120].mxu0 %vm1177_vm2, %v11110_v61  ;;  %v5904_v61 = vshll.u32 %v16958_v18, 16 }
 0x4ca   : > { %v16416_v16 = vpop.eup %16415  ;;  %12190 = vst.msk [vmem:[%s19374_s11 + $0x50] sm:$0xff] %vm12179_vm8, %v16414_v13  ;;  %16427 = vtanh.f32 %v15092_v54  ;;  %15063 = vmatprep.mubr.msk.bf16.mxu0 %vm1177_vm2, %v11112_v34  ;;  %v16959_v34 = vld [vmem:[%s17020_s22 + $0x230] sm:$0xff]   ;;  %v5899_v54 = vsel %vm5288_vm3, %v5889_v46, %v5898_v52  ;;  %v11119_v13 = vrot.slane %v16960_v31, 3 }
 0x4cb   : > { %v16418_v45 = vpop.eup %16417  ;;  %12188 = vst.msk [vmem:[%s19374_s11 + $0x40] sm:$0xff] %vm12179_vm8, %v16416_v16  ;;  %v5906_v30 = vrot.slane %v5904_v61, 2  ;;  %v11117_v37 = vrot.slane %v16959_v34, 3 }
 0x4cc   : > { %v16420_v8 = vpop.eup %16419  ;;  %12191 = vst.msk [vmem:[%s19374_s11 + $0x58] sm:$0xff] %vm12179_vm8, %v16418_v45  ;;  %v14957_v32 = vpop.f32.mrb[16].mxu0 }
 0x4cd   : > { %12189 = vst.msk [vmem:[%s19374_s11 + $0x48] sm:$0xff] %vm12179_vm8, %v16420_v8  ;;  %v15093_v57 = vadd.f32 %v14957_v32, %v19941_v17  ;;  %v11428_v43 = vpop.f32.mrb[17].mxu0  ;;  %v11118_v14 = vsel %vm10985_vm7, %v11115_v20, %v11117_v37  ;;  %v19947_v8 = vld [vmem:[#allocation18_spill] sm:$0xff] }
 0x4ce   : > { %14512 = vmatmul.mubr.msk.bf16.gmra.mrb[124].mxu1 %vm1177_vm2, %v5872_v59  ;;  %v15094_v25 = vadd.f32 %v11428_v43, %v19942_v4  ;;  %v14958_v51 = vpop.f32.mrb[18].mxu0  ;;  %v19948_v43 = vld [vmem:[#allocation16_spill] sm:$0xff]  ;;  %v16961_v20 = vld [vmem:[%s17020_s22 + $0x240] ss:$0 sps:$4 sm:$0x77]  }
 0x4cf   : > { %14515 = vmatprep.mubr.msk.bf16.mxu1 %vm1177_vm2, %v5881_v7  ;;  %16429 = vtanh.f32 %v15093_v57  ;;  %v15095_v0 = vadd.f32 %v14958_v51, %v19943_v56  ;;  %v11431_v9 = vpop.f32.mrb[19].mxu0  ;;  %v5907_v7 = vor.u32 %v5906_v30, %v5903_v15  ;;  %v11120_v57 = vsel %vm10985_vm7, %v11117_v37, %v11119_v13 }
 0x4d0   : > { %16431 = vtanh.f32 %v15094_v25  ;;  %v15096_v26 = vadd.f32 %v11431_v9, %v19944_v53  ;;  %v11121_v4 = vrot.slane %v16961_v20, 3  ;;  %v19950_v9 = vld [vmem:[#allocation19_spill] sm:$0xff] }
 0x4d1   : > { %v16422_v29 = vpop.eup %16421  ;;  %16433 = vtanh.f32 %v15095_v0  ;;  %15064 = vmatmul.mubr.msk.bf16.gmra.mrb[124].mxu0 %vm1177_vm2, %v11114_v10  ;;  %v5908_v2 = vsel %vm5288_vm3, %v5898_v52, %v5907_v7  ;;  %v19949_v52 = vld [vmem:[#allocation17_spill] sm:$0xff] }
 0x4d2   : > { %v16424_v63 = vpop.eup %16423  ;;  %12194 = vst.msk [vmem:[%s19374_s11 + $0x70] sm:$0xff] %vm12179_vm8, %v16422_v29  ;;  %16435 = vtanh.f32 %v15096_v26  ;;  %15067 = vmatprep.mubr.msk.bf16.mxu0 %vm1177_vm2, %v11116_v40  ;;  %v11122_v26 = vsel %vm10985_vm7, %v11119_v13, %v11121_v4  ;;  %v19955_v4 = vld [vmem:[#allocation26_spill] sm:$0xff] }
 0x4d3   : > { %v16426_v48 = vpop.eup %16425  ;;  %12192 = vst.msk [vmem:[%s19374_s11 + $0x60] sm:$0xff] %vm12179_vm8, %v16424_v63 }
 0x4d4   : > { %v16428_v59 = vpop.eup %16427  ;;  %12195 = vst.msk [vmem:[%s19374_s11 + $0x78] sm:$0xff] %vm12179_vm8, %v16426_v48  ;;  %v14961_v35 = vpop.f32.mrb[20].mxu0  ;;  %v19951_v48 = vld [vmem:[#allocation22_spill] sm:$0xff] }
 0x4d5   : > { %12193 = vst.msk [vmem:[%s19374_s11 + $0x68] sm:$0xff] %vm12179_vm8, %v16428_v59  ;;  %v15097_v36 = vadd.f32 %v14961_v35, %v19945_v42  ;;  %v11444_v16 = vpop.f32.mrb[21].mxu0 }
 0x4d6   : > { %14516 = vmatmul.mubr.msk.bf16.gmra.mrb[128].mxu1 %vm1177_vm2, %v5890_v50  ;;  %v15098_v39 = vadd.f32 %v11444_v16, %v19946_v19  ;;  %v14962_v45 = vpop.f32.mrb[22].mxu0 }
 0x4d7   : > { %14519 = vmatprep.mubr.msk.bf16.mxu1 %vm1177_vm2, %v5899_v54  ;;  %16437 = vtanh.f32 %v15097_v36  ;;  %v15099_v32 = vadd.f32 %v14962_v45, %v19947_v8  ;;  %v11447_v17 = vpop.f32.mrb[23].mxu0  ;;  %v19953_v45 = vld [vmem:[#allocation21_spill] sm:$0xff] }
 0x4d8   : > { %16439 = vtanh.f32 %v15098_v39  ;;  %v15100_v46 = vadd.f32 %v11447_v17, %v19948_v43 }
 0x4d9   : > { %v16430_v18 = vpop.eup %16429  ;;  %16441 = vtanh.f32 %v15099_v32  ;;  %15068 = vmatmul.mubr.msk.bf16.gmra.mrb[128].mxu0 %vm1177_vm2, %v11118_v14 }
 0x4da   : > { %v16432_v61 = vpop.eup %16431  ;;  %12198 = vst.msk [vmem:[%s19374_s11 + $0x90] sm:$0xff] %vm12179_vm8, %v16430_v18  ;;  %16443 = vtanh.f32 %v15100_v46  ;;  %15071 = vmatprep.mubr.msk.bf16.mxu0 %vm1177_vm2, %v11120_v57 }
 0x4db   : > { %v16434_v25 = vpop.eup %16433  ;;  %12196 = vst.msk [vmem:[%s19374_s11 + $0x80] sm:$0xff] %vm12179_vm8, %v16432_v61 }
 0x4dc   : > { %v16436_v51 = vpop.eup %16435  ;;  %12199 = vst.msk [vmem:[%s19374_s11 + $0x98] sm:$0xff] %vm12179_vm8, %v16434_v25  ;;  %v14965_v10 = vpop.f32.mrb[24].mxu0 }
 0x4dd   : > { %12197 = vst.msk [vmem:[%s19374_s11 + $0x88] sm:$0xff] %vm12179_vm8, %v16436_v51  ;;  %v15101_v56 = vadd.f32 %v14965_v10, %v19949_v52  ;;  %v11460_v0 = vpop.f32.mrb[25].mxu0 }
 0x4de   : > { %14520 = vmatmul.mubr.msk.bf16.gmra.mrb[132].mxu1 %vm1177_vm2, %v5908_v2  ;;  %v15102_v40 = vadd.f32 %v11460_v0, %v19950_v9  ;;  %v14966_v53 = vpop.f32.mrb[26].mxu0 }
 0x4df   : > { %16445 = vtanh.f32 %v15101_v56  ;;  %v15103_v29 = vadd.f32 %v14966_v53, %v19099_v23  ;;  %v11463_v50 = vpop.f32.mrb[27].mxu0 }
 0x4e0   : > { %16447 = vtanh.f32 %v15102_v40  ;;  %v15104_v15 = vadd.f32 %v11463_v50, %v19102_v60  ;;  %v19957_v50 = vld [vmem:[#allocation25_spill] sm:$0xff] }
 0x4e1   : > { %v16438_v30 = vpop.eup %16437  ;;  %16449 = vtanh.f32 %v15103_v29  ;;  %15072 = vmatmul.mubr.msk.bf16.gmra.mrb[132].mxu0 %vm1177_vm2, %v11122_v26 }
 0x4e2   : > { %v16440_v63 = vpop.eup %16439  ;;  %12202 = vst.msk [vmem:[%s19374_s11 + $0xb0] sm:$0xff] %vm12179_vm8, %v16438_v30  ;;  %16451 = vtanh.f32 %v15104_v15 }
 0x4e3   : > { %v16442_v34 = vpop.eup %16441  ;;  %12200 = vst.msk [vmem:[%s19374_s11 + $0xa0] sm:$0xff] %vm12179_vm8, %v16440_v63 }
 0x4e4   : > { %v16444_v37 = vpop.eup %16443  ;;  %12203 = vst.msk [vmem:[%s19374_s11 + $0xb8] sm:$0xff] %vm12179_vm8, %v16442_v34  ;;  %v14969_v23 = vpop.f32.mrb[28].mxu0 }
 0x4e5   : > { %12201 = vst.msk [vmem:[%s19374_s11 + $0xa8] sm:$0xff] %vm12179_vm8, %v16444_v37  ;;  %v15105_v60 = vadd.f32 %v14969_v23, %v19116_v27  ;;  %v11476_v54 = vpop.f32.mrb[29].mxu0 }
 0x4e6   : > { %v15106_v31 = vadd.f32 %v11476_v54, %v19951_v48  ;;  %v14970_v13 = vpop.f32.mrb[30].mxu0 }
 0x4e7   : > { %16453 = vtanh.f32 %v15105_v60  ;;  %v15107_v59 = vadd.f32 %v14970_v13, %v19122_v1  ;;  %v11479_v35 = vpop.f32.mrb[31].mxu0  ;;  %v19952_v1 = vld [vmem:[#allocation20_spill] sm:$0xff] }
 0x4e8   : > { %16455 = vtanh.f32 %v15106_v31  ;;  %v15108_v42 = vadd.f32 %v11479_v35, %v19125_v6 }
 0x4e9   : > { %v16446_v36 = vpop.eup %16445  ;;  %16457 = vtanh.f32 %v15107_v59  ;;  %v19959_v59 = vld [vmem:[#allocation30_spill] sm:$0xff] }
 0x4ea   : > { %v16448_v16 = vpop.eup %16447  ;;  %12206 = vst.msk [vmem:[%s19374_s11 + $0xd0] sm:$0xff] %vm12179_vm8, %v16446_v36  ;;  %16459 = vtanh.f32 %v15108_v42 }
 0x4eb   : > { %v16450_v27 = vpop.eup %16449  ;;  %12204 = vst.msk [vmem:[%s19374_s11 + $0xc0] sm:$0xff] %vm12179_vm8, %v16448_v16 }
 0x4ec   : > { %v16452_v7 = vpop.eup %16451  ;;  %12207 = vst.msk [vmem:[%s19374_s11 + $0xd8] sm:$0xff] %vm12179_vm8, %v16450_v27  ;;  %v14973_v19 = vpop.f32.mrb[32].mxu0 }
 0x4ed   : > { %12205 = vst.msk [vmem:[%s19374_s11 + $0xc8] sm:$0xff] %vm12179_vm8, %v16452_v7  ;;  %v15109_v39 = vadd.f32 %v14973_v19, %v19952_v1  ;;  %v11492_v6 = vpop.f32.mrb[33].mxu0 }
 0x4ee   : > { %v15110_v14 = vadd.f32 %v11492_v6, %v19953_v45  ;;  %v14974_v8 = vpop.f32.mrb[34].mxu0 }
 0x4ef   : > { %16461 = vtanh.f32 %v15109_v39  ;;  %v15111_v32 = vadd.f32 %v14974_v8, %v19144_v58  ;;  %v11495_v17 = vpop.f32.mrb[35].mxu0  ;;  %v19954_v58 = vld [vmem:[#allocation23_spill] sm:$0xff] }
 0x4f0   : > { %16463 = vtanh.f32 %v15110_v14  ;;  %v15112_v57 = vadd.f32 %v11495_v17, %v19147_v3  ;;  %v19961_v14 = vld [vmem:[#allocation29_spill] sm:$0xff] }
 0x4f1   : > { %v16454_v43 = vpop.eup %16453  ;;  %16465 = vtanh.f32 %v15111_v32 }
 0x4f2   : > { %v16456_v46 = vpop.eup %16455  ;;  %12210 = vst.msk [vmem:[%s19374_s11 + $0xf0] sm:$0xff] %vm12179_vm8, %v16454_v43  ;;  %16467 = vtanh.f32 %v15112_v57 }
 0x4f3   : > { %v16458_v18 = vpop.eup %16457  ;;  %12208 = vst.msk [vmem:[%s19374_s11 + $0xe0] sm:$0xff] %vm12179_vm8, %v16456_v46 }
 0x4f4   : > { %v16460_v2 = vpop.eup %16459  ;;  %12211 = vst.msk [vmem:[%s19374_s11 + $0xf8] sm:$0xff] %vm12179_vm8, %v16458_v18  ;;  %v14977_v61 = vpop.f32.mrb[36].mxu0 }
 0x4f5   : > { %12209 = vst.msk [vmem:[%s19374_s11 + $0xe8] sm:$0xff] %vm12179_vm8, %v16460_v2  ;;  %v15113_v20 = vadd.f32 %v14977_v61, %v19954_v58  ;;  %v11508_v3 = vpop.f32.mrb[37].mxu0 }
 0x4f6   : > { %v15114_v25 = vadd.f32 %v11508_v3, %v19955_v4  ;;  %v14978_v51 = vpop.f32.mrb[38].mxu0  ;;  %v19963_v3 = vld [vmem:[#allocation34_spill] sm:$0xff] }
 0x4f7   : > { %16469 = vtanh.f32 %v15113_v20  ;;  %v15115_v10 = vadd.f32 %v14978_v51, %v19166_v33  ;;  %v11511_v52 = vpop.f32.mrb[39].mxu0  ;;  %v19956_v33 = vld [vmem:[#allocation24_spill] sm:$0xff] }
 0x4f8   : > { %16471 = vtanh.f32 %v15114_v25  ;;  %v15116_v56 = vadd.f32 %v11511_v52, %v19169_v47 }
 0x4f9   : > { %v16462_v0 = vpop.eup %16461  ;;  %16473 = vtanh.f32 %v15115_v10 }
 0x4fa   : > { %v16464_v9 = vpop.eup %16463  ;;  %12214 = vst.msk [vmem:[%s19374_s11 + $0x110] sm:$0xff] %vm12179_vm8, %v16462_v0  ;;  %16475 = vtanh.f32 %v15116_v56 }
 0x4fb   : > { %v16466_v40 = vpop.eup %16465  ;;  %12212 = vst.msk [vmem:[%s19374_s11 + $0x100] sm:$0xff] %vm12179_vm8, %v16464_v9 }
 0x4fc   : > { %v16468_v53 = vpop.eup %16467  ;;  %12215 = vst.msk [vmem:[%s19374_s11 + $0x118] sm:$0xff] %vm12179_vm8, %v16466_v40  ;;  %v14981_v26 = vpop.f32.mrb[40].mxu0 }
 0x4fd   : > { %12213 = vst.msk [vmem:[%s19374_s11 + $0x108] sm:$0xff] %vm12179_vm8, %v16468_v53  ;;  %v15117_v29 = vadd.f32 %v14981_v26, %v19956_v33  ;;  %v11524_v47 = vpop.f32.mrb[41].mxu0  ;;  %v19965_v33 = vld [vmem:[#allocation33_spill] sm:$0xff] }
 0x4fe   : > { %v15118_v15 = vadd.f32 %v11524_v47, %v19957_v50  ;;  %v14982_v30 = vpop.f32.mrb[42].mxu0 }
 0x4ff   : > { %16477 = vtanh.f32 %v15117_v29  ;;  %v15119_v63 = vadd.f32 %v14982_v30, %v19188_v22  ;;  %v11527_v34 = vpop.f32.mrb[43].mxu0  ;;  %v19958_v22 = vld [vmem:[#allocation27_spill] sm:$0xff] }
 0x500   : > { %16479 = vtanh.f32 %v15118_v15  ;;  %v15120_v37 = vadd.f32 %v11527_v34, %v19191_v44 }
 0x501   : > { %v16470_v23 = vpop.eup %16469  ;;  %16481 = vtanh.f32 %v15119_v63 }
 0x502   : > { %v16472_v60 = vpop.eup %16471  ;;  %12218 = vst.msk [vmem:[%s19374_s11 + $0x130] sm:$0xff] %vm12179_vm8, %v16470_v23  ;;  %16483 = vtanh.f32 %v15120_v37 }
 0x503   : > { %v16474_v54 = vpop.eup %16473  ;;  %12216 = vst.msk [vmem:[%s19374_s11 + $0x120] sm:$0xff] %vm12179_vm8, %v16472_v60 }
 0x504   : > { %v16476_v48 = vpop.eup %16475  ;;  %12219 = vst.msk [vmem:[%s19374_s11 + $0x138] sm:$0xff] %vm12179_vm8, %v16474_v54  ;;  %v14985_v31 = vpop.f32.mrb[44].mxu0 }
 0x505   : > { %12217 = vst.msk [vmem:[%s19374_s11 + $0x128] sm:$0xff] %vm12179_vm8, %v16476_v48  ;;  %v15121_v13 = vadd.f32 %v14985_v31, %v19958_v22  ;;  %v11540_v44 = vpop.f32.mrb[45].mxu0  ;;  %v19967_v48 = vld [vmem:[#allocation36_spill] sm:$0xff] }
 0x506   : > { %v15122_v35 = vadd.f32 %v11540_v44, %v19959_v59  ;;  %v14986_v42 = vpop.f32.mrb[46].mxu0 }
 0x507   : > { %16485 = vtanh.f32 %v15121_v13  ;;  %v15123_v36 = vadd.f32 %v14986_v42, %v19210_v55  ;;  %v11543_v16 = vpop.f32.mrb[47].mxu0  ;;  %v19960_v55 = vld [vmem:[#allocation28_spill] sm:$0xff] }
 0x508   : > { %16487 = vtanh.f32 %v15122_v35  ;;  %v15124_v27 = vadd.f32 %v11543_v16, %v19213_v21 }
 0x509   : > { %v16478_v7 = vpop.eup %16477  ;;  %16489 = vtanh.f32 %v15123_v36 }
 0x50a   : > { %v16480_v19 = vpop.eup %16479  ;;  %12222 = vst.msk [vmem:[%s19374_s11 + $0x150] sm:$0xff] %vm12179_vm8, %v16478_v7  ;;  %16491 = vtanh.f32 %v15124_v27 }
 0x50b   : > { %v16482_v1 = vpop.eup %16481  ;;  %12220 = vst.msk [vmem:[%s19374_s11 + $0x140] sm:$0xff] %vm12179_vm8, %v16480_v19 }
 0x50c   : > { %v16484_v39 = vpop.eup %16483  ;;  %12223 = vst.msk [vmem:[%s19374_s11 + $0x158] sm:$0xff] %vm12179_vm8, %v16482_v1  ;;  %v14989_v6 = vpop.f32.mrb[48].mxu0 }
 0x50d   : > { %12221 = vst.msk [vmem:[%s19374_s11 + $0x148] sm:$0xff] %vm12179_vm8, %v16484_v39  ;;  %v15125_v45 = vadd.f32 %v14989_v6, %v19960_v55  ;;  %v11556_v21 = vpop.f32.mrb[49].mxu0 }
 0x50e   : > { %v15126_v8 = vadd.f32 %v11556_v21, %v19961_v14  ;;  %v14990_v32 = vpop.f32.mrb[50].mxu0  ;;  %v19970_v21 = vld [vmem:[#allocation2_spill] sm:$0xff] }
 0x50f   : > { %16493 = vtanh.f32 %v15125_v45  ;;  %v15127_v17 = vadd.f32 %v14990_v32, %v19232_v49  ;;  %v11559_v57 = vpop.f32.mrb[51].mxu0  ;;  %v19962_v49 = vld [vmem:[#allocation31_spill] sm:$0xff] }
 0x510   : > { %16495 = vtanh.f32 %v15126_v8  ;;  %v15128_v43 = vadd.f32 %v11559_v57, %v19235_v5 }
 0x511   : > { %v16486_v46 = vpop.eup %16485  ;;  %16497 = vtanh.f32 %v15127_v17 }
 0x512   : > { %v16488_v18 = vpop.eup %16487  ;;  %12226 = vst.msk [vmem:[%s19374_s11 + $0x170] sm:$0xff] %vm12179_vm8, %v16486_v46  ;;  %16499 = vtanh.f32 %v15128_v43 }
 0x513   : > { %v16490_v2 = vpop.eup %16489  ;;  %12224 = vst.msk [vmem:[%s19374_s11 + $0x160] sm:$0xff] %vm12179_vm8, %v16488_v18 }
 0x514   : > { %v16492_v61 = vpop.eup %16491  ;;  %12227 = vst.msk [vmem:[%s19374_s11 + $0x178] sm:$0xff] %vm12179_vm8, %v16490_v2  ;;  %v14993_v58 = vpop.f32.mrb[52].mxu0 }
 0x515   : > { %12225 = vst.msk [vmem:[%s19374_s11 + $0x168] sm:$0xff] %vm12179_vm8, %v16492_v61  ;;  %v15129_v20 = vadd.f32 %v14993_v58, %v19962_v49  ;;  %v11572_v5 = vpop.f32.mrb[53].mxu0 }
 0x516   : > { %v15130_v4 = vadd.f32 %v11572_v5, %v19963_v3  ;;  %v14994_v25 = vpop.f32.mrb[54].mxu0 }
 0x517   : > { %16501 = vtanh.f32 %v15129_v20  ;;  %v15131_v51 = vadd.f32 %v14994_v25, %v19254_v28  ;;  %v11575_v10 = vpop.f32.mrb[55].mxu0  ;;  %v19964_v28 = vld [vmem:[#allocation32_spill] sm:$0xff] }
 0x518   : > { %16503 = vtanh.f32 %v15130_v4  ;;  %v15132_v52 = vadd.f32 %v11575_v10, %v19257_v11 }
 0x519   : > { %v16494_v56 = vpop.eup %16493  ;;  %16505 = vtanh.f32 %v15131_v51 }
 0x51a   : > { %v16496_v0 = vpop.eup %16495  ;;  %12230 = vst.msk [vmem:[%s19374_s11 + $0x190] sm:$0xff] %vm12179_vm8, %v16494_v56  ;;  %16507 = vtanh.f32 %v15132_v52 }
 0x51b   : > { %v16498_v9 = vpop.eup %16497  ;;  %12228 = vst.msk [vmem:[%s19374_s11 + $0x180] sm:$0xff] %vm12179_vm8, %v16496_v0 }
 0x51c   : > { %v16500_v40 = vpop.eup %16499  ;;  %12231 = vst.msk [vmem:[%s19374_s11 + $0x198] sm:$0xff] %vm12179_vm8, %v16498_v9  ;;  %v14997_v53 = vpop.f32.mrb[56].mxu0 }
 0x51d   : > { %12229 = vst.msk [vmem:[%s19374_s11 + $0x188] sm:$0xff] %vm12179_vm8, %v16500_v40  ;;  %v15133_v26 = vadd.f32 %v14997_v53, %v19964_v28  ;;  %v11588_v11 = vpop.f32.mrb[57].mxu0 }
 0x51e   : > { %v15134_v29 = vadd.f32 %v11588_v11, %v19965_v33  ;;  %v14998_v47 = vpop.f32.mrb[58].mxu0 }
 0x51f   : > { %16509 = vtanh.f32 %v15133_v26  ;;  %v15135_v50 = vadd.f32 %v14998_v47, %v19276_v38  ;;  %v11591_v15 = vpop.f32.mrb[59].mxu0  ;;  %v19966_v38 = vld [vmem:[#allocation35_spill] sm:$0xff] }
 0x520   : > { %16511 = vtanh.f32 %v15134_v29  ;;  %v15136_v30 = vadd.f32 %v11591_v15, %v19279_v24 }
 0x521   : > { %v16502_v63 = vpop.eup %16501  ;;  %16513 = vtanh.f32 %v15135_v50 }
 0x522   : > { %v16504_v34 = vpop.eup %16503  ;;  %12234 = vst.msk [vmem:[%s19374_s11 + $0x1b0] sm:$0xff] %vm12179_vm8, %v16502_v63  ;;  %16515 = vtanh.f32 %v15136_v30 }
 0x523   : > { %v16506_v37 = vpop.eup %16505  ;;  %12232 = vst.msk [vmem:[%s19374_s11 + $0x1a0] sm:$0xff] %vm12179_vm8, %v16504_v34 }
 0x524   : > { %v16508_v23 = vpop.eup %16507  ;;  %12235 = vst.msk [vmem:[%s19374_s11 + $0x1b8] sm:$0xff] %vm12179_vm8, %v16506_v37  ;;  %v15001_v60 = vpop.f32.mrb[60].mxu0 }
 0x525   : > { %12233 = vst.msk [vmem:[%s19374_s11 + $0x1a8] sm:$0xff] %vm12179_vm8, %v16508_v23  ;;  %v15137_v54 = vadd.f32 %v15001_v60, %v19966_v38  ;;  %v11604_v24 = vpop.f32.mrb[61].mxu0 }
 0x526   : > { %v15138_v31 = vadd.f32 %v11604_v24, %v19967_v48  ;;  %v15002_v22 = vpop.f32.mrb[62].mxu0 }
 0x527   : > { %16517 = vtanh.f32 %v15137_v54  ;;  %v15139_v13 = vadd.f32 %v15002_v22, %v19298_v41  ;;  %v11607_v44 = vpop.f32.mrb[63].mxu0  ;;  %v19968_v41 = vld [vmem:[#allocation37_spill] sm:$0xff] }
 0x528   : > { %16519 = vtanh.f32 %v15138_v31  ;;  %v15140_v59 = vadd.f32 %v11607_v44, %v19301_v12  ;;  %v19969_v12 = vld [vmem:[#allocation3_spill] sm:$0xff] }
 0x529   : > { %v16510_v35 = vpop.eup %16509  ;;  %16521 = vtanh.f32 %v15139_v13 }
 0x52a   : > { %v16512_v42 = vpop.eup %16511  ;;  %12238 = vst.msk [vmem:[%s19374_s11 + $0x1d0] sm:$0xff] %vm12179_vm8, %v16510_v35  ;;  %16523 = vtanh.f32 %v15140_v59 }
 0x52b   : > { %v16514_v36 = vpop.eup %16513  ;;  %12236 = vst.msk [vmem:[%s19374_s11 + $0x1c0] sm:$0xff] %vm12179_vm8, %v16512_v42 }
 0x52c   : > { %v16516_v16 = vpop.eup %16515  ;;  %12239 = vst.msk [vmem:[%s19374_s11 + $0x1d8] sm:$0xff] %vm12179_vm8, %v16514_v36  ;;  %v15005_v27 = vpop.f32.mrb[64].mxu0 }
 0x52d   : > { %12237 = vst.msk [vmem:[%s19374_s11 + $0x1c8] sm:$0xff] %vm12179_vm8, %v16516_v16  ;;  %v15141_v7 = vadd.f32 %v15005_v27, %v19968_v41  ;;  %v11620_v19 = vpop.f32.mrb[65].mxu0 }
 0x52e   : > { %v15142_v1 = vadd.f32 %v11620_v19, %v19969_v12  ;;  %v15006_v39 = vpop.f32.mrb[66].mxu0 }
 0x52f   : > { %16525 = vtanh.f32 %v15141_v7  ;;  %v15143_v6 = vadd.f32 %v15006_v39, %v19320_v62  ;;  %v11623_v55 = vpop.f32.mrb[67].mxu0 }
 0x530   : > { %16527 = vtanh.f32 %v15142_v1  ;;  %v15144_v14 = vadd.f32 %v11623_v55, %v19970_v21 }
 0x531   : > { %v14457_v45 = vpop.f32.mrb[68].mxu1  ;;  %v16518_v32 = vpop.eup %16517  ;;  %16529 = vtanh.f32 %v15143_v6 }
 0x532   : > { %v6422_v8 = vpop.f32.mrb[69].mxu1  ;;  %v16520_v57 = vpop.eup %16519  ;;  %12242 = vst.msk [vmem:[%s19374_s11 + $0x1f0] sm:$0xff] %vm12179_vm8, %v16518_v32  ;;  %16531 = vtanh.f32 %v15144_v14 }
 0x533   : > { %v14458_v17 = vpop.f32.mrb[70].mxu1  ;;  %v16522_v46 = vpop.eup %16521  ;;  %12240 = vst.msk [vmem:[%s19374_s11 + $0x1e0] sm:$0xff] %vm12179_vm8, %v16520_v57 }
 0x534   : > { %v6425_v43 = vpop.f32.mrb[71].mxu1  ;;  %v16524_v62 = vpop.eup %16523  ;;  %12243 = vst.msk [vmem:[%s19374_s11 + $0x1f8] sm:$0xff] %vm12179_vm8, %v16522_v46 }
 0x535   : > { %v15009_v18 = vpop.f32.mrb[68].mxu0  ;;  %12241 = vst.msk [vmem:[%s19374_s11 + $0x1e8] sm:$0xff] %vm12179_vm8, %v16524_v62 }
 0x536   : > { %v15145_v2 = vadd.f32 %v15009_v18, %v14457_v45  ;;  %v11636_v61 = vpop.f32.mrb[69].mxu0 }
 0x537   : > { %v15146_v58 = vadd.f32 %v11636_v61, %v6422_v8  ;;  %v15010_v49 = vpop.f32.mrb[70].mxu0 }
 0x538   : > { %16533 = vtanh.f32 %v15145_v2  ;;  %v15147_v20 = vadd.f32 %v15010_v49, %v14458_v17  ;;  %v11639_v5 = vpop.f32.mrb[71].mxu0 }
 0x539   : > { %v14461_v3 = vpop.f32.mrb[72].mxu1  ;;  %16535 = vtanh.f32 %v15146_v58  ;;  %v15148_v4 = vadd.f32 %v11639_v5, %v6425_v43  ;;  %v16526_v51 = vpop.eup %16525 }
 0x53a   : > { %v6438_v25 = vpop.f32.mrb[73].mxu1  ;;  %16537 = vtanh.f32 %v15147_v20  ;;  %v16528_v52 = vpop.eup %16527  ;;  %12246 = vst.msk [vmem:[%s19374_s11 + $0x210] sm:$0xff] %vm12179_vm8, %v16526_v51 }
 0x53b   : > { %v14462_v10 = vpop.f32.mrb[74].mxu1  ;;  %16539 = vtanh.f32 %v15148_v4  ;;  %v16530_v0 = vpop.eup %16529  ;;  %12244 = vst.msk [vmem:[%s19374_s11 + $0x200] sm:$0xff] %vm12179_vm8, %v16528_v52 }
 0x53c   : > { %v6441_v56 = vpop.f32.mrb[75].mxu1  ;;  %v16532_v9 = vpop.eup %16531  ;;  %12247 = vst.msk [vmem:[%s19374_s11 + $0x218] sm:$0xff] %vm12179_vm8, %v16530_v0 }
 0x53d   : > { %v15013_v40 = vpop.f32.mrb[72].mxu0  ;;  %12245 = vst.msk [vmem:[%s19374_s11 + $0x208] sm:$0xff] %vm12179_vm8, %v16532_v9 }
 0x53e   : > { %v15149_v53 = vadd.f32 %v15013_v40, %v14461_v3  ;;  %v11652_v28 = vpop.f32.mrb[73].mxu0 }
 0x53f   : > { %v15150_v26 = vadd.f32 %v11652_v28, %v6438_v25  ;;  %v15014_v11 = vpop.f32.mrb[74].mxu0 }
 0x540   : > { %16541 = vtanh.f32 %v15149_v53  ;;  %v15151_v33 = vadd.f32 %v15014_v11, %v14462_v10  ;;  %v11655_v29 = vpop.f32.mrb[75].mxu0 }
 0x541   : > { %v14465_v47 = vpop.f32.mrb[76].mxu1  ;;  %16543 = vtanh.f32 %v15150_v26  ;;  %v15152_v50 = vadd.f32 %v11655_v29, %v6441_v56 }
 0x542   : > { %v6454_v15 = vpop.f32.mrb[77].mxu1  ;;  %v16534_v30 = vpop.eup %16533  ;;  %16545 = vtanh.f32 %v15151_v33 }
 0x543   : > { %v14466_v63 = vpop.f32.mrb[78].mxu1  ;;  %v16536_v34 = vpop.eup %16535  ;;  %12250 = vst.msk [vmem:[%s19374_s11 + $0x230] sm:$0xff] %vm12179_vm8, %v16534_v30  ;;  %16547 = vtanh.f32 %v15152_v50 }
 0x544   : > { %v6457_v37 = vpop.f32.mrb[79].mxu1  ;;  %v16538_v23 = vpop.eup %16537  ;;  %12248 = vst.msk [vmem:[%s19374_s11 + $0x220] sm:$0xff] %vm12179_vm8, %v16536_v34 }
 0x545   : > { %v16540_v60 = vpop.eup %16539  ;;  %12251 = vst.msk [vmem:[%s19374_s11 + $0x238] sm:$0xff] %vm12179_vm8, %v16538_v23  ;;  %v15017_v38 = vpop.f32.mrb[76].mxu0 }
 0x546   : > { %12249 = vst.msk [vmem:[%s19374_s11 + $0x228] sm:$0xff] %vm12179_vm8, %v16540_v60  ;;  %v15153_v54 = vadd.f32 %v15017_v38, %v14465_v47  ;;  %v11668_v24 = vpop.f32.mrb[77].mxu0 }
 0x547   : > { %v15154_v48 = vadd.f32 %v11668_v24, %v6454_v15  ;;  %v15018_v31 = vpop.f32.mrb[78].mxu0 }
 0x548   : > { %16549 = vtanh.f32 %v15153_v54  ;;  %v15155_v22 = vadd.f32 %v15018_v31, %v14466_v63  ;;  %v11671_v13 = vpop.f32.mrb[79].mxu0 }
 0x549   : > { %v14469_v44 = vpop.f32.mrb[80].mxu1  ;;  %16551 = vtanh.f32 %v15154_v48  ;;  %v15156_v59 = vadd.f32 %v11671_v13, %v6457_v37 }
 0x54a   : > { %v6470_v35 = vpop.f32.mrb[81].mxu1  ;;  %v16542_v42 = vpop.eup %16541  ;;  %16553 = vtanh.f32 %v15155_v22 }
 0x54b   : > { %v14470_v36 = vpop.f32.mrb[82].mxu1  ;;  %v16544_v16 = vpop.eup %16543  ;;  %12254 = vst.msk [vmem:[%s19374_s11 + $0x250] sm:$0xff] %vm12179_vm8, %v16542_v42  ;;  %16555 = vtanh.f32 %v15156_v59 }
 0x54c   : > { %v6473_v27 = vpop.f32.mrb[83].mxu1  ;;  %v16546_v41 = vpop.eup %16545  ;;  %12252 = vst.msk [vmem:[%s19374_s11 + $0x240] sm:$0xff] %vm12179_vm8, %v16544_v16 }
 0x54d   : > { %v16548_v7 = vpop.eup %16547  ;;  %12255 = vst.msk [vmem:[%s19374_s11 + $0x258] sm:$0xff] %vm12179_vm8, %v16546_v41  ;;  %v15021_v19 = vpop.f32.mrb[80].mxu0 }
 0x54e   : > { %12253 = vst.msk [vmem:[%s19374_s11 + $0x248] sm:$0xff] %vm12179_vm8, %v16548_v7  ;;  %v15157_v12 = vadd.f32 %v15021_v19, %v14469_v44  ;;  %v11684_v1 = vpop.f32.mrb[81].mxu0 }
 0x54f   : > { %v15158_v39 = vadd.f32 %v11684_v1, %v6470_v35  ;;  %v15022_v6 = vpop.f32.mrb[82].mxu0 }
 0x550   : > { %16557 = vtanh.f32 %v15157_v12  ;;  %v15159_v55 = vadd.f32 %v15022_v6, %v14470_v36  ;;  %v11687_v45 = vpop.f32.mrb[83].mxu0 }
 0x551   : > { %v14473_v21 = vpop.f32.mrb[84].mxu1  ;;  %16559 = vtanh.f32 %v15158_v39  ;;  %v15160_v14 = vadd.f32 %v11687_v45, %v6473_v27 }
 0x552   : > { %v6486_v8 = vpop.f32.mrb[85].mxu1  ;;  %v16550_v32 = vpop.eup %16549  ;;  %16561 = vtanh.f32 %v15159_v55 }
 0x553   : > { %v14474_v17 = vpop.f32.mrb[86].mxu1  ;;  %v16552_v57 = vpop.eup %16551  ;;  %12258 = vst.msk [vmem:[%s19374_s11 + $0x270] sm:$0xff] %vm12179_vm8, %v16550_v32  ;;  %16563 = vtanh.f32 %v15160_v14 }
 0x554   : > { %v6489_v43 = vpop.f32.mrb[87].mxu1  ;;  %v16554_v46 = vpop.eup %16553  ;;  %12256 = vst.msk [vmem:[%s19374_s11 + $0x260] sm:$0xff] %vm12179_vm8, %v16552_v57 }
 0x555   : > { %v16556_v62 = vpop.eup %16555  ;;  %12259 = vst.msk [vmem:[%s19374_s11 + $0x278] sm:$0xff] %vm12179_vm8, %v16554_v46  ;;  %v15025_v18 = vpop.f32.mrb[84].mxu0 }
 0x556   : > { %12257 = vst.msk [vmem:[%s19374_s11 + $0x268] sm:$0xff] %vm12179_vm8, %v16556_v62  ;;  %v15161_v2 = vadd.f32 %v15025_v18, %v14473_v21  ;;  %v11700_v61 = vpop.f32.mrb[85].mxu0 }
 0x557   : > { %v15162_v58 = vadd.f32 %v11700_v61, %v6486_v8  ;;  %v15026_v49 = vpop.f32.mrb[86].mxu0 }
 0x558   : > { %16565 = vtanh.f32 %v15161_v2  ;;  %v15163_v20 = vadd.f32 %v15026_v49, %v14474_v17  ;;  %v11703_v5 = vpop.f32.mrb[87].mxu0 }
 0x559   : > { %v14477_v3 = vpop.f32.mrb[88].mxu1  ;;  %16567 = vtanh.f32 %v15162_v58  ;;  %v15164_v4 = vadd.f32 %v11703_v5, %v6489_v43 }
 0x55a   : > { %v6502_v25 = vpop.f32.mrb[89].mxu1  ;;  %v16558_v51 = vpop.eup %16557  ;;  %16569 = vtanh.f32 %v15163_v20 }
 0x55b   : > { %v14478_v10 = vpop.f32.mrb[90].mxu1  ;;  %v16560_v52 = vpop.eup %16559  ;;  %12262 = vst.msk [vmem:[%s19374_s11 + $0x290] sm:$0xff] %vm12179_vm8, %v16558_v51  ;;  %16571 = vtanh.f32 %v15164_v4 }
 0x55c   : > { %v6505_v56 = vpop.f32.mrb[91].mxu1  ;;  %v16562_v0 = vpop.eup %16561  ;;  %12260 = vst.msk [vmem:[%s19374_s11 + $0x280] sm:$0xff] %vm12179_vm8, %v16560_v52 }
 0x55d   : > { %v16564_v9 = vpop.eup %16563  ;;  %12263 = vst.msk [vmem:[%s19374_s11 + $0x298] sm:$0xff] %vm12179_vm8, %v16562_v0  ;;  %v15029_v40 = vpop.f32.mrb[88].mxu0 }
 0x55e   : > { %12261 = vst.msk [vmem:[%s19374_s11 + $0x288] sm:$0xff] %vm12179_vm8, %v16564_v9  ;;  %v15165_v53 = vadd.f32 %v15029_v40, %v14477_v3  ;;  %v11716_v28 = vpop.f32.mrb[89].mxu0 }
 0x55f   : > { %v15166_v26 = vadd.f32 %v11716_v28, %v6502_v25  ;;  %v15030_v11 = vpop.f32.mrb[90].mxu0 }
 0x560   : > { %16573 = vtanh.f32 %v15165_v53  ;;  %v15167_v33 = vadd.f32 %v15030_v11, %v14478_v10  ;;  %v11719_v29 = vpop.f32.mrb[91].mxu0 }
 0x561   : > { %v14481_v47 = vpop.f32.mrb[92].mxu1  ;;  %16575 = vtanh.f32 %v15166_v26  ;;  %v15168_v50 = vadd.f32 %v11719_v29, %v6505_v56 }
 0x562   : > { %v6518_v15 = vpop.f32.mrb[93].mxu1  ;;  %v16566_v30 = vpop.eup %16565  ;;  %16577 = vtanh.f32 %v15167_v33 }
 0x563   : > { %v14482_v63 = vpop.f32.mrb[94].mxu1  ;;  %v16568_v34 = vpop.eup %16567  ;;  %12266 = vst.msk [vmem:[%s19374_s11 + $0x2b0] sm:$0xff] %vm12179_vm8, %v16566_v30  ;;  %16579 = vtanh.f32 %v15168_v50 }
 0x564   : > { %v6521_v37 = vpop.f32.mrb[95].mxu1  ;;  %v16570_v23 = vpop.eup %16569  ;;  %12264 = vst.msk [vmem:[%s19374_s11 + $0x2a0] sm:$0xff] %vm12179_vm8, %v16568_v34 }
 0x565   : > { %v16572_v60 = vpop.eup %16571  ;;  %12267 = vst.msk [vmem:[%s19374_s11 + $0x2b8] sm:$0xff] %vm12179_vm8, %v16570_v23  ;;  %v15033_v38 = vpop.f32.mrb[92].mxu0 }
 0x566   : > { %12265 = vst.msk [vmem:[%s19374_s11 + $0x2a8] sm:$0xff] %vm12179_vm8, %v16572_v60  ;;  %v15169_v54 = vadd.f32 %v15033_v38, %v14481_v47  ;;  %v11732_v24 = vpop.f32.mrb[93].mxu0 }
 0x567   : > { %v15170_v48 = vadd.f32 %v11732_v24, %v6518_v15  ;;  %v15034_v31 = vpop.f32.mrb[94].mxu0 }
 0x568   : > { %16581 = vtanh.f32 %v15169_v54  ;;  %v15171_v22 = vadd.f32 %v15034_v31, %v14482_v63  ;;  %v11735_v13 = vpop.f32.mrb[95].mxu0 }
 0x569   : > { %v14485_v44 = vpop.f32.mrb[96].mxu1  ;;  %16583 = vtanh.f32 %v15170_v48  ;;  %v15172_v59 = vadd.f32 %v11735_v13, %v6521_v37 }
 0x56a   : > { %v6534_v35 = vpop.f32.mrb[97].mxu1  ;;  %v16574_v42 = vpop.eup %16573  ;;  %16585 = vtanh.f32 %v15171_v22 }
 0x56b   : > { %v14486_v36 = vpop.f32.mrb[98].mxu1  ;;  %v16576_v16 = vpop.eup %16575  ;;  %12270 = vst.msk [vmem:[%s19374_s11 + $0x2d0] sm:$0xff] %vm12179_vm8, %v16574_v42  ;;  %16587 = vtanh.f32 %v15172_v59 }
 0x56c   : > { %v6537_v27 = vpop.f32.mrb[99].mxu1  ;;  %v16578_v41 = vpop.eup %16577  ;;  %12268 = vst.msk [vmem:[%s19374_s11 + $0x2c0] sm:$0xff] %vm12179_vm8, %v16576_v16 }
 0x56d   : > { %v16580_v7 = vpop.eup %16579  ;;  %12271 = vst.msk [vmem:[%s19374_s11 + $0x2d8] sm:$0xff] %vm12179_vm8, %v16578_v41  ;;  %v15037_v19 = vpop.f32.mrb[96].mxu0 }
 0x56e   : > { %12269 = vst.msk [vmem:[%s19374_s11 + $0x2c8] sm:$0xff] %vm12179_vm8, %v16580_v7  ;;  %v15173_v12 = vadd.f32 %v15037_v19, %v14485_v44  ;;  %v11748_v1 = vpop.f32.mrb[97].mxu0 }
 0x56f   : > { %v15174_v39 = vadd.f32 %v11748_v1, %v6534_v35  ;;  %v15038_v6 = vpop.f32.mrb[98].mxu0 }
 0x570   : > { %16589 = vtanh.f32 %v15173_v12  ;;  %v15175_v55 = vadd.f32 %v15038_v6, %v14486_v36  ;;  %v11751_v45 = vpop.f32.mrb[99].mxu0 }
 0x571   : > { %v14489_v21 = vpop.f32.mrb[100].mxu1  ;;  %16591 = vtanh.f32 %v15174_v39  ;;  %v15176_v14 = vadd.f32 %v11751_v45, %v6537_v27 }
 0x572   : > { %v6550_v8 = vpop.f32.mrb[101].mxu1  ;;  %v16582_v32 = vpop.eup %16581  ;;  %16593 = vtanh.f32 %v15175_v55 }
 0x573   : > { %v14490_v17 = vpop.f32.mrb[102].mxu1  ;;  %v16584_v57 = vpop.eup %16583  ;;  %12274 = vst.msk [vmem:[%s19374_s11 + $0x2f0] sm:$0xff] %vm12179_vm8, %v16582_v32  ;;  %16595 = vtanh.f32 %v15176_v14 }
 0x574   : > { %v6553_v43 = vpop.f32.mrb[103].mxu1  ;;  %v16586_v46 = vpop.eup %16585  ;;  %12272 = vst.msk [vmem:[%s19374_s11 + $0x2e0] sm:$0xff] %vm12179_vm8, %v16584_v57 }
 0x575   : > { %v16588_v62 = vpop.eup %16587  ;;  %12275 = vst.msk [vmem:[%s19374_s11 + $0x2f8] sm:$0xff] %vm12179_vm8, %v16586_v46  ;;  %v15041_v18 = vpop.f32.mrb[100].mxu0 }
 0x576   : > { %12273 = vst.msk [vmem:[%s19374_s11 + $0x2e8] sm:$0xff] %vm12179_vm8, %v16588_v62  ;;  %v15177_v2 = vadd.f32 %v15041_v18, %v14489_v21  ;;  %v11764_v61 = vpop.f32.mrb[101].mxu0 }
 0x577   : > { %v15178_v58 = vadd.f32 %v11764_v61, %v6550_v8  ;;  %v15042_v49 = vpop.f32.mrb[102].mxu0 }
 0x578   : > { %16597 = vtanh.f32 %v15177_v2  ;;  %v15179_v20 = vadd.f32 %v15042_v49, %v14490_v17  ;;  %v11767_v5 = vpop.f32.mrb[103].mxu0 }
 0x579   : > { %v14493_v3 = vpop.f32.mrb[104].mxu1  ;;  %16599 = vtanh.f32 %v15178_v58  ;;  %v15180_v4 = vadd.f32 %v11767_v5, %v6553_v43 }
 0x57a   : > { %v6566_v25 = vpop.f32.mrb[105].mxu1  ;;  %v16590_v51 = vpop.eup %16589  ;;  %16601 = vtanh.f32 %v15179_v20 }
 0x57b   : > { %v14494_v10 = vpop.f32.mrb[106].mxu1  ;;  %v16592_v52 = vpop.eup %16591  ;;  %12278 = vst.msk [vmem:[%s19374_s11 + $0x310] sm:$0xff] %vm12179_vm8, %v16590_v51  ;;  %16603 = vtanh.f32 %v15180_v4 }
 0x57c   : > { %v6569_v56 = vpop.f32.mrb[107].mxu1  ;;  %v16594_v0 = vpop.eup %16593  ;;  %12276 = vst.msk [vmem:[%s19374_s11 + $0x300] sm:$0xff] %vm12179_vm8, %v16592_v52 }
 0x57d   : > { %v16596_v9 = vpop.eup %16595  ;;  %12279 = vst.msk [vmem:[%s19374_s11 + $0x318] sm:$0xff] %vm12179_vm8, %v16594_v0  ;;  %v15045_v40 = vpop.f32.mrb[104].mxu0 }
 0x57e   : > { %12277 = vst.msk [vmem:[%s19374_s11 + $0x308] sm:$0xff] %vm12179_vm8, %v16596_v9  ;;  %v15181_v53 = vadd.f32 %v15045_v40, %v14493_v3  ;;  %v11780_v28 = vpop.f32.mrb[105].mxu0 }
 0x57f   : > { %v15182_v26 = vadd.f32 %v11780_v28, %v6566_v25  ;;  %v15046_v11 = vpop.f32.mrb[106].mxu0 }
 0x580   : > { %16605 = vtanh.f32 %v15181_v53  ;;  %v15183_v33 = vadd.f32 %v15046_v11, %v14494_v10  ;;  %v11783_v29 = vpop.f32.mrb[107].mxu0 }
 0x581   : > { %v14497_v47 = vpop.f32.mrb[108].mxu1  ;;  %16607 = vtanh.f32 %v15182_v26  ;;  %v15184_v50 = vadd.f32 %v11783_v29, %v6569_v56 }
 0x582   : > { %v6582_v15 = vpop.f32.mrb[109].mxu1  ;;  %v16598_v30 = vpop.eup %16597  ;;  %16609 = vtanh.f32 %v15183_v33 }
 0x583   : > { %v14498_v63 = vpop.f32.mrb[110].mxu1  ;;  %v16600_v34 = vpop.eup %16599  ;;  %12282 = vst.msk [vmem:[%s19374_s11 + $0x330] sm:$0xff] %vm12179_vm8, %v16598_v30  ;;  %16611 = vtanh.f32 %v15184_v50 }
 0x584   : > { %v6585_v37 = vpop.f32.mrb[111].mxu1  ;;  %v16602_v23 = vpop.eup %16601  ;;  %12280 = vst.msk [vmem:[%s19374_s11 + $0x320] sm:$0xff] %vm12179_vm8, %v16600_v34 }
 0x585   : > { %v16604_v60 = vpop.eup %16603  ;;  %12283 = vst.msk [vmem:[%s19374_s11 + $0x338] sm:$0xff] %vm12179_vm8, %v16602_v23  ;;  %v15049_v38 = vpop.f32.mrb[108].mxu0 }
 0x586   : > { %12281 = vst.msk [vmem:[%s19374_s11 + $0x328] sm:$0xff] %vm12179_vm8, %v16604_v60  ;;  %v15185_v54 = vadd.f32 %v15049_v38, %v14497_v47  ;;  %v11796_v24 = vpop.f32.mrb[109].mxu0 }
 0x587   : > { %v15186_v48 = vadd.f32 %v11796_v24, %v6582_v15  ;;  %v15050_v31 = vpop.f32.mrb[110].mxu0 }
 0x588   : > { %16613 = vtanh.f32 %v15185_v54  ;;  %v15187_v22 = vadd.f32 %v15050_v31, %v14498_v63  ;;  %v11799_v13 = vpop.f32.mrb[111].mxu0 }
 0x589   : > { %v14501_v44 = vpop.f32.mrb[112].mxu1  ;;  %16615 = vtanh.f32 %v15186_v48  ;;  %v15188_v59 = vadd.f32 %v11799_v13, %v6585_v37 }
 0x58a   : > { %v6598_v35 = vpop.f32.mrb[113].mxu1  ;;  %v16606_v42 = vpop.eup %16605  ;;  %16617 = vtanh.f32 %v15187_v22 }
 0x58b   : > { %v14502_v36 = vpop.f32.mrb[114].mxu1  ;;  %v16608_v16 = vpop.eup %16607  ;;  %12286 = vst.msk [vmem:[%s19374_s11 + $0x350] sm:$0xff] %vm12179_vm8, %v16606_v42  ;;  %16619 = vtanh.f32 %v15188_v59 }
 0x58c   : > { %v6601_v27 = vpop.f32.mrb[115].mxu1  ;;  %v16610_v41 = vpop.eup %16609  ;;  %12284 = vst.msk [vmem:[%s19374_s11 + $0x340] sm:$0xff] %vm12179_vm8, %v16608_v16 }
 0x58d   : > { %v16612_v7 = vpop.eup %16611  ;;  %12287 = vst.msk [vmem:[%s19374_s11 + $0x358] sm:$0xff] %vm12179_vm8, %v16610_v41  ;;  %v15053_v19 = vpop.f32.mrb[112].mxu0 }
 0x58e   : > { %12285 = vst.msk [vmem:[%s19374_s11 + $0x348] sm:$0xff] %vm12179_vm8, %v16612_v7  ;;  %v15189_v12 = vadd.f32 %v15053_v19, %v14501_v44  ;;  %v11812_v1 = vpop.f32.mrb[113].mxu0 }
 0x58f   : > { %v15190_v39 = vadd.f32 %v11812_v1, %v6598_v35  ;;  %v15054_v6 = vpop.f32.mrb[114].mxu0 }
 0x590   : > { %16621 = vtanh.f32 %v15189_v12  ;;  %v15191_v55 = vadd.f32 %v15054_v6, %v14502_v36  ;;  %v11815_v45 = vpop.f32.mrb[115].mxu0 }
 0x591   : > { %v14505_v21 = vpop.f32.mrb[116].mxu1  ;;  %16623 = vtanh.f32 %v15190_v39  ;;  %v15192_v14 = vadd.f32 %v11815_v45, %v6601_v27 }
 0x592   : > { %v6614_v8 = vpop.f32.mrb[117].mxu1  ;;  %v16614_v32 = vpop.eup %16613  ;;  %16625 = vtanh.f32 %v15191_v55 }
 0x593   : > { %v14506_v17 = vpop.f32.mrb[118].mxu1  ;;  %v16616_v57 = vpop.eup %16615  ;;  %12290 = vst.msk [vmem:[%s19374_s11 + $0x370] sm:$0xff] %vm12179_vm8, %v16614_v32  ;;  %16627 = vtanh.f32 %v15192_v14 }
 0x594   : > { %v6617_v43 = vpop.f32.mrb[119].mxu1  ;;  %v16618_v46 = vpop.eup %16617  ;;  %12288 = vst.msk [vmem:[%s19374_s11 + $0x360] sm:$0xff] %vm12179_vm8, %v16616_v57 }
 0x595   : > { %v16620_v62 = vpop.eup %16619  ;;  %12291 = vst.msk [vmem:[%s19374_s11 + $0x378] sm:$0xff] %vm12179_vm8, %v16618_v46  ;;  %v15057_v18 = vpop.f32.mrb[116].mxu0 }
 0x596   : > { %12289 = vst.msk [vmem:[%s19374_s11 + $0x368] sm:$0xff] %vm12179_vm8, %v16620_v62  ;;  %v15193_v2 = vadd.f32 %v15057_v18, %v14505_v21  ;;  %v11828_v61 = vpop.f32.mrb[117].mxu0 }
 0x597   : > { %v15194_v58 = vadd.f32 %v11828_v61, %v6614_v8  ;;  %v15058_v49 = vpop.f32.mrb[118].mxu0 }
 0x598   : > { %16629 = vtanh.f32 %v15193_v2  ;;  %v15195_v20 = vadd.f32 %v15058_v49, %v14506_v17  ;;  %v11831_v5 = vpop.f32.mrb[119].mxu0 }
 0x599   : > { %v14509_v3 = vpop.f32.mrb[120].mxu1  ;;  %16631 = vtanh.f32 %v15194_v58  ;;  %v15196_v4 = vadd.f32 %v11831_v5, %v6617_v43 }
 0x59a   : > { %v6630_v25 = vpop.f32.mrb[121].mxu1  ;;  %v16622_v51 = vpop.eup %16621  ;;  %16633 = vtanh.f32 %v15195_v20 }
 0x59b   : > { %v14510_v10 = vpop.f32.mrb[122].mxu1  ;;  %v16624_v52 = vpop.eup %16623  ;;  %12294 = vst.msk [vmem:[%s19374_s11 + $0x390] sm:$0xff] %vm12179_vm8, %v16622_v51  ;;  %16635 = vtanh.f32 %v15196_v4 }
 0x59c   : > { %v6633_v56 = vpop.f32.mrb[123].mxu1  ;;  %v16626_v0 = vpop.eup %16625  ;;  %12292 = vst.msk [vmem:[%s19374_s11 + $0x380] sm:$0xff] %vm12179_vm8, %v16624_v52 }
 0x59d   : > { %v16628_v9 = vpop.eup %16627  ;;  %12295 = vst.msk [vmem:[%s19374_s11 + $0x398] sm:$0xff] %vm12179_vm8, %v16626_v0  ;;  %v15061_v40 = vpop.f32.mrb[120].mxu0 }
 0x59e   : > { %12293 = vst.msk [vmem:[%s19374_s11 + $0x388] sm:$0xff] %vm12179_vm8, %v16628_v9  ;;  %v15197_v53 = vadd.f32 %v15061_v40, %v14509_v3  ;;  %v11844_v28 = vpop.f32.mrb[121].mxu0 }
 0x59f   : > { %v15198_v26 = vadd.f32 %v11844_v28, %v6630_v25  ;;  %v15062_v11 = vpop.f32.mrb[122].mxu0 }
 0x5a0   : > { %16637 = vtanh.f32 %v15197_v53  ;;  %v15199_v33 = vadd.f32 %v15062_v11, %v14510_v10  ;;  %v11847_v29 = vpop.f32.mrb[123].mxu0 }
 0x5a1   : > { %v14513_v47 = vpop.f32.mrb[124].mxu1  ;;  %16639 = vtanh.f32 %v15198_v26  ;;  %v15200_v50 = vadd.f32 %v11847_v29, %v6633_v56 }
 0x5a2   : > { %v6646_v15 = vpop.f32.mrb[125].mxu1  ;;  %v16630_v30 = vpop.eup %16629  ;;  %16641 = vtanh.f32 %v15199_v33 }
 0x5a3   : > { %v14514_v63 = vpop.f32.mrb[126].mxu1  ;;  %v16632_v34 = vpop.eup %16631  ;;  %12298 = vst.msk [vmem:[%s19374_s11 + $0x3b0] sm:$0xff] %vm12179_vm8, %v16630_v30  ;;  %16643 = vtanh.f32 %v15200_v50 }
 0x5a4   : > { %v6649_v37 = vpop.f32.mrb[127].mxu1  ;;  %v16634_v23 = vpop.eup %16633  ;;  %12296 = vst.msk [vmem:[%s19374_s11 + $0x3a0] sm:$0xff] %vm12179_vm8, %v16632_v34 }
 0x5a5   : > { %v16636_v60 = vpop.eup %16635  ;;  %12299 = vst.msk [vmem:[%s19374_s11 + $0x3b8] sm:$0xff] %vm12179_vm8, %v16634_v23  ;;  %v15065_v38 = vpop.f32.mrb[124].mxu0 }
 0x5a6   : > { %12297 = vst.msk [vmem:[%s19374_s11 + $0x3a8] sm:$0xff] %vm12179_vm8, %v16636_v60  ;;  %v15201_v54 = vadd.f32 %v15065_v38, %v14513_v47  ;;  %v11860_v24 = vpop.f32.mrb[125].mxu0 }
 0x5a7   : > { %v15202_v48 = vadd.f32 %v11860_v24, %v6646_v15  ;;  %v15066_v31 = vpop.f32.mrb[126].mxu0 }
 0x5a8   : > { %16645 = vtanh.f32 %v15201_v54  ;;  %v15203_v22 = vadd.f32 %v15066_v31, %v14514_v63  ;;  %v11863_v13 = vpop.f32.mrb[127].mxu0 }
 0x5a9   : > { %v14517_v44 = vpop.f32.mrb[128].mxu1  ;;  %16647 = vtanh.f32 %v15202_v48  ;;  %v15204_v59 = vadd.f32 %v11863_v13, %v6649_v37 }
 0x5aa   : > { %v6662_v35 = vpop.f32.mrb[129].mxu1  ;;  %v16638_v42 = vpop.eup %16637  ;;  %16649 = vtanh.f32 %v15203_v22 }
 0x5ab   : > { %v14518_v36 = vpop.f32.mrb[130].mxu1  ;;  %v16640_v16 = vpop.eup %16639  ;;  %12302 = vst.msk [vmem:[%s19374_s11 + $0x3d0] sm:$0xff] %vm12179_vm8, %v16638_v42  ;;  %16651 = vtanh.f32 %v15204_v59 }
 0x5ac   : > { %v6665_v27 = vpop.f32.mrb[131].mxu1  ;;  %v16642_v41 = vpop.eup %16641  ;;  %12300 = vst.msk [vmem:[%s19374_s11 + $0x3c0] sm:$0xff] %vm12179_vm8, %v16640_v16 }
 0x5ad   : > { %v16644_v7 = vpop.eup %16643  ;;  %12303 = vst.msk [vmem:[%s19374_s11 + $0x3d8] sm:$0xff] %vm12179_vm8, %v16642_v41  ;;  %v15069_v19 = vpop.f32.mrb[128].mxu0 }
 0x5ae   : > { %12301 = vst.msk [vmem:[%s19374_s11 + $0x3c8] sm:$0xff] %vm12179_vm8, %v16644_v7  ;;  %v15205_v12 = vadd.f32 %v15069_v19, %v14517_v44  ;;  %v11876_v1 = vpop.f32.mrb[129].mxu0 }
 0x5af   : > { %v15206_v39 = vadd.f32 %v11876_v1, %v6662_v35  ;;  %v15070_v6 = vpop.f32.mrb[130].mxu0 }
 0x5b0   : > { %16653 = vtanh.f32 %v15205_v12  ;;  %v15207_v55 = vadd.f32 %v15070_v6, %v14518_v36  ;;  %v11879_v45 = vpop.f32.mrb[131].mxu0 }
 0x5b1   : > { %v14521_v21 = vpop.f32.mrb[132].mxu1  ;;  %16655 = vtanh.f32 %v15206_v39  ;;  %v15208_v14 = vadd.f32 %v11879_v45, %v6665_v27 }
 0x5b2   : > { %v6678_v8 = vpop.f32.mrb[133].mxu1  ;;  %v16646_v32 = vpop.eup %16645  ;;  %16657 = vtanh.f32 %v15207_v55 }
 0x5b3   : > { %v14522_v17 = vpop.f32.mrb[134].mxu1  ;;  %v16648_v57 = vpop.eup %16647  ;;  %12306 = vst.msk [vmem:[%s19374_s11 + $0x3f0] sm:$0xff] %vm12179_vm8, %v16646_v32  ;;  %16659 = vtanh.f32 %v15208_v14 }
 0x5b4   : > { %v6681_v43 = vpop.f32.mrb[135].mxu1  ;;  %v16650_v46 = vpop.eup %16649  ;;  %12304 = vst.msk [vmem:[%s19374_s11 + $0x3e0] sm:$0xff] %vm12179_vm8, %v16648_v57 }
 0x5b5   : > { %v16652_v62 = vpop.eup %16651  ;;  %12307 = vst.msk [vmem:[%s19374_s11 + $0x3f8] sm:$0xff] %vm12179_vm8, %v16650_v46  ;;  %v15073_v18 = vpop.f32.mrb[132].mxu0 }
 0x5b6   : > { %12305 = vst.msk [vmem:[%s19374_s11 + $0x3e8] sm:$0xff] %vm12179_vm8, %v16652_v62  ;;  %v15209_v2 = vadd.f32 %v15073_v18, %v14521_v21  ;;  %v11892_v61 = vpop.f32.mrb[133].mxu0 }
 0x5b7   : > { %v15210_v58 = vadd.f32 %v11892_v61, %v6678_v8  ;;  %v15074_v49 = vpop.f32.mrb[134].mxu0 }
 0x5b8   : > { %16661 = vtanh.f32 %v15209_v2  ;;  %v15211_v20 = vadd.f32 %v15074_v49, %v14522_v17  ;;  %v11895_v5 = vpop.f32.mrb[135].mxu0 }
 0x5b9   : > { %16663 = vtanh.f32 %v15210_v58  ;;  %v15212_v3 = vadd.f32 %v11895_v5, %v6681_v43 }
 0x5ba   : > { %v16654_v4 = vpop.eup %16653  ;;  %16665 = vtanh.f32 %v15211_v20 }
 0x5bb   : > { %v16656_v25 = vpop.eup %16655  ;;  %12310 = vst.msk [vmem:[%s19374_s11 + $0x410] sm:$0xff] %vm12179_vm8, %v16654_v4  ;;  %16667 = vtanh.f32 %v15212_v3 }
 0x5bc   : > { %v16658_v51 = vpop.eup %16657  ;;  %12308 = vst.msk [vmem:[%s19374_s11 + $0x400] sm:$0xff] %vm12179_vm8, %v16656_v25 }
 0x5bd   : > { %v16660_v10 = vpop.eup %16659  ;;  %12311 = vst.msk [vmem:[%s19374_s11 + $0x418] sm:$0xff] %vm12179_vm8, %v16658_v51 }
 0x5be   : > { %12309 = vst.msk [vmem:[%s19374_s11 + $0x408] sm:$0xff] %vm12179_vm8, %v16660_v10 }
 0x5c2   : > { %v16662_v52 = vpop.eup %16661 }
 0x5c3   : > { %v16664_v56 = vpop.eup %16663  ;;  %12314 = vst.msk [vmem:[%s19374_s11 + $0x430] sm:$0xff] %vm12179_vm8, %v16662_v52 }
 0x5c4   : > { %v16666_v0 = vpop.eup %16665  ;;  %12312 = vst.msk [vmem:[%s19374_s11 + $0x420] sm:$0xff] %vm12179_vm8, %v16664_v56 }
 0x5c5   : > { %v16668_v9 = vpop.eup %16667  ;;  %12315 = vst.msk [vmem:[%s19374_s11 + $0x438] sm:$0xff] %vm12179_vm8, %v16666_v0 }
 0x5c6   : > { %12313 = vst.msk [vmem:[%s19374_s11 + $0x428] sm:$0xff] %vm12179_vm8, %v16668_v9 }
 0x5c7 PF: > { %s12_s9 = sadd.s32 1, %s16968_s9  }
 0x5c8   : > { %p9_p4 = scmp.ge.s32.totalorder %s12_s9, 4  }
 0x5ca   :  { %11 = sbr.rel (!%p9_p4) target bundleno = 1 (0x1), region = 66 }

</bundles_post_ra>
